<compile_context>
chip_gen: v7x
topology: tpu7x:2x2x1
jax: 0.10.0
libtpu: 0.0.40
codegen_flags: <defaults>
</compile_context>

<pallas_src>
import functools

import jax
import jax.numpy as jnp
import numpy as np
from jax import lax
from jax.experimental import pallas as pl
from jax.experimental.pallas import tpu as pltpu


# ----------------------------------------------------------------------------
# Generation-aware sizing helpers
# ----------------------------------------------------------------------------
def _round_up(x, m):
    return ((x + m - 1) // m) * m


@functools.lru_cache(maxsize=None)
def _vmem_capacity_bytes():
    try:
        info = pltpu.get_tpu_info()
        cap = getattr(info, "vmem_capacity_bytes", None)
        if cap:
            return int(cap)
    except Exception:
        pass
    return 64 * 1024 * 1024      # conservative fallback (v7x-sized)


def _vmem_limit_bytes():
    # ~75% of physical VMEM, capped at 100 MiB: ~96 MiB on 128 MiB parts (v5e/v6e),
    # ~48 MiB on 64 MiB parts (v7x).
    return int(min(_vmem_capacity_bytes() * 3 // 4, 100 * 1024 * 1024))


def _pick_time_tile(seq_len, batch_block, hidden, max_in_dim, vmem_limit):
    """Largest time chunk whose (double-buffered) streamed blocks fit a VMEM budget."""
    budget = int(vmem_limit * 0.5)
    # resident bf16 weights, both directions, assume pipeline keeps 2 buffers
    weight_bytes = 2 * 2 * 2 * (max_in_dim * 4 * hidden + hidden * 4 * hidden)
    # per-timestep streamed bytes: fwd+bwd ordered bf16 input streams + 2 bf16 output
    # streams, each double buffered
    per_step = 8 * batch_block * (max_in_dim + hidden)
    tc = (budget - weight_bytes) // max(per_step, 1)
    tc = int(max(1, min(tc, 32, seq_len)))
    # prefer a nearby divisor of seq_len (avoids time padding) if one exists
    for cand in range(tc, max(1, tc // 2) - 1, -1):
        if seq_len % cand == 0:
            return cand
    return tc


def _pick_row_tile(t_pad, b_pad, hidden, out_size, vmem_limit):
    """Row tile (multiple of the padded batch) for the LayerNorm+Linear kernel."""
    target_rows = 2048 if vmem_limit >= (72 << 20) else 1024
    per_row = 2 * 2 * hidden * 2 + 2 * out_size * 4      # bf16 halves in + f32 out, x2 buffers
    budget_rows = max(8, int(vmem_limit * 0.4) // max(per_row, 1))
    k_target = max(1, min(t_pad, min(target_rows, budget_rows) // max(b_pad, 1)))
    for k in range(k_target, 0, -1):
        if t_pad % k == 0:
            return b_pad * k
    return b_pad


# ----------------------------------------------------------------------------
# Kernel 1: fused bidirectional LSTM layer (input projection + recurrence, both directions)
# ----------------------------------------------------------------------------
def _make_layer_kernel(hidden, tc, nc, n_in):
    H = hidden

    def kernel(*refs):
        it = iter(refs)
        len_ref = next(it)                                  # (Bb, 1) int32, resident
        xs_f = [next(it) for _ in range(n_in)]              # fwd-ordered (tc, Bb, Din_i) bf16
        xs_b = [next(it) for _ in range(n_in)]              # bwd-ordered (tc, Bb, Din_i) bf16
        w_f = [next(it) for _ in range(n_in)]               # (Din_i, 4H) bf16 -> fwd gates
        w_b = [next(it) for _ in range(n_in)]               # (Din_i, 4H) bf16 -> bwd gates
        whh_f = next(it)                                    # (H, 4H) bf16
        whh_b = next(it)                                    # (H, 4H) bf16
        b_f = next(it)                                      # (1, 4H) f32
        b_b = next(it)                                      # (1, 4H) f32
        of_ref = next(it)                                   # (tc, Bb, H) bf16
        ob_ref = next(it)                                   # (tc, Bb, H) bf16
        hf_s, cf_s, hb_s, cb_s = (next(it) for _ in range(4))   # (Bb, H) f32 carries

        s = pl.program_id(1)                                # time-chunk index (arbitrary axis)

        @pl.when(s == 0)
        def _():
            hf_s[...] = jnp.zeros_like(hf_s)
            cf_s[...] = jnp.zeros_like(cf_s)
            hb_s[...] = jnp.zeros_like(hb_s)
            cb_s[...] = jnp.zeros_like(cb_s)

        lens = len_ref[...]                                 # (Bb, 1) int32
        bias_f = b_f[...]                                   # hoisted out of the loop
        bias_b = b_b[...]
        t0_f = s * tc                                       # global start time of the fwd chunk
        t0_b = (nc - 1 - s) * tc                            # global start time of the bwd chunk

        def cell(g_in, valid, h_prev, c_prev, whh_ref):
            # g_in already holds x @ W_ih + b for this step (no dependence on h), so only
            # the h_prev @ W_hh matmul sits on the serial critical path.
            gates = g_in + jnp.dot(h_prev.astype(jnp.bfloat16), whh_ref[...],
                                   preferred_element_type=jnp.float32)
            i_g = jax.nn.sigmoid(gates[:, 0 * H:1 * H])
            f_g = jax.nn.sigmoid(gates[:, 1 * H:2 * H])
            g_g = jnp.tanh(gates[:, 2 * H:3 * H])
            o_g = jax.nn.sigmoid(gates[:, 3 * H:4 * H])
            c_new = f_g * c_prev + i_g * g_g
            h_new = o_g * jnp.tanh(c_new)
            h_out = jnp.where(valid, h_new, 0.0)            # padded positions emit zeros
            h_upd = jnp.where(valid, h_new, h_prev)         # freeze state past sequence end
            c_upd = jnp.where(valid, c_new, c_prev)
            return h_out, h_upd, c_upd

        def step(j, carry):
            hf, cf, hb, cb = carry
            jf = j                # fwd walks its chunk in increasing time
            jb = tc - 1 - j       # bwd walks its (reverse-ordered) chunk in decreasing time
            # fused input projection for this step (both directions)
            g_f = bias_f
            for x_ref, w_ref in zip(xs_f, w_f):
                g_f = g_f + jnp.dot(x_ref[jf], w_ref[...],
                                    preferred_element_type=jnp.float32)
            g_b = bias_b
            for x_ref, w_ref in zip(xs_b, w_b):
                g_b = g_b + jnp.dot(x_ref[jb], w_ref[...],
                                    preferred_element_type=jnp.float32)
            valid_f = (t0_f + jf) < lens                    # (Bb, 1) mask from lengths
            valid_b = (t0_b + jb) < lens
            hof, hf, cf = cell(g_f, valid_f, hf, cf, whh_f)
            hob, hb, cb = cell(g_b, valid_b, hb, cb, whh_b)
            of_ref[jf] = hof.astype(of_ref.dtype)
            ob_ref[jb] = hob.astype(ob_ref.dtype)
            return hf, cf, hb, cb

        carry = (hf_s[...], cf_s[...], hb_s[...], cb_s[...])
        hf, cf, hb, cb = lax.fori_loop(0, tc, step, carry, unroll=True)
        hf_s[...] = hf
        cf_s[...] = cf
        hb_s[...] = hb
        cb_s[...] = cb

    return kernel


def bilstm_layer(xs, lengths2d, layer_p, *, hidden, tc, nb, vmem_limit):
    """One fused bidirectional LSTM layer.

    xs: list of time-major (T_pad, B_pad, Din_i) bf16 inputs (1 for layer 0, 2 afterwards).
    lengths2d: (B_pad, 1) int32.  Returns (out_fwd, out_bwd), each (T_pad, B_pad, H) bf16.
    """
    H = hidden
    g4 = 4 * H
    T_pad, B_pad = xs[0].shape[0], xs[0].shape[1]
    Bb = B_pad // nb
    nc = T_pad // tc
    n_in = len(xs)
    w_in_f = list(layer_p["w_in_f"])
    w_in_b = list(layer_p["w_in_b"])

    fwd_map = lambda b, s: (s, b, 0)
    bwd_map = lambda b, s: (nc - 1 - s, b, 0)
    const2 = lambda b, s: (0, 0)
    len_map = lambda b, s: (b, 0)

    in_specs = [pl.BlockSpec((Bb, 1), len_map)]
    in_specs += [pl.BlockSpec((tc, Bb, x.shape[-1]), fwd_map) for x in xs]
    in_specs += [pl.BlockSpec((tc, Bb, x.shape[-1]), bwd_map) for x in xs]
    in_specs += [pl.BlockSpec((w.shape[0], g4), const2) for w in w_in_f]
    in_specs += [pl.BlockSpec((w.shape[0], g4), const2) for w in w_in_b]
    in_specs += [pl.BlockSpec((H, g4), const2),      # W_hh fwd (VMEM-resident)
                 pl.BlockSpec((H, g4), const2),      # W_hh bwd
                 pl.BlockSpec((1, g4), const2),      # bias fwd
                 pl.BlockSpec((1, g4), const2)]      # bias bwd

    out_specs = (pl.BlockSpec((tc, Bb, H), fwd_map),
                 pl.BlockSpec((tc, Bb, H), bwd_map))
    out_shape = (jax.ShapeDtypeStruct((T_pad, B_pad, H), jnp.bfloat16),
                 jax.ShapeDtypeStruct((T_pad, B_pad, H), jnp.bfloat16))

    scratch = [pltpu.VMEM((Bb, H), jnp.float32),     # h fwd carry
               pltpu.VMEM((Bb, H), jnp.float32),     # c fwd carry
               pltpu.VMEM((Bb, H), jnp.float32),     # h bwd carry
               pltpu.VMEM((Bb, H), jnp.float32)]     # c bwd carry

    kernel = _make_layer_kernel(hidden=H, tc=tc, nc=nc, n_in=n_in)
    operands = ([lengths2d] + list(xs) + list(xs) + w_in_f + w_in_b
                + [layer_p["w_hh_f"], layer_p["w_hh_b"], layer_p["b_f"], layer_p["b_b"]])

    return pl.pallas_call(
        kernel,
        out_shape=out_shape,
        grid=(nb, nc),                               # (batch blocks, time chunks)
        in_specs=in_specs,
        out_specs=out_specs,
        scratch_shapes=scratch,
        compiler_params=pltpu.CompilerParams(
            dimension_semantics=("parallel", "arbitrary"),   # batch across TCs, time serial
            vmem_limit_bytes=vmem_limit),
    )(*operands)


# ----------------------------------------------------------------------------
# Kernel 2: fused LayerNorm(2H) + Linear(2H -> out), row-tiled, halves kept separate
# ----------------------------------------------------------------------------
def _ln_linear_kernel(xf_ref, xb_ref, gf_ref, gb_ref, bf_ref, bb_ref,
                      wf_ref, wb_ref, bias_ref, o_ref, *, d2):
    xf = xf_ref[...].astype(jnp.float32)
    xb = xb_ref[...].astype(jnp.float32)
    mean = (jnp.sum(xf, axis=-1, keepdims=True)
            + jnp.sum(xb, axis=-1, keepdims=True)) / d2
    df = xf - mean
    db = xb - mean
    var = (jnp.sum(df * df, axis=-1, keepdims=True)
           + jnp.sum(db * db, axis=-1, keepdims=True)) / d2
    rstd = lax.rsqrt(var + 1e-5)
    yf = df * rstd * gf_ref[...] + bf_ref[...]
    yb = db * rstd * gb_ref[...] + bb_ref[...]
    o_ref[...] = (jnp.dot(yf.astype(jnp.bfloat16), wf_ref[...],
                          preferred_element_type=jnp.float32)
                  + jnp.dot(yb.astype(jnp.bfloat16), wb_ref[...],
                            preferred_element_type=jnp.float32)
                  + bias_ref[...])


def ln_linear(xf, xb, gamma_f, gamma_b, beta_f, beta_b, w_f, w_b, bias, *, rt, vmem_limit):
    """xf/xb: (N, H) bf16 halves of the biLSTM output; w_f/w_b: (H, out) bf16."""
    N, H = xf.shape
    out = w_f.shape[1]
    kernel = functools.partial(_ln_linear_kernel, d2=float(2 * H))
    row = lambda i: (i, 0)
    const = lambda i: (0, 0)
    return pl.pallas_call(
        kernel,
        out_shape=jax.ShapeDtypeStruct((N, out), jnp.float32),
        grid=(N // rt,),
        in_specs=[
            pl.BlockSpec((rt, H), row),
            pl.BlockSpec((rt, H), row),
            pl.BlockSpec((1, H), const),
            pl.BlockSpec((1, H), const),
            pl.BlockSpec((1, H), const),
            pl.BlockSpec((1, H), const),
            pl.BlockSpec((H, out), const),
            pl.BlockSpec((H, out), const),
            pl.BlockSpec((1, out), const),
        ],
        out_specs=pl.BlockSpec((rt, out), row),
        compiler_params=pltpu.CompilerParams(
            dimension_semantics=("parallel",),
            vmem_limit_bytes=vmem_limit),
    )(xf, xb, gamma_f, gamma_b, beta_f, beta_b, w_f, w_b, bias)


# ----------------------------------------------------------------------------
# Model wrapper (glue: padding, embedding gather, layer stacking, free reshapes)
# ----------------------------------------------------------------------------
def bilstm_forward(params, tokens, lengths, *, hidden, num_layers):
    H = hidden
    B, S = tokens.shape
    E = params["embedding"].shape[1]
    vmem_limit = _vmem_limit_bytes()

    # --- sublane-friendly batch padding + optional batch-block split (dual-TC parts) ---
    B_pad = _round_up(B, 8)
    nb = 2 if (B_pad >= 16 and (B_pad // 2) % 8 == 0) else 1
    Bb = B_pad // nb

    # --- VMEM-aware time chunk; pad T to a multiple of it (never degrade to tc=1) ---
    max_in_dim = max(E, 2 * H)
    tc = _pick_time_tile(S, Bb, H, max_in_dim, vmem_limit)
    T_pad = _round_up(S, tc)

    tokens_p = jnp.pad(tokens, ((0, B_pad - B), (0, T_pad - S)))
    lengths_p = jnp.pad(lengths.astype(jnp.int32), (0, B_pad - B))
    lengths2d = lengths_p.reshape(B_pad, 1)

    # Embedding gather directly in time-major order (folds the transpose into the gather);
    # cast once to bf16 (it is an MXU operand).  Dropout -> identity at inference.
    x0 = params["embedding"][tokens_p.T].astype(jnp.bfloat16)      # (T_pad, B_pad, E)

    xs = [x0]
    for l in range(num_layers):
        out_f, out_b = bilstm_layer(xs, lengths2d, params[f"layer{l}"],
                                    hidden=H, tc=tc, nb=nb, vmem_limit=vmem_limit)
        xs = [out_f, out_b]       # bf16, consumed directly by the next layer (no concat)
        # inter-layer dropout -> identity at inference

    # --- LayerNorm(2H) + Linear(2H -> out) over all rows ---
    N_pad = T_pad * B_pad
    out_size = params["lin_w_f"].shape[1]
    rt = _pick_row_tile(T_pad, B_pad, H, out_size, vmem_limit)
    emission = ln_linear(xs[0].reshape(N_pad, H), xs[1].reshape(N_pad, H),
                         params["ln_gamma_f"], params["ln_gamma_b"],
                         params["ln_beta_f"], params["ln_beta_b"],
                         params["lin_w_f"], params["lin_w_b"], params["lin_b"],
                         rt=rt, vmem_limit=vmem_limit)
    emission = emission.reshape(T_pad, B_pad, out_size)[:S, :B]
    # final transpose only touches the tiny (B,S,out) emission tensor
    return jnp.transpose(emission, (1, 0, 2))


# ----------------------------------------------------------------------------
# Pure-JAX reference (mirrors the kernels' bf16-operand / f32-accumulate numerics)
# ----------------------------------------------------------------------------
def _ref_lstm_dir(xs, w_list, b, w_hh, lengths, hidden, reverse):
    T, B = xs[0].shape[0], xs[0].shape[1]
    H = hidden
    h = jnp.zeros((B, H), jnp.float32)
    c = jnp.zeros((B, H), jnp.float32)
    outs = [None] * T
    order = range(T - 1, -1, -1) if reverse else range(T)
    for t in order:
        g = b
        for x, w in zip(xs, w_list):
            g = g + jnp.dot(x[t], w, preferred_element_type=jnp.float32)
        gates = g + jnp.dot(h.astype(jnp.bfloat16), w_hh, preferred_element_type=jnp.float32)
        i_g = jax.nn.sigmoid(gates[:, :H])
        f_g = jax.nn.sigmoid(gates[:, H:2 * H])
        g_g = jnp.tanh(gates[:, 2 * H:3 * H])
        o_g = jax.nn.sigmoid(gates[:, 3 * H:])
        c_new = f_g * c + i_g * g_g
        h_new = o_g * jnp.tanh(c_new)
        valid = (t < lengths)[:, None]
        h = jnp.where(valid, h_new, h)
        c = jnp.where(valid, c_new, c)
        outs[t] = jnp.where(valid, h_new, 0.0).astype(jnp.bfloat16)
    return jnp.stack(outs, axis=0)


def bilstm_forward_ref(params, tokens, lengths, *, hidden, num_layers):
    H = hidden
    B, S = tokens.shape
    lengths = lengths.astype(jnp.int32)
    xs = [params["embedding"][tokens.T].astype(jnp.bfloat16)]     # (S, B, E)
    for l in range(num_layers):
        p = params[f"layer{l}"]
        out_f = _ref_lstm_dir(xs, p["w_in_f"], p["b_f"], p["w_hh_f"], lengths, H, reverse=False)
        out_b = _ref_lstm_dir(xs, p["w_in_b"], p["b_b"], p["w_hh_b"], lengths, H, reverse=True)
        xs = [out_f, out_b]
    yf = xs[0].reshape(S * B, H).astype(jnp.float32)
    yb = xs[1].reshape(S * B, H).astype(jnp.float32)
    d2 = float(2 * H)
    mean = (yf.sum(-1, keepdims=True) + yb.sum(-1, keepdims=True)) / d2
    df = yf - mean
    db = yb - mean
    var = ((df * df).sum(-1, keepdims=True) + (db * db).sum(-1, keepdims=True)) / d2
    rstd = lax.rsqrt(var + 1e-5)
    nf = df * rstd * params["ln_gamma_f"] + params["ln_beta_f"]
    nb_ = db * rstd * params["ln_gamma_b"] + params["ln_beta_b"]
    out = (jnp.dot(nf.astype(jnp.bfloat16), params["lin_w_f"], preferred_element_type=jnp.float32)
           + jnp.dot(nb_.astype(jnp.bfloat16), params["lin_w_b"],
                     preferred_element_type=jnp.float32)
           + params["lin_b"])
    return jnp.transpose(out.reshape(S, B, -1), (1, 0, 2))


# ----------------------------------------------------------------------------
# Deterministic parameter init (shapes follow nn.Embedding / nn.LSTM / LayerNorm / nn.Linear)
# Matmul weights are stored bf16 (MXU operands); biases / LN params stay f32.
# ----------------------------------------------------------------------------
def init_params(key, vocab, emb_size, hidden, out_size, num_layers):
    H = hidden
    keys = iter(jax.random.split(key, 3 + 8 * num_layers))
    params = {"embedding": jax.random.normal(next(keys), (vocab, emb_size), jnp.float32)}

    k = 1.0 / np.sqrt(H)
    for l in range(num_layers):
        in_dim = emb_size if l == 0 else 2 * H
        layer = {}
        for d in ("f", "b"):                                  # fwd direction, then bwd
            w_ih = jax.random.uniform(next(keys), (4 * H, in_dim), jnp.float32, -k, k)
            w_hh = jax.random.uniform(next(keys), (4 * H, H), jnp.float32, -k, k)
            b_ih = jax.random.uniform(next(keys), (4 * H,), jnp.float32, -k, k)
            b_hh = jax.random.uniform(next(keys), (4 * H,), jnp.float32, -k, k)
            w_ih_t = w_ih.T.astype(jnp.bfloat16)              # (in_dim, 4H)
            if l == 0:
                layer[f"w_in_{d}"] = [w_ih_t]                 # single input stream (embedding)
            else:
                layer[f"w_in_{d}"] = [w_ih_t[:H], w_ih_t[H:]]  # rows for [h_fwd ; h_bwd] inputs
            layer[f"b_{d}"] = (b_ih + b_hh).reshape(1, 4 * H)
            layer[f"w_hh_{d}"] = w_hh.T.astype(jnp.bfloat16)   # (H, 4H)
        params[f"layer{l}"] = layer

    params["ln_gamma_f"] = jnp.ones((1, H), jnp.float32)
    params["ln_gamma_b"] = jnp.ones((1, H), jnp.float32)
    params["ln_beta_f"] = jnp.zeros((1, H), jnp.float32)
    params["ln_beta_b"] = jnp.zeros((1, H), jnp.float32)
    kl = 1.0 / np.sqrt(2 * H)
    lin_w_t = jax.random.uniform(next(keys), (out_size, 2 * H), jnp.float32, -kl, kl).T
    params["lin_w_f"] = lin_w_t[:H].astype(jnp.bfloat16)       # (H, out)
    params["lin_w_b"] = lin_w_t[H:].astype(jnp.bfloat16)       # (H, out)
    params["lin_b"] = jax.random.uniform(next(keys), (1, out_size), jnp.float32, -kl, kl)
    return params


if __name__ == "__main__":
    vocab_size, embedding_size, hidden_size, out_size, num_layers = 50, 16, 32, 8, 2
    B, T = 2, 8

    key = jax.random.PRNGKey(0)
    k_param, k_tok = jax.random.split(key)
    params = init_params(k_param, vocab_size, embedding_size, hidden_size, out_size, num_layers)

    tokens = jax.random.randint(k_tok, (B, T), 0, vocab_size, dtype=jnp.int32)
    # pack_padded_sequence expects lengths sorted descending (enforce_sorted=True default);
    # the kernel itself does not require sorting.
    lengths = jnp.array([8, 5], dtype=jnp.int32)

    fwd = jax.jit(functools.partial(bilstm_forward, hidden=hidden_size, num_layers=num_layers))
    emission = jax.block_until_ready(fwd(params, tokens, lengths))

    ref = bilstm_forward_ref(params, tokens, lengths,
                             hidden=hidden_size, num_layers=num_layers)
    np.testing.assert_allclose(np.asarray(emission), np.asarray(ref), atol=2e-3, rtol=2e-3)

    print("KERNEL_OK")
</pallas_src>

<mosaic_0001>
module attributes {stable_mosaic.version = 11 : i64} {
  func.func @_ln_linear_kernel(%arg0: i32, %arg1: memref<64x32xbf16, #tpu.memory_space<vmem>>, %arg2: memref<64x32xbf16, #tpu.memory_space<vmem>>, %arg3: memref<1x32xf32, #tpu.memory_space<vmem>>, %arg4: memref<1x32xf32, #tpu.memory_space<vmem>>, %arg5: memref<1x32xf32, #tpu.memory_space<vmem>>, %arg6: memref<1x32xf32, #tpu.memory_space<vmem>>, %arg7: memref<32x8xbf16, #tpu.memory_space<vmem>>, %arg8: memref<32x8xbf16, #tpu.memory_space<vmem>>, %arg9: memref<1x8xf32, #tpu.memory_space<vmem>>, %arg10: memref<64x8xf32, #tpu.memory_space<vmem>>) attributes {dimension_semantics = [#tpu.dimension_semantics<parallel>], iteration_bounds = array<i64: 1>, scalar_prefetch = 0 : i64, scratch_operands = 0 : i64, tpu.core_type = #tpu.core_type<tc>, window_params = [{transform_indices = @transform_0, window_bounds = array<i64: 64, 32>}, {transform_indices = @transform_1, window_bounds = array<i64: 64, 32>}, {pipeline_mode = #tpu.pipeline_mode<synchronous>, transform_indices = @transform_2, window_bounds = array<i64: 1, 32>}, {pipeline_mode = #tpu.pipeline_mode<synchronous>, transform_indices = @transform_3, window_bounds = array<i64: 1, 32>}, {pipeline_mode = #tpu.pipeline_mode<synchronous>, transform_indices = @transform_4, window_bounds = array<i64: 1, 32>}, {pipeline_mode = #tpu.pipeline_mode<synchronous>, transform_indices = @transform_5, window_bounds = array<i64: 1, 32>}, {pipeline_mode = #tpu.pipeline_mode<synchronous>, transform_indices = @transform_6, window_bounds = array<i64: 32, 8>}, {pipeline_mode = #tpu.pipeline_mode<synchronous>, transform_indices = @transform_7, window_bounds = array<i64: 32, 8>}, {pipeline_mode = #tpu.pipeline_mode<synchronous>, transform_indices = @transform_8, window_bounds = array<i64: 1, 8>}, {transform_indices = @transform_9, window_bounds = array<i64: 64, 8>}]} {
    %c0 = arith.constant 0 : index
    %c0_0 = arith.constant 0 : index
    %0 = vector.load %arg1[%c0, %c0_0] : memref<64x32xbf16, #tpu.memory_space<vmem>>, vector<64x32xbf16>
    %1 = arith.extf %0 : vector<64x32xbf16> to vector<64x32xf32>
    %c0_1 = arith.constant 0 : index
    %c0_2 = arith.constant 0 : index
    %2 = vector.load %arg2[%c0_1, %c0_2] : memref<64x32xbf16, #tpu.memory_space<vmem>>, vector<64x32xbf16>
    %3 = arith.extf %2 : vector<64x32xbf16> to vector<64x32xf32>
    %cst = arith.constant dense<0.000000e+00> : vector<64xf32>
    %4 = vector.multi_reduction <add>, %1, %cst [1] : vector<64x32xf32> to vector<64xf32>
    %5 = vector.shape_cast %4 : vector<64xf32> to vector<64x1xf32>
    %cst_3 = arith.constant dense<0.000000e+00> : vector<64xf32>
    %6 = vector.multi_reduction <add>, %3, %cst_3 [1] : vector<64x32xf32> to vector<64xf32>
    %7 = vector.shape_cast %6 : vector<64xf32> to vector<64x1xf32>
    %8 = arith.addf %5, %7 : vector<64x1xf32>
    %cst_4 = arith.constant 6.400000e+01 : f32
    %9 = vector.broadcast %cst_4 : f32 to vector<64x1xf32>
    %10 = arith.divf %8, %9 : vector<64x1xf32>
    %11 = vector.broadcast %10 : vector<64x1xf32> to vector<64x32xf32>
    %12 = arith.subf %1, %11 : vector<64x32xf32>
    %13 = vector.broadcast %10 : vector<64x1xf32> to vector<64x32xf32>
    %14 = arith.subf %3, %13 : vector<64x32xf32>
    %15 = arith.mulf %12, %12 : vector<64x32xf32>
    %cst_5 = arith.constant dense<0.000000e+00> : vector<64xf32>
    %16 = vector.multi_reduction <add>, %15, %cst_5 [1] : vector<64x32xf32> to vector<64xf32>
    %17 = vector.shape_cast %16 : vector<64xf32> to vector<64x1xf32>
    %18 = arith.mulf %14, %14 : vector<64x32xf32>
    %cst_6 = arith.constant dense<0.000000e+00> : vector<64xf32>
    %19 = vector.multi_reduction <add>, %18, %cst_6 [1] : vector<64x32xf32> to vector<64xf32>
    %20 = vector.shape_cast %19 : vector<64xf32> to vector<64x1xf32>
    %21 = arith.addf %17, %20 : vector<64x1xf32>
    %cst_7 = arith.constant 6.400000e+01 : f32
    %22 = vector.broadcast %cst_7 : f32 to vector<64x1xf32>
    %23 = arith.divf %21, %22 : vector<64x1xf32>
    %cst_8 = arith.constant 9.99999974E-6 : f32
    %24 = vector.broadcast %cst_8 : f32 to vector<64x1xf32>
    %25 = arith.addf %23, %24 : vector<64x1xf32>
    %26 = math.rsqrt %25 : vector<64x1xf32>
    %27 = vector.broadcast %26 : vector<64x1xf32> to vector<64x32xf32>
    %28 = arith.mulf %12, %27 : vector<64x32xf32>
    %c0_9 = arith.constant 0 : index
    %c0_10 = arith.constant 0 : index
    %29 = vector.load %arg3[%c0_9, %c0_10] : memref<1x32xf32, #tpu.memory_space<vmem>>, vector<1x32xf32>
    %30 = vector.broadcast %29 : vector<1x32xf32> to vector<64x32xf32>
    %31 = arith.mulf %28, %30 : vector<64x32xf32>
    %c0_11 = arith.constant 0 : index
    %c0_12 = arith.constant 0 : index
    %32 = vector.load %arg5[%c0_11, %c0_12] : memref<1x32xf32, #tpu.memory_space<vmem>>, vector<1x32xf32>
    %33 = vector.broadcast %32 : vector<1x32xf32> to vector<64x32xf32>
    %34 = arith.addf %31, %33 : vector<64x32xf32>
    %35 = vector.broadcast %26 : vector<64x1xf32> to vector<64x32xf32>
    %36 = arith.mulf %14, %35 : vector<64x32xf32>
    %c0_13 = arith.constant 0 : index
    %c0_14 = arith.constant 0 : index
    %37 = vector.load %arg4[%c0_13, %c0_14] : memref<1x32xf32, #tpu.memory_space<vmem>>, vector<1x32xf32>
    %38 = vector.broadcast %37 : vector<1x32xf32> to vector<64x32xf32>
    %39 = arith.mulf %36, %38 : vector<64x32xf32>
    %c0_15 = arith.constant 0 : index
    %c0_16 = arith.constant 0 : index
    %40 = vector.load %arg6[%c0_15, %c0_16] : memref<1x32xf32, #tpu.memory_space<vmem>>, vector<1x32xf32>
    %41 = vector.broadcast %40 : vector<1x32xf32> to vector<64x32xf32>
    %42 = arith.addf %39, %41 : vector<64x32xf32>
    %43 = arith.truncf %34 : vector<64x32xf32> to vector<64x32xbf16>
    %c0_17 = arith.constant 0 : index
    %c0_18 = arith.constant 0 : index
    %44 = vector.load %arg7[%c0_17, %c0_18] : memref<32x8xbf16, #tpu.memory_space<vmem>>, vector<32x8xbf16>
    %cst_19 = arith.constant dense<0.000000e+00> : vector<64x8xf32>
    %45 = tpu.matmul %43, %44, %cst_19 {dimension_numbers = #tpu.dot_dimension_numbers<[1], [0], [0], [1], [0, 0, 1, 1], [], []>} : vector<64x32xbf16>, vector<32x8xbf16>, vector<64x8xf32> -> vector<64x8xf32>
    %46 = arith.truncf %42 : vector<64x32xf32> to vector<64x32xbf16>
    %c0_20 = arith.constant 0 : index
    %c0_21 = arith.constant 0 : index
    %47 = vector.load %arg8[%c0_20, %c0_21] : memref<32x8xbf16, #tpu.memory_space<vmem>>, vector<32x8xbf16>
    %cst_22 = arith.constant dense<0.000000e+00> : vector<64x8xf32>
    %48 = tpu.matmul %46, %47, %cst_22 {dimension_numbers = #tpu.dot_dimension_numbers<[1], [0], [0], [1], [0, 0, 1, 1], [], []>} : vector<64x32xbf16>, vector<32x8xbf16>, vector<64x8xf32> -> vector<64x8xf32>
    %49 = arith.addf %45, %48 : vector<64x8xf32>
    %c0_23 = arith.constant 0 : index
    %c0_24 = arith.constant 0 : index
    %50 = vector.load %arg9[%c0_23, %c0_24] : memref<1x8xf32, #tpu.memory_space<vmem>>, vector<1x8xf32>
    %51 = vector.broadcast %50 : vector<1x8xf32> to vector<64x8xf32>
    %52 = arith.addf %49, %51 : vector<64x8xf32>
    %c0_25 = arith.constant 0 : index
    %c0_26 = arith.constant 0 : index
    %53 = vector.load %arg10[%c0_25, %c0_26] : memref<64x8xf32, #tpu.memory_space<vmem>>, vector<64x8xf32>
    tpu.vector_store %arg10[%c0_25, %c0_26], %52 {strides = array<i32>} : memref<64x8xf32, #tpu.memory_space<vmem>>, vector<64x8xf32>,
    return
  }
  func.func @transform_0(%arg0: i32) -> (i32, i32) {
    %c0_i32 = arith.constant 0 : i32
    %c0_i32_0 = arith.constant 0 : i32
    return %arg0, %c0_i32 : i32, i32
  }
  func.func @transform_1(%arg0: i32) -> (i32, i32) {
    %c0_i32 = arith.constant 0 : i32
    %c0_i32_0 = arith.constant 0 : i32
    return %arg0, %c0_i32 : i32, i32
  }
  func.func @transform_2(%arg0: i32) -> (i32, i32) {
    %c0_i32 = arith.constant 0 : i32
    %c0_i32_0 = arith.constant 0 : i32
    %c0_i32_1 = arith.constant 0 : i32
    return %c0_i32, %c0_i32_0 : i32, i32
  }
  func.func @transform_3(%arg0: i32) -> (i32, i32) {
    %c0_i32 = arith.constant 0 : i32
    %c0_i32_0 = arith.constant 0 : i32
    %c0_i32_1 = arith.constant 0 : i32
    return %c0_i32, %c0_i32_0 : i32, i32
  }
  func.func @transform_4(%arg0: i32) -> (i32, i32) {
    %c0_i32 = arith.constant 0 : i32
    %c0_i32_0 = arith.constant 0 : i32
    %c0_i32_1 = arith.constant 0 : i32
    return %c0_i32, %c0_i32_0 : i32, i32
  }
  func.func @transform_5(%arg0: i32) -> (i32, i32) {
    %c0_i32 = arith.constant 0 : i32
    %c0_i32_0 = arith.constant 0 : i32
    %c0_i32_1 = arith.constant 0 : i32
    return %c0_i32, %c0_i32_0 : i32, i32
  }
  func.func @transform_6(%arg0: i32) -> (i32, i32) {
    %c0_i32 = arith.constant 0 : i32
    %c0_i32_0 = arith.constant 0 : i32
    %c0_i32_1 = arith.constant 0 : i32
    return %c0_i32, %c0_i32_0 : i32, i32
  }
  func.func @transform_7(%arg0: i32) -> (i32, i32) {
    %c0_i32 = arith.constant 0 : i32
    %c0_i32_0 = arith.constant 0 : i32
    %c0_i32_1 = arith.constant 0 : i32
    return %c0_i32, %c0_i32_0 : i32, i32
  }
  func.func @transform_8(%arg0: i32) -> (i32, i32) {
    %c0_i32 = arith.constant 0 : i32
    %c0_i32_0 = arith.constant 0 : i32
    %c0_i32_1 = arith.constant 0 : i32
    return %c0_i32, %c0_i32_0 : i32, i32
  }
  func.func @transform_9(%arg0: i32) -> (i32, i32) {
    %c0_i32 = arith.constant 0 : i32
    %c0_i32_0 = arith.constant 0 : i32
    return %arg0, %c0_i32 : i32, i32
  }
}

module attributes {stable_mosaic.version = 11 : i64} {
  func.func @kernel(%arg0: i32, %arg1: i32, %arg2: memref<8x1xi32, #tpu.memory_space<vmem>>, %arg3: memref<8x8x16xbf16, #tpu.memory_space<vmem>>, %arg4: memref<8x8x16xbf16, #tpu.memory_space<vmem>>, %arg5: memref<16x128xbf16, #tpu.memory_space<vmem>>, %arg6: memref<16x128xbf16, #tpu.memory_space<vmem>>, %arg7: memref<32x128xbf16, #tpu.memory_space<vmem>>, %arg8: memref<32x128xbf16, #tpu.memory_space<vmem>>, %arg9: memref<1x128xf32, #tpu.memory_space<vmem>>, %arg10: memref<1x128xf32, #tpu.memory_space<vmem>>, %arg11: memref<8x8x32xbf16, #tpu.memory_space<vmem>>, %arg12: memref<8x8x32xbf16, #tpu.memory_space<vmem>>, %arg13: memref<8x32xf32, #tpu.memory_space<vmem>>, %arg14: memref<8x32xf32, #tpu.memory_space<vmem>>, %arg15: memref<8x32xf32, #tpu.memory_space<vmem>>, %arg16: memref<8x32xf32, #tpu.memory_space<vmem>>) attributes {dimension_semantics = [#tpu.dimension_semantics<parallel>, #tpu.dimension_semantics<arbitrary>], iteration_bounds = array<i64: 1, 1>, scalar_prefetch = 0 : i64, scratch_operands = 4 : i64, tpu.core_type = #tpu.core_type<tc>, window_params = [{transform_indices = @transform_0, window_bounds = array<i64: 8, 1>}, {transform_indices = @transform_1, window_bounds = array<i64: 8, 8, 16>}, {transform_indices = @transform_2, window_bounds = array<i64: 8, 8, 16>}, {pipeline_mode = #tpu.pipeline_mode<synchronous>, transform_indices = @transform_3, window_bounds = array<i64: 16, 128>}, {pipeline_mode = #tpu.pipeline_mode<synchronous>, transform_indices = @transform_4, window_bounds = array<i64: 16, 128>}, {pipeline_mode = #tpu.pipeline_mode<synchronous>, transform_indices = @transform_5, window_bounds = array<i64: 32, 128>}, {pipeline_mode = #tpu.pipeline_mode<synchronous>, transform_indices = @transform_6, window_bounds = array<i64: 32, 128>}, {pipeline_mode = #tpu.pipeline_mode<synchronous>, transform_indices = @transform_7, window_bounds = array<i64: 1, 128>}, {pipeline_mode = #tpu.pipeline_mode<synchronous>, transform_indices = @transform_8, window_bounds = array<i64: 1, 128>}, {transform_indices = @transform_9, window_bounds = array<i64: 8, 8, 32>}, {transform_indices = @transform_10, window_bounds = array<i64: 8, 8, 32>}]} {
    %c0_i32 = arith.constant 0 : i32
    %0 = arith.cmpi eq, %arg1, %c0_i32 : i32
    %1 = arith.extui %0 : i1 to i32
    %c0_i32_0 = arith.constant 0 : i32
    %2 = arith.cmpi ne, %1, %c0_i32_0 : i32
    scf.if %2 {
      %cst_257 = arith.constant 0.000000e+00 : f32
      %889 = vector.broadcast %cst_257 : f32 to vector<8x32xf32>
      %c0_258 = arith.constant 0 : index
      %c0_259 = arith.constant 0 : index
      %890 = vector.load %arg13[%c0_258, %c0_259] : memref<8x32xf32, #tpu.memory_space<vmem>>, vector<8x32xf32>
      tpu.vector_store %arg13[%c0_258, %c0_259], %889 {strides = array<i32>} : memref<8x32xf32, #tpu.memory_space<vmem>>, vector<8x32xf32>,
      %cst_260 = arith.constant 0.000000e+00 : f32
      %891 = vector.broadcast %cst_260 : f32 to vector<8x32xf32>
      %c0_261 = arith.constant 0 : index
      %c0_262 = arith.constant 0 : index
      %892 = vector.load %arg14[%c0_261, %c0_262] : memref<8x32xf32, #tpu.memory_space<vmem>>, vector<8x32xf32>
      tpu.vector_store %arg14[%c0_261, %c0_262], %891 {strides = array<i32>} : memref<8x32xf32, #tpu.memory_space<vmem>>, vector<8x32xf32>,
      %cst_263 = arith.constant 0.000000e+00 : f32
      %893 = vector.broadcast %cst_263 : f32 to vector<8x32xf32>
      %c0_264 = arith.constant 0 : index
      %c0_265 = arith.constant 0 : index
      %894 = vector.load %arg15[%c0_264, %c0_265] : memref<8x32xf32, #tpu.memory_space<vmem>>, vector<8x32xf32>
      tpu.vector_store %arg15[%c0_264, %c0_265], %893 {strides = array<i32>} : memref<8x32xf32, #tpu.memory_space<vmem>>, vector<8x32xf32>,
      %cst_266 = arith.constant 0.000000e+00 : f32
      %895 = vector.broadcast %cst_266 : f32 to vector<8x32xf32>
      %c0_267 = arith.constant 0 : index
      %c0_268 = arith.constant 0 : index
      %896 = vector.load %arg16[%c0_267, %c0_268] : memref<8x32xf32, #tpu.memory_space<vmem>>, vector<8x32xf32>
      tpu.vector_store %arg16[%c0_267, %c0_268], %895 {strides = array<i32>} : memref<8x32xf32, #tpu.memory_space<vmem>>, vector<8x32xf32>,
    } else {
    }
    %c0 = arith.constant 0 : index
    %c0_1 = arith.constant 0 : index
    %3 = vector.load %arg2[%c0, %c0_1] : memref<8x1xi32, #tpu.memory_space<vmem>>, vector<8x1xi32>
    %c0_2 = arith.constant 0 : index
    %c0_3 = arith.constant 0 : index
    %4 = vector.load %arg9[%c0_2, %c0_3] : memref<1x128xf32, #tpu.memory_space<vmem>>, vector<1x128xf32>
    %c0_4 = arith.constant 0 : index
    %c0_5 = arith.constant 0 : index
    %5 = vector.load %arg10[%c0_4, %c0_5] : memref<1x128xf32, #tpu.memory_space<vmem>>, vector<1x128xf32>
    %c8_i32 = arith.constant 8 : i32
    %6 = arith.muli %arg1, %c8_i32 : i32
    %c0_i32_6 = arith.constant 0 : i32
    %7 = arith.subi %c0_i32_6, %arg1 : i32
    %c8_i32_7 = arith.constant 8 : i32
    %8 = arith.muli %7, %c8_i32_7 : i32
    %c0_8 = arith.constant 0 : index
    %c0_9 = arith.constant 0 : index
    %9 = vector.load %arg13[%c0_8, %c0_9] : memref<8x32xf32, #tpu.memory_space<vmem>>, vector<8x32xf32>
    %c0_10 = arith.constant 0 : index
    %c0_11 = arith.constant 0 : index
    %10 = vector.load %arg14[%c0_10, %c0_11] : memref<8x32xf32, #tpu.memory_space<vmem>>, vector<8x32xf32>
    %c0_12 = arith.constant 0 : index
    %c0_13 = arith.constant 0 : index
    %11 = vector.load %arg15[%c0_12, %c0_13] : memref<8x32xf32, #tpu.memory_space<vmem>>, vector<8x32xf32>
    %c0_14 = arith.constant 0 : index
    %c0_15 = arith.constant 0 : index
    %12 = vector.load %arg16[%c0_14, %c0_15] : memref<8x32xf32, #tpu.memory_space<vmem>>, vector<8x32xf32>
    %c0_i32_16 = arith.constant 0 : i32
    %c7_i32 = arith.constant 7 : i32
    %13 = arith.subi %c7_i32, %c0_i32_16 : i32
    %14 = arith.index_cast %c0_i32_16 : i32 to index
    %c0_17 = arith.constant 0 : index
    %c0_18 = arith.constant 0 : index
    %15 = vector.load %arg3[%14, %c0_17, %c0_18] : memref<8x8x16xbf16, #tpu.memory_space<vmem>>, vector<1x8x16xbf16>
    %16 = vector.shape_cast %15 : vector<1x8x16xbf16> to vector<8x16xbf16>
    %c0_19 = arith.constant 0 : index
    %c0_20 = arith.constant 0 : index
    %17 = vector.load %arg5[%c0_19, %c0_20] : memref<16x128xbf16, #tpu.memory_space<vmem>>, vector<16x128xbf16>
    %cst = arith.constant dense<0.000000e+00> : vector<8x128xf32>
    %18 = tpu.matmul %16, %17, %cst {dimension_numbers = #tpu.dot_dimension_numbers<[1], [0], [0], [1], [0, 0, 1, 1], [], []>} : vector<8x16xbf16>, vector<16x128xbf16>, vector<8x128xf32> -> vector<8x128xf32>
    %19 = vector.broadcast %4 : vector<1x128xf32> to vector<8x128xf32>
    %20 = arith.addf %19, %18 : vector<8x128xf32>
    %21 = arith.index_cast %13 : i32 to index
    %c0_21 = arith.constant 0 : index
    %c0_22 = arith.constant 0 : index
    %22 = vector.load %arg4[%21, %c0_21, %c0_22] : memref<8x8x16xbf16, #tpu.memory_space<vmem>>, vector<1x8x16xbf16>
    %23 = vector.shape_cast %22 : vector<1x8x16xbf16> to vector<8x16xbf16>
    %c0_23 = arith.constant 0 : index
    %c0_24 = arith.constant 0 : index
    %24 = vector.load %arg6[%c0_23, %c0_24] : memref<16x128xbf16, #tpu.memory_space<vmem>>, vector<16x128xbf16>
    %cst_25 = arith.constant dense<0.000000e+00> : vector<8x128xf32>
    %25 = tpu.matmul %23, %24, %cst_25 {dimension_numbers = #tpu.dot_dimension_numbers<[1], [0], [0], [1], [0, 0, 1, 1], [], []>} : vector<8x16xbf16>, vector<16x128xbf16>, vector<8x128xf32> -> vector<8x128xf32>
    %26 = vector.broadcast %5 : vector<1x128xf32> to vector<8x128xf32>
    %27 = arith.addf %26, %25 : vector<8x128xf32>
    %28 = arith.addi %6, %c0_i32_16 : i32
    %29 = vector.broadcast %28 : i32 to vector<8x1xi32>
    %30 = arith.cmpi slt, %29, %3 : vector<8x1xi32>
    %31 = arith.addi %8, %13 : i32
    %32 = vector.broadcast %31 : i32 to vector<8x1xi32>
    %33 = arith.cmpi slt, %32, %3 : vector<8x1xi32>
    %34 = arith.truncf %9 : vector<8x32xf32> to vector<8x32xbf16>
    %c0_26 = arith.constant 0 : index
    %c0_27 = arith.constant 0 : index
    %35 = vector.load %arg7[%c0_26, %c0_27] : memref<32x128xbf16, #tpu.memory_space<vmem>>, vector<32x128xbf16>
    %cst_28 = arith.constant dense<0.000000e+00> : vector<8x128xf32>
    %36 = tpu.matmul %34, %35, %cst_28 {dimension_numbers = #tpu.dot_dimension_numbers<[1], [0], [0], [1], [0, 0, 1, 1], [], []>} : vector<8x32xbf16>, vector<32x128xbf16>, vector<8x128xf32> -> vector<8x128xf32>
    %37 = arith.addf %20, %36 : vector<8x128xf32>
    %38 = vector.extract_strided_slice %37 {offsets = [0, 0], sizes = [8, 32], strides = [1, 1]} : vector<8x128xf32> to vector<8x32xf32>
    %39 = arith.negf %38 : vector<8x32xf32>
    %40 = math.exp %39 : vector<8x32xf32>
    %cst_29 = arith.constant 1.000000e+00 : f32
    %41 = vector.broadcast %cst_29 : f32 to vector<8x32xf32>
    %42 = arith.addf %41, %40 : vector<8x32xf32>
    %43 = arith.divf %41, %42 : vector<8x32xf32>
    %44 = vector.extract_strided_slice %37 {offsets = [0, 32], sizes = [8, 32], strides = [1, 1]} : vector<8x128xf32> to vector<8x32xf32>
    %45 = arith.negf %44 : vector<8x32xf32>
    %46 = math.exp %45 : vector<8x32xf32>
    %cst_30 = arith.constant 1.000000e+00 : f32
    %47 = vector.broadcast %cst_30 : f32 to vector<8x32xf32>
    %48 = arith.addf %47, %46 : vector<8x32xf32>
    %49 = arith.divf %47, %48 : vector<8x32xf32>
    %50 = vector.extract_strided_slice %37 {offsets = [0, 64], sizes = [8, 32], strides = [1, 1]} : vector<8x128xf32> to vector<8x32xf32>
    %51 = math.tanh %50 : vector<8x32xf32>
    %52 = vector.extract_strided_slice %37 {offsets = [0, 96], sizes = [8, 32], strides = [1, 1]} : vector<8x128xf32> to vector<8x32xf32>
    %53 = arith.negf %52 : vector<8x32xf32>
    %54 = math.exp %53 : vector<8x32xf32>
    %cst_31 = arith.constant 1.000000e+00 : f32
    %55 = vector.broadcast %cst_31 : f32 to vector<8x32xf32>
    %56 = arith.addf %55, %54 : vector<8x32xf32>
    %57 = arith.divf %55, %56 : vector<8x32xf32>
    %58 = arith.mulf %49, %10 : vector<8x32xf32>
    %59 = arith.mulf %43, %51 : vector<8x32xf32>
    %60 = arith.addf %58, %59 : vector<8x32xf32>
    %61 = math.tanh %60 : vector<8x32xf32>
    %62 = arith.mulf %57, %61 : vector<8x32xf32>
    %cst_32 = arith.constant 0.000000e+00 : f32
    %63 = vector.shape_cast %30 : vector<8x1xi1> to vector<8x1xi1>
    %64 = vector.broadcast %63 : vector<8x1xi1> to vector<8x32xi1>
    %65 = vector.broadcast %cst_32 : f32 to vector<8x32xf32>
    %66 = arith.select %64, %62, %65 : vector<8x32xi1>, vector<8x32xf32>
    %67 = vector.shape_cast %30 : vector<8x1xi1> to vector<8x1xi1>
    %68 = vector.broadcast %67 : vector<8x1xi1> to vector<8x32xi1>
    %69 = arith.select %68, %62, %9 : vector<8x32xi1>, vector<8x32xf32>
    %70 = vector.shape_cast %30 : vector<8x1xi1> to vector<8x1xi1>
    %71 = vector.broadcast %70 : vector<8x1xi1> to vector<8x32xi1>
    %72 = arith.select %71, %60, %10 : vector<8x32xi1>, vector<8x32xf32>
    %73 = arith.truncf %11 : vector<8x32xf32> to vector<8x32xbf16>
    %c0_33 = arith.constant 0 : index
    %c0_34 = arith.constant 0 : index
    %74 = vector.load %arg8[%c0_33, %c0_34] : memref<32x128xbf16, #tpu.memory_space<vmem>>, vector<32x128xbf16>
    %cst_35 = arith.constant dense<0.000000e+00> : vector<8x128xf32>
    %75 = tpu.matmul %73, %74, %cst_35 {dimension_numbers = #tpu.dot_dimension_numbers<[1], [0], [0], [1], [0, 0, 1, 1], [], []>} : vector<8x32xbf16>, vector<32x128xbf16>, vector<8x128xf32> -> vector<8x128xf32>
    %76 = arith.addf %27, %75 : vector<8x128xf32>
    %77 = vector.extract_strided_slice %76 {offsets = [0, 0], sizes = [8, 32], strides = [1, 1]} : vector<8x128xf32> to vector<8x32xf32>
    %78 = arith.negf %77 : vector<8x32xf32>
    %79 = math.exp %78 : vector<8x32xf32>
    %cst_36 = arith.constant 1.000000e+00 : f32
    %80 = vector.broadcast %cst_36 : f32 to vector<8x32xf32>
    %81 = arith.addf %80, %79 : vector<8x32xf32>
    %82 = arith.divf %80, %81 : vector<8x32xf32>
    %83 = vector.extract_strided_slice %76 {offsets = [0, 32], sizes = [8, 32], strides = [1, 1]} : vector<8x128xf32> to vector<8x32xf32>
    %84 = arith.negf %83 : vector<8x32xf32>
    %85 = math.exp %84 : vector<8x32xf32>
    %cst_37 = arith.constant 1.000000e+00 : f32
    %86 = vector.broadcast %cst_37 : f32 to vector<8x32xf32>
    %87 = arith.addf %86, %85 : vector<8x32xf32>
    %88 = arith.divf %86, %87 : vector<8x32xf32>
    %89 = vector.extract_strided_slice %76 {offsets = [0, 64], sizes = [8, 32], strides = [1, 1]} : vector<8x128xf32> to vector<8x32xf32>
    %90 = math.tanh %89 : vector<8x32xf32>
    %91 = vector.extract_strided_slice %76 {offsets = [0, 96], sizes = [8, 32], strides = [1, 1]} : vector<8x128xf32> to vector<8x32xf32>
    %92 = arith.negf %91 : vector<8x32xf32>
    %93 = math.exp %92 : vector<8x32xf32>
    %cst_38 = arith.constant 1.000000e+00 : f32
    %94 = vector.broadcast %cst_38 : f32 to vector<8x32xf32>
    %95 = arith.addf %94, %93 : vector<8x32xf32>
    %96 = arith.divf %94, %95 : vector<8x32xf32>
    %97 = arith.mulf %88, %12 : vector<8x32xf32>
    %98 = arith.mulf %82, %90 : vector<8x32xf32>
    %99 = arith.addf %97, %98 : vector<8x32xf32>
    %100 = math.tanh %99 : vector<8x32xf32>
    %101 = arith.mulf %96, %100 : vector<8x32xf32>
    %cst_39 = arith.constant 0.000000e+00 : f32
    %102 = vector.shape_cast %33 : vector<8x1xi1> to vector<8x1xi1>
    %103 = vector.broadcast %102 : vector<8x1xi1> to vector<8x32xi1>
    %104 = vector.broadcast %cst_39 : f32 to vector<8x32xf32>
    %105 = arith.select %103, %101, %104 : vector<8x32xi1>, vector<8x32xf32>
    %106 = vector.shape_cast %33 : vector<8x1xi1> to vector<8x1xi1>
    %107 = vector.broadcast %106 : vector<8x1xi1> to vector<8x32xi1>
    %108 = arith.select %107, %101, %11 : vector<8x32xi1>, vector<8x32xf32>
    %109 = vector.shape_cast %33 : vector<8x1xi1> to vector<8x1xi1>
    %110 = vector.broadcast %109 : vector<8x1xi1> to vector<8x32xi1>
    %111 = arith.select %110, %99, %12 : vector<8x32xi1>, vector<8x32xf32>
    %112 = arith.truncf %66 : vector<8x32xf32> to vector<8x32xbf16>
    %113 = arith.index_cast %c0_i32_16 : i32 to index
    %c0_40 = arith.constant 0 : index
    %c0_41 = arith.constant 0 : index
    %114 = vector.load %arg11[%113, %c0_40, %c0_41] : memref<8x8x32xbf16, #tpu.memory_space<vmem>>, vector<1x8x32xbf16>
    %115 = vector.shape_cast %114 : vector<1x8x32xbf16> to vector<8x32xbf16>
    %116 = vector.shape_cast %112 : vector<8x32xbf16> to vector<1x8x32xbf16>
    tpu.vector_store %arg11[%113, %c0_40, %c0_41], %116 {strides = array<i32>} : memref<8x8x32xbf16, #tpu.memory_space<vmem>>, vector<1x8x32xbf16>,
    %117 = arith.truncf %105 : vector<8x32xf32> to vector<8x32xbf16>
    %118 = arith.index_cast %13 : i32 to index
    %c0_42 = arith.constant 0 : index
    %c0_43 = arith.constant 0 : index
    %119 = vector.load %arg12[%118, %c0_42, %c0_43] : memref<8x8x32xbf16, #tpu.memory_space<vmem>>, vector<1x8x32xbf16>
    %120 = vector.shape_cast %119 : vector<1x8x32xbf16> to vector<8x32xbf16>
    %121 = vector.shape_cast %117 : vector<8x32xbf16> to vector<1x8x32xbf16>
    tpu.vector_store %arg12[%118, %c0_42, %c0_43], %121 {strides = array<i32>} : memref<8x8x32xbf16, #tpu.memory_space<vmem>>, vector<1x8x32xbf16>,
    %c1_i32 = arith.constant 1 : i32
    %c7_i32_44 = arith.constant 7 : i32
    %122 = arith.subi %c7_i32_44, %c1_i32 : i32
    %123 = arith.index_cast %c1_i32 : i32 to index
    %c0_45 = arith.constant 0 : index
    %c0_46 = arith.constant 0 : index
    %124 = vector.load %arg3[%123, %c0_45, %c0_46] : memref<8x8x16xbf16, #tpu.memory_space<vmem>>, vector<1x8x16xbf16>
    %125 = vector.shape_cast %124 : vector<1x8x16xbf16> to vector<8x16xbf16>
    %c0_47 = arith.constant 0 : index
    %c0_48 = arith.constant 0 : index
    %126 = vector.load %arg5[%c0_47, %c0_48] : memref<16x128xbf16, #tpu.memory_space<vmem>>, vector<16x128xbf16>
    %cst_49 = arith.constant dense<0.000000e+00> : vector<8x128xf32>
    %127 = tpu.matmul %125, %126, %cst_49 {dimension_numbers = #tpu.dot_dimension_numbers<[1], [0], [0], [1], [0, 0, 1, 1], [], []>} : vector<8x16xbf16>, vector<16x128xbf16>, vector<8x128xf32> -> vector<8x128xf32>
    %128 = vector.broadcast %4 : vector<1x128xf32> to vector<8x128xf32>
    %129 = arith.addf %128, %127 : vector<8x128xf32>
    %130 = arith.index_cast %122 : i32 to index
    %c0_50 = arith.constant 0 : index
    %c0_51 = arith.constant 0 : index
    %131 = vector.load %arg4[%130, %c0_50, %c0_51] : memref<8x8x16xbf16, #tpu.memory_space<vmem>>, vector<1x8x16xbf16>
    %132 = vector.shape_cast %131 : vector<1x8x16xbf16> to vector<8x16xbf16>
    %c0_52 = arith.constant 0 : index
    %c0_53 = arith.constant 0 : index
    %133 = vector.load %arg6[%c0_52, %c0_53] : memref<16x128xbf16, #tpu.memory_space<vmem>>, vector<16x128xbf16>
    %cst_54 = arith.constant dense<0.000000e+00> : vector<8x128xf32>
    %134 = tpu.matmul %132, %133, %cst_54 {dimension_numbers = #tpu.dot_dimension_numbers<[1], [0], [0], [1], [0, 0, 1, 1], [], []>} : vector<8x16xbf16>, vector<16x128xbf16>, vector<8x128xf32> -> vector<8x128xf32>
    %135 = vector.broadcast %5 : vector<1x128xf32> to vector<8x128xf32>
    %136 = arith.addf %135, %134 : vector<8x128xf32>
    %137 = arith.addi %6, %c1_i32 : i32
    %138 = vector.broadcast %137 : i32 to vector<8x1xi32>
    %139 = arith.cmpi slt, %138, %3 : vector<8x1xi32>
    %140 = arith.addi %8, %122 : i32
    %141 = vector.broadcast %140 : i32 to vector<8x1xi32>
    %142 = arith.cmpi slt, %141, %3 : vector<8x1xi32>
    %143 = arith.truncf %69 : vector<8x32xf32> to vector<8x32xbf16>
    %c0_55 = arith.constant 0 : index
    %c0_56 = arith.constant 0 : index
    %144 = vector.load %arg7[%c0_55, %c0_56] : memref<32x128xbf16, #tpu.memory_space<vmem>>, vector<32x128xbf16>
    %cst_57 = arith.constant dense<0.000000e+00> : vector<8x128xf32>
    %145 = tpu.matmul %143, %144, %cst_57 {dimension_numbers = #tpu.dot_dimension_numbers<[1], [0], [0], [1], [0, 0, 1, 1], [], []>} : vector<8x32xbf16>, vector<32x128xbf16>, vector<8x128xf32> -> vector<8x128xf32>
    %146 = arith.addf %129, %145 : vector<8x128xf32>
    %147 = vector.extract_strided_slice %146 {offsets = [0, 0], sizes = [8, 32], strides = [1, 1]} : vector<8x128xf32> to vector<8x32xf32>
    %148 = arith.negf %147 : vector<8x32xf32>
    %149 = math.exp %148 : vector<8x32xf32>
    %cst_58 = arith.constant 1.000000e+00 : f32
    %150 = vector.broadcast %cst_58 : f32 to vector<8x32xf32>
    %151 = arith.addf %150, %149 : vector<8x32xf32>
    %152 = arith.divf %150, %151 : vector<8x32xf32>
    %153 = vector.extract_strided_slice %146 {offsets = [0, 32], sizes = [8, 32], strides = [1, 1]} : vector<8x128xf32> to vector<8x32xf32>
    %154 = arith.negf %153 : vector<8x32xf32>
    %155 = math.exp %154 : vector<8x32xf32>
    %cst_59 = arith.constant 1.000000e+00 : f32
    %156 = vector.broadcast %cst_59 : f32 to vector<8x32xf32>
    %157 = arith.addf %156, %155 : vector<8x32xf32>
    %158 = arith.divf %156, %157 : vector<8x32xf32>
    %159 = vector.extract_strided_slice %146 {offsets = [0, 64], sizes = [8, 32], strides = [1, 1]} : vector<8x128xf32> to vector<8x32xf32>
    %160 = math.tanh %159 : vector<8x32xf32>
    %161 = vector.extract_strided_slice %146 {offsets = [0, 96], sizes = [8, 32], strides = [1, 1]} : vector<8x128xf32> to vector<8x32xf32>
    %162 = arith.negf %161 : vector<8x32xf32>
    %163 = math.exp %162 : vector<8x32xf32>
    %cst_60 = arith.constant 1.000000e+00 : f32
    %164 = vector.broadcast %cst_60 : f32 to vector<8x32xf32>
    %165 = arith.addf %164, %163 : vector<8x32xf32>
    %166 = arith.divf %164, %165 : vector<8x32xf32>
    %167 = arith.mulf %158, %72 : vector<8x32xf32>
    %168 = arith.mulf %152, %160 : vector<8x32xf32>
    %169 = arith.addf %167, %168 : vector<8x32xf32>
    %170 = math.tanh %169 : vector<8x32xf32>
    %171 = arith.mulf %166, %170 : vector<8x32xf32>
    %cst_61 = arith.constant 0.000000e+00 : f32
    %172 = vector.shape_cast %139 : vector<8x1xi1> to vector<8x1xi1>
    %173 = vector.broadcast %172 : vector<8x1xi1> to vector<8x32xi1>
    %174 = vector.broadcast %cst_61 : f32 to vector<8x32xf32>
    %175 = arith.select %173, %171, %174 : vector<8x32xi1>, vector<8x32xf32>
    %176 = vector.shape_cast %139 : vector<8x1xi1> to vector<8x1xi1>
    %177 = vector.broadcast %176 : vector<8x1xi1> to vector<8x32xi1>
    %178 = arith.select %177, %171, %69 : vector<8x32xi1>, vector<8x32xf32>
    %179 = vector.shape_cast %139 : vector<8x1xi1> to vector<8x1xi1>
    %180 = vector.broadcast %179 : vector<8x1xi1> to vector<8x32xi1>
    %181 = arith.select %180, %169, %72 : vector<8x32xi1>, vector<8x32xf32>
    %182 = arith.truncf %108 : vector<8x32xf32> to vector<8x32xbf16>
    %c0_62 = arith.constant 0 : index
    %c0_63 = arith.constant 0 : index
    %183 = vector.load %arg8[%c0_62, %c0_63] : memref<32x128xbf16, #tpu.memory_space<vmem>>, vector<32x128xbf16>
    %cst_64 = arith.constant dense<0.000000e+00> : vector<8x128xf32>
    %184 = tpu.matmul %182, %183, %cst_64 {dimension_numbers = #tpu.dot_dimension_numbers<[1], [0], [0], [1], [0, 0, 1, 1], [], []>} : vector<8x32xbf16>, vector<32x128xbf16>, vector<8x128xf32> -> vector<8x128xf32>
    %185 = arith.addf %136, %184 : vector<8x128xf32>
    %186 = vector.extract_strided_slice %185 {offsets = [0, 0], sizes = [8, 32], strides = [1, 1]} : vector<8x128xf32> to vector<8x32xf32>
    %187 = arith.negf %186 : vector<8x32xf32>
    %188 = math.exp %187 : vector<8x32xf32>
    %cst_65 = arith.constant 1.000000e+00 : f32
    %189 = vector.broadcast %cst_65 : f32 to vector<8x32xf32>
    %190 = arith.addf %189, %188 : vector<8x32xf32>
    %191 = arith.divf %189, %190 : vector<8x32xf32>
    %192 = vector.extract_strided_slice %185 {offsets = [0, 32], sizes = [8, 32], strides = [1, 1]} : vector<8x128xf32> to vector<8x32xf32>
    %193 = arith.negf %192 : vector<8x32xf32>
    %194 = math.exp %193 : vector<8x32xf32>
    %cst_66 = arith.constant 1.000000e+00 : f32
    %195 = vector.broadcast %cst_66 : f32 to vector<8x32xf32>
    %196 = arith.addf %195, %194 : vector<8x32xf32>
    %197 = arith.divf %195, %196 : vector<8x32xf32>
    %198 = vector.extract_strided_slice %185 {offsets = [0, 64], sizes = [8, 32], strides = [1, 1]} : vector<8x128xf32> to vector<8x32xf32>
    %199 = math.tanh %198 : vector<8x32xf32>
    %200 = vector.extract_strided_slice %185 {offsets = [0, 96], sizes = [8, 32], strides = [1, 1]} : vector<8x128xf32> to vector<8x32xf32>
    %201 = arith.negf %200 : vector<8x32xf32>
    %202 = math.exp %201 : vector<8x32xf32>
    %cst_67 = arith.constant 1.000000e+00 : f32
    %203 = vector.broadcast %cst_67 : f32 to vector<8x32xf32>
    %204 = arith.addf %203, %202 : vector<8x32xf32>
    %205 = arith.divf %203, %204 : vector<8x32xf32>
    %206 = arith.mulf %197, %111 : vector<8x32xf32>
    %207 = arith.mulf %191, %199 : vector<8x32xf32>
    %208 = arith.addf %206, %207 : vector<8x32xf32>
    %209 = math.tanh %208 : vector<8x32xf32>
    %210 = arith.mulf %205, %209 : vector<8x32xf32>
    %cst_68 = arith.constant 0.000000e+00 : f32
    %211 = vector.shape_cast %142 : vector<8x1xi1> to vector<8x1xi1>
    %212 = vector.broadcast %211 : vector<8x1xi1> to vector<8x32xi1>
    %213 = vector.broadcast %cst_68 : f32 to vector<8x32xf32>
    %214 = arith.select %212, %210, %213 : vector<8x32xi1>, vector<8x32xf32>
    %215 = vector.shape_cast %142 : vector<8x1xi1> to vector<8x1xi1>
    %216 = vector.broadcast %215 : vector<8x1xi1> to vector<8x32xi1>
    %217 = arith.select %216, %210, %108 : vector<8x32xi1>, vector<8x32xf32>
    %218 = vector.shape_cast %142 : vector<8x1xi1> to vector<8x1xi1>
    %219 = vector.broadcast %218 : vector<8x1xi1> to vector<8x32xi1>
    %220 = arith.select %219, %208, %111 : vector<8x32xi1>, vector<8x32xf32>
    %221 = arith.truncf %175 : vector<8x32xf32> to vector<8x32xbf16>
    %222 = arith.index_cast %c1_i32 : i32 to index
    %c0_69 = arith.constant 0 : index
    %c0_70 = arith.constant 0 : index
    %223 = vector.load %arg11[%222, %c0_69, %c0_70] : memref<8x8x32xbf16, #tpu.memory_space<vmem>>, vector<1x8x32xbf16>
    %224 = vector.shape_cast %223 : vector<1x8x32xbf16> to vector<8x32xbf16>
    %225 = vector.shape_cast %221 : vector<8x32xbf16> to vector<1x8x32xbf16>
    tpu.vector_store %arg11[%222, %c0_69, %c0_70], %225 {strides = array<i32>} : memref<8x8x32xbf16, #tpu.memory_space<vmem>>, vector<1x8x32xbf16>,
    %226 = arith.truncf %214 : vector<8x32xf32> to vector<8x32xbf16>
    %227 = arith.index_cast %122 : i32 to index
    %c0_71 = arith.constant 0 : index
    %c0_72 = arith.constant 0 : index
    %228 = vector.load %arg12[%227, %c0_71, %c0_72] : memref<8x8x32xbf16, #tpu.memory_space<vmem>>, vector<1x8x32xbf16>
    %229 = vector.shape_cast %228 : vector<1x8x32xbf16> to vector<8x32xbf16>
    %230 = vector.shape_cast %226 : vector<8x32xbf16> to vector<1x8x32xbf16>
    tpu.vector_store %arg12[%227, %c0_71, %c0_72], %230 {strides = array<i32>} : memref<8x8x32xbf16, #tpu.memory_space<vmem>>, vector<1x8x32xbf16>,
    %c2_i32 = arith.constant 2 : i32
    %c7_i32_73 = arith.constant 7 : i32
    %231 = arith.subi %c7_i32_73, %c2_i32 : i32
    %232 = arith.index_cast %c2_i32 : i32 to index
    %c0_74 = arith.constant 0 : index
    %c0_75 = arith.constant 0 : index
    %233 = vector.load %arg3[%232, %c0_74, %c0_75] : memref<8x8x16xbf16, #tpu.memory_space<vmem>>, vector<1x8x16xbf16>
    %234 = vector.shape_cast %233 : vector<1x8x16xbf16> to vector<8x16xbf16>
    %c0_76 = arith.constant 0 : index
    %c0_77 = arith.constant 0 : index
    %235 = vector.load %arg5[%c0_76, %c0_77] : memref<16x128xbf16, #tpu.memory_space<vmem>>, vector<16x128xbf16>
    %cst_78 = arith.constant dense<0.000000e+00> : vector<8x128xf32>
    %236 = tpu.matmul %234, %235, %cst_78 {dimension_numbers = #tpu.dot_dimension_numbers<[1], [0], [0], [1], [0, 0, 1, 1], [], []>} : vector<8x16xbf16>, vector<16x128xbf16>, vector<8x128xf32> -> vector<8x128xf32>
    %237 = vector.broadcast %4 : vector<1x128xf32> to vector<8x128xf32>
    %238 = arith.addf %237, %236 : vector<8x128xf32>
    %239 = arith.index_cast %231 : i32 to index
    %c0_79 = arith.constant 0 : index
    %c0_80 = arith.constant 0 : index
    %240 = vector.load %arg4[%239, %c0_79, %c0_80] : memref<8x8x16xbf16, #tpu.memory_space<vmem>>, vector<1x8x16xbf16>
    %241 = vector.shape_cast %240 : vector<1x8x16xbf16> to vector<8x16xbf16>
    %c0_81 = arith.constant 0 : index
    %c0_82 = arith.constant 0 : index
    %242 = vector.load %arg6[%c0_81, %c0_82] : memref<16x128xbf16, #tpu.memory_space<vmem>>, vector<16x128xbf16>
    %cst_83 = arith.constant dense<0.000000e+00> : vector<8x128xf32>
    %243 = tpu.matmul %241, %242, %cst_83 {dimension_numbers = #tpu.dot_dimension_numbers<[1], [0], [0], [1], [0, 0, 1, 1], [], []>} : vector<8x16xbf16>, vector<16x128xbf16>, vector<8x128xf32> -> vector<8x128xf32>
    %244 = vector.broadcast %5 : vector<1x128xf32> to vector<8x128xf32>
    %245 = arith.addf %244, %243 : vector<8x128xf32>
    %246 = arith.addi %6, %c2_i32 : i32
    %247 = vector.broadcast %246 : i32 to vector<8x1xi32>
    %248 = arith.cmpi slt, %247, %3 : vector<8x1xi32>
    %249 = arith.addi %8, %231 : i32
    %250 = vector.broadcast %249 : i32 to vector<8x1xi32>
    %251 = arith.cmpi slt, %250, %3 : vector<8x1xi32>
    %252 = arith.truncf %178 : vector<8x32xf32> to vector<8x32xbf16>
    %c0_84 = arith.constant 0 : index
    %c0_85 = arith.constant 0 : index
    %253 = vector.load %arg7[%c0_84, %c0_85] : memref<32x128xbf16, #tpu.memory_space<vmem>>, vector<32x128xbf16>
    %cst_86 = arith.constant dense<0.000000e+00> : vector<8x128xf32>
    %254 = tpu.matmul %252, %253, %cst_86 {dimension_numbers = #tpu.dot_dimension_numbers<[1], [0], [0], [1], [0, 0, 1, 1], [], []>} : vector<8x32xbf16>, vector<32x128xbf16>, vector<8x128xf32> -> vector<8x128xf32>
    %255 = arith.addf %238, %254 : vector<8x128xf32>
    %256 = vector.extract_strided_slice %255 {offsets = [0, 0], sizes = [8, 32], strides = [1, 1]} : vector<8x128xf32> to vector<8x32xf32>
    %257 = arith.negf %256 : vector<8x32xf32>
    %258 = math.exp %257 : vector<8x32xf32>
    %cst_87 = arith.constant 1.000000e+00 : f32
    %259 = vector.broadcast %cst_87 : f32 to vector<8x32xf32>
    %260 = arith.addf %259, %258 : vector<8x32xf32>
    %261 = arith.divf %259, %260 : vector<8x32xf32>
    %262 = vector.extract_strided_slice %255 {offsets = [0, 32], sizes = [8, 32], strides = [1, 1]} : vector<8x128xf32> to vector<8x32xf32>
    %263 = arith.negf %262 : vector<8x32xf32>
    %264 = math.exp %263 : vector<8x32xf32>
    %cst_88 = arith.constant 1.000000e+00 : f32
    %265 = vector.broadcast %cst_88 : f32 to vector<8x32xf32>
    %266 = arith.addf %265, %264 : vector<8x32xf32>
    %267 = arith.divf %265, %266 : vector<8x32xf32>
    %268 = vector.extract_strided_slice %255 {offsets = [0, 64], sizes = [8, 32], strides = [1, 1]} : vector<8x128xf32> to vector<8x32xf32>
    %269 = math.tanh %268 : vector<8x32xf32>
    %270 = vector.extract_strided_slice %255 {offsets = [0, 96], sizes = [8, 32], strides = [1, 1]} : vector<8x128xf32> to vector<8x32xf32>
    %271 = arith.negf %270 : vector<8x32xf32>
    %272 = math.exp %271 : vector<8x32xf32>
    %cst_89 = arith.constant 1.000000e+00 : f32
    %273 = vector.broadcast %cst_89 : f32 to vector<8x32xf32>
    %274 = arith.addf %273, %272 : vector<8x32xf32>
    %275 = arith.divf %273, %274 : vector<8x32xf32>
    %276 = arith.mulf %267, %181 : vector<8x32xf32>
    %277 = arith.mulf %261, %269 : vector<8x32xf32>
    %278 = arith.addf %276, %277 : vector<8x32xf32>
    %279 = math.tanh %278 : vector<8x32xf32>
    %280 = arith.mulf %275, %279 : vector<8x32xf32>
    %cst_90 = arith.constant 0.000000e+00 : f32
    %281 = vector.shape_cast %248 : vector<8x1xi1> to vector<8x1xi1>
    %282 = vector.broadcast %281 : vector<8x1xi1> to vector<8x32xi1>
    %283 = vector.broadcast %cst_90 : f32 to vector<8x32xf32>
    %284 = arith.select %282, %280, %283 : vector<8x32xi1>, vector<8x32xf32>
    %285 = vector.shape_cast %248 : vector<8x1xi1> to vector<8x1xi1>
    %286 = vector.broadcast %285 : vector<8x1xi1> to vector<8x32xi1>
    %287 = arith.select %286, %280, %178 : vector<8x32xi1>, vector<8x32xf32>
    %288 = vector.shape_cast %248 : vector<8x1xi1> to vector<8x1xi1>
    %289 = vector.broadcast %288 : vector<8x1xi1> to vector<8x32xi1>
    %290 = arith.select %289, %278, %181 : vector<8x32xi1>, vector<8x32xf32>
    %291 = arith.truncf %217 : vector<8x32xf32> to vector<8x32xbf16>
    %c0_91 = arith.constant 0 : index
    %c0_92 = arith.constant 0 : index
    %292 = vector.load %arg8[%c0_91, %c0_92] : memref<32x128xbf16, #tpu.memory_space<vmem>>, vector<32x128xbf16>
    %cst_93 = arith.constant dense<0.000000e+00> : vector<8x128xf32>
    %293 = tpu.matmul %291, %292, %cst_93 {dimension_numbers = #tpu.dot_dimension_numbers<[1], [0], [0], [1], [0, 0, 1, 1], [], []>} : vector<8x32xbf16>, vector<32x128xbf16>, vector<8x128xf32> -> vector<8x128xf32>
    %294 = arith.addf %245, %293 : vector<8x128xf32>
    %295 = vector.extract_strided_slice %294 {offsets = [0, 0], sizes = [8, 32], strides = [1, 1]} : vector<8x128xf32> to vector<8x32xf32>
    %296 = arith.negf %295 : vector<8x32xf32>
    %297 = math.exp %296 : vector<8x32xf32>
    %cst_94 = arith.constant 1.000000e+00 : f32
    %298 = vector.broadcast %cst_94 : f32 to vector<8x32xf32>
    %299 = arith.addf %298, %297 : vector<8x32xf32>
    %300 = arith.divf %298, %299 : vector<8x32xf32>
    %301 = vector.extract_strided_slice %294 {offsets = [0, 32], sizes = [8, 32], strides = [1, 1]} : vector<8x128xf32> to vector<8x32xf32>
    %302 = arith.negf %301 : vector<8x32xf32>
    %303 = math.exp %302 : vector<8x32xf32>
    %cst_95 = arith.constant 1.000000e+00 : f32
    %304 = vector.broadcast %cst_95 : f32 to vector<8x32xf32>
    %305 = arith.addf %304, %303 : vector<8x32xf32>
    %306 = arith.divf %304, %305 : vector<8x32xf32>
    %307 = vector.extract_strided_slice %294 {offsets = [0, 64], sizes = [8, 32], strides = [1, 1]} : vector<8x128xf32> to vector<8x32xf32>
    %308 = math.tanh %307 : vector<8x32xf32>
    %309 = vector.extract_strided_slice %294 {offsets = [0, 96], sizes = [8, 32], strides = [1, 1]} : vector<8x128xf32> to vector<8x32xf32>
    %310 = arith.negf %309 : vector<8x32xf32>
    %311 = math.exp %310 : vector<8x32xf32>
    %cst_96 = arith.constant 1.000000e+00 : f32
    %312 = vector.broadcast %cst_96 : f32 to vector<8x32xf32>
    %313 = arith.addf %312, %311 : vector<8x32xf32>
    %314 = arith.divf %312, %313 : vector<8x32xf32>
    %315 = arith.mulf %306, %220 : vector<8x32xf32>
    %316 = arith.mulf %300, %308 : vector<8x32xf32>
    %317 = arith.addf %315, %316 : vector<8x32xf32>
    %318 = math.tanh %317 : vector<8x32xf32>
    %319 = arith.mulf %314, %318 : vector<8x32xf32>
    %cst_97 = arith.constant 0.000000e+00 : f32
    %320 = vector.shape_cast %251 : vector<8x1xi1> to vector<8x1xi1>
    %321 = vector.broadcast %320 : vector<8x1xi1> to vector<8x32xi1>
    %322 = vector.broadcast %cst_97 : f32 to vector<8x32xf32>
    %323 = arith.select %321, %319, %322 : vector<8x32xi1>, vector<8x32xf32>
    %324 = vector.shape_cast %251 : vector<8x1xi1> to vector<8x1xi1>
    %325 = vector.broadcast %324 : vector<8x1xi1> to vector<8x32xi1>
    %326 = arith.select %325, %319, %217 : vector<8x32xi1>, vector<8x32xf32>
    %327 = vector.shape_cast %251 : vector<8x1xi1> to vector<8x1xi1>
    %328 = vector.broadcast %327 : vector<8x1xi1> to vector<8x32xi1>
    %329 = arith.select %328, %317, %220 : vector<8x32xi1>, vector<8x32xf32>
    %330 = arith.truncf %284 : vector<8x32xf32> to vector<8x32xbf16>
    %331 = arith.index_cast %c2_i32 : i32 to index
    %c0_98 = arith.constant 0 : index
    %c0_99 = arith.constant 0 : index
    %332 = vector.load %arg11[%331, %c0_98, %c0_99] : memref<8x8x32xbf16, #tpu.memory_space<vmem>>, vector<1x8x32xbf16>
    %333 = vector.shape_cast %332 : vector<1x8x32xbf16> to vector<8x32xbf16>
    %334 = vector.shape_cast %330 : vector<8x32xbf16> to vector<1x8x32xbf16>
    tpu.vector_store %arg11[%331, %c0_98, %c0_99], %334 {strides = array<i32>} : memref<8x8x32xbf16, #tpu.memory_space<vmem>>, vector<1x8x32xbf16>,
    %335 = arith.truncf %323 : vector<8x32xf32> to vector<8x32xbf16>
    %336 = arith.index_cast %231 : i32 to index
    %c0_100 = arith.constant 0 : index
    %c0_101 = arith.constant 0 : index
    %337 = vector.load %arg12[%336, %c0_100, %c0_101] : memref<8x8x32xbf16, #tpu.memory_space<vmem>>, vector<1x8x32xbf16>
    %338 = vector.shape_cast %337 : vector<1x8x32xbf16> to vector<8x32xbf16>
    %339 = vector.shape_cast %335 : vector<8x32xbf16> to vector<1x8x32xbf16>
    tpu.vector_store %arg12[%336, %c0_100, %c0_101], %339 {strides = array<i32>} : memref<8x8x32xbf16, #tpu.memory_space<vmem>>, vector<1x8x32xbf16>,
    %c3_i32 = arith.constant 3 : i32
    %c7_i32_102 = arith.constant 7 : i32
    %340 = arith.subi %c7_i32_102, %c3_i32 : i32
    %341 = arith.index_cast %c3_i32 : i32 to index
    %c0_103 = arith.constant 0 : index
    %c0_104 = arith.constant 0 : index
    %342 = vector.load %arg3[%341, %c0_103, %c0_104] : memref<8x8x16xbf16, #tpu.memory_space<vmem>>, vector<1x8x16xbf16>
    %343 = vector.shape_cast %342 : vector<1x8x16xbf16> to vector<8x16xbf16>
    %c0_105 = arith.constant 0 : index
    %c0_106 = arith.constant 0 : index
    %344 = vector.load %arg5[%c0_105, %c0_106] : memref<16x128xbf16, #tpu.memory_space<vmem>>, vector<16x128xbf16>
    %cst_107 = arith.constant dense<0.000000e+00> : vector<8x128xf32>
    %345 = tpu.matmul %343, %344, %cst_107 {dimension_numbers = #tpu.dot_dimension_numbers<[1], [0], [0], [1], [0, 0, 1, 1], [], []>} : vector<8x16xbf16>, vector<16x128xbf16>, vector<8x128xf32> -> vector<8x128xf32>
    %346 = vector.broadcast %4 : vector<1x128xf32> to vector<8x128xf32>
    %347 = arith.addf %346, %345 : vector<8x128xf32>
    %348 = arith.index_cast %340 : i32 to index
    %c0_108 = arith.constant 0 : index
    %c0_109 = arith.constant 0 : index
    %349 = vector.load %arg4[%348, %c0_108, %c0_109] : memref<8x8x16xbf16, #tpu.memory_space<vmem>>, vector<1x8x16xbf16>
    %350 = vector.shape_cast %349 : vector<1x8x16xbf16> to vector<8x16xbf16>
    %c0_110 = arith.constant 0 : index
    %c0_111 = arith.constant 0 : index
    %351 = vector.load %arg6[%c0_110, %c0_111] : memref<16x128xbf16, #tpu.memory_space<vmem>>, vector<16x128xbf16>
    %cst_112 = arith.constant dense<0.000000e+00> : vector<8x128xf32>
    %352 = tpu.matmul %350, %351, %cst_112 {dimension_numbers = #tpu.dot_dimension_numbers<[1], [0], [0], [1], [0, 0, 1, 1], [], []>} : vector<8x16xbf16>, vector<16x128xbf16>, vector<8x128xf32> -> vector<8x128xf32>
    %353 = vector.broadcast %5 : vector<1x128xf32> to vector<8x128xf32>
    %354 = arith.addf %353, %352 : vector<8x128xf32>
    %355 = arith.addi %6, %c3_i32 : i32
    %356 = vector.broadcast %355 : i32 to vector<8x1xi32>
    %357 = arith.cmpi slt, %356, %3 : vector<8x1xi32>
    %358 = arith.addi %8, %340 : i32
    %359 = vector.broadcast %358 : i32 to vector<8x1xi32>
    %360 = arith.cmpi slt, %359, %3 : vector<8x1xi32>
    %361 = arith.truncf %287 : vector<8x32xf32> to vector<8x32xbf16>
    %c0_113 = arith.constant 0 : index
    %c0_114 = arith.constant 0 : index
    %362 = vector.load %arg7[%c0_113, %c0_114] : memref<32x128xbf16, #tpu.memory_space<vmem>>, vector<32x128xbf16>
    %cst_115 = arith.constant dense<0.000000e+00> : vector<8x128xf32>
    %363 = tpu.matmul %361, %362, %cst_115 {dimension_numbers = #tpu.dot_dimension_numbers<[1], [0], [0], [1], [0, 0, 1, 1], [], []>} : vector<8x32xbf16>, vector<32x128xbf16>, vector<8x128xf32> -> vector<8x128xf32>
    %364 = arith.addf %347, %363 : vector<8x128xf32>
    %365 = vector.extract_strided_slice %364 {offsets = [0, 0], sizes = [8, 32], strides = [1, 1]} : vector<8x128xf32> to vector<8x32xf32>
    %366 = arith.negf %365 : vector<8x32xf32>
    %367 = math.exp %366 : vector<8x32xf32>
    %cst_116 = arith.constant 1.000000e+00 : f32
    %368 = vector.broadcast %cst_116 : f32 to vector<8x32xf32>
    %369 = arith.addf %368, %367 : vector<8x32xf32>
    %370 = arith.divf %368, %369 : vector<8x32xf32>
    %371 = vector.extract_strided_slice %364 {offsets = [0, 32], sizes = [8, 32], strides = [1, 1]} : vector<8x128xf32> to vector<8x32xf32>
    %372 = arith.negf %371 : vector<8x32xf32>
    %373 = math.exp %372 : vector<8x32xf32>
    %cst_117 = arith.constant 1.000000e+00 : f32
    %374 = vector.broadcast %cst_117 : f32 to vector<8x32xf32>
    %375 = arith.addf %374, %373 : vector<8x32xf32>
    %376 = arith.divf %374, %375 : vector<8x32xf32>
    %377 = vector.extract_strided_slice %364 {offsets = [0, 64], sizes = [8, 32], strides = [1, 1]} : vector<8x128xf32> to vector<8x32xf32>
    %378 = math.tanh %377 : vector<8x32xf32>
    %379 = vector.extract_strided_slice %364 {offsets = [0, 96], sizes = [8, 32], strides = [1, 1]} : vector<8x128xf32> to vector<8x32xf32>
    %380 = arith.negf %379 : vector<8x32xf32>
    %381 = math.exp %380 : vector<8x32xf32>
    %cst_118 = arith.constant 1.000000e+00 : f32
    %382 = vector.broadcast %cst_118 : f32 to vector<8x32xf32>
    %383 = arith.addf %382, %381 : vector<8x32xf32>
    %384 = arith.divf %382, %383 : vector<8x32xf32>
    %385 = arith.mulf %376, %290 : vector<8x32xf32>
    %386 = arith.mulf %370, %378 : vector<8x32xf32>
    %387 = arith.addf %385, %386 : vector<8x32xf32>
    %388 = math.tanh %387 : vector<8x32xf32>
    %389 = arith.mulf %384, %388 : vector<8x32xf32>
    %cst_119 = arith.constant 0.000000e+00 : f32
    %390 = vector.shape_cast %357 : vector<8x1xi1> to vector<8x1xi1>
    %391 = vector.broadcast %390 : vector<8x1xi1> to vector<8x32xi1>
    %392 = vector.broadcast %cst_119 : f32 to vector<8x32xf32>
    %393 = arith.select %391, %389, %392 : vector<8x32xi1>, vector<8x32xf32>
    %394 = vector.shape_cast %357 : vector<8x1xi1> to vector<8x1xi1>
    %395 = vector.broadcast %394 : vector<8x1xi1> to vector<8x32xi1>
    %396 = arith.select %395, %389, %287 : vector<8x32xi1>, vector<8x32xf32>
    %397 = vector.shape_cast %357 : vector<8x1xi1> to vector<8x1xi1>
    %398 = vector.broadcast %397 : vector<8x1xi1> to vector<8x32xi1>
    %399 = arith.select %398, %387, %290 : vector<8x32xi1>, vector<8x32xf32>
    %400 = arith.truncf %326 : vector<8x32xf32> to vector<8x32xbf16>
    %c0_120 = arith.constant 0 : index
    %c0_121 = arith.constant 0 : index
    %401 = vector.load %arg8[%c0_120, %c0_121] : memref<32x128xbf16, #tpu.memory_space<vmem>>, vector<32x128xbf16>
    %cst_122 = arith.constant dense<0.000000e+00> : vector<8x128xf32>
    %402 = tpu.matmul %400, %401, %cst_122 {dimension_numbers = #tpu.dot_dimension_numbers<[1], [0], [0], [1], [0, 0, 1, 1], [], []>} : vector<8x32xbf16>, vector<32x128xbf16>, vector<8x128xf32> -> vector<8x128xf32>
    %403 = arith.addf %354, %402 : vector<8x128xf32>
    %404 = vector.extract_strided_slice %403 {offsets = [0, 0], sizes = [8, 32], strides = [1, 1]} : vector<8x128xf32> to vector<8x32xf32>
    %405 = arith.negf %404 : vector<8x32xf32>
    %406 = math.exp %405 : vector<8x32xf32>
    %cst_123 = arith.constant 1.000000e+00 : f32
    %407 = vector.broadcast %cst_123 : f32 to vector<8x32xf32>
    %408 = arith.addf %407, %406 : vector<8x32xf32>
    %409 = arith.divf %407, %408 : vector<8x32xf32>
    %410 = vector.extract_strided_slice %403 {offsets = [0, 32], sizes = [8, 32], strides = [1, 1]} : vector<8x128xf32> to vector<8x32xf32>
    %411 = arith.negf %410 : vector<8x32xf32>
    %412 = math.exp %411 : vector<8x32xf32>
    %cst_124 = arith.constant 1.000000e+00 : f32
    %413 = vector.broadcast %cst_124 : f32 to vector<8x32xf32>
    %414 = arith.addf %413, %412 : vector<8x32xf32>
    %415 = arith.divf %413, %414 : vector<8x32xf32>
    %416 = vector.extract_strided_slice %403 {offsets = [0, 64], sizes = [8, 32], strides = [1, 1]} : vector<8x128xf32> to vector<8x32xf32>
    %417 = math.tanh %416 : vector<8x32xf32>
    %418 = vector.extract_strided_slice %403 {offsets = [0, 96], sizes = [8, 32], strides = [1, 1]} : vector<8x128xf32> to vector<8x32xf32>
    %419 = arith.negf %418 : vector<8x32xf32>
    %420 = math.exp %419 : vector<8x32xf32>
    %cst_125 = arith.constant 1.000000e+00 : f32
    %421 = vector.broadcast %cst_125 : f32 to vector<8x32xf32>
    %422 = arith.addf %421, %420 : vector<8x32xf32>
    %423 = arith.divf %421, %422 : vector<8x32xf32>
    %424 = arith.mulf %415, %329 : vector<8x32xf32>
    %425 = arith.mulf %409, %417 : vector<8x32xf32>
    %426 = arith.addf %424, %425 : vector<8x32xf32>
    %427 = math.tanh %426 : vector<8x32xf32>
    %428 = arith.mulf %423, %427 : vector<8x32xf32>
    %cst_126 = arith.constant 0.000000e+00 : f32
    %429 = vector.shape_cast %360 : vector<8x1xi1> to vector<8x1xi1>
    %430 = vector.broadcast %429 : vector<8x1xi1> to vector<8x32xi1>
    %431 = vector.broadcast %cst_126 : f32 to vector<8x32xf32>
    %432 = arith.select %430, %428, %431 : vector<8x32xi1>, vector<8x32xf32>
    %433 = vector.shape_cast %360 : vector<8x1xi1> to vector<8x1xi1>
    %434 = vector.broadcast %433 : vector<8x1xi1> to vector<8x32xi1>
    %435 = arith.select %434, %428, %326 : vector<8x32xi1>, vector<8x32xf32>
    %436 = vector.shape_cast %360 : vector<8x1xi1> to vector<8x1xi1>
    %437 = vector.broadcast %436 : vector<8x1xi1> to vector<8x32xi1>
    %438 = arith.select %437, %426, %329 : vector<8x32xi1>, vector<8x32xf32>
    %439 = arith.truncf %393 : vector<8x32xf32> to vector<8x32xbf16>
    %440 = arith.index_cast %c3_i32 : i32 to index
    %c0_127 = arith.constant 0 : index
    %c0_128 = arith.constant 0 : index
    %441 = vector.load %arg11[%440, %c0_127, %c0_128] : memref<8x8x32xbf16, #tpu.memory_space<vmem>>, vector<1x8x32xbf16>
    %442 = vector.shape_cast %441 : vector<1x8x32xbf16> to vector<8x32xbf16>
    %443 = vector.shape_cast %439 : vector<8x32xbf16> to vector<1x8x32xbf16>
    tpu.vector_store %arg11[%440, %c0_127, %c0_128], %443 {strides = array<i32>} : memref<8x8x32xbf16, #tpu.memory_space<vmem>>, vector<1x8x32xbf16>,
    %444 = arith.truncf %432 : vector<8x32xf32> to vector<8x32xbf16>
    %445 = arith.index_cast %340 : i32 to index
    %c0_129 = arith.constant 0 : index
    %c0_130 = arith.constant 0 : index
    %446 = vector.load %arg12[%445, %c0_129, %c0_130] : memref<8x8x32xbf16, #tpu.memory_space<vmem>>, vector<1x8x32xbf16>
    %447 = vector.shape_cast %446 : vector<1x8x32xbf16> to vector<8x32xbf16>
    %448 = vector.shape_cast %444 : vector<8x32xbf16> to vector<1x8x32xbf16>
    tpu.vector_store %arg12[%445, %c0_129, %c0_130], %448 {strides = array<i32>} : memref<8x8x32xbf16, #tpu.memory_space<vmem>>, vector<1x8x32xbf16>,
    %c4_i32 = arith.constant 4 : i32
    %c7_i32_131 = arith.constant 7 : i32
    %449 = arith.subi %c7_i32_131, %c4_i32 : i32
    %450 = arith.index_cast %c4_i32 : i32 to index
    %c0_132 = arith.constant 0 : index
    %c0_133 = arith.constant 0 : index
    %451 = vector.load %arg3[%450, %c0_132, %c0_133] : memref<8x8x16xbf16, #tpu.memory_space<vmem>>, vector<1x8x16xbf16>
    %452 = vector.shape_cast %451 : vector<1x8x16xbf16> to vector<8x16xbf16>
    %c0_134 = arith.constant 0 : index
    %c0_135 = arith.constant 0 : index
    %453 = vector.load %arg5[%c0_134, %c0_135] : memref<16x128xbf16, #tpu.memory_space<vmem>>, vector<16x128xbf16>
    %cst_136 = arith.constant dense<0.000000e+00> : vector<8x128xf32>
    %454 = tpu.matmul %452, %453, %cst_136 {dimension_numbers = #tpu.dot_dimension_numbers<[1], [0], [0], [1], [0, 0, 1, 1], [], []>} : vector<8x16xbf16>, vector<16x128xbf16>, vector<8x128xf32> -> vector<8x128xf32>
    %455 = vector.broadcast %4 : vector<1x128xf32> to vector<8x128xf32>
    %456 = arith.addf %455, %454 : vector<8x128xf32>
    %457 = arith.index_cast %449 : i32 to index
    %c0_137 = arith.constant 0 : index
    %c0_138 = arith.constant 0 : index
    %458 = vector.load %arg4[%457, %c0_137, %c0_138] : memref<8x8x16xbf16, #tpu.memory_space<vmem>>, vector<1x8x16xbf16>
    %459 = vector.shape_cast %458 : vector<1x8x16xbf16> to vector<8x16xbf16>
    %c0_139 = arith.constant 0 : index
    %c0_140 = arith.constant 0 : index
    %460 = vector.load %arg6[%c0_139, %c0_140] : memref<16x128xbf16, #tpu.memory_space<vmem>>, vector<16x128xbf16>
    %cst_141 = arith.constant dense<0.000000e+00> : vector<8x128xf32>
    %461 = tpu.matmul %459, %460, %cst_141 {dimension_numbers = #tpu.dot_dimension_numbers<[1], [0], [0], [1], [0, 0, 1, 1], [], []>} : vector<8x16xbf16>, vector<16x128xbf16>, vector<8x128xf32> -> vector<8x128xf32>
    %462 = vector.broadcast %5 : vector<1x128xf32> to vector<8x128xf32>
    %463 = arith.addf %462, %461 : vector<8x128xf32>
    %464 = arith.addi %6, %c4_i32 : i32
    %465 = vector.broadcast %464 : i32 to vector<8x1xi32>
    %466 = arith.cmpi slt, %465, %3 : vector<8x1xi32>
    %467 = arith.addi %8, %449 : i32
    %468 = vector.broadcast %467 : i32 to vector<8x1xi32>
    %469 = arith.cmpi slt, %468, %3 : vector<8x1xi32>
    %470 = arith.truncf %396 : vector<8x32xf32> to vector<8x32xbf16>
    %c0_142 = arith.constant 0 : index
    %c0_143 = arith.constant 0 : index
    %471 = vector.load %arg7[%c0_142, %c0_143] : memref<32x128xbf16, #tpu.memory_space<vmem>>, vector<32x128xbf16>
    %cst_144 = arith.constant dense<0.000000e+00> : vector<8x128xf32>
    %472 = tpu.matmul %470, %471, %cst_144 {dimension_numbers = #tpu.dot_dimension_numbers<[1], [0], [0], [1], [0, 0, 1, 1], [], []>} : vector<8x32xbf16>, vector<32x128xbf16>, vector<8x128xf32> -> vector<8x128xf32>
    %473 = arith.addf %456, %472 : vector<8x128xf32>
    %474 = vector.extract_strided_slice %473 {offsets = [0, 0], sizes = [8, 32], strides = [1, 1]} : vector<8x128xf32> to vector<8x32xf32>
    %475 = arith.negf %474 : vector<8x32xf32>
    %476 = math.exp %475 : vector<8x32xf32>
    %cst_145 = arith.constant 1.000000e+00 : f32
    %477 = vector.broadcast %cst_145 : f32 to vector<8x32xf32>
    %478 = arith.addf %477, %476 : vector<8x32xf32>
    %479 = arith.divf %477, %478 : vector<8x32xf32>
    %480 = vector.extract_strided_slice %473 {offsets = [0, 32], sizes = [8, 32], strides = [1, 1]} : vector<8x128xf32> to vector<8x32xf32>
    %481 = arith.negf %480 : vector<8x32xf32>
    %482 = math.exp %481 : vector<8x32xf32>
    %cst_146 = arith.constant 1.000000e+00 : f32
    %483 = vector.broadcast %cst_146 : f32 to vector<8x32xf32>
    %484 = arith.addf %483, %482 : vector<8x32xf32>
    %485 = arith.divf %483, %484 : vector<8x32xf32>
    %486 = vector.extract_strided_slice %473 {offsets = [0, 64], sizes = [8, 32], strides = [1, 1]} : vector<8x128xf32> to vector<8x32xf32>
    %487 = math.tanh %486 : vector<8x32xf32>
    %488 = vector.extract_strided_slice %473 {offsets = [0, 96], sizes = [8, 32], strides = [1, 1]} : vector<8x128xf32> to vector<8x32xf32>
    %489 = arith.negf %488 : vector<8x32xf32>
    %490 = math.exp %489 : vector<8x32xf32>
    %cst_147 = arith.constant 1.000000e+00 : f32
    %491 = vector.broadcast %cst_147 : f32 to vector<8x32xf32>
    %492 = arith.addf %491, %490 : vector<8x32xf32>
    %493 = arith.divf %491, %492 : vector<8x32xf32>
    %494 = arith.mulf %485, %399 : vector<8x32xf32>
    %495 = arith.mulf %479, %487 : vector<8x32xf32>
    %496 = arith.addf %494, %495 : vector<8x32xf32>
    %497 = math.tanh %496 : vector<8x32xf32>
    %498 = arith.mulf %493, %497 : vector<8x32xf32>
    %cst_148 = arith.constant 0.000000e+00 : f32
    %499 = vector.shape_cast %466 : vector<8x1xi1> to vector<8x1xi1>
    %500 = vector.broadcast %499 : vector<8x1xi1> to vector<8x32xi1>
    %501 = vector.broadcast %cst_148 : f32 to vector<8x32xf32>
    %502 = arith.select %500, %498, %501 : vector<8x32xi1>, vector<8x32xf32>
    %503 = vector.shape_cast %466 : vector<8x1xi1> to vector<8x1xi1>
    %504 = vector.broadcast %503 : vector<8x1xi1> to vector<8x32xi1>
    %505 = arith.select %504, %498, %396 : vector<8x32xi1>, vector<8x32xf32>
    %506 = vector.shape_cast %466 : vector<8x1xi1> to vector<8x1xi1>
    %507 = vector.broadcast %506 : vector<8x1xi1> to vector<8x32xi1>
    %508 = arith.select %507, %496, %399 : vector<8x32xi1>, vector<8x32xf32>
    %509 = arith.truncf %435 : vector<8x32xf32> to vector<8x32xbf16>
    %c0_149 = arith.constant 0 : index
    %c0_150 = arith.constant 0 : index
    %510 = vector.load %arg8[%c0_149, %c0_150] : memref<32x128xbf16, #tpu.memory_space<vmem>>, vector<32x128xbf16>
    %cst_151 = arith.constant dense<0.000000e+00> : vector<8x128xf32>
    %511 = tpu.matmul %509, %510, %cst_151 {dimension_numbers = #tpu.dot_dimension_numbers<[1], [0], [0], [1], [0, 0, 1, 1], [], []>} : vector<8x32xbf16>, vector<32x128xbf16>, vector<8x128xf32> -> vector<8x128xf32>
    %512 = arith.addf %463, %511 : vector<8x128xf32>
    %513 = vector.extract_strided_slice %512 {offsets = [0, 0], sizes = [8, 32], strides = [1, 1]} : vector<8x128xf32> to vector<8x32xf32>
    %514 = arith.negf %513 : vector<8x32xf32>
    %515 = math.exp %514 : vector<8x32xf32>
    %cst_152 = arith.constant 1.000000e+00 : f32
    %516 = vector.broadcast %cst_152 : f32 to vector<8x32xf32>
    %517 = arith.addf %516, %515 : vector<8x32xf32>
    %518 = arith.divf %516, %517 : vector<8x32xf32>
    %519 = vector.extract_strided_slice %512 {offsets = [0, 32], sizes = [8, 32], strides = [1, 1]} : vector<8x128xf32> to vector<8x32xf32>
    %520 = arith.negf %519 : vector<8x32xf32>
    %521 = math.exp %520 : vector<8x32xf32>
    %cst_153 = arith.constant 1.000000e+00 : f32
    %522 = vector.broadcast %cst_153 : f32 to vector<8x32xf32>
    %523 = arith.addf %522, %521 : vector<8x32xf32>
    %524 = arith.divf %522, %523 : vector<8x32xf32>
    %525 = vector.extract_strided_slice %512 {offsets = [0, 64], sizes = [8, 32], strides = [1, 1]} : vector<8x128xf32> to vector<8x32xf32>
    %526 = math.tanh %525 : vector<8x32xf32>
    %527 = vector.extract_strided_slice %512 {offsets = [0, 96], sizes = [8, 32], strides = [1, 1]} : vector<8x128xf32> to vector<8x32xf32>
    %528 = arith.negf %527 : vector<8x32xf32>
    %529 = math.exp %528 : vector<8x32xf32>
    %cst_154 = arith.constant 1.000000e+00 : f32
    %530 = vector.broadcast %cst_154 : f32 to vector<8x32xf32>
    %531 = arith.addf %530, %529 : vector<8x32xf32>
    %532 = arith.divf %530, %531 : vector<8x32xf32>
    %533 = arith.mulf %524, %438 : vector<8x32xf32>
    %534 = arith.mulf %518, %526 : vector<8x32xf32>
    %535 = arith.addf %533, %534 : vector<8x32xf32>
    %536 = math.tanh %535 : vector<8x32xf32>
    %537 = arith.mulf %532, %536 : vector<8x32xf32>
    %cst_155 = arith.constant 0.000000e+00 : f32
    %538 = vector.shape_cast %469 : vector<8x1xi1> to vector<8x1xi1>
    %539 = vector.broadcast %538 : vector<8x1xi1> to vector<8x32xi1>
    %540 = vector.broadcast %cst_155 : f32 to vector<8x32xf32>
    %541 = arith.select %539, %537, %540 : vector<8x32xi1>, vector<8x32xf32>
    %542 = vector.shape_cast %469 : vector<8x1xi1> to vector<8x1xi1>
    %543 = vector.broadcast %542 : vector<8x1xi1> to vector<8x32xi1>
    %544 = arith.select %543, %537, %435 : vector<8x32xi1>, vector<8x32xf32>
    %545 = vector.shape_cast %469 : vector<8x1xi1> to vector<8x1xi1>
    %546 = vector.broadcast %545 : vector<8x1xi1> to vector<8x32xi1>
    %547 = arith.select %546, %535, %438 : vector<8x32xi1>, vector<8x32xf32>
    %548 = arith.truncf %502 : vector<8x32xf32> to vector<8x32xbf16>
    %549 = arith.index_cast %c4_i32 : i32 to index
    %c0_156 = arith.constant 0 : index
    %c0_157 = arith.constant 0 : index
    %550 = vector.load %arg11[%549, %c0_156, %c0_157] : memref<8x8x32xbf16, #tpu.memory_space<vmem>>, vector<1x8x32xbf16>
    %551 = vector.shape_cast %550 : vector<1x8x32xbf16> to vector<8x32xbf16>
    %552 = vector.shape_cast %548 : vector<8x32xbf16> to vector<1x8x32xbf16>
    tpu.vector_store %arg11[%549, %c0_156, %c0_157], %552 {strides = array<i32>} : memref<8x8x32xbf16, #tpu.memory_space<vmem>>, vector<1x8x32xbf16>,
    %553 = arith.truncf %541 : vector<8x32xf32> to vector<8x32xbf16>
    %554 = arith.index_cast %449 : i32 to index
    %c0_158 = arith.constant 0 : index
    %c0_159 = arith.constant 0 : index
    %555 = vector.load %arg12[%554, %c0_158, %c0_159] : memref<8x8x32xbf16, #tpu.memory_space<vmem>>, vector<1x8x32xbf16>
    %556 = vector.shape_cast %555 : vector<1x8x32xbf16> to vector<8x32xbf16>
    %557 = vector.shape_cast %553 : vector<8x32xbf16> to vector<1x8x32xbf16>
    tpu.vector_store %arg12[%554, %c0_158, %c0_159], %557 {strides = array<i32>} : memref<8x8x32xbf16, #tpu.memory_space<vmem>>, vector<1x8x32xbf16>,
    %c5_i32 = arith.constant 5 : i32
    %c7_i32_160 = arith.constant 7 : i32
    %558 = arith.subi %c7_i32_160, %c5_i32 : i32
    %559 = arith.index_cast %c5_i32 : i32 to index
    %c0_161 = arith.constant 0 : index
    %c0_162 = arith.constant 0 : index
    %560 = vector.load %arg3[%559, %c0_161, %c0_162] : memref<8x8x16xbf16, #tpu.memory_space<vmem>>, vector<1x8x16xbf16>
    %561 = vector.shape_cast %560 : vector<1x8x16xbf16> to vector<8x16xbf16>
    %c0_163 = arith.constant 0 : index
    %c0_164 = arith.constant 0 : index
    %562 = vector.load %arg5[%c0_163, %c0_164] : memref<16x128xbf16, #tpu.memory_space<vmem>>, vector<16x128xbf16>
    %cst_165 = arith.constant dense<0.000000e+00> : vector<8x128xf32>
    %563 = tpu.matmul %561, %562, %cst_165 {dimension_numbers = #tpu.dot_dimension_numbers<[1], [0], [0], [1], [0, 0, 1, 1], [], []>} : vector<8x16xbf16>, vector<16x128xbf16>, vector<8x128xf32> -> vector<8x128xf32>
    %564 = vector.broadcast %4 : vector<1x128xf32> to vector<8x128xf32>
    %565 = arith.addf %564, %563 : vector<8x128xf32>
    %566 = arith.index_cast %558 : i32 to index
    %c0_166 = arith.constant 0 : index
    %c0_167 = arith.constant 0 : index
    %567 = vector.load %arg4[%566, %c0_166, %c0_167] : memref<8x8x16xbf16, #tpu.memory_space<vmem>>, vector<1x8x16xbf16>
    %568 = vector.shape_cast %567 : vector<1x8x16xbf16> to vector<8x16xbf16>
    %c0_168 = arith.constant 0 : index
    %c0_169 = arith.constant 0 : index
    %569 = vector.load %arg6[%c0_168, %c0_169] : memref<16x128xbf16, #tpu.memory_space<vmem>>, vector<16x128xbf16>
    %cst_170 = arith.constant dense<0.000000e+00> : vector<8x128xf32>
    %570 = tpu.matmul %568, %569, %cst_170 {dimension_numbers = #tpu.dot_dimension_numbers<[1], [0], [0], [1], [0, 0, 1, 1], [], []>} : vector<8x16xbf16>, vector<16x128xbf16>, vector<8x128xf32> -> vector<8x128xf32>
    %571 = vector.broadcast %5 : vector<1x128xf32> to vector<8x128xf32>
    %572 = arith.addf %571, %570 : vector<8x128xf32>
    %573 = arith.addi %6, %c5_i32 : i32
    %574 = vector.broadcast %573 : i32 to vector<8x1xi32>
    %575 = arith.cmpi slt, %574, %3 : vector<8x1xi32>
    %576 = arith.addi %8, %558 : i32
    %577 = vector.broadcast %576 : i32 to vector<8x1xi32>
    %578 = arith.cmpi slt, %577, %3 : vector<8x1xi32>
    %579 = arith.truncf %505 : vector<8x32xf32> to vector<8x32xbf16>
    %c0_171 = arith.constant 0 : index
    %c0_172 = arith.constant 0 : index
    %580 = vector.load %arg7[%c0_171, %c0_172] : memref<32x128xbf16, #tpu.memory_space<vmem>>, vector<32x128xbf16>
    %cst_173 = arith.constant dense<0.000000e+00> : vector<8x128xf32>
    %581 = tpu.matmul %579, %580, %cst_173 {dimension_numbers = #tpu.dot_dimension_numbers<[1], [0], [0], [1], [0, 0, 1, 1], [], []>} : vector<8x32xbf16>, vector<32x128xbf16>, vector<8x128xf32> -> vector<8x128xf32>
    %582 = arith.addf %565, %581 : vector<8x128xf32>
    %583 = vector.extract_strided_slice %582 {offsets = [0, 0], sizes = [8, 32], strides = [1, 1]} : vector<8x128xf32> to vector<8x32xf32>
    %584 = arith.negf %583 : vector<8x32xf32>
    %585 = math.exp %584 : vector<8x32xf32>
    %cst_174 = arith.constant 1.000000e+00 : f32
    %586 = vector.broadcast %cst_174 : f32 to vector<8x32xf32>
    %587 = arith.addf %586, %585 : vector<8x32xf32>
    %588 = arith.divf %586, %587 : vector<8x32xf32>
    %589 = vector.extract_strided_slice %582 {offsets = [0, 32], sizes = [8, 32], strides = [1, 1]} : vector<8x128xf32> to vector<8x32xf32>
    %590 = arith.negf %589 : vector<8x32xf32>
    %591 = math.exp %590 : vector<8x32xf32>
    %cst_175 = arith.constant 1.000000e+00 : f32
    %592 = vector.broadcast %cst_175 : f32 to vector<8x32xf32>
    %593 = arith.addf %592, %591 : vector<8x32xf32>
    %594 = arith.divf %592, %593 : vector<8x32xf32>
    %595 = vector.extract_strided_slice %582 {offsets = [0, 64], sizes = [8, 32], strides = [1, 1]} : vector<8x128xf32> to vector<8x32xf32>
    %596 = math.tanh %595 : vector<8x32xf32>
    %597 = vector.extract_strided_slice %582 {offsets = [0, 96], sizes = [8, 32], strides = [1, 1]} : vector<8x128xf32> to vector<8x32xf32>
    %598 = arith.negf %597 : vector<8x32xf32>
    %599 = math.exp %598 : vector<8x32xf32>
    %cst_176 = arith.constant 1.000000e+00 : f32
    %600 = vector.broadcast %cst_176 : f32 to vector<8x32xf32>
    %601 = arith.addf %600, %599 : vector<8x32xf32>
    %602 = arith.divf %600, %601 : vector<8x32xf32>
    %603 = arith.mulf %594, %508 : vector<8x32xf32>
    %604 = arith.mulf %588, %596 : vector<8x32xf32>
    %605 = arith.addf %603, %604 : vector<8x32xf32>
    %606 = math.tanh %605 : vector<8x32xf32>
    %607 = arith.mulf %602, %606 : vector<8x32xf32>
    %cst_177 = arith.constant 0.000000e+00 : f32
    %608 = vector.shape_cast %575 : vector<8x1xi1> to vector<8x1xi1>
    %609 = vector.broadcast %608 : vector<8x1xi1> to vector<8x32xi1>
    %610 = vector.broadcast %cst_177 : f32 to vector<8x32xf32>
    %611 = arith.select %609, %607, %610 : vector<8x32xi1>, vector<8x32xf32>
    %612 = vector.shape_cast %575 : vector<8x1xi1> to vector<8x1xi1>
    %613 = vector.broadcast %612 : vector<8x1xi1> to vector<8x32xi1>
    %614 = arith.select %613, %607, %505 : vector<8x32xi1>, vector<8x32xf32>
    %615 = vector.shape_cast %575 : vector<8x1xi1> to vector<8x1xi1>
    %616 = vector.broadcast %615 : vector<8x1xi1> to vector<8x32xi1>
    %617 = arith.select %616, %605, %508 : vector<8x32xi1>, vector<8x32xf32>
    %618 = arith.truncf %544 : vector<8x32xf32> to vector<8x32xbf16>
    %c0_178 = arith.constant 0 : index
    %c0_179 = arith.constant 0 : index
    %619 = vector.load %arg8[%c0_178, %c0_179] : memref<32x128xbf16, #tpu.memory_space<vmem>>, vector<32x128xbf16>
    %cst_180 = arith.constant dense<0.000000e+00> : vector<8x128xf32>
    %620 = tpu.matmul %618, %619, %cst_180 {dimension_numbers = #tpu.dot_dimension_numbers<[1], [0], [0], [1], [0, 0, 1, 1], [], []>} : vector<8x32xbf16>, vector<32x128xbf16>, vector<8x128xf32> -> vector<8x128xf32>
    %621 = arith.addf %572, %620 : vector<8x128xf32>
    %622 = vector.extract_strided_slice %621 {offsets = [0, 0], sizes = [8, 32], strides = [1, 1]} : vector<8x128xf32> to vector<8x32xf32>
    %623 = arith.negf %622 : vector<8x32xf32>
    %624 = math.exp %623 : vector<8x32xf32>
    %cst_181 = arith.constant 1.000000e+00 : f32
    %625 = vector.broadcast %cst_181 : f32 to vector<8x32xf32>
    %626 = arith.addf %625, %624 : vector<8x32xf32>
    %627 = arith.divf %625, %626 : vector<8x32xf32>
    %628 = vector.extract_strided_slice %621 {offsets = [0, 32], sizes = [8, 32], strides = [1, 1]} : vector<8x128xf32> to vector<8x32xf32>
    %629 = arith.negf %628 : vector<8x32xf32>
    %630 = math.exp %629 : vector<8x32xf32>
    %cst_182 = arith.constant 1.000000e+00 : f32
    %631 = vector.broadcast %cst_182 : f32 to vector<8x32xf32>
    %632 = arith.addf %631, %630 : vector<8x32xf32>
    %633 = arith.divf %631, %632 : vector<8x32xf32>
    %634 = vector.extract_strided_slice %621 {offsets = [0, 64], sizes = [8, 32], strides = [1, 1]} : vector<8x128xf32> to vector<8x32xf32>
    %635 = math.tanh %634 : vector<8x32xf32>
    %636 = vector.extract_strided_slice %621 {offsets = [0, 96], sizes = [8, 32], strides = [1, 1]} : vector<8x128xf32> to vector<8x32xf32>
    %637 = arith.negf %636 : vector<8x32xf32>
    %638 = math.exp %637 : vector<8x32xf32>
    %cst_183 = arith.constant 1.000000e+00 : f32
    %639 = vector.broadcast %cst_183 : f32 to vector<8x32xf32>
    %640 = arith.addf %639, %638 : vector<8x32xf32>
    %641 = arith.divf %639, %640 : vector<8x32xf32>
    %642 = arith.mulf %633, %547 : vector<8x32xf32>
    %643 = arith.mulf %627, %635 : vector<8x32xf32>
    %644 = arith.addf %642, %643 : vector<8x32xf32>
    %645 = math.tanh %644 : vector<8x32xf32>
    %646 = arith.mulf %641, %645 : vector<8x32xf32>
    %cst_184 = arith.constant 0.000000e+00 : f32
    %647 = vector.shape_cast %578 : vector<8x1xi1> to vector<8x1xi1>
    %648 = vector.broadcast %647 : vector<8x1xi1> to vector<8x32xi1>
    %649 = vector.broadcast %cst_184 : f32 to vector<8x32xf32>
    %650 = arith.select %648, %646, %649 : vector<8x32xi1>, vector<8x32xf32>
    %651 = vector.shape_cast %578 : vector<8x1xi1> to vector<8x1xi1>
    %652 = vector.broadcast %651 : vector<8x1xi1> to vector<8x32xi1>
    %653 = arith.select %652, %646, %544 : vector<8x32xi1>, vector<8x32xf32>
    %654 = vector.shape_cast %578 : vector<8x1xi1> to vector<8x1xi1>
    %655 = vector.broadcast %654 : vector<8x1xi1> to vector<8x32xi1>
    %656 = arith.select %655, %644, %547 : vector<8x32xi1>, vector<8x32xf32>
    %657 = arith.truncf %611 : vector<8x32xf32> to vector<8x32xbf16>
    %658 = arith.index_cast %c5_i32 : i32 to index
    %c0_185 = arith.constant 0 : index
    %c0_186 = arith.constant 0 : index
    %659 = vector.load %arg11[%658, %c0_185, %c0_186] : memref<8x8x32xbf16, #tpu.memory_space<vmem>>, vector<1x8x32xbf16>
    %660 = vector.shape_cast %659 : vector<1x8x32xbf16> to vector<8x32xbf16>
    %661 = vector.shape_cast %657 : vector<8x32xbf16> to vector<1x8x32xbf16>
    tpu.vector_store %arg11[%658, %c0_185, %c0_186], %661 {strides = array<i32>} : memref<8x8x32xbf16, #tpu.memory_space<vmem>>, vector<1x8x32xbf16>,
    %662 = arith.truncf %650 : vector<8x32xf32> to vector<8x32xbf16>
    %663 = arith.index_cast %558 : i32 to index
    %c0_187 = arith.constant 0 : index
    %c0_188 = arith.constant 0 : index
    %664 = vector.load %arg12[%663, %c0_187, %c0_188] : memref<8x8x32xbf16, #tpu.memory_space<vmem>>, vector<1x8x32xbf16>
    %665 = vector.shape_cast %664 : vector<1x8x32xbf16> to vector<8x32xbf16>
    %666 = vector.shape_cast %662 : vector<8x32xbf16> to vector<1x8x32xbf16>
    tpu.vector_store %arg12[%663, %c0_187, %c0_188], %666 {strides = array<i32>} : memref<8x8x32xbf16, #tpu.memory_space<vmem>>, vector<1x8x32xbf16>,
    %c6_i32 = arith.constant 6 : i32
    %c7_i32_189 = arith.constant 7 : i32
    %667 = arith.subi %c7_i32_189, %c6_i32 : i32
    %668 = arith.index_cast %c6_i32 : i32 to index
    %c0_190 = arith.constant 0 : index
    %c0_191 = arith.constant 0 : index
    %669 = vector.load %arg3[%668, %c0_190, %c0_191] : memref<8x8x16xbf16, #tpu.memory_space<vmem>>, vector<1x8x16xbf16>
    %670 = vector.shape_cast %669 : vector<1x8x16xbf16> to vector<8x16xbf16>
    %c0_192 = arith.constant 0 : index
    %c0_193 = arith.constant 0 : index
    %671 = vector.load %arg5[%c0_192, %c0_193] : memref<16x128xbf16, #tpu.memory_space<vmem>>, vector<16x128xbf16>
    %cst_194 = arith.constant dense<0.000000e+00> : vector<8x128xf32>
    %672 = tpu.matmul %670, %671, %cst_194 {dimension_numbers = #tpu.dot_dimension_numbers<[1], [0], [0], [1], [0, 0, 1, 1], [], []>} : vector<8x16xbf16>, vector<16x128xbf16>, vector<8x128xf32> -> vector<8x128xf32>
    %673 = vector.broadcast %4 : vector<1x128xf32> to vector<8x128xf32>
    %674 = arith.addf %673, %672 : vector<8x128xf32>
    %675 = arith.index_cast %667 : i32 to index
    %c0_195 = arith.constant 0 : index
    %c0_196 = arith.constant 0 : index
    %676 = vector.load %arg4[%675, %c0_195, %c0_196] : memref<8x8x16xbf16, #tpu.memory_space<vmem>>, vector<1x8x16xbf16>
    %677 = vector.shape_cast %676 : vector<1x8x16xbf16> to vector<8x16xbf16>
    %c0_197 = arith.constant 0 : index
    %c0_198 = arith.constant 0 : index
    %678 = vector.load %arg6[%c0_197, %c0_198] : memref<16x128xbf16, #tpu.memory_space<vmem>>, vector<16x128xbf16>
    %cst_199 = arith.constant dense<0.000000e+00> : vector<8x128xf32>
    %679 = tpu.matmul %677, %678, %cst_199 {dimension_numbers = #tpu.dot_dimension_numbers<[1], [0], [0], [1], [0, 0, 1, 1], [], []>} : vector<8x16xbf16>, vector<16x128xbf16>, vector<8x128xf32> -> vector<8x128xf32>
    %680 = vector.broadcast %5 : vector<1x128xf32> to vector<8x128xf32>
    %681 = arith.addf %680, %679 : vector<8x128xf32>
    %682 = arith.addi %6, %c6_i32 : i32
    %683 = vector.broadcast %682 : i32 to vector<8x1xi32>
    %684 = arith.cmpi slt, %683, %3 : vector<8x1xi32>
    %685 = arith.addi %8, %667 : i32
    %686 = vector.broadcast %685 : i32 to vector<8x1xi32>
    %687 = arith.cmpi slt, %686, %3 : vector<8x1xi32>
    %688 = arith.truncf %614 : vector<8x32xf32> to vector<8x32xbf16>
    %c0_200 = arith.constant 0 : index
    %c0_201 = arith.constant 0 : index
    %689 = vector.load %arg7[%c0_200, %c0_201] : memref<32x128xbf16, #tpu.memory_space<vmem>>, vector<32x128xbf16>
    %cst_202 = arith.constant dense<0.000000e+00> : vector<8x128xf32>
    %690 = tpu.matmul %688, %689, %cst_202 {dimension_numbers = #tpu.dot_dimension_numbers<[1], [0], [0], [1], [0, 0, 1, 1], [], []>} : vector<8x32xbf16>, vector<32x128xbf16>, vector<8x128xf32> -> vector<8x128xf32>
    %691 = arith.addf %674, %690 : vector<8x128xf32>
    %692 = vector.extract_strided_slice %691 {offsets = [0, 0], sizes = [8, 32], strides = [1, 1]} : vector<8x128xf32> to vector<8x32xf32>
    %693 = arith.negf %692 : vector<8x32xf32>
    %694 = math.exp %693 : vector<8x32xf32>
    %cst_203 = arith.constant 1.000000e+00 : f32
    %695 = vector.broadcast %cst_203 : f32 to vector<8x32xf32>
    %696 = arith.addf %695, %694 : vector<8x32xf32>
    %697 = arith.divf %695, %696 : vector<8x32xf32>
    %698 = vector.extract_strided_slice %691 {offsets = [0, 32], sizes = [8, 32], strides = [1, 1]} : vector<8x128xf32> to vector<8x32xf32>
    %699 = arith.negf %698 : vector<8x32xf32>
    %700 = math.exp %699 : vector<8x32xf32>
    %cst_204 = arith.constant 1.000000e+00 : f32
    %701 = vector.broadcast %cst_204 : f32 to vector<8x32xf32>
    %702 = arith.addf %701, %700 : vector<8x32xf32>
    %703 = arith.divf %701, %702 : vector<8x32xf32>
    %704 = vector.extract_strided_slice %691 {offsets = [0, 64], sizes = [8, 32], strides = [1, 1]} : vector<8x128xf32> to vector<8x32xf32>
    %705 = math.tanh %704 : vector<8x32xf32>
    %706 = vector.extract_strided_slice %691 {offsets = [0, 96], sizes = [8, 32], strides = [1, 1]} : vector<8x128xf32> to vector<8x32xf32>
    %707 = arith.negf %706 : vector<8x32xf32>
    %708 = math.exp %707 : vector<8x32xf32>
    %cst_205 = arith.constant 1.000000e+00 : f32
    %709 = vector.broadcast %cst_205 : f32 to vector<8x32xf32>
    %710 = arith.addf %709, %708 : vector<8x32xf32>
    %711 = arith.divf %709, %710 : vector<8x32xf32>
    %712 = arith.mulf %703, %617 : vector<8x32xf32>
    %713 = arith.mulf %697, %705 : vector<8x32xf32>
    %714 = arith.addf %712, %713 : vector<8x32xf32>
    %715 = math.tanh %714 : vector<8x32xf32>
    %716 = arith.mulf %711, %715 : vector<8x32xf32>
    %cst_206 = arith.constant 0.000000e+00 : f32
    %717 = vector.shape_cast %684 : vector<8x1xi1> to vector<8x1xi1>
    %718 = vector.broadcast %717 : vector<8x1xi1> to vector<8x32xi1>
    %719 = vector.broadcast %cst_206 : f32 to vector<8x32xf32>
    %720 = arith.select %718, %716, %719 : vector<8x32xi1>, vector<8x32xf32>
    %721 = vector.shape_cast %684 : vector<8x1xi1> to vector<8x1xi1>
    %722 = vector.broadcast %721 : vector<8x1xi1> to vector<8x32xi1>
    %723 = arith.select %722, %716, %614 : vector<8x32xi1>, vector<8x32xf32>
    %724 = vector.shape_cast %684 : vector<8x1xi1> to vector<8x1xi1>
    %725 = vector.broadcast %724 : vector<8x1xi1> to vector<8x32xi1>
    %726 = arith.select %725, %714, %617 : vector<8x32xi1>, vector<8x32xf32>
    %727 = arith.truncf %653 : vector<8x32xf32> to vector<8x32xbf16>
    %c0_207 = arith.constant 0 : index
    %c0_208 = arith.constant 0 : index
    %728 = vector.load %arg8[%c0_207, %c0_208] : memref<32x128xbf16, #tpu.memory_space<vmem>>, vector<32x128xbf16>
    %cst_209 = arith.constant dense<0.000000e+00> : vector<8x128xf32>
    %729 = tpu.matmul %727, %728, %cst_209 {dimension_numbers = #tpu.dot_dimension_numbers<[1], [0], [0], [1], [0, 0, 1, 1], [], []>} : vector<8x32xbf16>, vector<32x128xbf16>, vector<8x128xf32> -> vector<8x128xf32>
    %730 = arith.addf %681, %729 : vector<8x128xf32>
    %731 = vector.extract_strided_slice %730 {offsets = [0, 0], sizes = [8, 32], strides = [1, 1]} : vector<8x128xf32> to vector<8x32xf32>
    %732 = arith.negf %731 : vector<8x32xf32>
    %733 = math.exp %732 : vector<8x32xf32>
    %cst_210 = arith.constant 1.000000e+00 : f32
    %734 = vector.broadcast %cst_210 : f32 to vector<8x32xf32>
    %735 = arith.addf %734, %733 : vector<8x32xf32>
    %736 = arith.divf %734, %735 : vector<8x32xf32>
    %737 = vector.extract_strided_slice %730 {offsets = [0, 32], sizes = [8, 32], strides = [1, 1]} : vector<8x128xf32> to vector<8x32xf32>
    %738 = arith.negf %737 : vector<8x32xf32>
    %739 = math.exp %738 : vector<8x32xf32>
    %cst_211 = arith.constant 1.000000e+00 : f32
    %740 = vector.broadcast %cst_211 : f32 to vector<8x32xf32>
    %741 = arith.addf %740, %739 : vector<8x32xf32>
    %742 = arith.divf %740, %741 : vector<8x32xf32>
    %743 = vector.extract_strided_slice %730 {offsets = [0, 64], sizes = [8, 32], strides = [1, 1]} : vector<8x128xf32> to vector<8x32xf32>
    %744 = math.tanh %743 : vector<8x32xf32>
    %745 = vector.extract_strided_slice %730 {offsets = [0, 96], sizes = [8, 32], strides = [1, 1]} : vector<8x128xf32> to vector<8x32xf32>
    %746 = arith.negf %745 : vector<8x32xf32>
    %747 = math.exp %746 : vector<8x32xf32>
    %cst_212 = arith.constant 1.000000e+00 : f32
    %748 = vector.broadcast %cst_212 : f32 to vector<8x32xf32>
    %749 = arith.addf %748, %747 : vector<8x32xf32>
    %750 = arith.divf %748, %749 : vector<8x32xf32>
    %751 = arith.mulf %742, %656 : vector<8x32xf32>
    %752 = arith.mulf %736, %744 : vector<8x32xf32>
    %753 = arith.addf %751, %752 : vector<8x32xf32>
    %754 = math.tanh %753 : vector<8x32xf32>
    %755 = arith.mulf %750, %754 : vector<8x32xf32>
    %cst_213 = arith.constant 0.000000e+00 : f32
    %756 = vector.shape_cast %687 : vector<8x1xi1> to vector<8x1xi1>
    %757 = vector.broadcast %756 : vector<8x1xi1> to vector<8x32xi1>
    %758 = vector.broadcast %cst_213 : f32 to vector<8x32xf32>
    %759 = arith.select %757, %755, %758 : vector<8x32xi1>, vector<8x32xf32>
    %760 = vector.shape_cast %687 : vector<8x1xi1> to vector<8x1xi1>
    %761 = vector.broadcast %760 : vector<8x1xi1> to vector<8x32xi1>
    %762 = arith.select %761, %755, %653 : vector<8x32xi1>, vector<8x32xf32>
    %763 = vector.shape_cast %687 : vector<8x1xi1> to vector<8x1xi1>
    %764 = vector.broadcast %763 : vector<8x1xi1> to vector<8x32xi1>
    %765 = arith.select %764, %753, %656 : vector<8x32xi1>, vector<8x32xf32>
    %766 = arith.truncf %720 : vector<8x32xf32> to vector<8x32xbf16>
    %767 = arith.index_cast %c6_i32 : i32 to index
    %c0_214 = arith.constant 0 : index
    %c0_215 = arith.constant 0 : index
    %768 = vector.load %arg11[%767, %c0_214, %c0_215] : memref<8x8x32xbf16, #tpu.memory_space<vmem>>, vector<1x8x32xbf16>
    %769 = vector.shape_cast %768 : vector<1x8x32xbf16> to vector<8x32xbf16>
    %770 = vector.shape_cast %766 : vector<8x32xbf16> to vector<1x8x32xbf16>
    tpu.vector_store %arg11[%767, %c0_214, %c0_215], %770 {strides = array<i32>} : memref<8x8x32xbf16, #tpu.memory_space<vmem>>, vector<1x8x32xbf16>,
    %771 = arith.truncf %759 : vector<8x32xf32> to vector<8x32xbf16>
    %772 = arith.index_cast %667 : i32 to index
    %c0_216 = arith.constant 0 : index
    %c0_217 = arith.constant 0 : index
    %773 = vector.load %arg12[%772, %c0_216, %c0_217] : memref<8x8x32xbf16, #tpu.memory_space<vmem>>, vector<1x8x32xbf16>
    %774 = vector.shape_cast %773 : vector<1x8x32xbf16> to vector<8x32xbf16>
    %775 = vector.shape_cast %771 : vector<8x32xbf16> to vector<1x8x32xbf16>
    tpu.vector_store %arg12[%772, %c0_216, %c0_217], %775 {strides = array<i32>} : memref<8x8x32xbf16, #tpu.memory_space<vmem>>, vector<1x8x32xbf16>,
    %c7_i32_218 = arith.constant 7 : i32
    %c7_i32_219 = arith.constant 7 : i32
    %776 = arith.subi %c7_i32_219, %c7_i32_218 : i32
    %777 = arith.index_cast %c7_i32_218 : i32 to index
    %c0_220 = arith.constant 0 : index
    %c0_221 = arith.constant 0 : index
    %778 = vector.load %arg3[%777, %c0_220, %c0_221] : memref<8x8x16xbf16, #tpu.memory_space<vmem>>, vector<1x8x16xbf16>
    %779 = vector.shape_cast %778 : vector<1x8x16xbf16> to vector<8x16xbf16>
    %c0_222 = arith.constant 0 : index
    %c0_223 = arith.constant 0 : index
    %780 = vector.load %arg5[%c0_222, %c0_223] : memref<16x128xbf16, #tpu.memory_space<vmem>>, vector<16x128xbf16>
    %cst_224 = arith.constant dense<0.000000e+00> : vector<8x128xf32>
    %781 = tpu.matmul %779, %780, %cst_224 {dimension_numbers = #tpu.dot_dimension_numbers<[1], [0], [0], [1], [0, 0, 1, 1], [], []>} : vector<8x16xbf16>, vector<16x128xbf16>, vector<8x128xf32> -> vector<8x128xf32>
    %782 = vector.broadcast %4 : vector<1x128xf32> to vector<8x128xf32>
    %783 = arith.addf %782, %781 : vector<8x128xf32>
    %784 = arith.index_cast %776 : i32 to index
    %c0_225 = arith.constant 0 : index
    %c0_226 = arith.constant 0 : index
    %785 = vector.load %arg4[%784, %c0_225, %c0_226] : memref<8x8x16xbf16, #tpu.memory_space<vmem>>, vector<1x8x16xbf16>
    %786 = vector.shape_cast %785 : vector<1x8x16xbf16> to vector<8x16xbf16>
    %c0_227 = arith.constant 0 : index
    %c0_228 = arith.constant 0 : index
    %787 = vector.load %arg6[%c0_227, %c0_228] : memref<16x128xbf16, #tpu.memory_space<vmem>>, vector<16x128xbf16>
    %cst_229 = arith.constant dense<0.000000e+00> : vector<8x128xf32>
    %788 = tpu.matmul %786, %787, %cst_229 {dimension_numbers = #tpu.dot_dimension_numbers<[1], [0], [0], [1], [0, 0, 1, 1], [], []>} : vector<8x16xbf16>, vector<16x128xbf16>, vector<8x128xf32> -> vector<8x128xf32>
    %789 = vector.broadcast %5 : vector<1x128xf32> to vector<8x128xf32>
    %790 = arith.addf %789, %788 : vector<8x128xf32>
    %791 = arith.addi %6, %c7_i32_218 : i32
    %792 = vector.broadcast %791 : i32 to vector<8x1xi32>
    %793 = arith.cmpi slt, %792, %3 : vector<8x1xi32>
    %794 = arith.addi %8, %776 : i32
    %795 = vector.broadcast %794 : i32 to vector<8x1xi32>
    %796 = arith.cmpi slt, %795, %3 : vector<8x1xi32>
    %797 = arith.truncf %723 : vector<8x32xf32> to vector<8x32xbf16>
    %c0_230 = arith.constant 0 : index
    %c0_231 = arith.constant 0 : index
    %798 = vector.load %arg7[%c0_230, %c0_231] : memref<32x128xbf16, #tpu.memory_space<vmem>>, vector<32x128xbf16>
    %cst_232 = arith.constant dense<0.000000e+00> : vector<8x128xf32>
    %799 = tpu.matmul %797, %798, %cst_232 {dimension_numbers = #tpu.dot_dimension_numbers<[1], [0], [0], [1], [0, 0, 1, 1], [], []>} : vector<8x32xbf16>, vector<32x128xbf16>, vector<8x128xf32> -> vector<8x128xf32>
    %800 = arith.addf %783, %799 : vector<8x128xf32>
    %801 = vector.extract_strided_slice %800 {offsets = [0, 0], sizes = [8, 32], strides = [1, 1]} : vector<8x128xf32> to vector<8x32xf32>
    %802 = arith.negf %801 : vector<8x32xf32>
    %803 = math.exp %802 : vector<8x32xf32>
    %cst_233 = arith.constant 1.000000e+00 : f32
    %804 = vector.broadcast %cst_233 : f32 to vector<8x32xf32>
    %805 = arith.addf %804, %803 : vector<8x32xf32>
    %806 = arith.divf %804, %805 : vector<8x32xf32>
    %807 = vector.extract_strided_slice %800 {offsets = [0, 32], sizes = [8, 32], strides = [1, 1]} : vector<8x128xf32> to vector<8x32xf32>
    %808 = arith.negf %807 : vector<8x32xf32>
    %809 = math.exp %808 : vector<8x32xf32>
    %cst_234 = arith.constant 1.000000e+00 : f32
    %810 = vector.broadcast %cst_234 : f32 to vector<8x32xf32>
    %811 = arith.addf %810, %809 : vector<8x32xf32>
    %812 = arith.divf %810, %811 : vector<8x32xf32>
    %813 = vector.extract_strided_slice %800 {offsets = [0, 64], sizes = [8, 32], strides = [1, 1]} : vector<8x128xf32> to vector<8x32xf32>
    %814 = math.tanh %813 : vector<8x32xf32>
    %815 = vector.extract_strided_slice %800 {offsets = [0, 96], sizes = [8, 32], strides = [1, 1]} : vector<8x128xf32> to vector<8x32xf32>
    %816 = arith.negf %815 : vector<8x32xf32>
    %817 = math.exp %816 : vector<8x32xf32>
    %cst_235 = arith.constant 1.000000e+00 : f32
    %818 = vector.broadcast %cst_235 : f32 to vector<8x32xf32>
    %819 = arith.addf %818, %817 : vector<8x32xf32>
    %820 = arith.divf %818, %819 : vector<8x32xf32>
    %821 = arith.mulf %812, %726 : vector<8x32xf32>
    %822 = arith.mulf %806, %814 : vector<8x32xf32>
    %823 = arith.addf %821, %822 : vector<8x32xf32>
    %824 = math.tanh %823 : vector<8x32xf32>
    %825 = arith.mulf %820, %824 : vector<8x32xf32>
    %cst_236 = arith.constant 0.000000e+00 : f32
    %826 = vector.shape_cast %793 : vector<8x1xi1> to vector<8x1xi1>
    %827 = vector.broadcast %826 : vector<8x1xi1> to vector<8x32xi1>
    %828 = vector.broadcast %cst_236 : f32 to vector<8x32xf32>
    %829 = arith.select %827, %825, %828 : vector<8x32xi1>, vector<8x32xf32>
    %830 = vector.shape_cast %793 : vector<8x1xi1> to vector<8x1xi1>
    %831 = vector.broadcast %830 : vector<8x1xi1> to vector<8x32xi1>
    %832 = arith.select %831, %825, %723 : vector<8x32xi1>, vector<8x32xf32>
    %833 = vector.shape_cast %793 : vector<8x1xi1> to vector<8x1xi1>
    %834 = vector.broadcast %833 : vector<8x1xi1> to vector<8x32xi1>
    %835 = arith.select %834, %823, %726 : vector<8x32xi1>, vector<8x32xf32>
    %836 = arith.truncf %762 : vector<8x32xf32> to vector<8x32xbf16>
    %c0_237 = arith.constant 0 : index
    %c0_238 = arith.constant 0 : index
    %837 = vector.load %arg8[%c0_237, %c0_238] : memref<32x128xbf16, #tpu.memory_space<vmem>>, vector<32x128xbf16>
    %cst_239 = arith.constant dense<0.000000e+00> : vector<8x128xf32>
    %838 = tpu.matmul %836, %837, %cst_239 {dimension_numbers = #tpu.dot_dimension_numbers<[1], [0], [0], [1], [0, 0, 1, 1], [], []>} : vector<8x32xbf16>, vector<32x128xbf16>, vector<8x128xf32> -> vector<8x128xf32>
    %839 = arith.addf %790, %838 : vector<8x128xf32>
    %840 = vector.extract_strided_slice %839 {offsets = [0, 0], sizes = [8, 32], strides = [1, 1]} : vector<8x128xf32> to vector<8x32xf32>
    %841 = arith.negf %840 : vector<8x32xf32>
    %842 = math.exp %841 : vector<8x32xf32>
    %cst_240 = arith.constant 1.000000e+00 : f32
    %843 = vector.broadcast %cst_240 : f32 to vector<8x32xf32>
    %844 = arith.addf %843, %842 : vector<8x32xf32>
    %845 = arith.divf %843, %844 : vector<8x32xf32>
    %846 = vector.extract_strided_slice %839 {offsets = [0, 32], sizes = [8, 32], strides = [1, 1]} : vector<8x128xf32> to vector<8x32xf32>
    %847 = arith.negf %846 : vector<8x32xf32>
    %848 = math.exp %847 : vector<8x32xf32>
    %cst_241 = arith.constant 1.000000e+00 : f32
    %849 = vector.broadcast %cst_241 : f32 to vector<8x32xf32>
    %850 = arith.addf %849, %848 : vector<8x32xf32>
    %851 = arith.divf %849, %850 : vector<8x32xf32>
    %852 = vector.extract_strided_slice %839 {offsets = [0, 64], sizes = [8, 32], strides = [1, 1]} : vector<8x128xf32> to vector<8x32xf32>
    %853 = math.tanh %852 : vector<8x32xf32>
    %854 = vector.extract_strided_slice %839 {offsets = [0, 96], sizes = [8, 32], strides = [1, 1]} : vector<8x128xf32> to vector<8x32xf32>
    %855 = arith.negf %854 : vector<8x32xf32>
    %856 = math.exp %855 : vector<8x32xf32>
    %cst_242 = arith.constant 1.000000e+00 : f32
    %857 = vector.broadcast %cst_242 : f32 to vector<8x32xf32>
    %858 = arith.addf %857, %856 : vector<8x32xf32>
    %859 = arith.divf %857, %858 : vector<8x32xf32>
    %860 = arith.mulf %851, %765 : vector<8x32xf32>
    %861 = arith.mulf %845, %853 : vector<8x32xf32>
    %862 = arith.addf %860, %861 : vector<8x32xf32>
    %863 = math.tanh %862 : vector<8x32xf32>
    %864 = arith.mulf %859, %863 : vector<8x32xf32>
    %cst_243 = arith.constant 0.000000e+00 : f32
    %865 = vector.shape_cast %796 : vector<8x1xi1> to vector<8x1xi1>
    %866 = vector.broadcast %865 : vector<8x1xi1> to vector<8x32xi1>
    %867 = vector.broadcast %cst_243 : f32 to vector<8x32xf32>
    %868 = arith.select %866, %864, %867 : vector<8x32xi1>, vector<8x32xf32>
    %869 = vector.shape_cast %796 : vector<8x1xi1> to vector<8x1xi1>
    %870 = vector.broadcast %869 : vector<8x1xi1> to vector<8x32xi1>
    %871 = arith.select %870, %864, %762 : vector<8x32xi1>, vector<8x32xf32>
    %872 = vector.shape_cast %796 : vector<8x1xi1> to vector<8x1xi1>
    %873 = vector.broadcast %872 : vector<8x1xi1> to vector<8x32xi1>
    %874 = arith.select %873, %862, %765 : vector<8x32xi1>, vector<8x32xf32>
    %875 = arith.truncf %829 : vector<8x32xf32> to vector<8x32xbf16>
    %876 = arith.index_cast %c7_i32_218 : i32 to index
    %c0_244 = arith.constant 0 : index
    %c0_245 = arith.constant 0 : index
    %877 = vector.load %arg11[%876, %c0_244, %c0_245] : memref<8x8x32xbf16, #tpu.memory_space<vmem>>, vector<1x8x32xbf16>
    %878 = vector.shape_cast %877 : vector<1x8x32xbf16> to vector<8x32xbf16>
    %879 = vector.shape_cast %875 : vector<8x32xbf16> to vector<1x8x32xbf16>
    tpu.vector_store %arg11[%876, %c0_244, %c0_245], %879 {strides = array<i32>} : memref<8x8x32xbf16, #tpu.memory_space<vmem>>, vector<1x8x32xbf16>,
    %880 = arith.truncf %868 : vector<8x32xf32> to vector<8x32xbf16>
    %881 = arith.index_cast %776 : i32 to index
    %c0_246 = arith.constant 0 : index
    %c0_247 = arith.constant 0 : index
    %882 = vector.load %arg12[%881, %c0_246, %c0_247] : memref<8x8x32xbf16, #tpu.memory_space<vmem>>, vector<1x8x32xbf16>
    %883 = vector.shape_cast %882 : vector<1x8x32xbf16> to vector<8x32xbf16>
    %884 = vector.shape_cast %880 : vector<8x32xbf16> to vector<1x8x32xbf16>
    tpu.vector_store %arg12[%881, %c0_246, %c0_247], %884 {strides = array<i32>} : memref<8x8x32xbf16, #tpu.memory_space<vmem>>, vector<1x8x32xbf16>,
    %c8_i32_248 = arith.constant 8 : i32
    %c0_249 = arith.constant 0 : index
    %c0_250 = arith.constant 0 : index
    %885 = vector.load %arg13[%c0_249, %c0_250] : memref<8x32xf32, #tpu.memory_space<vmem>>, vector<8x32xf32>
    tpu.vector_store %arg13[%c0_249, %c0_250], %832 {strides = array<i32>} : memref<8x32xf32, #tpu.memory_space<vmem>>, vector<8x32xf32>,
    %c0_251 = arith.constant 0 : index
    %c0_252 = arith.constant 0 : index
    %886 = vector.load %arg14[%c0_251, %c0_252] : memref<8x32xf32, #tpu.memory_space<vmem>>, vector<8x32xf32>
    tpu.vector_store %arg14[%c0_251, %c0_252], %835 {strides = array<i32>} : memref<8x32xf32, #tpu.memory_space<vmem>>, vector<8x32xf32>,
    %c0_253 = arith.constant 0 : index
    %c0_254 = arith.constant 0 : index
    %887 = vector.load %arg15[%c0_253, %c0_254] : memref<8x32xf32, #tpu.memory_space<vmem>>, vector<8x32xf32>
    tpu.vector_store %arg15[%c0_253, %c0_254], %871 {strides = array<i32>} : memref<8x32xf32, #tpu.memory_space<vmem>>, vector<8x32xf32>,
    %c0_255 = arith.constant 0 : index
    %c0_256 = arith.constant 0 : index
    %888 = vector.load %arg16[%c0_255, %c0_256] : memref<8x32xf32, #tpu.memory_space<vmem>>, vector<8x32xf32>
    tpu.vector_store %arg16[%c0_255, %c0_256], %874 {strides = array<i32>} : memref<8x32xf32, #tpu.memory_space<vmem>>, vector<8x32xf32>,
    return
  }
  func.func @transform_0(%arg0: i32, %arg1: i32) -> (i32, i32) {
    %c0_i32 = arith.constant 0 : i32
    %c0_i32_0 = arith.constant 0 : i32
    return %arg0, %c0_i32 : i32, i32
  }
  func.func @transform_1(%arg0: i32, %arg1: i32) -> (i32, i32, i32) {
    %c0_i32 = arith.constant 0 : i32
    %c0_i32_0 = arith.constant 0 : i32
    return %arg1, %arg0, %c0_i32 : i32, i32, i32
  }
  func.func @transform_2(%arg0: i32, %arg1: i32) -> (i32, i32, i32) {
    %c0_i32 = arith.constant 0 : i32
    %0 = arith.subi %c0_i32, %arg1 : i32
    %c0_i32_0 = arith.constant 0 : i32
    %c0_i32_1 = arith.constant 0 : i32
    return %0, %arg0, %c0_i32_0 : i32, i32, i32
  }
  func.func @transform_3(%arg0: i32, %arg1: i32) -> (i32, i32) {
    %c0_i32 = arith.constant 0 : i32
    %c0_i32_0 = arith.constant 0 : i32
    %c0_i32_1 = arith.constant 0 : i32
    return %c0_i32, %c0_i32_0 : i32, i32
  }
  func.func @transform_4(%arg0: i32, %arg1: i32) -> (i32, i32) {
    %c0_i32 = arith.constant 0 : i32
    %c0_i32_0 = arith.constant 0 : i32
    %c0_i32_1 = arith.constant 0 : i32
    return %c0_i32, %c0_i32_0 : i32, i32
  }
  func.func @transform_5(%arg0: i32, %arg1: i32) -> (i32, i32) {
    %c0_i32 = arith.constant 0 : i32
    %c0_i32_0 = arith.constant 0 : i32
    %c0_i32_1 = arith.constant 0 : i32
    return %c0_i32, %c0_i32_0 : i32, i32
  }
  func.func @transform_6(%arg0: i32, %arg1: i32) -> (i32, i32) {
    %c0_i32 = arith.constant 0 : i32
    %c0_i32_0 = arith.constant 0 : i32
    %c0_i32_1 = arith.constant 0 : i32
    return %c0_i32, %c0_i32_0 : i32, i32
  }
  func.func @transform_7(%arg0: i32, %arg1: i32) -> (i32, i32) {
    %c0_i32 = arith.constant 0 : i32
    %c0_i32_0 = arith.constant 0 : i32
    %c0_i32_1 = arith.constant 0 : i32
    return %c0_i32, %c0_i32_0 : i32, i32
  }
  func.func @transform_8(%arg0: i32, %arg1: i32) -> (i32, i32) {
    %c0_i32 = arith.constant 0 : i32
    %c0_i32_0 = arith.constant 0 : i32
    %c0_i32_1 = arith.constant 0 : i32
    return %c0_i32, %c0_i32_0 : i32, i32
  }
  func.func @transform_9(%arg0: i32, %arg1: i32) -> (i32, i32, i32) {
    %c0_i32 = arith.constant 0 : i32
    %c0_i32_0 = arith.constant 0 : i32
    return %arg1, %arg0, %c0_i32 : i32, i32, i32
  }
  func.func @transform_10(%arg0: i32, %arg1: i32) -> (i32, i32, i32) {
    %c0_i32 = arith.constant 0 : i32
    %0 = arith.subi %c0_i32, %arg1 : i32
    %c0_i32_0 = arith.constant 0 : i32
    %c0_i32_1 = arith.constant 0 : i32
    return %0, %arg0, %c0_i32_0 : i32, i32, i32
  }
}

module attributes {stable_mosaic.version = 11 : i64} {
  func.func @kernel(%arg0: i32, %arg1: i32, %arg2: memref<8x1xi32, #tpu.memory_space<vmem>>, %arg3: memref<8x8x32xbf16, #tpu.memory_space<vmem>>, %arg4: memref<8x8x32xbf16, #tpu.memory_space<vmem>>, %arg5: memref<8x8x32xbf16, #tpu.memory_space<vmem>>, %arg6: memref<8x8x32xbf16, #tpu.memory_space<vmem>>, %arg7: memref<32x128xbf16, #tpu.memory_space<vmem>>, %arg8: memref<32x128xbf16, #tpu.memory_space<vmem>>, %arg9: memref<32x128xbf16, #tpu.memory_space<vmem>>, %arg10: memref<32x128xbf16, #tpu.memory_space<vmem>>, %arg11: memref<32x128xbf16, #tpu.memory_space<vmem>>, %arg12: memref<32x128xbf16, #tpu.memory_space<vmem>>, %arg13: memref<1x128xf32, #tpu.memory_space<vmem>>, %arg14: memref<1x128xf32, #tpu.memory_space<vmem>>, %arg15: memref<8x8x32xbf16, #tpu.memory_space<vmem>>, %arg16: memref<8x8x32xbf16, #tpu.memory_space<vmem>>, %arg17: memref<8x32xf32, #tpu.memory_space<vmem>>, %arg18: memref<8x32xf32, #tpu.memory_space<vmem>>, %arg19: memref<8x32xf32, #tpu.memory_space<vmem>>, %arg20: memref<8x32xf32, #tpu.memory_space<vmem>>) attributes {dimension_semantics = [#tpu.dimension_semantics<parallel>, #tpu.dimension_semantics<arbitrary>], iteration_bounds = array<i64: 1, 1>, scalar_prefetch = 0 : i64, scratch_operands = 4 : i64, tpu.core_type = #tpu.core_type<tc>, window_params = [{transform_indices = @transform_0, window_bounds = array<i64: 8, 1>}, {transform_indices = @transform_1, window_bounds = array<i64: 8, 8, 32>}, {transform_indices = @transform_2, window_bounds = array<i64: 8, 8, 32>}, {transform_indices = @transform_3, window_bounds = array<i64: 8, 8, 32>}, {transform_indices = @transform_4, window_bounds = array<i64: 8, 8, 32>}, {pipeline_mode = #tpu.pipeline_mode<synchronous>, transform_indices = @transform_5, window_bounds = array<i64: 32, 128>}, {pipeline_mode = #tpu.pipeline_mode<synchronous>, transform_indices = @transform_6, window_bounds = array<i64: 32, 128>}, {pipeline_mode = #tpu.pipeline_mode<synchronous>, transform_indices = @transform_7, window_bounds = array<i64: 32, 128>}, {pipeline_mode = #tpu.pipeline_mode<synchronous>, transform_indices = @transform_8, window_bounds = array<i64: 32, 128>}, {pipeline_mode = #tpu.pipeline_mode<synchronous>, transform_indices = @transform_9, window_bounds = array<i64: 32, 128>}, {pipeline_mode = #tpu.pipeline_mode<synchronous>, transform_indices = @transform_10, window_bounds = array<i64: 32, 128>}, {pipeline_mode = #tpu.pipeline_mode<synchronous>, transform_indices = @transform_11, window_bounds = array<i64: 1, 128>}, {pipeline_mode = #tpu.pipeline_mode<synchronous>, transform_indices = @transform_12, window_bounds = array<i64: 1, 128>}, {transform_indices = @transform_13, window_bounds = array<i64: 8, 8, 32>}, {transform_indices = @transform_14, window_bounds = array<i64: 8, 8, 32>}]} {
    %c0_i32 = arith.constant 0 : i32
    %0 = arith.cmpi eq, %arg1, %c0_i32 : i32
    %1 = arith.extui %0 : i1 to i32
    %c0_i32_0 = arith.constant 0 : i32
    %2 = arith.cmpi ne, %1, %c0_i32_0 : i32
    scf.if %2 {
      %cst_337 = arith.constant 0.000000e+00 : f32
      %985 = vector.broadcast %cst_337 : f32 to vector<8x32xf32>
      %c0_338 = arith.constant 0 : index
      %c0_339 = arith.constant 0 : index
      %986 = vector.load %arg17[%c0_338, %c0_339] : memref<8x32xf32, #tpu.memory_space<vmem>>, vector<8x32xf32>
      tpu.vector_store %arg17[%c0_338, %c0_339], %985 {strides = array<i32>} : memref<8x32xf32, #tpu.memory_space<vmem>>, vector<8x32xf32>,
      %cst_340 = arith.constant 0.000000e+00 : f32
      %987 = vector.broadcast %cst_340 : f32 to vector<8x32xf32>
      %c0_341 = arith.constant 0 : index
      %c0_342 = arith.constant 0 : index
      %988 = vector.load %arg18[%c0_341, %c0_342] : memref<8x32xf32, #tpu.memory_space<vmem>>, vector<8x32xf32>
      tpu.vector_store %arg18[%c0_341, %c0_342], %987 {strides = array<i32>} : memref<8x32xf32, #tpu.memory_space<vmem>>, vector<8x32xf32>,
      %cst_343 = arith.constant 0.000000e+00 : f32
      %989 = vector.broadcast %cst_343 : f32 to vector<8x32xf32>
      %c0_344 = arith.constant 0 : index
      %c0_345 = arith.constant 0 : index
      %990 = vector.load %arg19[%c0_344, %c0_345] : memref<8x32xf32, #tpu.memory_space<vmem>>, vector<8x32xf32>
      tpu.vector_store %arg19[%c0_344, %c0_345], %989 {strides = array<i32>} : memref<8x32xf32, #tpu.memory_space<vmem>>, vector<8x32xf32>,
      %cst_346 = arith.constant 0.000000e+00 : f32
      %991 = vector.broadcast %cst_346 : f32 to vector<8x32xf32>
      %c0_347 = arith.constant 0 : index
      %c0_348 = arith.constant 0 : index
      %992 = vector.load %arg20[%c0_347, %c0_348] : memref<8x32xf32, #tpu.memory_space<vmem>>, vector<8x32xf32>
      tpu.vector_store %arg20[%c0_347, %c0_348], %991 {strides = array<i32>} : memref<8x32xf32, #tpu.memory_space<vmem>>, vector<8x32xf32>,
    } else {
    }
    %c0 = arith.constant 0 : index
    %c0_1 = arith.constant 0 : index
    %3 = vector.load %arg2[%c0, %c0_1] : memref<8x1xi32, #tpu.memory_space<vmem>>, vector<8x1xi32>
    %c0_2 = arith.constant 0 : index
    %c0_3 = arith.constant 0 : index
    %4 = vector.load %arg13[%c0_2, %c0_3] : memref<1x128xf32, #tpu.memory_space<vmem>>, vector<1x128xf32>
    %c0_4 = arith.constant 0 : index
    %c0_5 = arith.constant 0 : index
    %5 = vector.load %arg14[%c0_4, %c0_5] : memref<1x128xf32, #tpu.memory_space<vmem>>, vector<1x128xf32>
    %c8_i32 = arith.constant 8 : i32
    %6 = arith.muli %arg1, %c8_i32 : i32
    %c0_i32_6 = arith.constant 0 : i32
    %7 = arith.subi %c0_i32_6, %arg1 : i32
    %c8_i32_7 = arith.constant 8 : i32
    %8 = arith.muli %7, %c8_i32_7 : i32
    %c0_8 = arith.constant 0 : index
    %c0_9 = arith.constant 0 : index
    %9 = vector.load %arg17[%c0_8, %c0_9] : memref<8x32xf32, #tpu.memory_space<vmem>>, vector<8x32xf32>
    %c0_10 = arith.constant 0 : index
    %c0_11 = arith.constant 0 : index
    %10 = vector.load %arg18[%c0_10, %c0_11] : memref<8x32xf32, #tpu.memory_space<vmem>>, vector<8x32xf32>
    %c0_12 = arith.constant 0 : index
    %c0_13 = arith.constant 0 : index
    %11 = vector.load %arg19[%c0_12, %c0_13] : memref<8x32xf32, #tpu.memory_space<vmem>>, vector<8x32xf32>
    %c0_14 = arith.constant 0 : index
    %c0_15 = arith.constant 0 : index
    %12 = vector.load %arg20[%c0_14, %c0_15] : memref<8x32xf32, #tpu.memory_space<vmem>>, vector<8x32xf32>
    %c0_i32_16 = arith.constant 0 : i32
    %c7_i32 = arith.constant 7 : i32
    %13 = arith.subi %c7_i32, %c0_i32_16 : i32
    %14 = arith.index_cast %c0_i32_16 : i32 to index
    %c0_17 = arith.constant 0 : index
    %c0_18 = arith.constant 0 : index
    %15 = vector.load %arg3[%14, %c0_17, %c0_18] : memref<8x8x32xbf16, #tpu.memory_space<vmem>>, vector<1x8x32xbf16>
    %16 = vector.shape_cast %15 : vector<1x8x32xbf16> to vector<8x32xbf16>
    %c0_19 = arith.constant 0 : index
    %c0_20 = arith.constant 0 : index
    %17 = vector.load %arg7[%c0_19, %c0_20] : memref<32x128xbf16, #tpu.memory_space<vmem>>, vector<32x128xbf16>
    %cst = arith.constant dense<0.000000e+00> : vector<8x128xf32>
    %18 = tpu.matmul %16, %17, %cst {dimension_numbers = #tpu.dot_dimension_numbers<[1], [0], [0], [1], [0, 0, 1, 1], [], []>} : vector<8x32xbf16>, vector<32x128xbf16>, vector<8x128xf32> -> vector<8x128xf32>
    %19 = vector.broadcast %4 : vector<1x128xf32> to vector<8x128xf32>
    %20 = arith.addf %19, %18 : vector<8x128xf32>
    %21 = arith.index_cast %c0_i32_16 : i32 to index
    %c0_21 = arith.constant 0 : index
    %c0_22 = arith.constant 0 : index
    %22 = vector.load %arg4[%21, %c0_21, %c0_22] : memref<8x8x32xbf16, #tpu.memory_space<vmem>>, vector<1x8x32xbf16>
    %23 = vector.shape_cast %22 : vector<1x8x32xbf16> to vector<8x32xbf16>
    %c0_23 = arith.constant 0 : index
    %c0_24 = arith.constant 0 : index
    %24 = vector.load %arg8[%c0_23, %c0_24] : memref<32x128xbf16, #tpu.memory_space<vmem>>, vector<32x128xbf16>
    %cst_25 = arith.constant dense<0.000000e+00> : vector<8x128xf32>
    %25 = tpu.matmul %23, %24, %cst_25 {dimension_numbers = #tpu.dot_dimension_numbers<[1], [0], [0], [1], [0, 0, 1, 1], [], []>} : vector<8x32xbf16>, vector<32x128xbf16>, vector<8x128xf32> -> vector<8x128xf32>
    %26 = arith.addf %20, %25 : vector<8x128xf32>
    %27 = arith.index_cast %13 : i32 to index
    %c0_26 = arith.constant 0 : index
    %c0_27 = arith.constant 0 : index
    %28 = vector.load %arg5[%27, %c0_26, %c0_27] : memref<8x8x32xbf16, #tpu.memory_space<vmem>>, vector<1x8x32xbf16>
    %29 = vector.shape_cast %28 : vector<1x8x32xbf16> to vector<8x32xbf16>
    %c0_28 = arith.constant 0 : index
    %c0_29 = arith.constant 0 : index
    %30 = vector.load %arg9[%c0_28, %c0_29] : memref<32x128xbf16, #tpu.memory_space<vmem>>, vector<32x128xbf16>
    %cst_30 = arith.constant dense<0.000000e+00> : vector<8x128xf32>
    %31 = tpu.matmul %29, %30, %cst_30 {dimension_numbers = #tpu.dot_dimension_numbers<[1], [0], [0], [1], [0, 0, 1, 1], [], []>} : vector<8x32xbf16>, vector<32x128xbf16>, vector<8x128xf32> -> vector<8x128xf32>
    %32 = vector.broadcast %5 : vector<1x128xf32> to vector<8x128xf32>
    %33 = arith.addf %32, %31 : vector<8x128xf32>
    %34 = arith.index_cast %13 : i32 to index
    %c0_31 = arith.constant 0 : index
    %c0_32 = arith.constant 0 : index
    %35 = vector.load %arg6[%34, %c0_31, %c0_32] : memref<8x8x32xbf16, #tpu.memory_space<vmem>>, vector<1x8x32xbf16>
    %36 = vector.shape_cast %35 : vector<1x8x32xbf16> to vector<8x32xbf16>
    %c0_33 = arith.constant 0 : index
    %c0_34 = arith.constant 0 : index
    %37 = vector.load %arg10[%c0_33, %c0_34] : memref<32x128xbf16, #tpu.memory_space<vmem>>, vector<32x128xbf16>
    %cst_35 = arith.constant dense<0.000000e+00> : vector<8x128xf32>
    %38 = tpu.matmul %36, %37, %cst_35 {dimension_numbers = #tpu.dot_dimension_numbers<[1], [0], [0], [1], [0, 0, 1, 1], [], []>} : vector<8x32xbf16>, vector<32x128xbf16>, vector<8x128xf32> -> vector<8x128xf32>
    %39 = arith.addf %33, %38 : vector<8x128xf32>
    %40 = arith.addi %6, %c0_i32_16 : i32
    %41 = vector.broadcast %40 : i32 to vector<8x1xi32>
    %42 = arith.cmpi slt, %41, %3 : vector<8x1xi32>
    %43 = arith.addi %8, %13 : i32
    %44 = vector.broadcast %43 : i32 to vector<8x1xi32>
    %45 = arith.cmpi slt, %44, %3 : vector<8x1xi32>
    %46 = arith.truncf %9 : vector<8x32xf32> to vector<8x32xbf16>
    %c0_36 = arith.constant 0 : index
    %c0_37 = arith.constant 0 : index
    %47 = vector.load %arg11[%c0_36, %c0_37] : memref<32x128xbf16, #tpu.memory_space<vmem>>, vector<32x128xbf16>
    %cst_38 = arith.constant dense<0.000000e+00> : vector<8x128xf32>
    %48 = tpu.matmul %46, %47, %cst_38 {dimension_numbers = #tpu.dot_dimension_numbers<[1], [0], [0], [1], [0, 0, 1, 1], [], []>} : vector<8x32xbf16>, vector<32x128xbf16>, vector<8x128xf32> -> vector<8x128xf32>
    %49 = arith.addf %26, %48 : vector<8x128xf32>
    %50 = vector.extract_strided_slice %49 {offsets = [0, 0], sizes = [8, 32], strides = [1, 1]} : vector<8x128xf32> to vector<8x32xf32>
    %51 = arith.negf %50 : vector<8x32xf32>
    %52 = math.exp %51 : vector<8x32xf32>
    %cst_39 = arith.constant 1.000000e+00 : f32
    %53 = vector.broadcast %cst_39 : f32 to vector<8x32xf32>
    %54 = arith.addf %53, %52 : vector<8x32xf32>
    %55 = arith.divf %53, %54 : vector<8x32xf32>
    %56 = vector.extract_strided_slice %49 {offsets = [0, 32], sizes = [8, 32], strides = [1, 1]} : vector<8x128xf32> to vector<8x32xf32>
    %57 = arith.negf %56 : vector<8x32xf32>
    %58 = math.exp %57 : vector<8x32xf32>
    %cst_40 = arith.constant 1.000000e+00 : f32
    %59 = vector.broadcast %cst_40 : f32 to vector<8x32xf32>
    %60 = arith.addf %59, %58 : vector<8x32xf32>
    %61 = arith.divf %59, %60 : vector<8x32xf32>
    %62 = vector.extract_strided_slice %49 {offsets = [0, 64], sizes = [8, 32], strides = [1, 1]} : vector<8x128xf32> to vector<8x32xf32>
    %63 = math.tanh %62 : vector<8x32xf32>
    %64 = vector.extract_strided_slice %49 {offsets = [0, 96], sizes = [8, 32], strides = [1, 1]} : vector<8x128xf32> to vector<8x32xf32>
    %65 = arith.negf %64 : vector<8x32xf32>
    %66 = math.exp %65 : vector<8x32xf32>
    %cst_41 = arith.constant 1.000000e+00 : f32
    %67 = vector.broadcast %cst_41 : f32 to vector<8x32xf32>
    %68 = arith.addf %67, %66 : vector<8x32xf32>
    %69 = arith.divf %67, %68 : vector<8x32xf32>
    %70 = arith.mulf %61, %10 : vector<8x32xf32>
    %71 = arith.mulf %55, %63 : vector<8x32xf32>
    %72 = arith.addf %70, %71 : vector<8x32xf32>
    %73 = math.tanh %72 : vector<8x32xf32>
    %74 = arith.mulf %69, %73 : vector<8x32xf32>
    %cst_42 = arith.constant 0.000000e+00 : f32
    %75 = vector.shape_cast %42 : vector<8x1xi1> to vector<8x1xi1>
    %76 = vector.broadcast %75 : vector<8x1xi1> to vector<8x32xi1>
    %77 = vector.broadcast %cst_42 : f32 to vector<8x32xf32>
    %78 = arith.select %76, %74, %77 : vector<8x32xi1>, vector<8x32xf32>
    %79 = vector.shape_cast %42 : vector<8x1xi1> to vector<8x1xi1>
    %80 = vector.broadcast %79 : vector<8x1xi1> to vector<8x32xi1>
    %81 = arith.select %80, %74, %9 : vector<8x32xi1>, vector<8x32xf32>
    %82 = vector.shape_cast %42 : vector<8x1xi1> to vector<8x1xi1>
    %83 = vector.broadcast %82 : vector<8x1xi1> to vector<8x32xi1>
    %84 = arith.select %83, %72, %10 : vector<8x32xi1>, vector<8x32xf32>
    %85 = arith.truncf %11 : vector<8x32xf32> to vector<8x32xbf16>
    %c0_43 = arith.constant 0 : index
    %c0_44 = arith.constant 0 : index
    %86 = vector.load %arg12[%c0_43, %c0_44] : memref<32x128xbf16, #tpu.memory_space<vmem>>, vector<32x128xbf16>
    %cst_45 = arith.constant dense<0.000000e+00> : vector<8x128xf32>
    %87 = tpu.matmul %85, %86, %cst_45 {dimension_numbers = #tpu.dot_dimension_numbers<[1], [0], [0], [1], [0, 0, 1, 1], [], []>} : vector<8x32xbf16>, vector<32x128xbf16>, vector<8x128xf32> -> vector<8x128xf32>
    %88 = arith.addf %39, %87 : vector<8x128xf32>
    %89 = vector.extract_strided_slice %88 {offsets = [0, 0], sizes = [8, 32], strides = [1, 1]} : vector<8x128xf32> to vector<8x32xf32>
    %90 = arith.negf %89 : vector<8x32xf32>
    %91 = math.exp %90 : vector<8x32xf32>
    %cst_46 = arith.constant 1.000000e+00 : f32
    %92 = vector.broadcast %cst_46 : f32 to vector<8x32xf32>
    %93 = arith.addf %92, %91 : vector<8x32xf32>
    %94 = arith.divf %92, %93 : vector<8x32xf32>
    %95 = vector.extract_strided_slice %88 {offsets = [0, 32], sizes = [8, 32], strides = [1, 1]} : vector<8x128xf32> to vector<8x32xf32>
    %96 = arith.negf %95 : vector<8x32xf32>
    %97 = math.exp %96 : vector<8x32xf32>
    %cst_47 = arith.constant 1.000000e+00 : f32
    %98 = vector.broadcast %cst_47 : f32 to vector<8x32xf32>
    %99 = arith.addf %98, %97 : vector<8x32xf32>
    %100 = arith.divf %98, %99 : vector<8x32xf32>
    %101 = vector.extract_strided_slice %88 {offsets = [0, 64], sizes = [8, 32], strides = [1, 1]} : vector<8x128xf32> to vector<8x32xf32>
    %102 = math.tanh %101 : vector<8x32xf32>
    %103 = vector.extract_strided_slice %88 {offsets = [0, 96], sizes = [8, 32], strides = [1, 1]} : vector<8x128xf32> to vector<8x32xf32>
    %104 = arith.negf %103 : vector<8x32xf32>
    %105 = math.exp %104 : vector<8x32xf32>
    %cst_48 = arith.constant 1.000000e+00 : f32
    %106 = vector.broadcast %cst_48 : f32 to vector<8x32xf32>
    %107 = arith.addf %106, %105 : vector<8x32xf32>
    %108 = arith.divf %106, %107 : vector<8x32xf32>
    %109 = arith.mulf %100, %12 : vector<8x32xf32>
    %110 = arith.mulf %94, %102 : vector<8x32xf32>
    %111 = arith.addf %109, %110 : vector<8x32xf32>
    %112 = math.tanh %111 : vector<8x32xf32>
    %113 = arith.mulf %108, %112 : vector<8x32xf32>
    %cst_49 = arith.constant 0.000000e+00 : f32
    %114 = vector.shape_cast %45 : vector<8x1xi1> to vector<8x1xi1>
    %115 = vector.broadcast %114 : vector<8x1xi1> to vector<8x32xi1>
    %116 = vector.broadcast %cst_49 : f32 to vector<8x32xf32>
    %117 = arith.select %115, %113, %116 : vector<8x32xi1>, vector<8x32xf32>
    %118 = vector.shape_cast %45 : vector<8x1xi1> to vector<8x1xi1>
    %119 = vector.broadcast %118 : vector<8x1xi1> to vector<8x32xi1>
    %120 = arith.select %119, %113, %11 : vector<8x32xi1>, vector<8x32xf32>
    %121 = vector.shape_cast %45 : vector<8x1xi1> to vector<8x1xi1>
    %122 = vector.broadcast %121 : vector<8x1xi1> to vector<8x32xi1>
    %123 = arith.select %122, %111, %12 : vector<8x32xi1>, vector<8x32xf32>
    %124 = arith.truncf %78 : vector<8x32xf32> to vector<8x32xbf16>
    %125 = arith.index_cast %c0_i32_16 : i32 to index
    %c0_50 = arith.constant 0 : index
    %c0_51 = arith.constant 0 : index
    %126 = vector.load %arg15[%125, %c0_50, %c0_51] : memref<8x8x32xbf16, #tpu.memory_space<vmem>>, vector<1x8x32xbf16>
    %127 = vector.shape_cast %126 : vector<1x8x32xbf16> to vector<8x32xbf16>
    %128 = vector.shape_cast %124 : vector<8x32xbf16> to vector<1x8x32xbf16>
    tpu.vector_store %arg15[%125, %c0_50, %c0_51], %128 {strides = array<i32>} : memref<8x8x32xbf16, #tpu.memory_space<vmem>>, vector<1x8x32xbf16>,
    %129 = arith.truncf %117 : vector<8x32xf32> to vector<8x32xbf16>
    %130 = arith.index_cast %13 : i32 to index
    %c0_52 = arith.constant 0 : index
    %c0_53 = arith.constant 0 : index
    %131 = vector.load %arg16[%130, %c0_52, %c0_53] : memref<8x8x32xbf16, #tpu.memory_space<vmem>>, vector<1x8x32xbf16>
    %132 = vector.shape_cast %131 : vector<1x8x32xbf16> to vector<8x32xbf16>
    %133 = vector.shape_cast %129 : vector<8x32xbf16> to vector<1x8x32xbf16>
    tpu.vector_store %arg16[%130, %c0_52, %c0_53], %133 {strides = array<i32>} : memref<8x8x32xbf16, #tpu.memory_space<vmem>>, vector<1x8x32xbf16>,
    %c1_i32 = arith.constant 1 : i32
    %c7_i32_54 = arith.constant 7 : i32
    %134 = arith.subi %c7_i32_54, %c1_i32 : i32
    %135 = arith.index_cast %c1_i32 : i32 to index
    %c0_55 = arith.constant 0 : index
    %c0_56 = arith.constant 0 : index
    %136 = vector.load %arg3[%135, %c0_55, %c0_56] : memref<8x8x32xbf16, #tpu.memory_space<vmem>>, vector<1x8x32xbf16>
    %137 = vector.shape_cast %136 : vector<1x8x32xbf16> to vector<8x32xbf16>
    %c0_57 = arith.constant 0 : index
    %c0_58 = arith.constant 0 : index
    %138 = vector.load %arg7[%c0_57, %c0_58] : memref<32x128xbf16, #tpu.memory_space<vmem>>, vector<32x128xbf16>
    %cst_59 = arith.constant dense<0.000000e+00> : vector<8x128xf32>
    %139 = tpu.matmul %137, %138, %cst_59 {dimension_numbers = #tpu.dot_dimension_numbers<[1], [0], [0], [1], [0, 0, 1, 1], [], []>} : vector<8x32xbf16>, vector<32x128xbf16>, vector<8x128xf32> -> vector<8x128xf32>
    %140 = vector.broadcast %4 : vector<1x128xf32> to vector<8x128xf32>
    %141 = arith.addf %140, %139 : vector<8x128xf32>
    %142 = arith.index_cast %c1_i32 : i32 to index
    %c0_60 = arith.constant 0 : index
    %c0_61 = arith.constant 0 : index
    %143 = vector.load %arg4[%142, %c0_60, %c0_61] : memref<8x8x32xbf16, #tpu.memory_space<vmem>>, vector<1x8x32xbf16>
    %144 = vector.shape_cast %143 : vector<1x8x32xbf16> to vector<8x32xbf16>
    %c0_62 = arith.constant 0 : index
    %c0_63 = arith.constant 0 : index
    %145 = vector.load %arg8[%c0_62, %c0_63] : memref<32x128xbf16, #tpu.memory_space<vmem>>, vector<32x128xbf16>
    %cst_64 = arith.constant dense<0.000000e+00> : vector<8x128xf32>
    %146 = tpu.matmul %144, %145, %cst_64 {dimension_numbers = #tpu.dot_dimension_numbers<[1], [0], [0], [1], [0, 0, 1, 1], [], []>} : vector<8x32xbf16>, vector<32x128xbf16>, vector<8x128xf32> -> vector<8x128xf32>
    %147 = arith.addf %141, %146 : vector<8x128xf32>
    %148 = arith.index_cast %134 : i32 to index
    %c0_65 = arith.constant 0 : index
    %c0_66 = arith.constant 0 : index
    %149 = vector.load %arg5[%148, %c0_65, %c0_66] : memref<8x8x32xbf16, #tpu.memory_space<vmem>>, vector<1x8x32xbf16>
    %150 = vector.shape_cast %149 : vector<1x8x32xbf16> to vector<8x32xbf16>
    %c0_67 = arith.constant 0 : index
    %c0_68 = arith.constant 0 : index
    %151 = vector.load %arg9[%c0_67, %c0_68] : memref<32x128xbf16, #tpu.memory_space<vmem>>, vector<32x128xbf16>
    %cst_69 = arith.constant dense<0.000000e+00> : vector<8x128xf32>
    %152 = tpu.matmul %150, %151, %cst_69 {dimension_numbers = #tpu.dot_dimension_numbers<[1], [0], [0], [1], [0, 0, 1, 1], [], []>} : vector<8x32xbf16>, vector<32x128xbf16>, vector<8x128xf32> -> vector<8x128xf32>
    %153 = vector.broadcast %5 : vector<1x128xf32> to vector<8x128xf32>
    %154 = arith.addf %153, %152 : vector<8x128xf32>
    %155 = arith.index_cast %134 : i32 to index
    %c0_70 = arith.constant 0 : index
    %c0_71 = arith.constant 0 : index
    %156 = vector.load %arg6[%155, %c0_70, %c0_71] : memref<8x8x32xbf16, #tpu.memory_space<vmem>>, vector<1x8x32xbf16>
    %157 = vector.shape_cast %156 : vector<1x8x32xbf16> to vector<8x32xbf16>
    %c0_72 = arith.constant 0 : index
    %c0_73 = arith.constant 0 : index
    %158 = vector.load %arg10[%c0_72, %c0_73] : memref<32x128xbf16, #tpu.memory_space<vmem>>, vector<32x128xbf16>
    %cst_74 = arith.constant dense<0.000000e+00> : vector<8x128xf32>
    %159 = tpu.matmul %157, %158, %cst_74 {dimension_numbers = #tpu.dot_dimension_numbers<[1], [0], [0], [1], [0, 0, 1, 1], [], []>} : vector<8x32xbf16>, vector<32x128xbf16>, vector<8x128xf32> -> vector<8x128xf32>
    %160 = arith.addf %154, %159 : vector<8x128xf32>
    %161 = arith.addi %6, %c1_i32 : i32
    %162 = vector.broadcast %161 : i32 to vector<8x1xi32>
    %163 = arith.cmpi slt, %162, %3 : vector<8x1xi32>
    %164 = arith.addi %8, %134 : i32
    %165 = vector.broadcast %164 : i32 to vector<8x1xi32>
    %166 = arith.cmpi slt, %165, %3 : vector<8x1xi32>
    %167 = arith.truncf %81 : vector<8x32xf32> to vector<8x32xbf16>
    %c0_75 = arith.constant 0 : index
    %c0_76 = arith.constant 0 : index
    %168 = vector.load %arg11[%c0_75, %c0_76] : memref<32x128xbf16, #tpu.memory_space<vmem>>, vector<32x128xbf16>
    %cst_77 = arith.constant dense<0.000000e+00> : vector<8x128xf32>
    %169 = tpu.matmul %167, %168, %cst_77 {dimension_numbers = #tpu.dot_dimension_numbers<[1], [0], [0], [1], [0, 0, 1, 1], [], []>} : vector<8x32xbf16>, vector<32x128xbf16>, vector<8x128xf32> -> vector<8x128xf32>
    %170 = arith.addf %147, %169 : vector<8x128xf32>
    %171 = vector.extract_strided_slice %170 {offsets = [0, 0], sizes = [8, 32], strides = [1, 1]} : vector<8x128xf32> to vector<8x32xf32>
    %172 = arith.negf %171 : vector<8x32xf32>
    %173 = math.exp %172 : vector<8x32xf32>
    %cst_78 = arith.constant 1.000000e+00 : f32
    %174 = vector.broadcast %cst_78 : f32 to vector<8x32xf32>
    %175 = arith.addf %174, %173 : vector<8x32xf32>
    %176 = arith.divf %174, %175 : vector<8x32xf32>
    %177 = vector.extract_strided_slice %170 {offsets = [0, 32], sizes = [8, 32], strides = [1, 1]} : vector<8x128xf32> to vector<8x32xf32>
    %178 = arith.negf %177 : vector<8x32xf32>
    %179 = math.exp %178 : vector<8x32xf32>
    %cst_79 = arith.constant 1.000000e+00 : f32
    %180 = vector.broadcast %cst_79 : f32 to vector<8x32xf32>
    %181 = arith.addf %180, %179 : vector<8x32xf32>
    %182 = arith.divf %180, %181 : vector<8x32xf32>
    %183 = vector.extract_strided_slice %170 {offsets = [0, 64], sizes = [8, 32], strides = [1, 1]} : vector<8x128xf32> to vector<8x32xf32>
    %184 = math.tanh %183 : vector<8x32xf32>
    %185 = vector.extract_strided_slice %170 {offsets = [0, 96], sizes = [8, 32], strides = [1, 1]} : vector<8x128xf32> to vector<8x32xf32>
    %186 = arith.negf %185 : vector<8x32xf32>
    %187 = math.exp %186 : vector<8x32xf32>
    %cst_80 = arith.constant 1.000000e+00 : f32
    %188 = vector.broadcast %cst_80 : f32 to vector<8x32xf32>
    %189 = arith.addf %188, %187 : vector<8x32xf32>
    %190 = arith.divf %188, %189 : vector<8x32xf32>
    %191 = arith.mulf %182, %84 : vector<8x32xf32>
    %192 = arith.mulf %176, %184 : vector<8x32xf32>
    %193 = arith.addf %191, %192 : vector<8x32xf32>
    %194 = math.tanh %193 : vector<8x32xf32>
    %195 = arith.mulf %190, %194 : vector<8x32xf32>
    %cst_81 = arith.constant 0.000000e+00 : f32
    %196 = vector.shape_cast %163 : vector<8x1xi1> to vector<8x1xi1>
    %197 = vector.broadcast %196 : vector<8x1xi1> to vector<8x32xi1>
    %198 = vector.broadcast %cst_81 : f32 to vector<8x32xf32>
    %199 = arith.select %197, %195, %198 : vector<8x32xi1>, vector<8x32xf32>
    %200 = vector.shape_cast %163 : vector<8x1xi1> to vector<8x1xi1>
    %201 = vector.broadcast %200 : vector<8x1xi1> to vector<8x32xi1>
    %202 = arith.select %201, %195, %81 : vector<8x32xi1>, vector<8x32xf32>
    %203 = vector.shape_cast %163 : vector<8x1xi1> to vector<8x1xi1>
    %204 = vector.broadcast %203 : vector<8x1xi1> to vector<8x32xi1>
    %205 = arith.select %204, %193, %84 : vector<8x32xi1>, vector<8x32xf32>
    %206 = arith.truncf %120 : vector<8x32xf32> to vector<8x32xbf16>
    %c0_82 = arith.constant 0 : index
    %c0_83 = arith.constant 0 : index
    %207 = vector.load %arg12[%c0_82, %c0_83] : memref<32x128xbf16, #tpu.memory_space<vmem>>, vector<32x128xbf16>
    %cst_84 = arith.constant dense<0.000000e+00> : vector<8x128xf32>
    %208 = tpu.matmul %206, %207, %cst_84 {dimension_numbers = #tpu.dot_dimension_numbers<[1], [0], [0], [1], [0, 0, 1, 1], [], []>} : vector<8x32xbf16>, vector<32x128xbf16>, vector<8x128xf32> -> vector<8x128xf32>
    %209 = arith.addf %160, %208 : vector<8x128xf32>
    %210 = vector.extract_strided_slice %209 {offsets = [0, 0], sizes = [8, 32], strides = [1, 1]} : vector<8x128xf32> to vector<8x32xf32>
    %211 = arith.negf %210 : vector<8x32xf32>
    %212 = math.exp %211 : vector<8x32xf32>
    %cst_85 = arith.constant 1.000000e+00 : f32
    %213 = vector.broadcast %cst_85 : f32 to vector<8x32xf32>
    %214 = arith.addf %213, %212 : vector<8x32xf32>
    %215 = arith.divf %213, %214 : vector<8x32xf32>
    %216 = vector.extract_strided_slice %209 {offsets = [0, 32], sizes = [8, 32], strides = [1, 1]} : vector<8x128xf32> to vector<8x32xf32>
    %217 = arith.negf %216 : vector<8x32xf32>
    %218 = math.exp %217 : vector<8x32xf32>
    %cst_86 = arith.constant 1.000000e+00 : f32
    %219 = vector.broadcast %cst_86 : f32 to vector<8x32xf32>
    %220 = arith.addf %219, %218 : vector<8x32xf32>
    %221 = arith.divf %219, %220 : vector<8x32xf32>
    %222 = vector.extract_strided_slice %209 {offsets = [0, 64], sizes = [8, 32], strides = [1, 1]} : vector<8x128xf32> to vector<8x32xf32>
    %223 = math.tanh %222 : vector<8x32xf32>
    %224 = vector.extract_strided_slice %209 {offsets = [0, 96], sizes = [8, 32], strides = [1, 1]} : vector<8x128xf32> to vector<8x32xf32>
    %225 = arith.negf %224 : vector<8x32xf32>
    %226 = math.exp %225 : vector<8x32xf32>
    %cst_87 = arith.constant 1.000000e+00 : f32
    %227 = vector.broadcast %cst_87 : f32 to vector<8x32xf32>
    %228 = arith.addf %227, %226 : vector<8x32xf32>
    %229 = arith.divf %227, %228 : vector<8x32xf32>
    %230 = arith.mulf %221, %123 : vector<8x32xf32>
    %231 = arith.mulf %215, %223 : vector<8x32xf32>
    %232 = arith.addf %230, %231 : vector<8x32xf32>
    %233 = math.tanh %232 : vector<8x32xf32>
    %234 = arith.mulf %229, %233 : vector<8x32xf32>
    %cst_88 = arith.constant 0.000000e+00 : f32
    %235 = vector.shape_cast %166 : vector<8x1xi1> to vector<8x1xi1>
    %236 = vector.broadcast %235 : vector<8x1xi1> to vector<8x32xi1>
    %237 = vector.broadcast %cst_88 : f32 to vector<8x32xf32>
    %238 = arith.select %236, %234, %237 : vector<8x32xi1>, vector<8x32xf32>
    %239 = vector.shape_cast %166 : vector<8x1xi1> to vector<8x1xi1>
    %240 = vector.broadcast %239 : vector<8x1xi1> to vector<8x32xi1>
    %241 = arith.select %240, %234, %120 : vector<8x32xi1>, vector<8x32xf32>
    %242 = vector.shape_cast %166 : vector<8x1xi1> to vector<8x1xi1>
    %243 = vector.broadcast %242 : vector<8x1xi1> to vector<8x32xi1>
    %244 = arith.select %243, %232, %123 : vector<8x32xi1>, vector<8x32xf32>
    %245 = arith.truncf %199 : vector<8x32xf32> to vector<8x32xbf16>
    %246 = arith.index_cast %c1_i32 : i32 to index
    %c0_89 = arith.constant 0 : index
    %c0_90 = arith.constant 0 : index
    %247 = vector.load %arg15[%246, %c0_89, %c0_90] : memref<8x8x32xbf16, #tpu.memory_space<vmem>>, vector<1x8x32xbf16>
    %248 = vector.shape_cast %247 : vector<1x8x32xbf16> to vector<8x32xbf16>
    %249 = vector.shape_cast %245 : vector<8x32xbf16> to vector<1x8x32xbf16>
    tpu.vector_store %arg15[%246, %c0_89, %c0_90], %249 {strides = array<i32>} : memref<8x8x32xbf16, #tpu.memory_space<vmem>>, vector<1x8x32xbf16>,
    %250 = arith.truncf %238 : vector<8x32xf32> to vector<8x32xbf16>
    %251 = arith.index_cast %134 : i32 to index
    %c0_91 = arith.constant 0 : index
    %c0_92 = arith.constant 0 : index
    %252 = vector.load %arg16[%251, %c0_91, %c0_92] : memref<8x8x32xbf16, #tpu.memory_space<vmem>>, vector<1x8x32xbf16>
    %253 = vector.shape_cast %252 : vector<1x8x32xbf16> to vector<8x32xbf16>
    %254 = vector.shape_cast %250 : vector<8x32xbf16> to vector<1x8x32xbf16>
    tpu.vector_store %arg16[%251, %c0_91, %c0_92], %254 {strides = array<i32>} : memref<8x8x32xbf16, #tpu.memory_space<vmem>>, vector<1x8x32xbf16>,
    %c2_i32 = arith.constant 2 : i32
    %c7_i32_93 = arith.constant 7 : i32
    %255 = arith.subi %c7_i32_93, %c2_i32 : i32
    %256 = arith.index_cast %c2_i32 : i32 to index
    %c0_94 = arith.constant 0 : index
    %c0_95 = arith.constant 0 : index
    %257 = vector.load %arg3[%256, %c0_94, %c0_95] : memref<8x8x32xbf16, #tpu.memory_space<vmem>>, vector<1x8x32xbf16>
    %258 = vector.shape_cast %257 : vector<1x8x32xbf16> to vector<8x32xbf16>
    %c0_96 = arith.constant 0 : index
    %c0_97 = arith.constant 0 : index
    %259 = vector.load %arg7[%c0_96, %c0_97] : memref<32x128xbf16, #tpu.memory_space<vmem>>, vector<32x128xbf16>
    %cst_98 = arith.constant dense<0.000000e+00> : vector<8x128xf32>
    %260 = tpu.matmul %258, %259, %cst_98 {dimension_numbers = #tpu.dot_dimension_numbers<[1], [0], [0], [1], [0, 0, 1, 1], [], []>} : vector<8x32xbf16>, vector<32x128xbf16>, vector<8x128xf32> -> vector<8x128xf32>
    %261 = vector.broadcast %4 : vector<1x128xf32> to vector<8x128xf32>
    %262 = arith.addf %261, %260 : vector<8x128xf32>
    %263 = arith.index_cast %c2_i32 : i32 to index
    %c0_99 = arith.constant 0 : index
    %c0_100 = arith.constant 0 : index
    %264 = vector.load %arg4[%263, %c0_99, %c0_100] : memref<8x8x32xbf16, #tpu.memory_space<vmem>>, vector<1x8x32xbf16>
    %265 = vector.shape_cast %264 : vector<1x8x32xbf16> to vector<8x32xbf16>
    %c0_101 = arith.constant 0 : index
    %c0_102 = arith.constant 0 : index
    %266 = vector.load %arg8[%c0_101, %c0_102] : memref<32x128xbf16, #tpu.memory_space<vmem>>, vector<32x128xbf16>
    %cst_103 = arith.constant dense<0.000000e+00> : vector<8x128xf32>
    %267 = tpu.matmul %265, %266, %cst_103 {dimension_numbers = #tpu.dot_dimension_numbers<[1], [0], [0], [1], [0, 0, 1, 1], [], []>} : vector<8x32xbf16>, vector<32x128xbf16>, vector<8x128xf32> -> vector<8x128xf32>
    %268 = arith.addf %262, %267 : vector<8x128xf32>
    %269 = arith.index_cast %255 : i32 to index
    %c0_104 = arith.constant 0 : index
    %c0_105 = arith.constant 0 : index
    %270 = vector.load %arg5[%269, %c0_104, %c0_105] : memref<8x8x32xbf16, #tpu.memory_space<vmem>>, vector<1x8x32xbf16>
    %271 = vector.shape_cast %270 : vector<1x8x32xbf16> to vector<8x32xbf16>
    %c0_106 = arith.constant 0 : index
    %c0_107 = arith.constant 0 : index
    %272 = vector.load %arg9[%c0_106, %c0_107] : memref<32x128xbf16, #tpu.memory_space<vmem>>, vector<32x128xbf16>
    %cst_108 = arith.constant dense<0.000000e+00> : vector<8x128xf32>
    %273 = tpu.matmul %271, %272, %cst_108 {dimension_numbers = #tpu.dot_dimension_numbers<[1], [0], [0], [1], [0, 0, 1, 1], [], []>} : vector<8x32xbf16>, vector<32x128xbf16>, vector<8x128xf32> -> vector<8x128xf32>
    %274 = vector.broadcast %5 : vector<1x128xf32> to vector<8x128xf32>
    %275 = arith.addf %274, %273 : vector<8x128xf32>
    %276 = arith.index_cast %255 : i32 to index
    %c0_109 = arith.constant 0 : index
    %c0_110 = arith.constant 0 : index
    %277 = vector.load %arg6[%276, %c0_109, %c0_110] : memref<8x8x32xbf16, #tpu.memory_space<vmem>>, vector<1x8x32xbf16>
    %278 = vector.shape_cast %277 : vector<1x8x32xbf16> to vector<8x32xbf16>
    %c0_111 = arith.constant 0 : index
    %c0_112 = arith.constant 0 : index
    %279 = vector.load %arg10[%c0_111, %c0_112] : memref<32x128xbf16, #tpu.memory_space<vmem>>, vector<32x128xbf16>
    %cst_113 = arith.constant dense<0.000000e+00> : vector<8x128xf32>
    %280 = tpu.matmul %278, %279, %cst_113 {dimension_numbers = #tpu.dot_dimension_numbers<[1], [0], [0], [1], [0, 0, 1, 1], [], []>} : vector<8x32xbf16>, vector<32x128xbf16>, vector<8x128xf32> -> vector<8x128xf32>
    %281 = arith.addf %275, %280 : vector<8x128xf32>
    %282 = arith.addi %6, %c2_i32 : i32
    %283 = vector.broadcast %282 : i32 to vector<8x1xi32>
    %284 = arith.cmpi slt, %283, %3 : vector<8x1xi32>
    %285 = arith.addi %8, %255 : i32
    %286 = vector.broadcast %285 : i32 to vector<8x1xi32>
    %287 = arith.cmpi slt, %286, %3 : vector<8x1xi32>
    %288 = arith.truncf %202 : vector<8x32xf32> to vector<8x32xbf16>
    %c0_114 = arith.constant 0 : index
    %c0_115 = arith.constant 0 : index
    %289 = vector.load %arg11[%c0_114, %c0_115] : memref<32x128xbf16, #tpu.memory_space<vmem>>, vector<32x128xbf16>
    %cst_116 = arith.constant dense<0.000000e+00> : vector<8x128xf32>
    %290 = tpu.matmul %288, %289, %cst_116 {dimension_numbers = #tpu.dot_dimension_numbers<[1], [0], [0], [1], [0, 0, 1, 1], [], []>} : vector<8x32xbf16>, vector<32x128xbf16>, vector<8x128xf32> -> vector<8x128xf32>
    %291 = arith.addf %268, %290 : vector<8x128xf32>
    %292 = vector.extract_strided_slice %291 {offsets = [0, 0], sizes = [8, 32], strides = [1, 1]} : vector<8x128xf32> to vector<8x32xf32>
    %293 = arith.negf %292 : vector<8x32xf32>
    %294 = math.exp %293 : vector<8x32xf32>
    %cst_117 = arith.constant 1.000000e+00 : f32
    %295 = vector.broadcast %cst_117 : f32 to vector<8x32xf32>
    %296 = arith.addf %295, %294 : vector<8x32xf32>
    %297 = arith.divf %295, %296 : vector<8x32xf32>
    %298 = vector.extract_strided_slice %291 {offsets = [0, 32], sizes = [8, 32], strides = [1, 1]} : vector<8x128xf32> to vector<8x32xf32>
    %299 = arith.negf %298 : vector<8x32xf32>
    %300 = math.exp %299 : vector<8x32xf32>
    %cst_118 = arith.constant 1.000000e+00 : f32
    %301 = vector.broadcast %cst_118 : f32 to vector<8x32xf32>
    %302 = arith.addf %301, %300 : vector<8x32xf32>
    %303 = arith.divf %301, %302 : vector<8x32xf32>
    %304 = vector.extract_strided_slice %291 {offsets = [0, 64], sizes = [8, 32], strides = [1, 1]} : vector<8x128xf32> to vector<8x32xf32>
    %305 = math.tanh %304 : vector<8x32xf32>
    %306 = vector.extract_strided_slice %291 {offsets = [0, 96], sizes = [8, 32], strides = [1, 1]} : vector<8x128xf32> to vector<8x32xf32>
    %307 = arith.negf %306 : vector<8x32xf32>
    %308 = math.exp %307 : vector<8x32xf32>
    %cst_119 = arith.constant 1.000000e+00 : f32
    %309 = vector.broadcast %cst_119 : f32 to vector<8x32xf32>
    %310 = arith.addf %309, %308 : vector<8x32xf32>
    %311 = arith.divf %309, %310 : vector<8x32xf32>
    %312 = arith.mulf %303, %205 : vector<8x32xf32>
    %313 = arith.mulf %297, %305 : vector<8x32xf32>
    %314 = arith.addf %312, %313 : vector<8x32xf32>
    %315 = math.tanh %314 : vector<8x32xf32>
    %316 = arith.mulf %311, %315 : vector<8x32xf32>
    %cst_120 = arith.constant 0.000000e+00 : f32
    %317 = vector.shape_cast %284 : vector<8x1xi1> to vector<8x1xi1>
    %318 = vector.broadcast %317 : vector<8x1xi1> to vector<8x32xi1>
    %319 = vector.broadcast %cst_120 : f32 to vector<8x32xf32>
    %320 = arith.select %318, %316, %319 : vector<8x32xi1>, vector<8x32xf32>
    %321 = vector.shape_cast %284 : vector<8x1xi1> to vector<8x1xi1>
    %322 = vector.broadcast %321 : vector<8x1xi1> to vector<8x32xi1>
    %323 = arith.select %322, %316, %202 : vector<8x32xi1>, vector<8x32xf32>
    %324 = vector.shape_cast %284 : vector<8x1xi1> to vector<8x1xi1>
    %325 = vector.broadcast %324 : vector<8x1xi1> to vector<8x32xi1>
    %326 = arith.select %325, %314, %205 : vector<8x32xi1>, vector<8x32xf32>
    %327 = arith.truncf %241 : vector<8x32xf32> to vector<8x32xbf16>
    %c0_121 = arith.constant 0 : index
    %c0_122 = arith.constant 0 : index
    %328 = vector.load %arg12[%c0_121, %c0_122] : memref<32x128xbf16, #tpu.memory_space<vmem>>, vector<32x128xbf16>
    %cst_123 = arith.constant dense<0.000000e+00> : vector<8x128xf32>
    %329 = tpu.matmul %327, %328, %cst_123 {dimension_numbers = #tpu.dot_dimension_numbers<[1], [0], [0], [1], [0, 0, 1, 1], [], []>} : vector<8x32xbf16>, vector<32x128xbf16>, vector<8x128xf32> -> vector<8x128xf32>
    %330 = arith.addf %281, %329 : vector<8x128xf32>
    %331 = vector.extract_strided_slice %330 {offsets = [0, 0], sizes = [8, 32], strides = [1, 1]} : vector<8x128xf32> to vector<8x32xf32>
    %332 = arith.negf %331 : vector<8x32xf32>
    %333 = math.exp %332 : vector<8x32xf32>
    %cst_124 = arith.constant 1.000000e+00 : f32
    %334 = vector.broadcast %cst_124 : f32 to vector<8x32xf32>
    %335 = arith.addf %334, %333 : vector<8x32xf32>
    %336 = arith.divf %334, %335 : vector<8x32xf32>
    %337 = vector.extract_strided_slice %330 {offsets = [0, 32], sizes = [8, 32], strides = [1, 1]} : vector<8x128xf32> to vector<8x32xf32>
    %338 = arith.negf %337 : vector<8x32xf32>
    %339 = math.exp %338 : vector<8x32xf32>
    %cst_125 = arith.constant 1.000000e+00 : f32
    %340 = vector.broadcast %cst_125 : f32 to vector<8x32xf32>
    %341 = arith.addf %340, %339 : vector<8x32xf32>
    %342 = arith.divf %340, %341 : vector<8x32xf32>
    %343 = vector.extract_strided_slice %330 {offsets = [0, 64], sizes = [8, 32], strides = [1, 1]} : vector<8x128xf32> to vector<8x32xf32>
    %344 = math.tanh %343 : vector<8x32xf32>
    %345 = vector.extract_strided_slice %330 {offsets = [0, 96], sizes = [8, 32], strides = [1, 1]} : vector<8x128xf32> to vector<8x32xf32>
    %346 = arith.negf %345 : vector<8x32xf32>
    %347 = math.exp %346 : vector<8x32xf32>
    %cst_126 = arith.constant 1.000000e+00 : f32
    %348 = vector.broadcast %cst_126 : f32 to vector<8x32xf32>
    %349 = arith.addf %348, %347 : vector<8x32xf32>
    %350 = arith.divf %348, %349 : vector<8x32xf32>
    %351 = arith.mulf %342, %244 : vector<8x32xf32>
    %352 = arith.mulf %336, %344 : vector<8x32xf32>
    %353 = arith.addf %351, %352 : vector<8x32xf32>
    %354 = math.tanh %353 : vector<8x32xf32>
    %355 = arith.mulf %350, %354 : vector<8x32xf32>
    %cst_127 = arith.constant 0.000000e+00 : f32
    %356 = vector.shape_cast %287 : vector<8x1xi1> to vector<8x1xi1>
    %357 = vector.broadcast %356 : vector<8x1xi1> to vector<8x32xi1>
    %358 = vector.broadcast %cst_127 : f32 to vector<8x32xf32>
    %359 = arith.select %357, %355, %358 : vector<8x32xi1>, vector<8x32xf32>
    %360 = vector.shape_cast %287 : vector<8x1xi1> to vector<8x1xi1>
    %361 = vector.broadcast %360 : vector<8x1xi1> to vector<8x32xi1>
    %362 = arith.select %361, %355, %241 : vector<8x32xi1>, vector<8x32xf32>
    %363 = vector.shape_cast %287 : vector<8x1xi1> to vector<8x1xi1>
    %364 = vector.broadcast %363 : vector<8x1xi1> to vector<8x32xi1>
    %365 = arith.select %364, %353, %244 : vector<8x32xi1>, vector<8x32xf32>
    %366 = arith.truncf %320 : vector<8x32xf32> to vector<8x32xbf16>
    %367 = arith.index_cast %c2_i32 : i32 to index
    %c0_128 = arith.constant 0 : index
    %c0_129 = arith.constant 0 : index
    %368 = vector.load %arg15[%367, %c0_128, %c0_129] : memref<8x8x32xbf16, #tpu.memory_space<vmem>>, vector<1x8x32xbf16>
    %369 = vector.shape_cast %368 : vector<1x8x32xbf16> to vector<8x32xbf16>
    %370 = vector.shape_cast %366 : vector<8x32xbf16> to vector<1x8x32xbf16>
    tpu.vector_store %arg15[%367, %c0_128, %c0_129], %370 {strides = array<i32>} : memref<8x8x32xbf16, #tpu.memory_space<vmem>>, vector<1x8x32xbf16>,
    %371 = arith.truncf %359 : vector<8x32xf32> to vector<8x32xbf16>
    %372 = arith.index_cast %255 : i32 to index
    %c0_130 = arith.constant 0 : index
    %c0_131 = arith.constant 0 : index
    %373 = vector.load %arg16[%372, %c0_130, %c0_131] : memref<8x8x32xbf16, #tpu.memory_space<vmem>>, vector<1x8x32xbf16>
    %374 = vector.shape_cast %373 : vector<1x8x32xbf16> to vector<8x32xbf16>
    %375 = vector.shape_cast %371 : vector<8x32xbf16> to vector<1x8x32xbf16>
    tpu.vector_store %arg16[%372, %c0_130, %c0_131], %375 {strides = array<i32>} : memref<8x8x32xbf16, #tpu.memory_space<vmem>>, vector<1x8x32xbf16>,
    %c3_i32 = arith.constant 3 : i32
    %c7_i32_132 = arith.constant 7 : i32
    %376 = arith.subi %c7_i32_132, %c3_i32 : i32
    %377 = arith.index_cast %c3_i32 : i32 to index
    %c0_133 = arith.constant 0 : index
    %c0_134 = arith.constant 0 : index
    %378 = vector.load %arg3[%377, %c0_133, %c0_134] : memref<8x8x32xbf16, #tpu.memory_space<vmem>>, vector<1x8x32xbf16>
    %379 = vector.shape_cast %378 : vector<1x8x32xbf16> to vector<8x32xbf16>
    %c0_135 = arith.constant 0 : index
    %c0_136 = arith.constant 0 : index
    %380 = vector.load %arg7[%c0_135, %c0_136] : memref<32x128xbf16, #tpu.memory_space<vmem>>, vector<32x128xbf16>
    %cst_137 = arith.constant dense<0.000000e+00> : vector<8x128xf32>
    %381 = tpu.matmul %379, %380, %cst_137 {dimension_numbers = #tpu.dot_dimension_numbers<[1], [0], [0], [1], [0, 0, 1, 1], [], []>} : vector<8x32xbf16>, vector<32x128xbf16>, vector<8x128xf32> -> vector<8x128xf32>
    %382 = vector.broadcast %4 : vector<1x128xf32> to vector<8x128xf32>
    %383 = arith.addf %382, %381 : vector<8x128xf32>
    %384 = arith.index_cast %c3_i32 : i32 to index
    %c0_138 = arith.constant 0 : index
    %c0_139 = arith.constant 0 : index
    %385 = vector.load %arg4[%384, %c0_138, %c0_139] : memref<8x8x32xbf16, #tpu.memory_space<vmem>>, vector<1x8x32xbf16>
    %386 = vector.shape_cast %385 : vector<1x8x32xbf16> to vector<8x32xbf16>
    %c0_140 = arith.constant 0 : index
    %c0_141 = arith.constant 0 : index
    %387 = vector.load %arg8[%c0_140, %c0_141] : memref<32x128xbf16, #tpu.memory_space<vmem>>, vector<32x128xbf16>
    %cst_142 = arith.constant dense<0.000000e+00> : vector<8x128xf32>
    %388 = tpu.matmul %386, %387, %cst_142 {dimension_numbers = #tpu.dot_dimension_numbers<[1], [0], [0], [1], [0, 0, 1, 1], [], []>} : vector<8x32xbf16>, vector<32x128xbf16>, vector<8x128xf32> -> vector<8x128xf32>
    %389 = arith.addf %383, %388 : vector<8x128xf32>
    %390 = arith.index_cast %376 : i32 to index
    %c0_143 = arith.constant 0 : index
    %c0_144 = arith.constant 0 : index
    %391 = vector.load %arg5[%390, %c0_143, %c0_144] : memref<8x8x32xbf16, #tpu.memory_space<vmem>>, vector<1x8x32xbf16>
    %392 = vector.shape_cast %391 : vector<1x8x32xbf16> to vector<8x32xbf16>
    %c0_145 = arith.constant 0 : index
    %c0_146 = arith.constant 0 : index
    %393 = vector.load %arg9[%c0_145, %c0_146] : memref<32x128xbf16, #tpu.memory_space<vmem>>, vector<32x128xbf16>
    %cst_147 = arith.constant dense<0.000000e+00> : vector<8x128xf32>
    %394 = tpu.matmul %392, %393, %cst_147 {dimension_numbers = #tpu.dot_dimension_numbers<[1], [0], [0], [1], [0, 0, 1, 1], [], []>} : vector<8x32xbf16>, vector<32x128xbf16>, vector<8x128xf32> -> vector<8x128xf32>
    %395 = vector.broadcast %5 : vector<1x128xf32> to vector<8x128xf32>
    %396 = arith.addf %395, %394 : vector<8x128xf32>
    %397 = arith.index_cast %376 : i32 to index
    %c0_148 = arith.constant 0 : index
    %c0_149 = arith.constant 0 : index
    %398 = vector.load %arg6[%397, %c0_148, %c0_149] : memref<8x8x32xbf16, #tpu.memory_space<vmem>>, vector<1x8x32xbf16>
    %399 = vector.shape_cast %398 : vector<1x8x32xbf16> to vector<8x32xbf16>
    %c0_150 = arith.constant 0 : index
    %c0_151 = arith.constant 0 : index
    %400 = vector.load %arg10[%c0_150, %c0_151] : memref<32x128xbf16, #tpu.memory_space<vmem>>, vector<32x128xbf16>
    %cst_152 = arith.constant dense<0.000000e+00> : vector<8x128xf32>
    %401 = tpu.matmul %399, %400, %cst_152 {dimension_numbers = #tpu.dot_dimension_numbers<[1], [0], [0], [1], [0, 0, 1, 1], [], []>} : vector<8x32xbf16>, vector<32x128xbf16>, vector<8x128xf32> -> vector<8x128xf32>
    %402 = arith.addf %396, %401 : vector<8x128xf32>
    %403 = arith.addi %6, %c3_i32 : i32
    %404 = vector.broadcast %403 : i32 to vector<8x1xi32>
    %405 = arith.cmpi slt, %404, %3 : vector<8x1xi32>
    %406 = arith.addi %8, %376 : i32
    %407 = vector.broadcast %406 : i32 to vector<8x1xi32>
    %408 = arith.cmpi slt, %407, %3 : vector<8x1xi32>
    %409 = arith.truncf %323 : vector<8x32xf32> to vector<8x32xbf16>
    %c0_153 = arith.constant 0 : index
    %c0_154 = arith.constant 0 : index
    %410 = vector.load %arg11[%c0_153, %c0_154] : memref<32x128xbf16, #tpu.memory_space<vmem>>, vector<32x128xbf16>
    %cst_155 = arith.constant dense<0.000000e+00> : vector<8x128xf32>
    %411 = tpu.matmul %409, %410, %cst_155 {dimension_numbers = #tpu.dot_dimension_numbers<[1], [0], [0], [1], [0, 0, 1, 1], [], []>} : vector<8x32xbf16>, vector<32x128xbf16>, vector<8x128xf32> -> vector<8x128xf32>
    %412 = arith.addf %389, %411 : vector<8x128xf32>
    %413 = vector.extract_strided_slice %412 {offsets = [0, 0], sizes = [8, 32], strides = [1, 1]} : vector<8x128xf32> to vector<8x32xf32>
    %414 = arith.negf %413 : vector<8x32xf32>
    %415 = math.exp %414 : vector<8x32xf32>
    %cst_156 = arith.constant 1.000000e+00 : f32
    %416 = vector.broadcast %cst_156 : f32 to vector<8x32xf32>
    %417 = arith.addf %416, %415 : vector<8x32xf32>
    %418 = arith.divf %416, %417 : vector<8x32xf32>
    %419 = vector.extract_strided_slice %412 {offsets = [0, 32], sizes = [8, 32], strides = [1, 1]} : vector<8x128xf32> to vector<8x32xf32>
    %420 = arith.negf %419 : vector<8x32xf32>
    %421 = math.exp %420 : vector<8x32xf32>
    %cst_157 = arith.constant 1.000000e+00 : f32
    %422 = vector.broadcast %cst_157 : f32 to vector<8x32xf32>
    %423 = arith.addf %422, %421 : vector<8x32xf32>
    %424 = arith.divf %422, %423 : vector<8x32xf32>
    %425 = vector.extract_strided_slice %412 {offsets = [0, 64], sizes = [8, 32], strides = [1, 1]} : vector<8x128xf32> to vector<8x32xf32>
    %426 = math.tanh %425 : vector<8x32xf32>
    %427 = vector.extract_strided_slice %412 {offsets = [0, 96], sizes = [8, 32], strides = [1, 1]} : vector<8x128xf32> to vector<8x32xf32>
    %428 = arith.negf %427 : vector<8x32xf32>
    %429 = math.exp %428 : vector<8x32xf32>
    %cst_158 = arith.constant 1.000000e+00 : f32
    %430 = vector.broadcast %cst_158 : f32 to vector<8x32xf32>
    %431 = arith.addf %430, %429 : vector<8x32xf32>
    %432 = arith.divf %430, %431 : vector<8x32xf32>
    %433 = arith.mulf %424, %326 : vector<8x32xf32>
    %434 = arith.mulf %418, %426 : vector<8x32xf32>
    %435 = arith.addf %433, %434 : vector<8x32xf32>
    %436 = math.tanh %435 : vector<8x32xf32>
    %437 = arith.mulf %432, %436 : vector<8x32xf32>
    %cst_159 = arith.constant 0.000000e+00 : f32
    %438 = vector.shape_cast %405 : vector<8x1xi1> to vector<8x1xi1>
    %439 = vector.broadcast %438 : vector<8x1xi1> to vector<8x32xi1>
    %440 = vector.broadcast %cst_159 : f32 to vector<8x32xf32>
    %441 = arith.select %439, %437, %440 : vector<8x32xi1>, vector<8x32xf32>
    %442 = vector.shape_cast %405 : vector<8x1xi1> to vector<8x1xi1>
    %443 = vector.broadcast %442 : vector<8x1xi1> to vector<8x32xi1>
    %444 = arith.select %443, %437, %323 : vector<8x32xi1>, vector<8x32xf32>
    %445 = vector.shape_cast %405 : vector<8x1xi1> to vector<8x1xi1>
    %446 = vector.broadcast %445 : vector<8x1xi1> to vector<8x32xi1>
    %447 = arith.select %446, %435, %326 : vector<8x32xi1>, vector<8x32xf32>
    %448 = arith.truncf %362 : vector<8x32xf32> to vector<8x32xbf16>
    %c0_160 = arith.constant 0 : index
    %c0_161 = arith.constant 0 : index
    %449 = vector.load %arg12[%c0_160, %c0_161] : memref<32x128xbf16, #tpu.memory_space<vmem>>, vector<32x128xbf16>
    %cst_162 = arith.constant dense<0.000000e+00> : vector<8x128xf32>
    %450 = tpu.matmul %448, %449, %cst_162 {dimension_numbers = #tpu.dot_dimension_numbers<[1], [0], [0], [1], [0, 0, 1, 1], [], []>} : vector<8x32xbf16>, vector<32x128xbf16>, vector<8x128xf32> -> vector<8x128xf32>
    %451 = arith.addf %402, %450 : vector<8x128xf32>
    %452 = vector.extract_strided_slice %451 {offsets = [0, 0], sizes = [8, 32], strides = [1, 1]} : vector<8x128xf32> to vector<8x32xf32>
    %453 = arith.negf %452 : vector<8x32xf32>
    %454 = math.exp %453 : vector<8x32xf32>
    %cst_163 = arith.constant 1.000000e+00 : f32
    %455 = vector.broadcast %cst_163 : f32 to vector<8x32xf32>
    %456 = arith.addf %455, %454 : vector<8x32xf32>
    %457 = arith.divf %455, %456 : vector<8x32xf32>
    %458 = vector.extract_strided_slice %451 {offsets = [0, 32], sizes = [8, 32], strides = [1, 1]} : vector<8x128xf32> to vector<8x32xf32>
    %459 = arith.negf %458 : vector<8x32xf32>
    %460 = math.exp %459 : vector<8x32xf32>
    %cst_164 = arith.constant 1.000000e+00 : f32
    %461 = vector.broadcast %cst_164 : f32 to vector<8x32xf32>
    %462 = arith.addf %461, %460 : vector<8x32xf32>
    %463 = arith.divf %461, %462 : vector<8x32xf32>
    %464 = vector.extract_strided_slice %451 {offsets = [0, 64], sizes = [8, 32], strides = [1, 1]} : vector<8x128xf32> to vector<8x32xf32>
    %465 = math.tanh %464 : vector<8x32xf32>
    %466 = vector.extract_strided_slice %451 {offsets = [0, 96], sizes = [8, 32], strides = [1, 1]} : vector<8x128xf32> to vector<8x32xf32>
    %467 = arith.negf %466 : vector<8x32xf32>
    %468 = math.exp %467 : vector<8x32xf32>
    %cst_165 = arith.constant 1.000000e+00 : f32
    %469 = vector.broadcast %cst_165 : f32 to vector<8x32xf32>
    %470 = arith.addf %469, %468 : vector<8x32xf32>
    %471 = arith.divf %469, %470 : vector<8x32xf32>
    %472 = arith.mulf %463, %365 : vector<8x32xf32>
    %473 = arith.mulf %457, %465 : vector<8x32xf32>
    %474 = arith.addf %472, %473 : vector<8x32xf32>
    %475 = math.tanh %474 : vector<8x32xf32>
    %476 = arith.mulf %471, %475 : vector<8x32xf32>
    %cst_166 = arith.constant 0.000000e+00 : f32
    %477 = vector.shape_cast %408 : vector<8x1xi1> to vector<8x1xi1>
    %478 = vector.broadcast %477 : vector<8x1xi1> to vector<8x32xi1>
    %479 = vector.broadcast %cst_166 : f32 to vector<8x32xf32>
    %480 = arith.select %478, %476, %479 : vector<8x32xi1>, vector<8x32xf32>
    %481 = vector.shape_cast %408 : vector<8x1xi1> to vector<8x1xi1>
    %482 = vector.broadcast %481 : vector<8x1xi1> to vector<8x32xi1>
    %483 = arith.select %482, %476, %362 : vector<8x32xi1>, vector<8x32xf32>
    %484 = vector.shape_cast %408 : vector<8x1xi1> to vector<8x1xi1>
    %485 = vector.broadcast %484 : vector<8x1xi1> to vector<8x32xi1>
    %486 = arith.select %485, %474, %365 : vector<8x32xi1>, vector<8x32xf32>
    %487 = arith.truncf %441 : vector<8x32xf32> to vector<8x32xbf16>
    %488 = arith.index_cast %c3_i32 : i32 to index
    %c0_167 = arith.constant 0 : index
    %c0_168 = arith.constant 0 : index
    %489 = vector.load %arg15[%488, %c0_167, %c0_168] : memref<8x8x32xbf16, #tpu.memory_space<vmem>>, vector<1x8x32xbf16>
    %490 = vector.shape_cast %489 : vector<1x8x32xbf16> to vector<8x32xbf16>
    %491 = vector.shape_cast %487 : vector<8x32xbf16> to vector<1x8x32xbf16>
    tpu.vector_store %arg15[%488, %c0_167, %c0_168], %491 {strides = array<i32>} : memref<8x8x32xbf16, #tpu.memory_space<vmem>>, vector<1x8x32xbf16>,
    %492 = arith.truncf %480 : vector<8x32xf32> to vector<8x32xbf16>
    %493 = arith.index_cast %376 : i32 to index
    %c0_169 = arith.constant 0 : index
    %c0_170 = arith.constant 0 : index
    %494 = vector.load %arg16[%493, %c0_169, %c0_170] : memref<8x8x32xbf16, #tpu.memory_space<vmem>>, vector<1x8x32xbf16>
    %495 = vector.shape_cast %494 : vector<1x8x32xbf16> to vector<8x32xbf16>
    %496 = vector.shape_cast %492 : vector<8x32xbf16> to vector<1x8x32xbf16>
    tpu.vector_store %arg16[%493, %c0_169, %c0_170], %496 {strides = array<i32>} : memref<8x8x32xbf16, #tpu.memory_space<vmem>>, vector<1x8x32xbf16>,
    %c4_i32 = arith.constant 4 : i32
    %c7_i32_171 = arith.constant 7 : i32
    %497 = arith.subi %c7_i32_171, %c4_i32 : i32
    %498 = arith.index_cast %c4_i32 : i32 to index
    %c0_172 = arith.constant 0 : index
    %c0_173 = arith.constant 0 : index
    %499 = vector.load %arg3[%498, %c0_172, %c0_173] : memref<8x8x32xbf16, #tpu.memory_space<vmem>>, vector<1x8x32xbf16>
    %500 = vector.shape_cast %499 : vector<1x8x32xbf16> to vector<8x32xbf16>
    %c0_174 = arith.constant 0 : index
    %c0_175 = arith.constant 0 : index
    %501 = vector.load %arg7[%c0_174, %c0_175] : memref<32x128xbf16, #tpu.memory_space<vmem>>, vector<32x128xbf16>
    %cst_176 = arith.constant dense<0.000000e+00> : vector<8x128xf32>
    %502 = tpu.matmul %500, %501, %cst_176 {dimension_numbers = #tpu.dot_dimension_numbers<[1], [0], [0], [1], [0, 0, 1, 1], [], []>} : vector<8x32xbf16>, vector<32x128xbf16>, vector<8x128xf32> -> vector<8x128xf32>
    %503 = vector.broadcast %4 : vector<1x128xf32> to vector<8x128xf32>
    %504 = arith.addf %503, %502 : vector<8x128xf32>
    %505 = arith.index_cast %c4_i32 : i32 to index
    %c0_177 = arith.constant 0 : index
    %c0_178 = arith.constant 0 : index
    %506 = vector.load %arg4[%505, %c0_177, %c0_178] : memref<8x8x32xbf16, #tpu.memory_space<vmem>>, vector<1x8x32xbf16>
    %507 = vector.shape_cast %506 : vector<1x8x32xbf16> to vector<8x32xbf16>
    %c0_179 = arith.constant 0 : index
    %c0_180 = arith.constant 0 : index
    %508 = vector.load %arg8[%c0_179, %c0_180] : memref<32x128xbf16, #tpu.memory_space<vmem>>, vector<32x128xbf16>
    %cst_181 = arith.constant dense<0.000000e+00> : vector<8x128xf32>
    %509 = tpu.matmul %507, %508, %cst_181 {dimension_numbers = #tpu.dot_dimension_numbers<[1], [0], [0], [1], [0, 0, 1, 1], [], []>} : vector<8x32xbf16>, vector<32x128xbf16>, vector<8x128xf32> -> vector<8x128xf32>
    %510 = arith.addf %504, %509 : vector<8x128xf32>
    %511 = arith.index_cast %497 : i32 to index
    %c0_182 = arith.constant 0 : index
    %c0_183 = arith.constant 0 : index
    %512 = vector.load %arg5[%511, %c0_182, %c0_183] : memref<8x8x32xbf16, #tpu.memory_space<vmem>>, vector<1x8x32xbf16>
    %513 = vector.shape_cast %512 : vector<1x8x32xbf16> to vector<8x32xbf16>
    %c0_184 = arith.constant 0 : index
    %c0_185 = arith.constant 0 : index
    %514 = vector.load %arg9[%c0_184, %c0_185] : memref<32x128xbf16, #tpu.memory_space<vmem>>, vector<32x128xbf16>
    %cst_186 = arith.constant dense<0.000000e+00> : vector<8x128xf32>
    %515 = tpu.matmul %513, %514, %cst_186 {dimension_numbers = #tpu.dot_dimension_numbers<[1], [0], [0], [1], [0, 0, 1, 1], [], []>} : vector<8x32xbf16>, vector<32x128xbf16>, vector<8x128xf32> -> vector<8x128xf32>
    %516 = vector.broadcast %5 : vector<1x128xf32> to vector<8x128xf32>
    %517 = arith.addf %516, %515 : vector<8x128xf32>
    %518 = arith.index_cast %497 : i32 to index
    %c0_187 = arith.constant 0 : index
    %c0_188 = arith.constant 0 : index
    %519 = vector.load %arg6[%518, %c0_187, %c0_188] : memref<8x8x32xbf16, #tpu.memory_space<vmem>>, vector<1x8x32xbf16>
    %520 = vector.shape_cast %519 : vector<1x8x32xbf16> to vector<8x32xbf16>
    %c0_189 = arith.constant 0 : index
    %c0_190 = arith.constant 0 : index
    %521 = vector.load %arg10[%c0_189, %c0_190] : memref<32x128xbf16, #tpu.memory_space<vmem>>, vector<32x128xbf16>
    %cst_191 = arith.constant dense<0.000000e+00> : vector<8x128xf32>
    %522 = tpu.matmul %520, %521, %cst_191 {dimension_numbers = #tpu.dot_dimension_numbers<[1], [0], [0], [1], [0, 0, 1, 1], [], []>} : vector<8x32xbf16>, vector<32x128xbf16>, vector<8x128xf32> -> vector<8x128xf32>
    %523 = arith.addf %517, %522 : vector<8x128xf32>
    %524 = arith.addi %6, %c4_i32 : i32
    %525 = vector.broadcast %524 : i32 to vector<8x1xi32>
    %526 = arith.cmpi slt, %525, %3 : vector<8x1xi32>
    %527 = arith.addi %8, %497 : i32
    %528 = vector.broadcast %527 : i32 to vector<8x1xi32>
    %529 = arith.cmpi slt, %528, %3 : vector<8x1xi32>
    %530 = arith.truncf %444 : vector<8x32xf32> to vector<8x32xbf16>
    %c0_192 = arith.constant 0 : index
    %c0_193 = arith.constant 0 : index
    %531 = vector.load %arg11[%c0_192, %c0_193] : memref<32x128xbf16, #tpu.memory_space<vmem>>, vector<32x128xbf16>
    %cst_194 = arith.constant dense<0.000000e+00> : vector<8x128xf32>
    %532 = tpu.matmul %530, %531, %cst_194 {dimension_numbers = #tpu.dot_dimension_numbers<[1], [0], [0], [1], [0, 0, 1, 1], [], []>} : vector<8x32xbf16>, vector<32x128xbf16>, vector<8x128xf32> -> vector<8x128xf32>
    %533 = arith.addf %510, %532 : vector<8x128xf32>
    %534 = vector.extract_strided_slice %533 {offsets = [0, 0], sizes = [8, 32], strides = [1, 1]} : vector<8x128xf32> to vector<8x32xf32>
    %535 = arith.negf %534 : vector<8x32xf32>
    %536 = math.exp %535 : vector<8x32xf32>
    %cst_195 = arith.constant 1.000000e+00 : f32
    %537 = vector.broadcast %cst_195 : f32 to vector<8x32xf32>
    %538 = arith.addf %537, %536 : vector<8x32xf32>
    %539 = arith.divf %537, %538 : vector<8x32xf32>
    %540 = vector.extract_strided_slice %533 {offsets = [0, 32], sizes = [8, 32], strides = [1, 1]} : vector<8x128xf32> to vector<8x32xf32>
    %541 = arith.negf %540 : vector<8x32xf32>
    %542 = math.exp %541 : vector<8x32xf32>
    %cst_196 = arith.constant 1.000000e+00 : f32
    %543 = vector.broadcast %cst_196 : f32 to vector<8x32xf32>
    %544 = arith.addf %543, %542 : vector<8x32xf32>
    %545 = arith.divf %543, %544 : vector<8x32xf32>
    %546 = vector.extract_strided_slice %533 {offsets = [0, 64], sizes = [8, 32], strides = [1, 1]} : vector<8x128xf32> to vector<8x32xf32>
    %547 = math.tanh %546 : vector<8x32xf32>
    %548 = vector.extract_strided_slice %533 {offsets = [0, 96], sizes = [8, 32], strides = [1, 1]} : vector<8x128xf32> to vector<8x32xf32>
    %549 = arith.negf %548 : vector<8x32xf32>
    %550 = math.exp %549 : vector<8x32xf32>
    %cst_197 = arith.constant 1.000000e+00 : f32
    %551 = vector.broadcast %cst_197 : f32 to vector<8x32xf32>
    %552 = arith.addf %551, %550 : vector<8x32xf32>
    %553 = arith.divf %551, %552 : vector<8x32xf32>
    %554 = arith.mulf %545, %447 : vector<8x32xf32>
    %555 = arith.mulf %539, %547 : vector<8x32xf32>
    %556 = arith.addf %554, %555 : vector<8x32xf32>
    %557 = math.tanh %556 : vector<8x32xf32>
    %558 = arith.mulf %553, %557 : vector<8x32xf32>
    %cst_198 = arith.constant 0.000000e+00 : f32
    %559 = vector.shape_cast %526 : vector<8x1xi1> to vector<8x1xi1>
    %560 = vector.broadcast %559 : vector<8x1xi1> to vector<8x32xi1>
    %561 = vector.broadcast %cst_198 : f32 to vector<8x32xf32>
    %562 = arith.select %560, %558, %561 : vector<8x32xi1>, vector<8x32xf32>
    %563 = vector.shape_cast %526 : vector<8x1xi1> to vector<8x1xi1>
    %564 = vector.broadcast %563 : vector<8x1xi1> to vector<8x32xi1>
    %565 = arith.select %564, %558, %444 : vector<8x32xi1>, vector<8x32xf32>
    %566 = vector.shape_cast %526 : vector<8x1xi1> to vector<8x1xi1>
    %567 = vector.broadcast %566 : vector<8x1xi1> to vector<8x32xi1>
    %568 = arith.select %567, %556, %447 : vector<8x32xi1>, vector<8x32xf32>
    %569 = arith.truncf %483 : vector<8x32xf32> to vector<8x32xbf16>
    %c0_199 = arith.constant 0 : index
    %c0_200 = arith.constant 0 : index
    %570 = vector.load %arg12[%c0_199, %c0_200] : memref<32x128xbf16, #tpu.memory_space<vmem>>, vector<32x128xbf16>
    %cst_201 = arith.constant dense<0.000000e+00> : vector<8x128xf32>
    %571 = tpu.matmul %569, %570, %cst_201 {dimension_numbers = #tpu.dot_dimension_numbers<[1], [0], [0], [1], [0, 0, 1, 1], [], []>} : vector<8x32xbf16>, vector<32x128xbf16>, vector<8x128xf32> -> vector<8x128xf32>
    %572 = arith.addf %523, %571 : vector<8x128xf32>
    %573 = vector.extract_strided_slice %572 {offsets = [0, 0], sizes = [8, 32], strides = [1, 1]} : vector<8x128xf32> to vector<8x32xf32>
    %574 = arith.negf %573 : vector<8x32xf32>
    %575 = math.exp %574 : vector<8x32xf32>
    %cst_202 = arith.constant 1.000000e+00 : f32
    %576 = vector.broadcast %cst_202 : f32 to vector<8x32xf32>
    %577 = arith.addf %576, %575 : vector<8x32xf32>
    %578 = arith.divf %576, %577 : vector<8x32xf32>
    %579 = vector.extract_strided_slice %572 {offsets = [0, 32], sizes = [8, 32], strides = [1, 1]} : vector<8x128xf32> to vector<8x32xf32>
    %580 = arith.negf %579 : vector<8x32xf32>
    %581 = math.exp %580 : vector<8x32xf32>
    %cst_203 = arith.constant 1.000000e+00 : f32
    %582 = vector.broadcast %cst_203 : f32 to vector<8x32xf32>
    %583 = arith.addf %582, %581 : vector<8x32xf32>
    %584 = arith.divf %582, %583 : vector<8x32xf32>
    %585 = vector.extract_strided_slice %572 {offsets = [0, 64], sizes = [8, 32], strides = [1, 1]} : vector<8x128xf32> to vector<8x32xf32>
    %586 = math.tanh %585 : vector<8x32xf32>
    %587 = vector.extract_strided_slice %572 {offsets = [0, 96], sizes = [8, 32], strides = [1, 1]} : vector<8x128xf32> to vector<8x32xf32>
    %588 = arith.negf %587 : vector<8x32xf32>
    %589 = math.exp %588 : vector<8x32xf32>
    %cst_204 = arith.constant 1.000000e+00 : f32
    %590 = vector.broadcast %cst_204 : f32 to vector<8x32xf32>
    %591 = arith.addf %590, %589 : vector<8x32xf32>
    %592 = arith.divf %590, %591 : vector<8x32xf32>
    %593 = arith.mulf %584, %486 : vector<8x32xf32>
    %594 = arith.mulf %578, %586 : vector<8x32xf32>
    %595 = arith.addf %593, %594 : vector<8x32xf32>
    %596 = math.tanh %595 : vector<8x32xf32>
    %597 = arith.mulf %592, %596 : vector<8x32xf32>
    %cst_205 = arith.constant 0.000000e+00 : f32
    %598 = vector.shape_cast %529 : vector<8x1xi1> to vector<8x1xi1>
    %599 = vector.broadcast %598 : vector<8x1xi1> to vector<8x32xi1>
    %600 = vector.broadcast %cst_205 : f32 to vector<8x32xf32>
    %601 = arith.select %599, %597, %600 : vector<8x32xi1>, vector<8x32xf32>
    %602 = vector.shape_cast %529 : vector<8x1xi1> to vector<8x1xi1>
    %603 = vector.broadcast %602 : vector<8x1xi1> to vector<8x32xi1>
    %604 = arith.select %603, %597, %483 : vector<8x32xi1>, vector<8x32xf32>
    %605 = vector.shape_cast %529 : vector<8x1xi1> to vector<8x1xi1>
    %606 = vector.broadcast %605 : vector<8x1xi1> to vector<8x32xi1>
    %607 = arith.select %606, %595, %486 : vector<8x32xi1>, vector<8x32xf32>
    %608 = arith.truncf %562 : vector<8x32xf32> to vector<8x32xbf16>
    %609 = arith.index_cast %c4_i32 : i32 to index
    %c0_206 = arith.constant 0 : index
    %c0_207 = arith.constant 0 : index
    %610 = vector.load %arg15[%609, %c0_206, %c0_207] : memref<8x8x32xbf16, #tpu.memory_space<vmem>>, vector<1x8x32xbf16>
    %611 = vector.shape_cast %610 : vector<1x8x32xbf16> to vector<8x32xbf16>
    %612 = vector.shape_cast %608 : vector<8x32xbf16> to vector<1x8x32xbf16>
    tpu.vector_store %arg15[%609, %c0_206, %c0_207], %612 {strides = array<i32>} : memref<8x8x32xbf16, #tpu.memory_space<vmem>>, vector<1x8x32xbf16>,
    %613 = arith.truncf %601 : vector<8x32xf32> to vector<8x32xbf16>
    %614 = arith.index_cast %497 : i32 to index
    %c0_208 = arith.constant 0 : index
    %c0_209 = arith.constant 0 : index
    %615 = vector.load %arg16[%614, %c0_208, %c0_209] : memref<8x8x32xbf16, #tpu.memory_space<vmem>>, vector<1x8x32xbf16>
    %616 = vector.shape_cast %615 : vector<1x8x32xbf16> to vector<8x32xbf16>
    %617 = vector.shape_cast %613 : vector<8x32xbf16> to vector<1x8x32xbf16>
    tpu.vector_store %arg16[%614, %c0_208, %c0_209], %617 {strides = array<i32>} : memref<8x8x32xbf16, #tpu.memory_space<vmem>>, vector<1x8x32xbf16>,
    %c5_i32 = arith.constant 5 : i32
    %c7_i32_210 = arith.constant 7 : i32
    %618 = arith.subi %c7_i32_210, %c5_i32 : i32
    %619 = arith.index_cast %c5_i32 : i32 to index
    %c0_211 = arith.constant 0 : index
    %c0_212 = arith.constant 0 : index
    %620 = vector.load %arg3[%619, %c0_211, %c0_212] : memref<8x8x32xbf16, #tpu.memory_space<vmem>>, vector<1x8x32xbf16>
    %621 = vector.shape_cast %620 : vector<1x8x32xbf16> to vector<8x32xbf16>
    %c0_213 = arith.constant 0 : index
    %c0_214 = arith.constant 0 : index
    %622 = vector.load %arg7[%c0_213, %c0_214] : memref<32x128xbf16, #tpu.memory_space<vmem>>, vector<32x128xbf16>
    %cst_215 = arith.constant dense<0.000000e+00> : vector<8x128xf32>
    %623 = tpu.matmul %621, %622, %cst_215 {dimension_numbers = #tpu.dot_dimension_numbers<[1], [0], [0], [1], [0, 0, 1, 1], [], []>} : vector<8x32xbf16>, vector<32x128xbf16>, vector<8x128xf32> -> vector<8x128xf32>
    %624 = vector.broadcast %4 : vector<1x128xf32> to vector<8x128xf32>
    %625 = arith.addf %624, %623 : vector<8x128xf32>
    %626 = arith.index_cast %c5_i32 : i32 to index
    %c0_216 = arith.constant 0 : index
    %c0_217 = arith.constant 0 : index
    %627 = vector.load %arg4[%626, %c0_216, %c0_217] : memref<8x8x32xbf16, #tpu.memory_space<vmem>>, vector<1x8x32xbf16>
    %628 = vector.shape_cast %627 : vector<1x8x32xbf16> to vector<8x32xbf16>
    %c0_218 = arith.constant 0 : index
    %c0_219 = arith.constant 0 : index
    %629 = vector.load %arg8[%c0_218, %c0_219] : memref<32x128xbf16, #tpu.memory_space<vmem>>, vector<32x128xbf16>
    %cst_220 = arith.constant dense<0.000000e+00> : vector<8x128xf32>
    %630 = tpu.matmul %628, %629, %cst_220 {dimension_numbers = #tpu.dot_dimension_numbers<[1], [0], [0], [1], [0, 0, 1, 1], [], []>} : vector<8x32xbf16>, vector<32x128xbf16>, vector<8x128xf32> -> vector<8x128xf32>
    %631 = arith.addf %625, %630 : vector<8x128xf32>
    %632 = arith.index_cast %618 : i32 to index
    %c0_221 = arith.constant 0 : index
    %c0_222 = arith.constant 0 : index
    %633 = vector.load %arg5[%632, %c0_221, %c0_222] : memref<8x8x32xbf16, #tpu.memory_space<vmem>>, vector<1x8x32xbf16>
    %634 = vector.shape_cast %633 : vector<1x8x32xbf16> to vector<8x32xbf16>
    %c0_223 = arith.constant 0 : index
    %c0_224 = arith.constant 0 : index
    %635 = vector.load %arg9[%c0_223, %c0_224] : memref<32x128xbf16, #tpu.memory_space<vmem>>, vector<32x128xbf16>
    %cst_225 = arith.constant dense<0.000000e+00> : vector<8x128xf32>
    %636 = tpu.matmul %634, %635, %cst_225 {dimension_numbers = #tpu.dot_dimension_numbers<[1], [0], [0], [1], [0, 0, 1, 1], [], []>} : vector<8x32xbf16>, vector<32x128xbf16>, vector<8x128xf32> -> vector<8x128xf32>
    %637 = vector.broadcast %5 : vector<1x128xf32> to vector<8x128xf32>
    %638 = arith.addf %637, %636 : vector<8x128xf32>
    %639 = arith.index_cast %618 : i32 to index
    %c0_226 = arith.constant 0 : index
    %c0_227 = arith.constant 0 : index
    %640 = vector.load %arg6[%639, %c0_226, %c0_227] : memref<8x8x32xbf16, #tpu.memory_space<vmem>>, vector<1x8x32xbf16>
    %641 = vector.shape_cast %640 : vector<1x8x32xbf16> to vector<8x32xbf16>
    %c0_228 = arith.constant 0 : index
    %c0_229 = arith.constant 0 : index
    %642 = vector.load %arg10[%c0_228, %c0_229] : memref<32x128xbf16, #tpu.memory_space<vmem>>, vector<32x128xbf16>
    %cst_230 = arith.constant dense<0.000000e+00> : vector<8x128xf32>
    %643 = tpu.matmul %641, %642, %cst_230 {dimension_numbers = #tpu.dot_dimension_numbers<[1], [0], [0], [1], [0, 0, 1, 1], [], []>} : vector<8x32xbf16>, vector<32x128xbf16>, vector<8x128xf32> -> vector<8x128xf32>
    %644 = arith.addf %638, %643 : vector<8x128xf32>
    %645 = arith.addi %6, %c5_i32 : i32
    %646 = vector.broadcast %645 : i32 to vector<8x1xi32>
    %647 = arith.cmpi slt, %646, %3 : vector<8x1xi32>
    %648 = arith.addi %8, %618 : i32
    %649 = vector.broadcast %648 : i32 to vector<8x1xi32>
    %650 = arith.cmpi slt, %649, %3 : vector<8x1xi32>
    %651 = arith.truncf %565 : vector<8x32xf32> to vector<8x32xbf16>
    %c0_231 = arith.constant 0 : index
    %c0_232 = arith.constant 0 : index
    %652 = vector.load %arg11[%c0_231, %c0_232] : memref<32x128xbf16, #tpu.memory_space<vmem>>, vector<32x128xbf16>
    %cst_233 = arith.constant dense<0.000000e+00> : vector<8x128xf32>
    %653 = tpu.matmul %651, %652, %cst_233 {dimension_numbers = #tpu.dot_dimension_numbers<[1], [0], [0], [1], [0, 0, 1, 1], [], []>} : vector<8x32xbf16>, vector<32x128xbf16>, vector<8x128xf32> -> vector<8x128xf32>
    %654 = arith.addf %631, %653 : vector<8x128xf32>
    %655 = vector.extract_strided_slice %654 {offsets = [0, 0], sizes = [8, 32], strides = [1, 1]} : vector<8x128xf32> to vector<8x32xf32>
    %656 = arith.negf %655 : vector<8x32xf32>
    %657 = math.exp %656 : vector<8x32xf32>
    %cst_234 = arith.constant 1.000000e+00 : f32
    %658 = vector.broadcast %cst_234 : f32 to vector<8x32xf32>
    %659 = arith.addf %658, %657 : vector<8x32xf32>
    %660 = arith.divf %658, %659 : vector<8x32xf32>
    %661 = vector.extract_strided_slice %654 {offsets = [0, 32], sizes = [8, 32], strides = [1, 1]} : vector<8x128xf32> to vector<8x32xf32>
    %662 = arith.negf %661 : vector<8x32xf32>
    %663 = math.exp %662 : vector<8x32xf32>
    %cst_235 = arith.constant 1.000000e+00 : f32
    %664 = vector.broadcast %cst_235 : f32 to vector<8x32xf32>
    %665 = arith.addf %664, %663 : vector<8x32xf32>
    %666 = arith.divf %664, %665 : vector<8x32xf32>
    %667 = vector.extract_strided_slice %654 {offsets = [0, 64], sizes = [8, 32], strides = [1, 1]} : vector<8x128xf32> to vector<8x32xf32>
    %668 = math.tanh %667 : vector<8x32xf32>
    %669 = vector.extract_strided_slice %654 {offsets = [0, 96], sizes = [8, 32], strides = [1, 1]} : vector<8x128xf32> to vector<8x32xf32>
    %670 = arith.negf %669 : vector<8x32xf32>
    %671 = math.exp %670 : vector<8x32xf32>
    %cst_236 = arith.constant 1.000000e+00 : f32
    %672 = vector.broadcast %cst_236 : f32 to vector<8x32xf32>
    %673 = arith.addf %672, %671 : vector<8x32xf32>
    %674 = arith.divf %672, %673 : vector<8x32xf32>
    %675 = arith.mulf %666, %568 : vector<8x32xf32>
    %676 = arith.mulf %660, %668 : vector<8x32xf32>
    %677 = arith.addf %675, %676 : vector<8x32xf32>
    %678 = math.tanh %677 : vector<8x32xf32>
    %679 = arith.mulf %674, %678 : vector<8x32xf32>
    %cst_237 = arith.constant 0.000000e+00 : f32
    %680 = vector.shape_cast %647 : vector<8x1xi1> to vector<8x1xi1>
    %681 = vector.broadcast %680 : vector<8x1xi1> to vector<8x32xi1>
    %682 = vector.broadcast %cst_237 : f32 to vector<8x32xf32>
    %683 = arith.select %681, %679, %682 : vector<8x32xi1>, vector<8x32xf32>
    %684 = vector.shape_cast %647 : vector<8x1xi1> to vector<8x1xi1>
    %685 = vector.broadcast %684 : vector<8x1xi1> to vector<8x32xi1>
    %686 = arith.select %685, %679, %565 : vector<8x32xi1>, vector<8x32xf32>
    %687 = vector.shape_cast %647 : vector<8x1xi1> to vector<8x1xi1>
    %688 = vector.broadcast %687 : vector<8x1xi1> to vector<8x32xi1>
    %689 = arith.select %688, %677, %568 : vector<8x32xi1>, vector<8x32xf32>
    %690 = arith.truncf %604 : vector<8x32xf32> to vector<8x32xbf16>
    %c0_238 = arith.constant 0 : index
    %c0_239 = arith.constant 0 : index
    %691 = vector.load %arg12[%c0_238, %c0_239] : memref<32x128xbf16, #tpu.memory_space<vmem>>, vector<32x128xbf16>
    %cst_240 = arith.constant dense<0.000000e+00> : vector<8x128xf32>
    %692 = tpu.matmul %690, %691, %cst_240 {dimension_numbers = #tpu.dot_dimension_numbers<[1], [0], [0], [1], [0, 0, 1, 1], [], []>} : vector<8x32xbf16>, vector<32x128xbf16>, vector<8x128xf32> -> vector<8x128xf32>
    %693 = arith.addf %644, %692 : vector<8x128xf32>
    %694 = vector.extract_strided_slice %693 {offsets = [0, 0], sizes = [8, 32], strides = [1, 1]} : vector<8x128xf32> to vector<8x32xf32>
    %695 = arith.negf %694 : vector<8x32xf32>
    %696 = math.exp %695 : vector<8x32xf32>
    %cst_241 = arith.constant 1.000000e+00 : f32
    %697 = vector.broadcast %cst_241 : f32 to vector<8x32xf32>
    %698 = arith.addf %697, %696 : vector<8x32xf32>
    %699 = arith.divf %697, %698 : vector<8x32xf32>
    %700 = vector.extract_strided_slice %693 {offsets = [0, 32], sizes = [8, 32], strides = [1, 1]} : vector<8x128xf32> to vector<8x32xf32>
    %701 = arith.negf %700 : vector<8x32xf32>
    %702 = math.exp %701 : vector<8x32xf32>
    %cst_242 = arith.constant 1.000000e+00 : f32
    %703 = vector.broadcast %cst_242 : f32 to vector<8x32xf32>
    %704 = arith.addf %703, %702 : vector<8x32xf32>
    %705 = arith.divf %703, %704 : vector<8x32xf32>
    %706 = vector.extract_strided_slice %693 {offsets = [0, 64], sizes = [8, 32], strides = [1, 1]} : vector<8x128xf32> to vector<8x32xf32>
    %707 = math.tanh %706 : vector<8x32xf32>
    %708 = vector.extract_strided_slice %693 {offsets = [0, 96], sizes = [8, 32], strides = [1, 1]} : vector<8x128xf32> to vector<8x32xf32>
    %709 = arith.negf %708 : vector<8x32xf32>
    %710 = math.exp %709 : vector<8x32xf32>
    %cst_243 = arith.constant 1.000000e+00 : f32
    %711 = vector.broadcast %cst_243 : f32 to vector<8x32xf32>
    %712 = arith.addf %711, %710 : vector<8x32xf32>
    %713 = arith.divf %711, %712 : vector<8x32xf32>
    %714 = arith.mulf %705, %607 : vector<8x32xf32>
    %715 = arith.mulf %699, %707 : vector<8x32xf32>
    %716 = arith.addf %714, %715 : vector<8x32xf32>
    %717 = math.tanh %716 : vector<8x32xf32>
    %718 = arith.mulf %713, %717 : vector<8x32xf32>
    %cst_244 = arith.constant 0.000000e+00 : f32
    %719 = vector.shape_cast %650 : vector<8x1xi1> to vector<8x1xi1>
    %720 = vector.broadcast %719 : vector<8x1xi1> to vector<8x32xi1>
    %721 = vector.broadcast %cst_244 : f32 to vector<8x32xf32>
    %722 = arith.select %720, %718, %721 : vector<8x32xi1>, vector<8x32xf32>
    %723 = vector.shape_cast %650 : vector<8x1xi1> to vector<8x1xi1>
    %724 = vector.broadcast %723 : vector<8x1xi1> to vector<8x32xi1>
    %725 = arith.select %724, %718, %604 : vector<8x32xi1>, vector<8x32xf32>
    %726 = vector.shape_cast %650 : vector<8x1xi1> to vector<8x1xi1>
    %727 = vector.broadcast %726 : vector<8x1xi1> to vector<8x32xi1>
    %728 = arith.select %727, %716, %607 : vector<8x32xi1>, vector<8x32xf32>
    %729 = arith.truncf %683 : vector<8x32xf32> to vector<8x32xbf16>
    %730 = arith.index_cast %c5_i32 : i32 to index
    %c0_245 = arith.constant 0 : index
    %c0_246 = arith.constant 0 : index
    %731 = vector.load %arg15[%730, %c0_245, %c0_246] : memref<8x8x32xbf16, #tpu.memory_space<vmem>>, vector<1x8x32xbf16>
    %732 = vector.shape_cast %731 : vector<1x8x32xbf16> to vector<8x32xbf16>
    %733 = vector.shape_cast %729 : vector<8x32xbf16> to vector<1x8x32xbf16>
    tpu.vector_store %arg15[%730, %c0_245, %c0_246], %733 {strides = array<i32>} : memref<8x8x32xbf16, #tpu.memory_space<vmem>>, vector<1x8x32xbf16>,
    %734 = arith.truncf %722 : vector<8x32xf32> to vector<8x32xbf16>
    %735 = arith.index_cast %618 : i32 to index
    %c0_247 = arith.constant 0 : index
    %c0_248 = arith.constant 0 : index
    %736 = vector.load %arg16[%735, %c0_247, %c0_248] : memref<8x8x32xbf16, #tpu.memory_space<vmem>>, vector<1x8x32xbf16>
    %737 = vector.shape_cast %736 : vector<1x8x32xbf16> to vector<8x32xbf16>
    %738 = vector.shape_cast %734 : vector<8x32xbf16> to vector<1x8x32xbf16>
    tpu.vector_store %arg16[%735, %c0_247, %c0_248], %738 {strides = array<i32>} : memref<8x8x32xbf16, #tpu.memory_space<vmem>>, vector<1x8x32xbf16>,
    %c6_i32 = arith.constant 6 : i32
    %c7_i32_249 = arith.constant 7 : i32
    %739 = arith.subi %c7_i32_249, %c6_i32 : i32
    %740 = arith.index_cast %c6_i32 : i32 to index
    %c0_250 = arith.constant 0 : index
    %c0_251 = arith.constant 0 : index
    %741 = vector.load %arg3[%740, %c0_250, %c0_251] : memref<8x8x32xbf16, #tpu.memory_space<vmem>>, vector<1x8x32xbf16>
    %742 = vector.shape_cast %741 : vector<1x8x32xbf16> to vector<8x32xbf16>
    %c0_252 = arith.constant 0 : index
    %c0_253 = arith.constant 0 : index
    %743 = vector.load %arg7[%c0_252, %c0_253] : memref<32x128xbf16, #tpu.memory_space<vmem>>, vector<32x128xbf16>
    %cst_254 = arith.constant dense<0.000000e+00> : vector<8x128xf32>
    %744 = tpu.matmul %742, %743, %cst_254 {dimension_numbers = #tpu.dot_dimension_numbers<[1], [0], [0], [1], [0, 0, 1, 1], [], []>} : vector<8x32xbf16>, vector<32x128xbf16>, vector<8x128xf32> -> vector<8x128xf32>
    %745 = vector.broadcast %4 : vector<1x128xf32> to vector<8x128xf32>
    %746 = arith.addf %745, %744 : vector<8x128xf32>
    %747 = arith.index_cast %c6_i32 : i32 to index
    %c0_255 = arith.constant 0 : index
    %c0_256 = arith.constant 0 : index
    %748 = vector.load %arg4[%747, %c0_255, %c0_256] : memref<8x8x32xbf16, #tpu.memory_space<vmem>>, vector<1x8x32xbf16>
    %749 = vector.shape_cast %748 : vector<1x8x32xbf16> to vector<8x32xbf16>
    %c0_257 = arith.constant 0 : index
    %c0_258 = arith.constant 0 : index
    %750 = vector.load %arg8[%c0_257, %c0_258] : memref<32x128xbf16, #tpu.memory_space<vmem>>, vector<32x128xbf16>
    %cst_259 = arith.constant dense<0.000000e+00> : vector<8x128xf32>
    %751 = tpu.matmul %749, %750, %cst_259 {dimension_numbers = #tpu.dot_dimension_numbers<[1], [0], [0], [1], [0, 0, 1, 1], [], []>} : vector<8x32xbf16>, vector<32x128xbf16>, vector<8x128xf32> -> vector<8x128xf32>
    %752 = arith.addf %746, %751 : vector<8x128xf32>
    %753 = arith.index_cast %739 : i32 to index
    %c0_260 = arith.constant 0 : index
    %c0_261 = arith.constant 0 : index
    %754 = vector.load %arg5[%753, %c0_260, %c0_261] : memref<8x8x32xbf16, #tpu.memory_space<vmem>>, vector<1x8x32xbf16>
    %755 = vector.shape_cast %754 : vector<1x8x32xbf16> to vector<8x32xbf16>
    %c0_262 = arith.constant 0 : index
    %c0_263 = arith.constant 0 : index
    %756 = vector.load %arg9[%c0_262, %c0_263] : memref<32x128xbf16, #tpu.memory_space<vmem>>, vector<32x128xbf16>
    %cst_264 = arith.constant dense<0.000000e+00> : vector<8x128xf32>
    %757 = tpu.matmul %755, %756, %cst_264 {dimension_numbers = #tpu.dot_dimension_numbers<[1], [0], [0], [1], [0, 0, 1, 1], [], []>} : vector<8x32xbf16>, vector<32x128xbf16>, vector<8x128xf32> -> vector<8x128xf32>
    %758 = vector.broadcast %5 : vector<1x128xf32> to vector<8x128xf32>
    %759 = arith.addf %758, %757 : vector<8x128xf32>
    %760 = arith.index_cast %739 : i32 to index
    %c0_265 = arith.constant 0 : index
    %c0_266 = arith.constant 0 : index
    %761 = vector.load %arg6[%760, %c0_265, %c0_266] : memref<8x8x32xbf16, #tpu.memory_space<vmem>>, vector<1x8x32xbf16>
    %762 = vector.shape_cast %761 : vector<1x8x32xbf16> to vector<8x32xbf16>
    %c0_267 = arith.constant 0 : index
    %c0_268 = arith.constant 0 : index
    %763 = vector.load %arg10[%c0_267, %c0_268] : memref<32x128xbf16, #tpu.memory_space<vmem>>, vector<32x128xbf16>
    %cst_269 = arith.constant dense<0.000000e+00> : vector<8x128xf32>
    %764 = tpu.matmul %762, %763, %cst_269 {dimension_numbers = #tpu.dot_dimension_numbers<[1], [0], [0], [1], [0, 0, 1, 1], [], []>} : vector<8x32xbf16>, vector<32x128xbf16>, vector<8x128xf32> -> vector<8x128xf32>
    %765 = arith.addf %759, %764 : vector<8x128xf32>
    %766 = arith.addi %6, %c6_i32 : i32
    %767 = vector.broadcast %766 : i32 to vector<8x1xi32>
    %768 = arith.cmpi slt, %767, %3 : vector<8x1xi32>
    %769 = arith.addi %8, %739 : i32
    %770 = vector.broadcast %769 : i32 to vector<8x1xi32>
    %771 = arith.cmpi slt, %770, %3 : vector<8x1xi32>
    %772 = arith.truncf %686 : vector<8x32xf32> to vector<8x32xbf16>
    %c0_270 = arith.constant 0 : index
    %c0_271 = arith.constant 0 : index
    %773 = vector.load %arg11[%c0_270, %c0_271] : memref<32x128xbf16, #tpu.memory_space<vmem>>, vector<32x128xbf16>
    %cst_272 = arith.constant dense<0.000000e+00> : vector<8x128xf32>
    %774 = tpu.matmul %772, %773, %cst_272 {dimension_numbers = #tpu.dot_dimension_numbers<[1], [0], [0], [1], [0, 0, 1, 1], [], []>} : vector<8x32xbf16>, vector<32x128xbf16>, vector<8x128xf32> -> vector<8x128xf32>
    %775 = arith.addf %752, %774 : vector<8x128xf32>
    %776 = vector.extract_strided_slice %775 {offsets = [0, 0], sizes = [8, 32], strides = [1, 1]} : vector<8x128xf32> to vector<8x32xf32>
    %777 = arith.negf %776 : vector<8x32xf32>
    %778 = math.exp %777 : vector<8x32xf32>
    %cst_273 = arith.constant 1.000000e+00 : f32
    %779 = vector.broadcast %cst_273 : f32 to vector<8x32xf32>
    %780 = arith.addf %779, %778 : vector<8x32xf32>
    %781 = arith.divf %779, %780 : vector<8x32xf32>
    %782 = vector.extract_strided_slice %775 {offsets = [0, 32], sizes = [8, 32], strides = [1, 1]} : vector<8x128xf32> to vector<8x32xf32>
    %783 = arith.negf %782 : vector<8x32xf32>
    %784 = math.exp %783 : vector<8x32xf32>
    %cst_274 = arith.constant 1.000000e+00 : f32
    %785 = vector.broadcast %cst_274 : f32 to vector<8x32xf32>
    %786 = arith.addf %785, %784 : vector<8x32xf32>
    %787 = arith.divf %785, %786 : vector<8x32xf32>
    %788 = vector.extract_strided_slice %775 {offsets = [0, 64], sizes = [8, 32], strides = [1, 1]} : vector<8x128xf32> to vector<8x32xf32>
    %789 = math.tanh %788 : vector<8x32xf32>
    %790 = vector.extract_strided_slice %775 {offsets = [0, 96], sizes = [8, 32], strides = [1, 1]} : vector<8x128xf32> to vector<8x32xf32>
    %791 = arith.negf %790 : vector<8x32xf32>
    %792 = math.exp %791 : vector<8x32xf32>
    %cst_275 = arith.constant 1.000000e+00 : f32
    %793 = vector.broadcast %cst_275 : f32 to vector<8x32xf32>
    %794 = arith.addf %793, %792 : vector<8x32xf32>
    %795 = arith.divf %793, %794 : vector<8x32xf32>
    %796 = arith.mulf %787, %689 : vector<8x32xf32>
    %797 = arith.mulf %781, %789 : vector<8x32xf32>
    %798 = arith.addf %796, %797 : vector<8x32xf32>
    %799 = math.tanh %798 : vector<8x32xf32>
    %800 = arith.mulf %795, %799 : vector<8x32xf32>
    %cst_276 = arith.constant 0.000000e+00 : f32
    %801 = vector.shape_cast %768 : vector<8x1xi1> to vector<8x1xi1>
    %802 = vector.broadcast %801 : vector<8x1xi1> to vector<8x32xi1>
    %803 = vector.broadcast %cst_276 : f32 to vector<8x32xf32>
    %804 = arith.select %802, %800, %803 : vector<8x32xi1>, vector<8x32xf32>
    %805 = vector.shape_cast %768 : vector<8x1xi1> to vector<8x1xi1>
    %806 = vector.broadcast %805 : vector<8x1xi1> to vector<8x32xi1>
    %807 = arith.select %806, %800, %686 : vector<8x32xi1>, vector<8x32xf32>
    %808 = vector.shape_cast %768 : vector<8x1xi1> to vector<8x1xi1>
    %809 = vector.broadcast %808 : vector<8x1xi1> to vector<8x32xi1>
    %810 = arith.select %809, %798, %689 : vector<8x32xi1>, vector<8x32xf32>
    %811 = arith.truncf %725 : vector<8x32xf32> to vector<8x32xbf16>
    %c0_277 = arith.constant 0 : index
    %c0_278 = arith.constant 0 : index
    %812 = vector.load %arg12[%c0_277, %c0_278] : memref<32x128xbf16, #tpu.memory_space<vmem>>, vector<32x128xbf16>
    %cst_279 = arith.constant dense<0.000000e+00> : vector<8x128xf32>
    %813 = tpu.matmul %811, %812, %cst_279 {dimension_numbers = #tpu.dot_dimension_numbers<[1], [0], [0], [1], [0, 0, 1, 1], [], []>} : vector<8x32xbf16>, vector<32x128xbf16>, vector<8x128xf32> -> vector<8x128xf32>
    %814 = arith.addf %765, %813 : vector<8x128xf32>
    %815 = vector.extract_strided_slice %814 {offsets = [0, 0], sizes = [8, 32], strides = [1, 1]} : vector<8x128xf32> to vector<8x32xf32>
    %816 = arith.negf %815 : vector<8x32xf32>
    %817 = math.exp %816 : vector<8x32xf32>
    %cst_280 = arith.constant 1.000000e+00 : f32
    %818 = vector.broadcast %cst_280 : f32 to vector<8x32xf32>
    %819 = arith.addf %818, %817 : vector<8x32xf32>
    %820 = arith.divf %818, %819 : vector<8x32xf32>
    %821 = vector.extract_strided_slice %814 {offsets = [0, 32], sizes = [8, 32], strides = [1, 1]} : vector<8x128xf32> to vector<8x32xf32>
    %822 = arith.negf %821 : vector<8x32xf32>
    %823 = math.exp %822 : vector<8x32xf32>
    %cst_281 = arith.constant 1.000000e+00 : f32
    %824 = vector.broadcast %cst_281 : f32 to vector<8x32xf32>
    %825 = arith.addf %824, %823 : vector<8x32xf32>
    %826 = arith.divf %824, %825 : vector<8x32xf32>
    %827 = vector.extract_strided_slice %814 {offsets = [0, 64], sizes = [8, 32], strides = [1, 1]} : vector<8x128xf32> to vector<8x32xf32>
    %828 = math.tanh %827 : vector<8x32xf32>
    %829 = vector.extract_strided_slice %814 {offsets = [0, 96], sizes = [8, 32], strides = [1, 1]} : vector<8x128xf32> to vector<8x32xf32>
    %830 = arith.negf %829 : vector<8x32xf32>
    %831 = math.exp %830 : vector<8x32xf32>
    %cst_282 = arith.constant 1.000000e+00 : f32
    %832 = vector.broadcast %cst_282 : f32 to vector<8x32xf32>
    %833 = arith.addf %832, %831 : vector<8x32xf32>
    %834 = arith.divf %832, %833 : vector<8x32xf32>
    %835 = arith.mulf %826, %728 : vector<8x32xf32>
    %836 = arith.mulf %820, %828 : vector<8x32xf32>
    %837 = arith.addf %835, %836 : vector<8x32xf32>
    %838 = math.tanh %837 : vector<8x32xf32>
    %839 = arith.mulf %834, %838 : vector<8x32xf32>
    %cst_283 = arith.constant 0.000000e+00 : f32
    %840 = vector.shape_cast %771 : vector<8x1xi1> to vector<8x1xi1>
    %841 = vector.broadcast %840 : vector<8x1xi1> to vector<8x32xi1>
    %842 = vector.broadcast %cst_283 : f32 to vector<8x32xf32>
    %843 = arith.select %841, %839, %842 : vector<8x32xi1>, vector<8x32xf32>
    %844 = vector.shape_cast %771 : vector<8x1xi1> to vector<8x1xi1>
    %845 = vector.broadcast %844 : vector<8x1xi1> to vector<8x32xi1>
    %846 = arith.select %845, %839, %725 : vector<8x32xi1>, vector<8x32xf32>
    %847 = vector.shape_cast %771 : vector<8x1xi1> to vector<8x1xi1>
    %848 = vector.broadcast %847 : vector<8x1xi1> to vector<8x32xi1>
    %849 = arith.select %848, %837, %728 : vector<8x32xi1>, vector<8x32xf32>
    %850 = arith.truncf %804 : vector<8x32xf32> to vector<8x32xbf16>
    %851 = arith.index_cast %c6_i32 : i32 to index
    %c0_284 = arith.constant 0 : index
    %c0_285 = arith.constant 0 : index
    %852 = vector.load %arg15[%851, %c0_284, %c0_285] : memref<8x8x32xbf16, #tpu.memory_space<vmem>>, vector<1x8x32xbf16>
    %853 = vector.shape_cast %852 : vector<1x8x32xbf16> to vector<8x32xbf16>
    %854 = vector.shape_cast %850 : vector<8x32xbf16> to vector<1x8x32xbf16>
    tpu.vector_store %arg15[%851, %c0_284, %c0_285], %854 {strides = array<i32>} : memref<8x8x32xbf16, #tpu.memory_space<vmem>>, vector<1x8x32xbf16>,
    %855 = arith.truncf %843 : vector<8x32xf32> to vector<8x32xbf16>
    %856 = arith.index_cast %739 : i32 to index
    %c0_286 = arith.constant 0 : index
    %c0_287 = arith.constant 0 : index
    %857 = vector.load %arg16[%856, %c0_286, %c0_287] : memref<8x8x32xbf16, #tpu.memory_space<vmem>>, vector<1x8x32xbf16>
    %858 = vector.shape_cast %857 : vector<1x8x32xbf16> to vector<8x32xbf16>
    %859 = vector.shape_cast %855 : vector<8x32xbf16> to vector<1x8x32xbf16>
    tpu.vector_store %arg16[%856, %c0_286, %c0_287], %859 {strides = array<i32>} : memref<8x8x32xbf16, #tpu.memory_space<vmem>>, vector<1x8x32xbf16>,
    %c7_i32_288 = arith.constant 7 : i32
    %c7_i32_289 = arith.constant 7 : i32
    %860 = arith.subi %c7_i32_289, %c7_i32_288 : i32
    %861 = arith.index_cast %c7_i32_288 : i32 to index
    %c0_290 = arith.constant 0 : index
    %c0_291 = arith.constant 0 : index
    %862 = vector.load %arg3[%861, %c0_290, %c0_291] : memref<8x8x32xbf16, #tpu.memory_space<vmem>>, vector<1x8x32xbf16>
    %863 = vector.shape_cast %862 : vector<1x8x32xbf16> to vector<8x32xbf16>
    %c0_292 = arith.constant 0 : index
    %c0_293 = arith.constant 0 : index
    %864 = vector.load %arg7[%c0_292, %c0_293] : memref<32x128xbf16, #tpu.memory_space<vmem>>, vector<32x128xbf16>
    %cst_294 = arith.constant dense<0.000000e+00> : vector<8x128xf32>
    %865 = tpu.matmul %863, %864, %cst_294 {dimension_numbers = #tpu.dot_dimension_numbers<[1], [0], [0], [1], [0, 0, 1, 1], [], []>} : vector<8x32xbf16>, vector<32x128xbf16>, vector<8x128xf32> -> vector<8x128xf32>
    %866 = vector.broadcast %4 : vector<1x128xf32> to vector<8x128xf32>
    %867 = arith.addf %866, %865 : vector<8x128xf32>
    %868 = arith.index_cast %c7_i32_288 : i32 to index
    %c0_295 = arith.constant 0 : index
    %c0_296 = arith.constant 0 : index
    %869 = vector.load %arg4[%868, %c0_295, %c0_296] : memref<8x8x32xbf16, #tpu.memory_space<vmem>>, vector<1x8x32xbf16>
    %870 = vector.shape_cast %869 : vector<1x8x32xbf16> to vector<8x32xbf16>
    %c0_297 = arith.constant 0 : index
    %c0_298 = arith.constant 0 : index
    %871 = vector.load %arg8[%c0_297, %c0_298] : memref<32x128xbf16, #tpu.memory_space<vmem>>, vector<32x128xbf16>
    %cst_299 = arith.constant dense<0.000000e+00> : vector<8x128xf32>
    %872 = tpu.matmul %870, %871, %cst_299 {dimension_numbers = #tpu.dot_dimension_numbers<[1], [0], [0], [1], [0, 0, 1, 1], [], []>} : vector<8x32xbf16>, vector<32x128xbf16>, vector<8x128xf32> -> vector<8x128xf32>
    %873 = arith.addf %867, %872 : vector<8x128xf32>
    %874 = arith.index_cast %860 : i32 to index
    %c0_300 = arith.constant 0 : index
    %c0_301 = arith.constant 0 : index
    %875 = vector.load %arg5[%874, %c0_300, %c0_301] : memref<8x8x32xbf16, #tpu.memory_space<vmem>>, vector<1x8x32xbf16>
    %876 = vector.shape_cast %875 : vector<1x8x32xbf16> to vector<8x32xbf16>
    %c0_302 = arith.constant 0 : index
    %c0_303 = arith.constant 0 : index
    %877 = vector.load %arg9[%c0_302, %c0_303] : memref<32x128xbf16, #tpu.memory_space<vmem>>, vector<32x128xbf16>
    %cst_304 = arith.constant dense<0.000000e+00> : vector<8x128xf32>
    %878 = tpu.matmul %876, %877, %cst_304 {dimension_numbers = #tpu.dot_dimension_numbers<[1], [0], [0], [1], [0, 0, 1, 1], [], []>} : vector<8x32xbf16>, vector<32x128xbf16>, vector<8x128xf32> -> vector<8x128xf32>
    %879 = vector.broadcast %5 : vector<1x128xf32> to vector<8x128xf32>
    %880 = arith.addf %879, %878 : vector<8x128xf32>
    %881 = arith.index_cast %860 : i32 to index
    %c0_305 = arith.constant 0 : index
    %c0_306 = arith.constant 0 : index
    %882 = vector.load %arg6[%881, %c0_305, %c0_306] : memref<8x8x32xbf16, #tpu.memory_space<vmem>>, vector<1x8x32xbf16>
    %883 = vector.shape_cast %882 : vector<1x8x32xbf16> to vector<8x32xbf16>
    %c0_307 = arith.constant 0 : index
    %c0_308 = arith.constant 0 : index
    %884 = vector.load %arg10[%c0_307, %c0_308] : memref<32x128xbf16, #tpu.memory_space<vmem>>, vector<32x128xbf16>
    %cst_309 = arith.constant dense<0.000000e+00> : vector<8x128xf32>
    %885 = tpu.matmul %883, %884, %cst_309 {dimension_numbers = #tpu.dot_dimension_numbers<[1], [0], [0], [1], [0, 0, 1, 1], [], []>} : vector<8x32xbf16>, vector<32x128xbf16>, vector<8x128xf32> -> vector<8x128xf32>
    %886 = arith.addf %880, %885 : vector<8x128xf32>
    %887 = arith.addi %6, %c7_i32_288 : i32
    %888 = vector.broadcast %887 : i32 to vector<8x1xi32>
    %889 = arith.cmpi slt, %888, %3 : vector<8x1xi32>
    %890 = arith.addi %8, %860 : i32
    %891 = vector.broadcast %890 : i32 to vector<8x1xi32>
    %892 = arith.cmpi slt, %891, %3 : vector<8x1xi32>
    %893 = arith.truncf %807 : vector<8x32xf32> to vector<8x32xbf16>
    %c0_310 = arith.constant 0 : index
    %c0_311 = arith.constant 0 : index
    %894 = vector.load %arg11[%c0_310, %c0_311] : memref<32x128xbf16, #tpu.memory_space<vmem>>, vector<32x128xbf16>
    %cst_312 = arith.constant dense<0.000000e+00> : vector<8x128xf32>
    %895 = tpu.matmul %893, %894, %cst_312 {dimension_numbers = #tpu.dot_dimension_numbers<[1], [0], [0], [1], [0, 0, 1, 1], [], []>} : vector<8x32xbf16>, vector<32x128xbf16>, vector<8x128xf32> -> vector<8x128xf32>
    %896 = arith.addf %873, %895 : vector<8x128xf32>
    %897 = vector.extract_strided_slice %896 {offsets = [0, 0], sizes = [8, 32], strides = [1, 1]} : vector<8x128xf32> to vector<8x32xf32>
    %898 = arith.negf %897 : vector<8x32xf32>
    %899 = math.exp %898 : vector<8x32xf32>
    %cst_313 = arith.constant 1.000000e+00 : f32
    %900 = vector.broadcast %cst_313 : f32 to vector<8x32xf32>
    %901 = arith.addf %900, %899 : vector<8x32xf32>
    %902 = arith.divf %900, %901 : vector<8x32xf32>
    %903 = vector.extract_strided_slice %896 {offsets = [0, 32], sizes = [8, 32], strides = [1, 1]} : vector<8x128xf32> to vector<8x32xf32>
    %904 = arith.negf %903 : vector<8x32xf32>
    %905 = math.exp %904 : vector<8x32xf32>
    %cst_314 = arith.constant 1.000000e+00 : f32
    %906 = vector.broadcast %cst_314 : f32 to vector<8x32xf32>
    %907 = arith.addf %906, %905 : vector<8x32xf32>
    %908 = arith.divf %906, %907 : vector<8x32xf32>
    %909 = vector.extract_strided_slice %896 {offsets = [0, 64], sizes = [8, 32], strides = [1, 1]} : vector<8x128xf32> to vector<8x32xf32>
    %910 = math.tanh %909 : vector<8x32xf32>
    %911 = vector.extract_strided_slice %896 {offsets = [0, 96], sizes = [8, 32], strides = [1, 1]} : vector<8x128xf32> to vector<8x32xf32>
    %912 = arith.negf %911 : vector<8x32xf32>
    %913 = math.exp %912 : vector<8x32xf32>
    %cst_315 = arith.constant 1.000000e+00 : f32
    %914 = vector.broadcast %cst_315 : f32 to vector<8x32xf32>
    %915 = arith.addf %914, %913 : vector<8x32xf32>
    %916 = arith.divf %914, %915 : vector<8x32xf32>
    %917 = arith.mulf %908, %810 : vector<8x32xf32>
    %918 = arith.mulf %902, %910 : vector<8x32xf32>
    %919 = arith.addf %917, %918 : vector<8x32xf32>
    %920 = math.tanh %919 : vector<8x32xf32>
    %921 = arith.mulf %916, %920 : vector<8x32xf32>
    %cst_316 = arith.constant 0.000000e+00 : f32
    %922 = vector.shape_cast %889 : vector<8x1xi1> to vector<8x1xi1>
    %923 = vector.broadcast %922 : vector<8x1xi1> to vector<8x32xi1>
    %924 = vector.broadcast %cst_316 : f32 to vector<8x32xf32>
    %925 = arith.select %923, %921, %924 : vector<8x32xi1>, vector<8x32xf32>
    %926 = vector.shape_cast %889 : vector<8x1xi1> to vector<8x1xi1>
    %927 = vector.broadcast %926 : vector<8x1xi1> to vector<8x32xi1>
    %928 = arith.select %927, %921, %807 : vector<8x32xi1>, vector<8x32xf32>
    %929 = vector.shape_cast %889 : vector<8x1xi1> to vector<8x1xi1>
    %930 = vector.broadcast %929 : vector<8x1xi1> to vector<8x32xi1>
    %931 = arith.select %930, %919, %810 : vector<8x32xi1>, vector<8x32xf32>
    %932 = arith.truncf %846 : vector<8x32xf32> to vector<8x32xbf16>
    %c0_317 = arith.constant 0 : index
    %c0_318 = arith.constant 0 : index
    %933 = vector.load %arg12[%c0_317, %c0_318] : memref<32x128xbf16, #tpu.memory_space<vmem>>, vector<32x128xbf16>
    %cst_319 = arith.constant dense<0.000000e+00> : vector<8x128xf32>
    %934 = tpu.matmul %932, %933, %cst_319 {dimension_numbers = #tpu.dot_dimension_numbers<[1], [0], [0], [1], [0, 0, 1, 1], [], []>} : vector<8x32xbf16>, vector<32x128xbf16>, vector<8x128xf32> -> vector<8x128xf32>
    %935 = arith.addf %886, %934 : vector<8x128xf32>
    %936 = vector.extract_strided_slice %935 {offsets = [0, 0], sizes = [8, 32], strides = [1, 1]} : vector<8x128xf32> to vector<8x32xf32>
    %937 = arith.negf %936 : vector<8x32xf32>
    %938 = math.exp %937 : vector<8x32xf32>
    %cst_320 = arith.constant 1.000000e+00 : f32
    %939 = vector.broadcast %cst_320 : f32 to vector<8x32xf32>
    %940 = arith.addf %939, %938 : vector<8x32xf32>
    %941 = arith.divf %939, %940 : vector<8x32xf32>
    %942 = vector.extract_strided_slice %935 {offsets = [0, 32], sizes = [8, 32], strides = [1, 1]} : vector<8x128xf32> to vector<8x32xf32>
    %943 = arith.negf %942 : vector<8x32xf32>
    %944 = math.exp %943 : vector<8x32xf32>
    %cst_321 = arith.constant 1.000000e+00 : f32
    %945 = vector.broadcast %cst_321 : f32 to vector<8x32xf32>
    %946 = arith.addf %945, %944 : vector<8x32xf32>
    %947 = arith.divf %945, %946 : vector<8x32xf32>
    %948 = vector.extract_strided_slice %935 {offsets = [0, 64], sizes = [8, 32], strides = [1, 1]} : vector<8x128xf32> to vector<8x32xf32>
    %949 = math.tanh %948 : vector<8x32xf32>
    %950 = vector.extract_strided_slice %935 {offsets = [0, 96], sizes = [8, 32], strides = [1, 1]} : vector<8x128xf32> to vector<8x32xf32>
    %951 = arith.negf %950 : vector<8x32xf32>
    %952 = math.exp %951 : vector<8x32xf32>
    %cst_322 = arith.constant 1.000000e+00 : f32
    %953 = vector.broadcast %cst_322 : f32 to vector<8x32xf32>
    %954 = arith.addf %953, %952 : vector<8x32xf32>
    %955 = arith.divf %953, %954 : vector<8x32xf32>
    %956 = arith.mulf %947, %849 : vector<8x32xf32>
    %957 = arith.mulf %941, %949 : vector<8x32xf32>
    %958 = arith.addf %956, %957 : vector<8x32xf32>
    %959 = math.tanh %958 : vector<8x32xf32>
    %960 = arith.mulf %955, %959 : vector<8x32xf32>
    %cst_323 = arith.constant 0.000000e+00 : f32
    %961 = vector.shape_cast %892 : vector<8x1xi1> to vector<8x1xi1>
    %962 = vector.broadcast %961 : vector<8x1xi1> to vector<8x32xi1>
    %963 = vector.broadcast %cst_323 : f32 to vector<8x32xf32>
    %964 = arith.select %962, %960, %963 : vector<8x32xi1>, vector<8x32xf32>
    %965 = vector.shape_cast %892 : vector<8x1xi1> to vector<8x1xi1>
    %966 = vector.broadcast %965 : vector<8x1xi1> to vector<8x32xi1>
    %967 = arith.select %966, %960, %846 : vector<8x32xi1>, vector<8x32xf32>
    %968 = vector.shape_cast %892 : vector<8x1xi1> to vector<8x1xi1>
    %969 = vector.broadcast %968 : vector<8x1xi1> to vector<8x32xi1>
    %970 = arith.select %969, %958, %849 : vector<8x32xi1>, vector<8x32xf32>
    %971 = arith.truncf %925 : vector<8x32xf32> to vector<8x32xbf16>
    %972 = arith.index_cast %c7_i32_288 : i32 to index
    %c0_324 = arith.constant 0 : index
    %c0_325 = arith.constant 0 : index
    %973 = vector.load %arg15[%972, %c0_324, %c0_325] : memref<8x8x32xbf16, #tpu.memory_space<vmem>>, vector<1x8x32xbf16>
    %974 = vector.shape_cast %973 : vector<1x8x32xbf16> to vector<8x32xbf16>
    %975 = vector.shape_cast %971 : vector<8x32xbf16> to vector<1x8x32xbf16>
    tpu.vector_store %arg15[%972, %c0_324, %c0_325], %975 {strides = array<i32>} : memref<8x8x32xbf16, #tpu.memory_space<vmem>>, vector<1x8x32xbf16>,
    %976 = arith.truncf %964 : vector<8x32xf32> to vector<8x32xbf16>
    %977 = arith.index_cast %860 : i32 to index
    %c0_326 = arith.constant 0 : index
    %c0_327 = arith.constant 0 : index
    %978 = vector.load %arg16[%977, %c0_326, %c0_327] : memref<8x8x32xbf16, #tpu.memory_space<vmem>>, vector<1x8x32xbf16>
    %979 = vector.shape_cast %978 : vector<1x8x32xbf16> to vector<8x32xbf16>
    %980 = vector.shape_cast %976 : vector<8x32xbf16> to vector<1x8x32xbf16>
    tpu.vector_store %arg16[%977, %c0_326, %c0_327], %980 {strides = array<i32>} : memref<8x8x32xbf16, #tpu.memory_space<vmem>>, vector<1x8x32xbf16>,
    %c8_i32_328 = arith.constant 8 : i32
    %c0_329 = arith.constant 0 : index
    %c0_330 = arith.constant 0 : index
    %981 = vector.load %arg17[%c0_329, %c0_330] : memref<8x32xf32, #tpu.memory_space<vmem>>, vector<8x32xf32>
    tpu.vector_store %arg17[%c0_329, %c0_330], %928 {strides = array<i32>} : memref<8x32xf32, #tpu.memory_space<vmem>>, vector<8x32xf32>,
    %c0_331 = arith.constant 0 : index
    %c0_332 = arith.constant 0 : index
    %982 = vector.load %arg18[%c0_331, %c0_332] : memref<8x32xf32, #tpu.memory_space<vmem>>, vector<8x32xf32>
    tpu.vector_store %arg18[%c0_331, %c0_332], %931 {strides = array<i32>} : memref<8x32xf32, #tpu.memory_space<vmem>>, vector<8x32xf32>,
    %c0_333 = arith.constant 0 : index
    %c0_334 = arith.constant 0 : index
    %983 = vector.load %arg19[%c0_333, %c0_334] : memref<8x32xf32, #tpu.memory_space<vmem>>, vector<8x32xf32>
    tpu.vector_store %arg19[%c0_333, %c0_334], %967 {strides = array<i32>} : memref<8x32xf32, #tpu.memory_space<vmem>>, vector<8x32xf32>,
    %c0_335 = arith.constant 0 : index
    %c0_336 = arith.constant 0 : index
    %984 = vector.load %arg20[%c0_335, %c0_336] : memref<8x32xf32, #tpu.memory_space<vmem>>, vector<8x32xf32>
    tpu.vector_store %arg20[%c0_335, %c0_336], %970 {strides = array<i32>} : memref<8x32xf32, #tpu.memory_space<vmem>>, vector<8x32xf32>,
    return
  }
  func.func @transform_0(%arg0: i32, %arg1: i32) -> (i32, i32) {
    %c0_i32 = arith.constant 0 : i32
    %c0_i32_0 = arith.constant 0 : i32
    return %arg0, %c0_i32 : i32, i32
  }
  func.func @transform_1(%arg0: i32, %arg1: i32) -> (i32, i32, i32) {
    %c0_i32 = arith.constant 0 : i32
    %c0_i32_0 = arith.constant 0 : i32
    return %arg1, %arg0, %c0_i32 : i32, i32, i32
  }
  func.func @transform_2(%arg0: i32, %arg1: i32) -> (i32, i32, i32) {
    %c0_i32 = arith.constant 0 : i32
    %c0_i32_0 = arith.constant 0 : i32
    return %arg1, %arg0, %c0_i32 : i32, i32, i32
  }
  func.func @transform_3(%arg0: i32, %arg1: i32) -> (i32, i32, i32) {
    %c0_i32 = arith.constant 0 : i32
    %0 = arith.subi %c0_i32, %arg1 : i32
    %c0_i32_0 = arith.constant 0 : i32
    %c0_i32_1 = arith.constant 0 : i32
    return %0, %arg0, %c0_i32_0 : i32, i32, i32
  }
  func.func @transform_4(%arg0: i32, %arg1: i32) -> (i32, i32, i32) {
    %c0_i32 = arith.constant 0 : i32
    %0 = arith.subi %c0_i32, %arg1 : i32
    %c0_i32_0 = arith.constant 0 : i32
    %c0_i32_1 = arith.constant 0 : i32
    return %0, %arg0, %c0_i32_0 : i32, i32, i32
  }
  func.func @transform_5(%arg0: i32, %arg1: i32) -> (i32, i32) {
    %c0_i32 = arith.constant 0 : i32
    %c0_i32_0 = arith.constant 0 : i32
    %c0_i32_1 = arith.constant 0 : i32
    return %c0_i32, %c0_i32_0 : i32, i32
  }
  func.func @transform_6(%arg0: i32, %arg1: i32) -> (i32, i32) {
    %c0_i32 = arith.constant 0 : i32
    %c0_i32_0 = arith.constant 0 : i32
    %c0_i32_1 = arith.constant 0 : i32
    return %c0_i32, %c0_i32_0 : i32, i32
  }
  func.func @transform_7(%arg0: i32, %arg1: i32) -> (i32, i32) {
    %c0_i32 = arith.constant 0 : i32
    %c0_i32_0 = arith.constant 0 : i32
    %c0_i32_1 = arith.constant 0 : i32
    return %c0_i32, %c0_i32_0 : i32, i32
  }
  func.func @transform_8(%arg0: i32, %arg1: i32) -> (i32, i32) {
    %c0_i32 = arith.constant 0 : i32
    %c0_i32_0 = arith.constant 0 : i32
    %c0_i32_1 = arith.constant 0 : i32
    return %c0_i32, %c0_i32_0 : i32, i32
  }
  func.func @transform_9(%arg0: i32, %arg1: i32) -> (i32, i32) {
    %c0_i32 = arith.constant 0 : i32
    %c0_i32_0 = arith.constant 0 : i32
    %c0_i32_1 = arith.constant 0 : i32
    return %c0_i32, %c0_i32_0 : i32, i32
  }
  func.func @transform_10(%arg0: i32, %arg1: i32) -> (i32, i32) {
    %c0_i32 = arith.constant 0 : i32
    %c0_i32_0 = arith.constant 0 : i32
    %c0_i32_1 = arith.constant 0 : i32
    return %c0_i32, %c0_i32_0 : i32, i32
  }
  func.func @transform_11(%arg0: i32, %arg1: i32) -> (i32, i32) {
    %c0_i32 = arith.constant 0 : i32
    %c0_i32_0 = arith.constant 0 : i32
    %c0_i32_1 = arith.constant 0 : i32
    return %c0_i32, %c0_i32_0 : i32, i32
  }
  func.func @transform_12(%arg0: i32, %arg1: i32) -> (i32, i32) {
    %c0_i32 = arith.constant 0 : i32
    %c0_i32_0 = arith.constant 0 : i32
    %c0_i32_1 = arith.constant 0 : i32
    return %c0_i32, %c0_i32_0 : i32, i32
  }
  func.func @transform_13(%arg0: i32, %arg1: i32) -> (i32, i32, i32) {
    %c0_i32 = arith.constant 0 : i32
    %c0_i32_0 = arith.constant 0 : i32
    return %arg1, %arg0, %c0_i32 : i32, i32, i32
  }
  func.func @transform_14(%arg0: i32, %arg1: i32) -> (i32, i32, i32) {
    %c0_i32 = arith.constant 0 : i32
    %0 = arith.subi %c0_i32, %arg1 : i32
    %c0_i32_0 = arith.constant 0 : i32
    %c0_i32_1 = arith.constant 0 : i32
    return %0, %arg0, %c0_i32_0 : i32, i32, i32
  }
}

</mosaic_0001>

<bundles_post_ra>
// kernel: bilstm_forward.5
= control target key start
LH: loop header
LB: loop body
LE: loop exit
PB: predicated region body
PF: predicated region fallthrough
CT: control target
= control target key end

     0   :  { %vm65_vm0 = vcmask 261120   ;;  %vm528_vm1 = vcmask 64512   ;;  %s1041_s1 = inlined_call_operand.vmem [shape: bf16[64,32], index: 1, kind: input, shape index: {}]   ;;  %s1042_s0 = inlined_call_operand.vmem [shape: bf16[64,32], index: 0, kind: input, shape index: {}]   ;;  %s1043_s7 = inlined_call_operand.vmem [shape: bf16[32,8], index: 7, kind: input, shape index: {}]   ;;  %s1044_s6 = inlined_call_operand.vmem [shape: bf16[32,8], index: 6, kind: input, shape index: {}]   ;;  %s1045_s3 = inlined_call_operand.vmem [shape: f32[1,32], index: 3, kind: input, shape index: {}]   ;;  %s1046_s2 = inlined_call_operand.vmem [shape: f32[1,32], index: 2, kind: input, shape index: {}]   ;;  %s1047_s5 = inlined_call_operand.vmem [shape: f32[1,32], index: 5, kind: input, shape index: {}]   ;;  %s1048_s4 = inlined_call_operand.vmem [shape: f32[1,32], index: 4, kind: input, shape index: {}]   ;;  %s1049_s8 = inlined_call_operand.vmem [shape: f32[1,8], index: 8, kind: input, shape index: {}]   ;;  %s1050_s9 = inlined_call_operand.vmem [shape: f32[64,8], index: 9, kind: output, shape index: {}]  }
   0x1   :  { %v713_v0 = vld [vmem:[%s1041_s1] sm:$0xff]   ;;  %v727_v6 = vld [vmem:[%s1042_s0 + $0x8] sm:$0xff]   ;;  %v755_v18 = vld [vmem:[%s1042_s0 + $0x10] sm:$0xff]  }
   0x2   :  { %v718_v1 = vld [vmem:[%s1042_s0] sm:$0xff]   ;;  %v576_v2 = vunpack.c.l.bf16 %v713_v0  ;;  %v577_v4 = vunpack.c.h.bf16 %v713_v0  ;;  %v565_v11 = vunpack.c.h.bf16 %v727_v6  ;;  %v564_v12 = vunpack.c.l.bf16 %v727_v6  ;;  %v742_v13 = vld [vmem:[%s1041_s1 + $0x8] sm:$0xff]   ;;  %v768_v23 = vld [vmem:[%s1041_s1 + $0x10] sm:$0xff]  }
   0x3   :  { %v560_v3 = vunpack.c.l.bf16 %v718_v1  ;;  %v561_v5 = vunpack.c.h.bf16 %v718_v1  ;;  %v581_v16 = vunpack.c.h.bf16 %v742_v13  ;;  %v580_v17 = vunpack.c.l.bf16 %v742_v13  ;;  %v781_v28 = vld [vmem:[%s1042_s0 + $0x18] sm:$0xff]  }
   0x4   :  { %v90_v7 = vsel %vm65_vm0, %v576_v2, 0.0  ;;  %v93_v9 = vsel %vm65_vm0, %v577_v4, 0.0  ;;  %v75_v14 = vsel %vm65_vm0, %v565_v11, 0.0  ;;  %v72_v15 = vsel %vm65_vm0, %v564_v12, 0.0  ;;  %v794_v33 = vld [vmem:[%s1041_s1 + $0x18] sm:$0xff]  }
   0x5   :  { %v66_v8 = vsel %vm65_vm0, %v560_v3, 0.0  ;;  %91 = vadd.xlane.f32.xlu1 %v90_v7  ;;  %v69_v10 = vsel %vm65_vm0, %v561_v5, 0.0  ;;  %v99_v19 = vsel %vm65_vm0, %v581_v16, 0.0  ;;  %v96_v20 = vsel %vm65_vm0, %v580_v17, 0.0 }
   0x6   :  { %67 = vadd.xlane.f32.xlu0 %v66_v8  ;;  %v569_v21 = vunpack.c.h.bf16 %v755_v18  ;;  %v568_v22 = vunpack.c.l.bf16 %v755_v18  ;;  %v585_v26 = vunpack.c.h.bf16 %v768_v23  ;;  %v584_v27 = vunpack.c.l.bf16 %v768_v23 }
   0x7   :  { %v573_v31 = vunpack.c.h.bf16 %v781_v28  ;;  %v572_v32 = vunpack.c.l.bf16 %v781_v28  ;;  %v589_v36 = vunpack.c.h.bf16 %v794_v33  ;;  %v588_v37 = vunpack.c.l.bf16 %v794_v33 }
   0x8   :  { %v81_v24 = vsel %vm65_vm0, %v569_v21, 0.0  ;;  %v78_v25 = vsel %vm65_vm0, %v568_v22, 0.0  ;;  %v105_v29 = vsel %vm65_vm0, %v585_v26, 0.0  ;;  %v102_v30 = vsel %vm65_vm0, %v584_v27, 0.0 }
   0x9   :  { %94 = vadd.xlane.f32.xlu1 %v93_v9  ;;  %v87_v34 = vsel %vm65_vm0, %v573_v31, 0.0  ;;  %v84_v35 = vsel %vm65_vm0, %v572_v32, 0.0  ;;  %v111_v38 = vsel %vm65_vm0, %v589_v36, 0.0  ;;  %v108_v39 = vsel %vm65_vm0, %v588_v37, 0.0 }
   0xa   :  { %70 = vadd.xlane.f32.xlu0 %v69_v10 }
   0xd   :  { %76 = vadd.xlane.f32.xlu1 %v75_v14 }
   0xe   :  { %73 = vadd.xlane.f32.xlu0 %v72_v15 }
  0x11   :  { %100 = vadd.xlane.f32.xlu1 %v99_v19 }
  0x12   :  { %97 = vadd.xlane.f32.xlu0 %v96_v20 }
  0x15   :  { %82 = vadd.xlane.f32.xlu1 %v81_v24 }
  0x16   :  { %79 = vadd.xlane.f32.xlu0 %v78_v25 }
  0x19   :  { %106 = vadd.xlane.f32.xlu1 %v105_v29 }
  0x1a   :  { %103 = vadd.xlane.f32.xlu0 %v102_v30 }
  0x1d   :  { %88 = vadd.xlane.f32.xlu1 %v87_v34 }
  0x1e   :  { %85 = vadd.xlane.f32.xlu0 %v84_v35 }
  0x21   :  { %112 = vadd.xlane.f32.xlu1 %v111_v38 }
  0x22   :  { %109 = vadd.xlane.f32.xlu0 %v108_v39 }
  0x92   :  { %v92_v40 = vpop.xlane.xlu1 %91 }
  0x93   :  { %v68_v41 = vpop.xlane.xlu0 %67 }
  0x94   :  { %v114_v42 = vadd.f32 %v92_v40, %v68_v41 }
  0x96   :  { %v123_v43 = vmul.f32 0.015625, %v114_v42  ;;  %v95_v44 = vpop.xlane.xlu1 %94 }
  0x97   :  { %v71_v45 = vpop.xlane.xlu0 %70 }
  0x98   :  { %v810_v46 = vsub.f32 %v560_v3, %v123_v43  ;;  %v812_v47 = vsub.f32 %v576_v2, %v123_v43  ;;  %v115_v48 = vadd.f32 %v95_v44, %v71_v45 }
  0x9a   :  { %v124_v49 = vmul.f32 0.015625, %v115_v48  ;;  %v147_v50 = vmul.f32 %v810_v46, %v810_v46  ;;  %v77_v51 = vpop.xlane.xlu1 %76  ;;  %v179_v56 = vmul.f32 %v812_v47, %v812_v47 }
  0x9b   :  { %v74_v52 = vpop.xlane.xlu0 %73 }
  0x9c   :  { %v818_v53 = vsub.f32 %v561_v5, %v124_v49  ;;  %v822_v54 = vsub.f32 %v577_v4, %v124_v49  ;;  %v155_v55 = vsel %vm65_vm0, %v147_v50, 0.0  ;;  %v187_v63 = vsel %vm65_vm0, %v179_v56, 0.0 }
  0x9d   :  { %156 = vadd.xlane.f32.xlu0 %v155_v55 }
  0x9e   :  { %v148_v57 = vmul.f32 %v818_v53, %v818_v53  ;;  %v101_v58 = vpop.xlane.xlu1 %100  ;;  %v180_v60 = vmul.f32 %v822_v54, %v822_v54 }
  0x9f   :  { %v98_v59 = vpop.xlane.xlu0 %97  ;;  %v117_v61 = vadd.f32 %v101_v58, %v77_v51 }
  0xa0   :  { %v116_v62 = vadd.f32 %v98_v59, %v74_v52  ;;  %v158_v0 = vsel %vm65_vm0, %v148_v57, 0.0  ;;  %v190_v5 = vsel %vm65_vm0, %v180_v60, 0.0  ;;  %v640_v60 = vld [vmem:[%s1043_s7] sm:$0xff]  }
  0xa1   :  { %188 = vadd.xlane.f32.xlu0 %v187_v63  ;;  %159 = vadd.xlane.f32.xlu1 %v158_v0  ;;  %v126_v1 = vmul.f32 0.015625, %v117_v61  ;;  %v641_v61 = vld [vmem:[%s1044_s6] sm:$0xff]   ;;  %v643_v63 = vld [vmem:[%s1044_s6 + $0x8] sm:$0xff]  }
  0xa2   :  { %v125_v2 = vmul.f32 0.015625, %v116_v62  ;;  %v83_v3 = vpop.xlane.xlu1 %82  ;;  %608 = vmatprep.subr.bf16.mxu1 %v640_v60  ;;  %620 = vmatprep.subr.bf16.mxu0 %v641_v61  ;;  %v642_v62 = vld [vmem:[%s1043_s7 + $0x8] sm:$0xff]  }
  0xa3   :  { %v80_v4 = vpop.xlane.xlu0 %79  ;;  %v836_v7 = vsub.f32 %v565_v11, %v126_v1  ;;  %v840_v8 = vsub.f32 %v581_v16, %v126_v1  ;;  %609 = vmatpush3.bf16.msra.mxu1 %v640_v60  ;;  %621 = vmatpush3.bf16.msra.mxu0 %v641_v61 }
  0xa4   :  { %v844_v9 = vsub.f32 %v564_v12, %v125_v2  ;;  %v848_v10 = vsub.f32 %v580_v17, %v125_v2  ;;  %610 = vmatprep.subr.bf16.mxu1 %v642_v62  ;;  %622 = vmatprep.subr.bf16.mxu0 %v643_v63 }
  0xa5   :  { %191 = vadd.xlane.f32.xlu1 %v190_v5  ;;  %v150_v14 = vmul.f32 %v836_v7, %v836_v7  ;;  %v182_v16 = vmul.f32 %v840_v8, %v840_v8 }
  0xa6   :  { %v149_v11 = vmul.f32 %v844_v9, %v844_v9  ;;  %v107_v15 = vpop.xlane.xlu1 %106  ;;  %v181_v6 = vmul.f32 %v848_v10, %v848_v10 }
  0xa7   :  { %v104_v19 = vpop.xlane.xlu0 %103  ;;  %v119_v12 = vadd.f32 %v107_v15, %v83_v3  ;;  %v164_v13 = vsel %vm65_vm0, %v150_v14, 0.0  ;;  %v196_v34 = vsel %vm65_vm0, %v182_v16, 0.0  ;;  %611 = vmatpush3.bf16.msra.mxu1 %v642_v62  ;;  %623 = vmatpush3.bf16.msra.mxu0 %v643_v63 }
  0xa8   :  { %v118_v20 = vadd.f32 %v104_v19, %v80_v4  ;;  %v161_v17 = vsel %vm65_vm0, %v149_v11, 0.0  ;;  %v193_v35 = vsel %vm65_vm0, %v181_v6, 0.0 }
  0xa9   :  { %165 = vadd.xlane.f32.xlu1 %v164_v13  ;;  %162 = vadd.xlane.f32.xlu0 %v161_v17  ;;  %v128_v24 = vmul.f32 0.015625, %v119_v12 }
  0xaa   :  { %v127_v25 = vmul.f32 0.015625, %v118_v20  ;;  %v89_v29 = vpop.xlane.xlu1 %88 }
  0xab   :  { %v86_v30 = vpop.xlane.xlu0 %85  ;;  %v864_v38 = vsub.f32 %v569_v21, %v128_v24  ;;  %v868_v39 = vsub.f32 %v585_v26, %v128_v24 }
  0xac   :  { %v872_v40 = vsub.f32 %v568_v22, %v127_v25  ;;  %v876_v41 = vsub.f32 %v584_v27, %v127_v25 }
  0xad   :  { %197 = vadd.xlane.f32.xlu1 %v196_v34  ;;  %194 = vadd.xlane.f32.xlu0 %v193_v35  ;;  %v152_v42 = vmul.f32 %v864_v38, %v864_v38  ;;  %v184_v26 = vmul.f32 %v868_v39, %v868_v39 }
  0xae   :  { %v151_v21 = vmul.f32 %v872_v40, %v872_v40  ;;  %v113_v43 = vpop.xlane.xlu1 %112  ;;  %v183_v18 = vmul.f32 %v876_v41, %v876_v41 }
  0xaf   :  { %v110_v44 = vpop.xlane.xlu0 %109  ;;  %v121_v22 = vadd.f32 %v113_v43, %v89_v29  ;;  %v170_v27 = vsel %vm65_vm0, %v152_v42, 0.0  ;;  %v202_v50 = vsel %vm65_vm0, %v184_v26, 0.0  ;;  %v940_v26 = vld [vmem:[%s1046_s2] ss:$0 sm:$0xff] }
  0xb0   :  { %v120_v23 = vadd.f32 %v110_v44, %v86_v30  ;;  %v167_v45 = vsel %vm65_vm0, %v151_v21, 0.0  ;;  %v199_v51 = vsel %vm65_vm0, %v183_v18, 0.0  ;;  %v935_v44 = vld [vmem:[%s1045_s3] ss:$0 sm:$0xff] }
  0xb1   :  { %171 = vadd.xlane.f32.xlu1 %v170_v27  ;;  %168 = vadd.xlane.f32.xlu0 %v167_v45  ;;  %v130_v48 = vmul.f32 0.015625, %v121_v22 }
  0xb2   :  { %v129_v49 = vmul.f32 0.015625, %v120_v23 }
  0xb3   :  { %v892_v52 = vsub.f32 %v573_v31, %v130_v48  ;;  %v896_v55 = vsub.f32 %v589_v36, %v130_v48 }
  0xb4   :  { %v900_v56 = vsub.f32 %v572_v32, %v129_v49  ;;  %v904_v57 = vsub.f32 %v588_v37, %v129_v49 }
  0xb5   :  { %203 = vadd.xlane.f32.xlu1 %v202_v50  ;;  %200 = vadd.xlane.f32.xlu0 %v199_v51  ;;  %v154_v58 = vmul.f32 %v892_v52, %v892_v52  ;;  %v186_v28 = vmul.f32 %v896_v55, %v896_v55 }
  0xb6   :  { %v153_v31 = vmul.f32 %v900_v56, %v900_v56  ;;  %v185_v32 = vmul.f32 %v904_v57, %v904_v57 }
  0xb7   :  { %v176_v59 = vsel %vm65_vm0, %v154_v58, 0.0  ;;  %v208_v33 = vsel %vm65_vm0, %v186_v28, 0.0  ;;  %v949_v58 = vld [vmem:[%s1047_s5] ss:$0 sm:$0xff] }
  0xb8   :  { %v173_v36 = vsel %vm65_vm0, %v153_v31, 0.0  ;;  %v205_v37 = vsel %vm65_vm0, %v185_v32, 0.0  ;;  %v954_v31 = vld [vmem:[%s1048_s4] ss:$0 sm:$0xff] }
  0xb9   :  { %177 = vadd.xlane.f32.xlu1 %v176_v59  ;;  %174 = vadd.xlane.f32.xlu0 %v173_v36 }
  0xbd   :  { %209 = vadd.xlane.f32.xlu1 %v208_v33  ;;  %206 = vadd.xlane.f32.xlu0 %v205_v37 }
 0x12a   :  { %v157_v0 = vpop.xlane.xlu0 %156 }
 0x12e   :  { %v160_v1 = vpop.xlane.xlu1 %159  ;;  %v189_v2 = vpop.xlane.xlu0 %188 }
 0x12f   :  { %v211_v3 = vadd.f32 %v189_v2, %v157_v0 }
 0x131   :  { %v219_v4 = vmul.f32 0.015625, %v211_v3 }
 0x132   :  { %v192_v5 = vpop.xlane.xlu1 %191 }
 0x133   :  { %v227_v14 = vadd.f32 1e-05, %v219_v4  ;;  %v212_v11 = vadd.f32 %v192_v5, %v160_v1 }
 0x135   :  { %644 = vrsqrt.f32 %v227_v14  ;;  %v220_v15 = vmul.f32 0.015625, %v212_v11 }
 0x136   :  { %v166_v19 = vpop.xlane.xlu1 %165  ;;  %v163_v16 = vpop.xlane.xlu0 %162 }
 0x137   :  { %v228_v6 = vadd.f32 1e-05, %v220_v15 }
 0x139   :  { %646 = vrsqrt.f32 %v228_v6 }
 0x13a   :  { %v198_v12 = vpop.xlane.xlu1 %197  ;;  %v195_v20 = vpop.xlane.xlu0 %194 }
 0x13b   :  { %v214_v13 = vadd.f32 %v198_v12, %v166_v19  ;;  %v213_v17 = vadd.f32 %v195_v20, %v163_v16 }
 0x13d   :  { %v222_v24 = vmul.f32 0.015625, %v214_v13  ;;  %v221_v25 = vmul.f32 0.015625, %v213_v17 }
 0x13e   :  { %v172_v29 = vpop.xlane.xlu1 %171  ;;  %v169_v30 = vpop.xlane.xlu0 %168 }
 0x13f   :  { %v645_v34 = vpop.eup %644  ;;  %v230_v35 = vadd.f32 1e-05, %v222_v24  ;;  %v229_v42 = vadd.f32 1e-05, %v221_v25 }
 0x140   :  { %v281_v21 = vmul.f32 %v645_v34, %v812_v47  ;;  %v243_v43 = vmul.f32 %v645_v34, %v810_v46 }
 0x141   :  { %648 = vrsqrt.f32 %v230_v35 }
 0x142   :  { %650 = vrsqrt.f32 %v229_v42  ;;  %v204_v18 = vpop.xlane.xlu1 %203  ;;  %v201_v22 = vpop.xlane.xlu0 %200  ;;  %v296_v46 = vmul.f32 %v935_v44, %v281_v21  ;;  %v258_v49 = vmul.f32 %v940_v26, %v243_v43 }
 0x143   :  { %v647_v23 = vpop.eup %646  ;;  %v216_v27 = vadd.f32 %v204_v18, %v172_v29  ;;  %v215_v45 = vadd.f32 %v201_v22, %v169_v30 }
 0x144   :  { %v282_v47 = vmul.f32 %v647_v23, %v822_v54  ;;  %v244_v48 = vmul.f32 %v647_v23, %v818_v53  ;;  %v311_v33 = vadd.f32 %v949_v58, %v296_v46  ;;  %v273_v60 = vadd.f32 %v954_v31, %v258_v49 }
 0x145   :  { %v224_v50 = vmul.f32 0.015625, %v216_v27  ;;  %v223_v51 = vmul.f32 0.015625, %v215_v45 }
 0x146   :  { %v178_v59 = vpop.xlane.xlu1 %177  ;;  %v175_v54 = vpop.xlane.xlu0 %174  ;;  %v297_v36 = vmul.f32 %v935_v44, %v282_v47  ;;  %v259_v53 = vmul.f32 %v940_v26, %v244_v48 }
 0x147   :  { %v232_v28 = vadd.f32 1e-05, %v224_v50  ;;  %v231_v32 = vadd.f32 1e-05, %v223_v51 }
 0x148   :  { %v312_v37 = vadd.f32 %v949_v58, %v297_v36  ;;  %v274_v61 = vadd.f32 %v954_v31, %v259_v53 }
 0x149   :  { %652 = vrsqrt.f32 %v232_v28 }
 0x14a   :  { %654 = vrsqrt.f32 %v231_v32  ;;  %v210_v62 = vpop.xlane.xlu1 %209  ;;  %v207_v63 = vpop.xlane.xlu0 %206  ;;  %v327_v0 = vpack.c.bf16 %v312_v37, %v311_v33  ;;  %v319_v1 = vpack.c.bf16 %v274_v61, %v273_v60 }
 0x14b   :  { %v649_v2 = vpop.eup %648  ;;  %v218_v3 = vadd.f32 %v210_v62, %v178_v59  ;;  %v217_v4 = vadd.f32 %v207_v63, %v175_v54 }
 0x14c   :  { %v651_v5 = vpop.eup %650  ;;  %v246_v14 = vmul.f32 %v649_v2, %v836_v7  ;;  %v284_v11 = vmul.f32 %v649_v2, %v840_v8  ;;  %612 = vmatprep.mubr.msk.bf16.mxu1 %vm65_vm0, %v327_v0  ;;  %624 = vmatprep.mubr.msk.bf16.mxu0 %vm65_vm0, %v319_v1 }
 0x14d   :  { %v245_v15 = vmul.f32 %v651_v5, %v844_v9  ;;  %v283_v19 = vmul.f32 %v651_v5, %v848_v10  ;;  %v226_v16 = vmul.f32 0.015625, %v218_v3  ;;  %v225_v6 = vmul.f32 0.015625, %v217_v4 }
 0x14e   :  { %v299_v12 = vmul.f32 %v935_v44, %v284_v11  ;;  %v261_v20 = vmul.f32 %v940_v26, %v246_v14 }
 0x14f   :  { %v234_v13 = vadd.f32 1e-05, %v226_v16  ;;  %v233_v17 = vadd.f32 1e-05, %v225_v6  ;;  %v298_v7 = vmul.f32 %v935_v44, %v283_v19  ;;  %v260_v8 = vmul.f32 %v940_v26, %v245_v15 }
 0x150   :  { %v314_v24 = vadd.f32 %v949_v58, %v299_v12  ;;  %v276_v25 = vadd.f32 %v954_v31, %v261_v20 }
 0x151   :  { %656 = vrsqrt.f32 %v234_v13  ;;  %v313_v9 = vadd.f32 %v949_v58, %v298_v7  ;;  %v275_v10 = vadd.f32 %v954_v31, %v260_v8 }
 0x152   :  { %658 = vrsqrt.f32 %v233_v17 }
 0x153   :  { %v653_v29 = vpop.eup %652  ;;  %v328_v30 = vpack.c.bf16 %v314_v24, %v313_v9  ;;  %v320_v34 = vpack.c.bf16 %v276_v25, %v275_v10 }
 0x154   :  { %v655_v35 = vpop.eup %654  ;;  %v248_v42 = vmul.f32 %v653_v29, %v864_v38  ;;  %v286_v21 = vmul.f32 %v653_v29, %v868_v39 }
 0x155   :  { %v247_v43 = vmul.f32 %v655_v35, %v872_v40  ;;  %v285_v18 = vmul.f32 %v655_v35, %v876_v41  ;;  %613 = vmatmul.mubr.msk.bf16.vlgmr.msra.gmra.mrb[0].mxu1 %vm65_vm0, %v328_v30  ;;  %625 = vmatmul.mubr.msk.bf16.vlgmr.msra.gmra.mrb[0].mxu0 %vm65_vm0, %v320_v34 }
 0x156   :  { %v301_v22 = vmul.f32 %v935_v44, %v286_v21  ;;  %v263_v23 = vmul.f32 %v940_v26, %v248_v42 }
 0x157   :  { %v300_v27 = vmul.f32 %v935_v44, %v285_v18  ;;  %v262_v45 = vmul.f32 %v940_v26, %v247_v43 }
 0x158   :  { %v316_v38 = vadd.f32 %v949_v58, %v301_v22  ;;  %v278_v39 = vadd.f32 %v954_v31, %v263_v23 }
 0x159   :  { %v315_v40 = vadd.f32 %v949_v58, %v300_v27  ;;  %v277_v41 = vadd.f32 %v954_v31, %v262_v45 }
 0x15b   :  { %v657_v47 = vpop.eup %656  ;;  %v329_v46 = vpack.c.bf16 %v316_v38, %v315_v40  ;;  %v321_v48 = vpack.c.bf16 %v278_v39, %v277_v41 }
 0x15c   :  { %v659_v49 = vpop.eup %658  ;;  %v250_v50 = vmul.f32 %v657_v47, %v892_v52  ;;  %v288_v51 = vmul.f32 %v657_v47, %v896_v55 }
 0x15d   :  { %v249_v59 = vmul.f32 %v659_v49, %v900_v56  ;;  %v287_v54 = vmul.f32 %v659_v49, %v904_v57  ;;  %616 = vmatprep.mubr.msk.bf16.mxu1 %vm65_vm0, %v329_v46  ;;  %628 = vmatprep.mubr.msk.bf16.mxu0 %vm65_vm0, %v321_v48 }
 0x15e   :  { %v303_v36 = vmul.f32 %v935_v44, %v288_v51  ;;  %v265_v53 = vmul.f32 %v940_v26, %v250_v50 }
 0x15f   :  { %v302_v28 = vmul.f32 %v935_v44, %v287_v54  ;;  %v264_v32 = vmul.f32 %v940_v26, %v249_v59  ;;  %v557_v44 = vld [vmem:[%s1049_s8] ss:$0 sm:$0xff] }
 0x160   :  { %v318_v52 = vadd.f32 %v949_v58, %v303_v36  ;;  %v280_v55 = vadd.f32 %v954_v31, %v265_v53 }
 0x161   :  { %v317_v56 = vadd.f32 %v949_v58, %v302_v28  ;;  %v279_v57 = vadd.f32 %v954_v31, %v264_v32 }
 0x163   :  { %v330_v33 = vpack.c.bf16 %v318_v52, %v317_v56  ;;  %v322_v37 = vpack.c.bf16 %v280_v55, %v279_v57 }
 0x165   :  { %617 = vmatmul.mubr.msk.bf16.gmra.mrb[4].mxu1 %vm65_vm0, %v330_v33  ;;  %629 = vmatmul.mubr.msk.bf16.gmra.mrb[4].mxu0 %vm65_vm0, %v322_v37 }
 0x228   :  { %v614_v60 = vpop.f32.mrb[0].mxu1  ;;  %v626_v61 = vpop.f32.mrb[0].mxu0 }
 0x229   :  { %v491_v26 = vadd.f32 %v626_v61, %v614_v60  ;;  %v393_v62 = vpop.f32.mrb[1].mxu1  ;;  %v482_v63 = vpop.f32.mrb[1].mxu0 }
 0x22a   :  { %v483_v0 = vadd.f32 %v482_v63, %v393_v62  ;;  %v615_v58 = vpop.f32.mrb[2].mxu1  ;;  %v627_v1 = vpop.f32.mrb[2].mxu0 }
 0x22b   :  { %v522_v31 = vadd.f32 %v557_v44, %v491_v26  ;;  %v494_v2 = vadd.f32 %v627_v1, %v615_v58  ;;  %v396_v3 = vpop.f32.mrb[3].mxu1  ;;  %v485_v4 = vpop.f32.mrb[3].mxu0 }
 0x22c   :  { %v520_v5 = vadd.f32 %v557_v44, %v483_v0  ;;  %v486_v14 = vadd.f32 %v485_v4, %v396_v3 }
 0x22d   :  { %531 = vst.msk [vmem:[%s1050_s9 + $0x10] sm:$0xff] %vm528_vm1, %v522_v31  ;;  %v523_v11 = vadd.f32 %v557_v44, %v494_v2 }
 0x22e   :  { %529 = vst.msk [vmem:[%s1050_s9] sm:$0xff] %vm528_vm1, %v520_v5  ;;  %v521_v15 = vadd.f32 %v557_v44, %v486_v14 }
 0x22f   :  { %532 = vst.msk [vmem:[%s1050_s9 + $0x18] sm:$0xff] %vm528_vm1, %v523_v11 }
 0x230   :  { %530 = vst.msk [vmem:[%s1050_s9 + $0x8] sm:$0xff] %vm528_vm1, %v521_v15 }
 0x238   :  { %v618_v19 = vpop.f32.mrb[4].mxu1  ;;  %v630_v16 = vpop.f32.mrb[4].mxu0 }
 0x239   :  { %v507_v6 = vadd.f32 %v630_v16, %v618_v19  ;;  %v409_v12 = vpop.f32.mrb[5].mxu1  ;;  %v498_v20 = vpop.f32.mrb[5].mxu0 }
 0x23a   :  { %v499_v13 = vadd.f32 %v498_v20, %v409_v12  ;;  %v619_v17 = vpop.f32.mrb[6].mxu1  ;;  %v631_v7 = vpop.f32.mrb[6].mxu0 }
 0x23b   :  { %v526_v8 = vadd.f32 %v557_v44, %v507_v6  ;;  %v510_v24 = vadd.f32 %v631_v7, %v619_v17  ;;  %v412_v25 = vpop.f32.mrb[7].mxu1  ;;  %v501_v9 = vpop.f32.mrb[7].mxu0 }
 0x23c   :  { %v524_v10 = vadd.f32 %v557_v44, %v499_v13  ;;  %v502_v29 = vadd.f32 %v501_v9, %v412_v25 }
 0x23d   :  { %535 = vst.msk [vmem:[%s1050_s9 + $0x30] sm:$0xff] %vm528_vm1, %v526_v8  ;;  %v527_v30 = vadd.f32 %v557_v44, %v510_v24 }
 0x23e   :  { %533 = vst.msk [vmem:[%s1050_s9 + $0x20] sm:$0xff] %vm528_vm1, %v524_v10  ;;  %v525_v34 = vadd.f32 %v557_v44, %v502_v29 }
 0x23f   :  { %536 = vst.msk [vmem:[%s1050_s9 + $0x38] sm:$0xff] %vm528_vm1, %v527_v30 }
 0x240   :  { %534 = vst.msk [vmem:[%s1050_s9 + $0x28] sm:$0xff] %vm528_vm1, %v525_v34 }

// kernel: bilstm_forward.3
= control target key start
LH: loop header
LB: loop body
LE: loop exit
PB: predicated region body
PF: predicated region fallthrough
CT: control target
= control target key end

     0   :  { %vm75_vm0 = vcmask 261120   ;;  %v3501_v0 = vmov 0.0   ;;  %vm3502_vm1 = vmmov 0   ;;  %vm99_vm2 = vcmask 130048   ;;  %s3503_s29 = smov 32   ;;  %s3505_s14 = smov 64   ;;  %s4543_s3 = inlined_call_operand.vmem [shape: bf16[16,128], index: 3, kind: input, shape index: {}]   ;;  %s4544_s4 = inlined_call_operand.vmem [shape: bf16[16,128], index: 4, kind: input, shape index: {}]   ;;  %s4545_s1 = inlined_call_operand.vmem [shape: bf16[8,8,16], index: 1, kind: input, shape index: {}, may-alias: {1,2}]   ;;  %s4546_s2 = inlined_call_operand.vmem [shape: bf16[8,8,16], index: 2, kind: input, shape index: {}, may-alias: {1,2}]   ;;  %s4547_s5 = inlined_call_operand.vmem [shape: bf16[32,128], index: 5, kind: input, shape index: {}]   ;;  %s4548_s6 = inlined_call_operand.vmem [shape: bf16[32,128], index: 6, kind: input, shape index: {}]   ;;  %s4549_s7 = inlined_call_operand.vmem [shape: f32[1,128], index: 7, kind: input, shape index: {}]   ;;  %s4550_s8 = inlined_call_operand.vmem [shape: f32[1,128], index: 8, kind: input, shape index: {}]   ;;  %s4551_s0 = inlined_call_operand.vmem [shape: s32[8,1], index: 0, kind: input, shape index: {}]   ;;  %s4552_s9 = inlined_call_operand.vmem [shape: bf16[8,8,32], index: 9, kind: output, shape index: {0}]   ;;  %s4553_s10 = inlined_call_operand.vmem [shape: bf16[8,8,32], index: 10, kind: output, shape index: {1}]  }
   0x1   :  { %3011 = vmatprep.subr.bf16.mxu0 %v3501_v0  ;;  %3017 = vmatprep.subr.bf16.mxu1 %v3501_v0  ;;  %v3323_v1 = vld [vmem:[%s4543_s3] sm:$0xff]   ;;  %76 = vst.msk [vmem:[#allocation2] sm:$0xff] %vm75_vm0, %v3501_v0  ;;  %77 = vst.msk [vmem:[#allocation3] sm:$0xff] %vm75_vm0, %v3501_v0  ;;  %v2760_v4 = vld [vmem:[%s4546_s2 + $0x1c] sm:$0xf]  ;;  %v3504_v27 = vmov 0  }
   0x2   :  { %78 = vst.msk [vmem:[#allocation4] sm:$0xff] %vm75_vm0, %v3501_v0  ;;  %79 = vst.msk [vmem:[#allocation5] sm:$0xff] %vm75_vm0, %v3501_v0  ;;  %v3324_v2 = vld [vmem:[%s4544_s4] sm:$0xff]   ;;  %3013 = vmatprep.mubr.msk.bf16.mxu0 %vm3502_vm1, %v3501_v0  ;;  %3019 = vmatprep.mubr.msk.bf16.mxu1 %vm3502_vm1, %v3501_v0  ;;  %v3327_v7 = vld [vmem:[%s4547_s5 + $0x8] sm:$0xff]   ;;  %s3506_s28 = smov 96  }
   0x3   :  { %3012 = vmatpush3.bf16.msra.mxu0 %v3323_v1  ;;  %v90_v3 = vld [vmem:[%s4545_s1] sm:$0xf]  ;;  %3018 = vmatpush3.bf16.msra.mxu1 %v3324_v2  ;;  %v3328_v8 = vld [vmem:[%s4548_s6 + $0x8] sm:$0xff]   ;;  %v2777_v56 = vld [vmem:[%s4545_s1 + $0x4] sm:$0xf] }
   0x4   :  { %3023 = vmatprep.subr.bf16.mxu0 %v3501_v0  ;;  %v3325_v5 = vld [vmem:[%s4547_s5] sm:$0xff]   ;;  %3031 = vmatprep.subr.bf16.mxu1 %v3501_v0  ;;  %v2780_v58 = vld [vmem:[%s4546_s2 + $0x18] sm:$0xf]  ;;  %v3333_v61 = vld [vmem:[%s4547_s5 + $0x8] sm:$0xff]  }
   0x5   :  { %v3326_v6 = vld [vmem:[%s4548_s6] sm:$0xff]   ;;  %3321 = vset.pattern.permute.xlu0 %v3504_v27  ;;  %3322 = vset.pattern.permute.xlu1 %v3504_v27  ;;  %v3334_v62 = vld [vmem:[%s4548_s6 + $0x8] sm:$0xff]  }
   0x6   :  { %3014 = vmatmul.mubr.msk.bf16.vlgmr.msra.gmra.mrb[0].mxu0 %vm99_vm2, %v90_v3  ;;  %3020 = vmatmul.mubr.msk.bf16.vlgmr.msra.gmra.mrb[0].mxu1 %vm99_vm2, %v2760_v4  ;;  %v3631_v15 = vld [vmem:[%s4549_s7] ss:$0 sm:$0xff] }
   0x7   :  { %3024 = vmatpush3.bf16.msra.mxu0 %v3325_v5  ;;  %3032 = vmatpush3.bf16.msra.mxu1 %v3326_v6  ;;  %v3636_v17 = vld [vmem:[%s4550_s8] ss:$0 sm:$0xff] }
   0x8   :  { %3025 = vmatprep.subr.bf16.mxu0 %v3501_v0  ;;  %v87_v9 = vld [vmem:[#allocation3] sm:$0xff]  ;;  %3033 = vmatprep.subr.bf16.mxu1 %v3501_v0  ;;  %v3608_v10 = vld [vmem:[#allocation2] sm:$0xff] }
   0x9   :  { %3027 = vmatprep.mubr.msk.bf16.mxu0 %vm3502_vm1, %v3501_v0  ;;  %v89_v11 = vld [vmem:[#allocation5] sm:$0xff]  ;;  %3035 = vmatprep.mubr.msk.bf16.mxu1 %vm3502_vm1, %v3501_v0  ;;  %v3612_v12 = vld [vmem:[#allocation4] sm:$0xff]  ;;  %v215_v13 = vpack.c.bf16 %v3608_v10, %v3608_v10  ;;  %v3647_v36 = vld [vmem:[%s4551_s0] sm:$0xff] }
   0xa   :  { %285 = vrot.lane.b32.xlu1 %v87_v9, %s3503_s29  ;;  %v317_v14 = vpack.c.bf16 %v3612_v12, %v3612_v12  ;;  %vm2764_vm3 = vcmp.gt.s32.totalorder %v3647_v36, 0  ;;  %vm2765_vm4 = vcmp.gt.s32.totalorder %v3647_v36, 7  ;;  %v3329_v53 = vld [vmem:[%s4543_s3] sm:$0xff]   ;;  %vm2783_vm7 = vcmp.gt.s32.totalorder %v3647_v36, 1 }
   0xb   :  { %3026 = vmatpush3.bf16.msra.mxu0 %v3327_v7  ;;  %3034 = vmatpush3.bf16.msra.mxu1 %v3328_v8  ;;  %v3652_v42 = vsel %vm2764_vm3, 1, %v3504_v27  ;;  %v3658_v44 = vsel %vm2765_vm4, 1, %v3504_v27  ;;  %v3330_v54 = vld [vmem:[%s4544_s4] sm:$0xff]   ;;  %vm2784_vm8 = vcmp.gt.s32.totalorder %v3647_v36, 6  ;;  %vm2803_vm11 = vcmp.gt.s32.totalorder %v3647_v36, 2 }
   0xc   :  { %3039 = vmatprep.subr.bf16.mxu0 %v3501_v0  ;;  %3045 = vmatprep.subr.bf16.mxu1 %v3501_v0  ;;  %v3331_v57 = vld [vmem:[%s4547_s5] sm:$0xff]   ;;  %vm2804_vm12 = vcmp.gt.s32.totalorder %v3647_v36, 5  ;;  %vm2823_vm15 = vcmp.gt.s32.totalorder %v3647_v36, 3  ;;  %vm2824_vm3 = vcmp.gt.s32.totalorder %v3647_v36, 4 }
   0xd   :  { %v3332_v59 = vld [vmem:[%s4548_s6] sm:$0xff]  }
   0xe   :  { %386 = vrot.lane.b32.xlu1 %v89_v11, %s3503_s29 }
  0x12   :  { %3028 = vmatmul.mubr.msk.bf16.vlgmr.msra.gmra.mrb[0].mxu0 %vm75_vm0, %v215_v13  ;;  %3036 = vmatmul.mubr.msk.bf16.vlgmr.msra.gmra.mrb[0].mxu1 %vm75_vm0, %v317_v14 }
  0x13   :  { %3041 = vmatprep.mubr.msk.bf16.mxu0 %vm3502_vm1, %v3501_v0  ;;  %3047 = vmatprep.mubr.msk.bf16.mxu1 %vm3502_vm1, %v3501_v0 }
  0x14   :  { %3040 = vmatpush3.bf16.msra.mxu0 %v3329_v53  ;;  %3046 = vmatpush3.bf16.msra.mxu1 %v3330_v54 }
  0x15   :  { %3051 = vmatprep.subr.bf16.mxu0 %v3501_v0  ;;  %3059 = vmatprep.subr.bf16.mxu1 %v3501_v0 }
  0x1a   :  { %3042 = vmatmul.mubr.msk.bf16.vlgmr.msra.gmra.mrb[4].mxu0 %vm99_vm2, %v2777_v56  ;;  %3048 = vmatmul.mubr.msk.bf16.vlgmr.msra.gmra.mrb[4].mxu1 %vm99_vm2, %v2780_v58  ;;  %v2800_v58 = vld [vmem:[%s4546_s2 + $0x14] sm:$0xf] }
  0x1b   :  { %3052 = vmatpush3.bf16.msra.mxu0 %v3331_v57  ;;  %3060 = vmatpush3.bf16.msra.mxu1 %v3332_v59  ;;  %v3338_v59 = vld [vmem:[%s4548_s6] sm:$0xff]  }
  0x1c   :  { %3053 = vmatprep.subr.bf16.mxu0 %v3501_v0  ;;  %3061 = vmatprep.subr.bf16.mxu1 %v3501_v0 }
  0x1d   :  { %3055 = vmatprep.mubr.msk.bf16.mxu0 %vm3502_vm1, %v3501_v0  ;;  %3063 = vmatprep.mubr.msk.bf16.mxu1 %vm3502_vm1, %v3501_v0 }
  0x1f   :  { %3054 = vmatpush3.bf16.msra.mxu0 %v3333_v61  ;;  %3062 = vmatpush3.bf16.msra.mxu1 %v3334_v62  ;;  %v3339_v61 = vld [vmem:[%s4547_s5 + $0x8] sm:$0xff]  }
  0x20   :  { %3067 = vmatprep.subr.bf16.mxu0 %v3501_v0  ;;  %3073 = vmatprep.subr.bf16.mxu1 %v3501_v0 }
  0x7c   :  { %v3661_v45 = vpop.permute.xlu1 %285 }
  0x80   :  { %v3664_v47 = vpop.permute.xlu1 %386 }
  0xe5   :  { %v270_v16 = vpop.f32.mrb[0].mxu0  ;;  %v371_v19 = vpop.f32.mrb[0].mxu1 }
  0xe6   :  { %v3235_v18 = vadd.f32 %v3631_v15, %v270_v16  ;;  %v3029_v20 = vpop.f32.mrb[1].mxu0  ;;  %v3037_v21 = vpop.f32.mrb[1].mxu1  ;;  %v3236_v23 = vadd.f32 %v3636_v17, %v371_v19 }
  0xe7   :  { %v273_v22 = vpop.f32.mrb[2].mxu0  ;;  %v374_v24 = vpop.f32.mrb[2].mxu1 }
  0xe8   :  { %3371 = vtanh.f32 %v3235_v18  ;;  %v3030_v25 = vpop.f32.mrb[3].mxu0  ;;  %v3038_v26 = vpop.f32.mrb[3].mxu1  ;;  %v2769_v30 = vmul.f32 -1.442695, %v3235_v18  ;;  %v2773_v31 = vmul.f32 -1.442695, %v3236_v23 }
  0xe9   :  { %3373 = vtanh.f32 %v3236_v23 }
  0xea   :  { %3375 = vpow2.f32 %v2769_v30 }
  0xeb   :  { %3377 = vpow2.f32 %v2773_v31 }
  0xf2   :  { %v3372_v28 = vpop.eup %3371 }
  0xf3   :  { %290 = vrot.lane.b32.xlu0 %v3372_v28, %s3505_s14  ;;  %v3374_v29 = vpop.eup %3373 }
  0xf4   :  { %v3376_v32 = vpop.eup %3375 }
  0xf5   :  { %v280_v33 = vadd.f32 1.0, %v3376_v32  ;;  %v3378_v34 = vpop.eup %3377 }
  0xf6   :  { %v381_v35 = vadd.f32 1.0, %v3378_v34 }
  0xf7   :  { %391 = vrot.lane.b32.xlu0 %v3374_v29, %s3505_s14  ;;  %3379 = vrcp.f32 %v280_v33 }
  0xf8   :  { %3381 = vrcp.f32 %v381_v35 }
 0x101   :  { %v3380_v37 = vpop.eup %3379 }
 0x102   :  { %v3382_v40 = vpop.eup %3381  ;;  %v288_v46 = vmul.f32 %v3380_v37, %v3661_v45 }
 0x103   :  { %v389_v50 = vmul.f32 %v3382_v40, %v3664_v47 }
 0x165   :  { %v291_v38 = vpop.permute.xlu0 %290 }
 0x166   :  { %v293_v39 = vmul.f32 %v3380_v37, %v291_v38 }
 0x168   :  { %295 = vrot.lane.b32.xlu0 %v293_v39, %s3503_s29 }
 0x169   :  { %v392_v41 = vpop.permute.xlu0 %391 }
 0x16a   :  { %v394_v43 = vmul.f32 %v3382_v40, %v392_v41  ;;  %v3754_v41 = vsel %vm2783_vm7, 1, %v3504_v27 }
 0x16c   :  { %396 = vrot.lane.b32.xlu1 %v394_v43, %s3503_s29  ;;  %307 = vperm.xlu0 %3321, %v3652_v42  }
 0x170   :  { %408 = vperm.xlu1 %3322, %v3658_v44  }
 0x1da   :  { %v296_v48 = vpop.permute.xlu0 %295 }
 0x1db   :  { %v3666_v49 = vadd.f32 %v296_v48, %v288_v46  ;;  %v3760_v46 = vsel %vm2784_vm8, 1, %v3504_v27 }
 0x1dd   :  { %3383 = vtanh.f32 %v3666_v49 }
 0x1de   :  { %v397_v51 = vpop.permute.xlu1 %396 }
 0x1df   :  { %v3670_v52 = vadd.f32 %v397_v51, %v389_v50 }
 0x1e1   :  { %3385 = vtanh.f32 %v3670_v52 }
 0x1e7   :  { %v3384_v55 = vpop.eup %3383 }
 0x1e8   :  { %301 = vrot.lane.b32.xlu1 %v3384_v55, %s3505_s14 }
 0x1eb   :  { %v3386_v60 = vpop.eup %3385  ;;  %v3717_v1 = vpop.permute.xlu0 %307 }
 0x1ec   :  { %312 = vrot.lane.b32.xlu1 %v3608_v10, %s3506_s28  ;;  %402 = vrot.lane.b32.xlu0 %v3386_v60, %s3505_s14  ;;  %vm309_vm5 = vcmp.eq.s32.totalorder %v3717_v1, 1 }
 0x1ed   :  { %v3767_v48 = vsel %vm309_vm5, %v3666_v49, %v3661_v45  ;;  %v3335_v45 = vld [vmem:[%s4543_s3] sm:$0xff]  }
 0x1ee   :  { %v3336_v49 = vld [vmem:[%s4544_s4] sm:$0xff]  }
 0x1ef   :  { %v3715_v63 = vpop.permute.xlu1 %408 }
 0x1f0   :  { %413 = vrot.lane.b32.xlu0 %v3612_v12, %s3506_s28  ;;  %vm410_vm6 = vcmp.eq.s32.totalorder %v3715_v63, 1 }
 0x1f1   :  { %v3776_v54 = vsel %vm410_vm6, %v3670_v52, %v3664_v47  ;;  %v2797_v47 = vld [vmem:[%s4545_s1 + $0x8] sm:$0xf]  ;;  %v3337_v52 = vld [vmem:[%s4547_s5] sm:$0xff]  }
 0x25a   :  { %v302_v2 = vpop.permute.xlu1 %301 }
 0x25b   :  { %v3719_v3 = vmul.f32 %v3380_v37, %v302_v2  ;;  %v3340_v2 = vld [vmem:[%s4548_s6 + $0x8] sm:$0xff]  }
 0x25e   :  { %v313_v4 = vpop.permute.xlu1 %312  ;;  %v403_v5 = vpop.permute.xlu0 %402 }
 0x25f   :  { %v3725_v6 = vsel %vm309_vm5, %v3719_v3, %v313_v4  ;;  %v3729_v8 = vmul.f32 %v3382_v40, %v403_v5 }
 0x260   :  { %v550_v7 = vpack.c.bf16 %v3725_v6, %v3725_v6 }
 0x262   :  { %556 = vrot.lane.b32.xlu1 %v550_v7, %s3503_s29  ;;  %v414_v9 = vpop.permute.xlu0 %413 }
 0x263   :  { %v3736_v10 = vsel %vm410_vm6, %v3729_v8, %v414_v9 }
 0x264   :  { %v646_v11 = vpack.c.bf16 %v3736_v10, %v3736_v10 }
 0x266   :  { %652 = vrot.lane.b32.xlu0 %v646_v11, %s3503_s29 }
 0x2d4   :  { %v557_v12 = vpop.permute.xlu1 %556 }
 0x2d5   :  { %3056 = vmatmul.mubr.msk.bf16.vlgmr.msra.gmra.mrb[4].mxu0 %vm75_vm0, %v557_v12 }
 0x2d6   :  { %3069 = vmatprep.mubr.msk.bf16.mxu0 %vm3502_vm1, %v3501_v0  ;;  %3068 = vmatpush3.bf16.msra.mxu0 %v3335_v45  ;;  %v3868_v45 = vsel %vm2804_vm12, 1, %v3504_v27 }
 0x2d7   :  { %3079 = vmatprep.subr.bf16.mxu0 %v3501_v0 }
 0x2d8   :  { %v653_v13 = vpop.permute.xlu0 %652 }
 0x2d9   :  { %3064 = vmatmul.mubr.msk.bf16.vlgmr.msra.gmra.mrb[4].mxu1 %vm75_vm0, %v653_v13 }
 0x2da   :  { %3075 = vmatprep.mubr.msk.bf16.mxu1 %vm3502_vm1, %v3501_v0  ;;  %3074 = vmatpush3.bf16.msra.mxu1 %v3336_v49 }
 0x2db   :  { %3087 = vmatprep.subr.bf16.mxu1 %v3501_v0 }
 0x2dd   :  { %3070 = vmatmul.mubr.msk.bf16.vlgmr.msra.gmra.mrb[8].mxu0 %vm99_vm2, %v2797_v47 }
 0x2de   :  { %3080 = vmatpush3.bf16.msra.mxu0 %v3337_v52  ;;  %3083 = vmatprep.mubr.msk.bf16.mxu0 %vm3502_vm1, %v3501_v0 }
 0x2df   :  { %3081 = vmatprep.subr.bf16.mxu0 %v3501_v0 }
 0x2e1   :  { %3076 = vmatmul.mubr.msk.bf16.vlgmr.msra.gmra.mrb[8].mxu1 %vm99_vm2, %v2800_v58 }
 0x2e2   :  { %3088 = vmatpush3.bf16.msra.mxu1 %v3338_v59  ;;  %3091 = vmatprep.mubr.msk.bf16.mxu1 %vm3502_vm1, %v3501_v0 }
 0x2e3   :  { %3089 = vmatprep.subr.bf16.mxu1 %v3501_v0  ;;  %3082 = vmatpush3.bf16.msra.mxu0 %v3339_v61 }
 0x2e4   :  { %3095 = vmatprep.subr.bf16.mxu0 %v3501_v0 }
 0x2e6   :  { %3090 = vmatpush3.bf16.msra.mxu1 %v3340_v2  ;;  %v2820_v2 = vld [vmem:[%s4546_s2 + $0x10] sm:$0xf] }
 0x2e7   :  { %3101 = vmatprep.subr.bf16.mxu1 %v3501_v0 }
 0x3a8   :  { %v607_v14 = vpop.f32.mrb[4].mxu0 }
 0x3a9   :  { %v3237_v16 = vadd.f32 %v3631_v15, %v607_v14  ;;  %v3057_v18 = vpop.f32.mrb[5].mxu0 }
 0x3aa   :  { %v610_v19 = vpop.f32.mrb[6].mxu0 }
 0x3ab   :  { %3387 = vtanh.f32 %v3237_v16  ;;  %v3058_v20 = vpop.f32.mrb[7].mxu0  ;;  %v2788_v29 = vmul.f32 -1.442695, %v3237_v16 }
 0x3ac   :  { %v703_v21 = vpop.f32.mrb[4].mxu1 }
 0x3ad   :  { %v3238_v22 = vadd.f32 %v3636_v17, %v703_v21  ;;  %v3065_v23 = vpop.f32.mrb[5].mxu1 }
 0x3ae   :  { %v706_v24 = vpop.f32.mrb[6].mxu1 }
 0x3af   :  { %3389 = vtanh.f32 %v3238_v22  ;;  %v3066_v25 = vpop.f32.mrb[7].mxu1  ;;  %v2792_v30 = vmul.f32 -1.442695, %v3238_v22 }
 0x3b0   :  { %3391 = vpow2.f32 %v2788_v29 }
 0x3b1   :  { %3393 = vpow2.f32 %v2792_v30 }
 0x3b5   :  { %v3388_v26 = vpop.eup %3387 }
 0x3b6   :  { %623 = vrot.lane.b32.xlu1 %v3388_v26, %s3505_s14 }
 0x3b9   :  { %v3390_v28 = vpop.eup %3389 }
 0x3ba   :  { %719 = vrot.lane.b32.xlu0 %v3390_v28, %s3505_s14  ;;  %v3392_v31 = vpop.eup %3391 }
 0x3bb   :  { %v617_v32 = vadd.f32 1.0, %v3392_v31  ;;  %v3394_v33 = vpop.eup %3393 }
 0x3bc   :  { %v713_v34 = vadd.f32 1.0, %v3394_v33 }
 0x3bd   :  { %3395 = vrcp.f32 %v617_v32 }
 0x3be   :  { %3397 = vrcp.f32 %v713_v34 }
 0x3c7   :  { %v3396_v35 = vpop.eup %3395 }
 0x3c8   :  { %v3398_v39 = vpop.eup %3397  ;;  %v621_v50 = vmul.f32 %v3396_v35, %v3767_v48 }
 0x3c9   :  { %v717_v55 = vmul.f32 %v3398_v39, %v3776_v54 }
 0x428   :  { %v624_v37 = vpop.permute.xlu1 %623 }
 0x429   :  { %v626_v38 = vmul.f32 %v3396_v35, %v624_v37 }
 0x42b   :  { %628 = vrot.lane.b32.xlu1 %v626_v38, %s3503_s29 }
 0x42c   :  { %v720_v40 = vpop.permute.xlu0 %719 }
 0x42d   :  { %v722_v43 = vmul.f32 %v3398_v39, %v720_v40 }
 0x42f   :  { %640 = vperm.xlu1 %3322, %v3754_v41   ;;  %724 = vrot.lane.b32.xlu0 %v722_v43, %s3503_s29 }
 0x433   :  { %736 = vperm.xlu0 %3321, %v3760_v46  }
 0x49d   :  { %v629_v51 = vpop.permute.xlu1 %628 }
 0x49e   :  { %v3770_v53 = vadd.f32 %v629_v51, %v621_v50 }
 0x4a0   :  { %3399 = vtanh.f32 %v3770_v53 }
 0x4a1   :  { %v725_v56 = vpop.permute.xlu0 %724 }
 0x4a2   :  { %v3780_v57 = vadd.f32 %v725_v56, %v717_v55  ;;  %v3862_v55 = vsel %vm2803_vm11, 1, %v3504_v27 }
 0x4a4   :  { %3401 = vtanh.f32 %v3780_v57 }
 0x4aa   :  { %v3400_v60 = vpop.eup %3399 }
 0x4ab   :  { %634 = vrot.lane.b32.xlu1 %v3400_v60, %s3505_s14 }
 0x4ae   :  { %v3402_v62 = vpop.eup %3401  ;;  %v3821_v4 = vpop.permute.xlu1 %640 }
 0x4af   :  { %730 = vrot.lane.b32.xlu0 %v3402_v62, %s3505_s14  ;;  %vm642_vm9 = vcmp.eq.s32.totalorder %v3821_v4, 1 }
 0x4b0   :  { %v3875_v49 = vsel %vm642_vm9, %v3770_v53, %v3767_v48  ;;  %v3341_v48 = vld [vmem:[%s4543_s3] sm:$0xff]  }
 0x4b1   :  { %v3342_v53 = vld [vmem:[%s4544_s4] sm:$0xff]  }
 0x4b2   :  { %v3823_v5 = vpop.permute.xlu0 %736 }
 0x4b3   :  { %vm738_vm10 = vcmp.eq.s32.totalorder %v3823_v5, 1 }
 0x4b4   :  { %v3884_v59 = vsel %vm738_vm10, %v3780_v57, %v3776_v54  ;;  %v2817_v54 = vld [vmem:[%s4545_s1 + $0xc] sm:$0xf]  ;;  %v3343_v57 = vld [vmem:[%s4547_s5] sm:$0xff]  }
 0x51d   :  { %v635_v7 = vpop.permute.xlu1 %634 }
 0x51e   :  { %v3825_v9 = vmul.f32 %v3396_v35, %v635_v7  ;;  %v3344_v7 = vld [vmem:[%s4548_s6] sm:$0xff]  }
 0x520   :  { %v3832_v11 = vsel %vm642_vm9, %v3825_v9, %v3725_v6 }
 0x521   :  { %v731_v12 = vpop.permute.xlu0 %730  ;;  %v874_v13 = vpack.c.bf16 %v3832_v11, %v3832_v11 }
 0x522   :  { %v3836_v14 = vmul.f32 %v3398_v39, %v731_v12 }
 0x523   :  { %880 = vrot.lane.b32.xlu1 %v874_v13, %s3503_s29  ;;  %v3345_v13 = vld [vmem:[%s4547_s5 + $0x8] sm:$0xff]  }
 0x524   :  { %v3844_v16 = vsel %vm738_vm10, %v3836_v14, %v3736_v10  ;;  %v739_v1 = vsel %vm738_vm10, %v3836_v14, 0.0 }
 0x525   :  { %v970_v6 = vpack.c.bf16 %v3844_v16, %v3844_v16  ;;  %v2918_v63 = vpack.c.bf16 %v739_v1, %v739_v1 }
 0x527   :  { %976 = vrot.lane.b32.xlu0 %v970_v6, %s3503_s29 }
 0x595   :  { %v881_v18 = vpop.permute.xlu1 %880 }
 0x596   :  { %3084 = vmatmul.mubr.msk.bf16.vlgmr.msra.gmra.mrb[8].mxu0 %vm75_vm0, %v881_v18  ;;  %v3346_v18 = vld [vmem:[%s4548_s6 + $0x8] sm:$0xff]  }
 0x597   :  { %3097 = vmatprep.mubr.msk.bf16.mxu0 %vm3502_vm1, %v3501_v0  ;;  %3096 = vmatpush3.bf16.msra.mxu0 %v3341_v48 }
 0x598   :  { %3107 = vmatprep.subr.bf16.mxu0 %v3501_v0 }
 0x599   :  { %v977_v19 = vpop.permute.xlu0 %976 }
 0x59a   :  { %3092 = vmatmul.mubr.msk.bf16.vlgmr.msra.gmra.mrb[8].mxu1 %vm75_vm0, %v977_v19 }
 0x59b   :  { %3103 = vmatprep.mubr.msk.bf16.mxu1 %vm3502_vm1, %v3501_v0  ;;  %3102 = vmatpush3.bf16.msra.mxu1 %v3342_v53 }
 0x59c   :  { %3115 = vmatprep.subr.bf16.mxu1 %v3501_v0 }
 0x59e   :  { %3098 = vmatmul.mubr.msk.bf16.vlgmr.msra.gmra.mrb[12].mxu0 %vm99_vm2, %v2817_v54 }
 0x59f   :  { %3108 = vmatpush3.bf16.msra.mxu0 %v3343_v57  ;;  %3111 = vmatprep.mubr.msk.bf16.mxu0 %vm3502_vm1, %v3501_v0 }
 0x5a0   :  { %3109 = vmatprep.subr.bf16.mxu0 %v3501_v0 }
 0x5a2   :  { %3104 = vmatmul.mubr.msk.bf16.vlgmr.msra.gmra.mrb[12].mxu1 %vm99_vm2, %v2820_v2  ;;  %v3970_v2 = vsel %vm2823_vm15, 1, %v3504_v27 }
 0x5a3   :  { %3116 = vmatpush3.bf16.msra.mxu1 %v3344_v7  ;;  %3119 = vmatprep.mubr.msk.bf16.mxu1 %vm3502_vm1, %v3501_v0 }
 0x5a4   :  { %3117 = vmatprep.subr.bf16.mxu1 %v3501_v0  ;;  %3110 = vmatpush3.bf16.msra.mxu0 %v3345_v13 }
 0x5a5   :  { %3123 = vmatprep.subr.bf16.mxu0 %v3501_v0 }
 0x5a7   :  { %3118 = vmatpush3.bf16.msra.mxu1 %v3346_v18 }
 0x5a8   :  { %3129 = vmatprep.subr.bf16.mxu1 %v3501_v0 }
 0x669   :  { %v931_v20 = vpop.f32.mrb[8].mxu0 }
 0x66a   :  { %v3239_v10 = vadd.f32 %v3631_v15, %v931_v20  ;;  %v3085_v21 = vpop.f32.mrb[9].mxu0 }
 0x66b   :  { %v934_v22 = vpop.f32.mrb[10].mxu0 }
 0x66c   :  { %3403 = vtanh.f32 %v3239_v10  ;;  %v3086_v23 = vpop.f32.mrb[11].mxu0  ;;  %v2808_v32 = vmul.f32 -1.442695, %v3239_v10 }
 0x66d   :  { %v1027_v24 = vpop.f32.mrb[8].mxu1 }
 0x66e   :  { %v3240_v25 = vadd.f32 %v3636_v17, %v1027_v24  ;;  %v3093_v26 = vpop.f32.mrb[9].mxu1 }
 0x66f   :  { %v1030_v28 = vpop.f32.mrb[10].mxu1 }
 0x670   :  { %3405 = vtanh.f32 %v3240_v25  ;;  %v3094_v29 = vpop.f32.mrb[11].mxu1  ;;  %v2812_v33 = vmul.f32 -1.442695, %v3240_v25 }
 0x671   :  { %3407 = vpow2.f32 %v2808_v32 }
 0x672   :  { %3409 = vpow2.f32 %v2812_v33 }
 0x676   :  { %v3404_v30 = vpop.eup %3403 }
 0x677   :  { %947 = vrot.lane.b32.xlu1 %v3404_v30, %s3505_s14 }
 0x67a   :  { %v3406_v31 = vpop.eup %3405 }
 0x67b   :  { %1043 = vrot.lane.b32.xlu0 %v3406_v31, %s3505_s14  ;;  %v3408_v34 = vpop.eup %3407 }
 0x67c   :  { %v941_v35 = vadd.f32 1.0, %v3408_v34  ;;  %v3410_v37 = vpop.eup %3409 }
 0x67d   :  { %v1037_v38 = vadd.f32 1.0, %v3410_v37 }
 0x67e   :  { %3411 = vrcp.f32 %v941_v35 }
 0x67f   :  { %3413 = vrcp.f32 %v1037_v38 }
 0x688   :  { %v3412_v39 = vpop.eup %3411 }
 0x689   :  { %v3414_v50 = vpop.eup %3413  ;;  %v945_v47 = vmul.f32 %v3412_v39, %v3875_v49 }
 0x68a   :  { %v1041_v60 = vmul.f32 %v3414_v50, %v3884_v59 }
 0x6e9   :  { %v948_v40 = vpop.permute.xlu1 %947 }
 0x6ea   :  { %v950_v43 = vmul.f32 %v3412_v39, %v948_v40 }
 0x6ec   :  { %952 = vrot.lane.b32.xlu1 %v950_v43, %s3503_s29 }
 0x6ed   :  { %v1044_v51 = vpop.permute.xlu0 %1043 }
 0x6ee   :  { %v1046_v56 = vmul.f32 %v3414_v50, %v1044_v51 }
 0x6f0   :  { %964 = vperm.xlu1 %3322, %v3862_v55   ;;  %1048 = vrot.lane.b32.xlu0 %v1046_v56, %s3503_s29 }
 0x6f4   :  { %1060 = vperm.xlu0 %3321, %v3868_v45  }
 0x75e   :  { %v953_v52 = vpop.permute.xlu1 %952 }
 0x75f   :  { %v3878_v58 = vadd.f32 %v953_v52, %v945_v47 }
 0x761   :  { %3415 = vtanh.f32 %v3878_v58 }
 0x762   :  { %v1049_v61 = vpop.permute.xlu0 %1048 }
 0x763   :  { %v3888_v62 = vadd.f32 %v1049_v61, %v1041_v60 }
 0x765   :  { %3417 = vtanh.f32 %v3888_v62 }
 0x76b   :  { %v3416_v12 = vpop.eup %3415 }
 0x76c   :  { %958 = vrot.lane.b32.xlu1 %v3416_v12, %s3505_s14  ;;  %v3976_v12 = vsel %vm2824_vm3, 1, %v3504_v27 }
 0x76f   :  { %v3418_v6 = vpop.eup %3417  ;;  %v3929_v19 = vpop.permute.xlu1 %964 }
 0x770   :  { %1054 = vrot.lane.b32.xlu0 %v3418_v6, %s3505_s14  ;;  %vm966_vm13 = vcmp.eq.s32.totalorder %v3929_v19, 1 }
 0x771   :  { %v3983_v13 = vsel %vm966_vm13, %v3878_v58, %v3875_v49  ;;  %v3347_v49 = vld [vmem:[%s4543_s3] sm:$0xff]  }
 0x772   :  { %v3348_v58 = vld [vmem:[%s4544_s4] sm:$0xff]  }
 0x773   :  { %v3931_v20 = vpop.permute.xlu0 %1060 }
 0x774   :  { %vm1062_vm14 = vcmp.eq.s32.totalorder %v3931_v20, 1 }
 0x775   :  { %v3992_v36 = vsel %vm1062_vm14, %v3888_v62, %v3884_v59  ;;  %v2837_v59 = vld [vmem:[%s4545_s1 + $0x10] sm:$0xf]  ;;  %v3349_v62 = vld [vmem:[%s4547_s5] sm:$0xff]  }
 0x7de   :  { %v959_v10 = vpop.permute.xlu1 %958 }
 0x7df   :  { %v3933_v21 = vmul.f32 %v3412_v39, %v959_v10 }
 0x7e1   :  { %v3940_v22 = vsel %vm966_vm13, %v3933_v21, %v3832_v11 }
 0x7e2   :  { %v1055_v23 = vpop.permute.xlu0 %1054  ;;  %v1198_v24 = vpack.c.bf16 %v3940_v22, %v3940_v22 }
 0x7e3   :  { %v3944_v25 = vmul.f32 %v3414_v50, %v1055_v23 }
 0x7e4   :  { %1204 = vrot.lane.b32.xlu1 %v1198_v24, %s3503_s29 }
 0x7e5   :  { %v3952_v26 = vsel %vm1062_vm14, %v3944_v25, %v3844_v16  ;;  %v1063_v4 = vsel %vm1062_vm14, %v3944_v25, 0.0 }
 0x7e6   :  { %v1294_v11 = vpack.c.bf16 %v3952_v26, %v3952_v26  ;;  %v2920_v5 = vpack.c.bf16 %v1063_v4, %v1063_v4 }
 0x7e8   :  { %1300 = vrot.lane.b32.xlu0 %v1294_v11, %s3503_s29  ;;  %v2840_v11 = vld [vmem:[%s4546_s2 + $0xc] sm:$0xf] }
 0x856   :  { %v1205_v28 = vpop.permute.xlu1 %1204 }
 0x857   :  { %3112 = vmatmul.mubr.msk.bf16.vlgmr.msra.gmra.mrb[12].mxu0 %vm75_vm0, %v1205_v28  ;;  %v3350_v28 = vld [vmem:[%s4548_s6] sm:$0xff]  }
 0x858   :  { %3125 = vmatprep.mubr.msk.bf16.mxu0 %vm3502_vm1, %v3501_v0  ;;  %3124 = vmatpush3.bf16.msra.mxu0 %v3347_v49 }
 0x859   :  { %3135 = vmatprep.subr.bf16.mxu0 %v3501_v0 }
 0x85a   :  { %v1301_v29 = vpop.permute.xlu0 %1300 }
 0x85b   :  { %3120 = vmatmul.mubr.msk.bf16.vlgmr.msra.gmra.mrb[12].mxu1 %vm75_vm0, %v1301_v29 }
 0x85c   :  { %3131 = vmatprep.mubr.msk.bf16.mxu1 %vm3502_vm1, %v3501_v0  ;;  %3130 = vmatpush3.bf16.msra.mxu1 %v3348_v58 }
 0x85d   :  { %3143 = vmatprep.subr.bf16.mxu1 %v3501_v0 }
 0x85f   :  { %3126 = vmatmul.mubr.msk.bf16.vlgmr.msra.gmra.mrb[16].mxu0 %vm99_vm2, %v2837_v59 }
 0x860   :  { %3136 = vmatpush3.bf16.msra.mxu0 %v3349_v62  ;;  %3139 = vmatprep.mubr.msk.bf16.mxu0 %vm3502_vm1, %v3501_v0 }
 0x861   :  { %3137 = vmatprep.subr.bf16.mxu0 %v3501_v0 }
 0x863   :  { %3132 = vmatmul.mubr.msk.bf16.vlgmr.msra.gmra.mrb[16].mxu1 %vm99_vm2, %v2840_v11 }
 0x864   :  { %3144 = vmatpush3.bf16.msra.mxu1 %v3350_v28  ;;  %3147 = vmatprep.mubr.msk.bf16.mxu1 %vm3502_vm1, %v3501_v0 }
 0x865   :  { %3145 = vmatprep.subr.bf16.mxu1 %v3501_v0 }
 0x92a   :  { %v1255_v30 = vpop.f32.mrb[12].mxu0 }
 0x92b   :  { %v3241_v16 = vadd.f32 %v3631_v15, %v1255_v30  ;;  %v3113_v31 = vpop.f32.mrb[13].mxu0  ;;  %v3351_v30 = vld [vmem:[%s4547_s5 + $0x8] sm:$0xff]  }
 0x92c   :  { %v1258_v32 = vpop.f32.mrb[14].mxu0  ;;  %3138 = vmatpush3.bf16.msra.mxu0 %v3351_v30  ;;  %v3352_v31 = vld [vmem:[%s4548_s6 + $0x8] sm:$0xff]  }
 0x92d   :  { %3419 = vtanh.f32 %v3241_v16  ;;  %v3114_v33 = vpop.f32.mrb[15].mxu0  ;;  %v2828_v50 = vmul.f32 -1.442695, %v3241_v16  ;;  %3151 = vmatprep.subr.bf16.mxu0 %v3501_v0  ;;  %3146 = vmatpush3.bf16.msra.mxu1 %v3352_v31 }
 0x92e   :  { %v1351_v34 = vpop.f32.mrb[12].mxu1  ;;  %3157 = vmatprep.subr.bf16.mxu1 %v3501_v0 }
 0x92f   :  { %v3242_v35 = vadd.f32 %v3636_v17, %v1351_v34  ;;  %v3121_v37 = vpop.f32.mrb[13].mxu1 }
 0x930   :  { %v1354_v38 = vpop.f32.mrb[14].mxu1 }
 0x931   :  { %3421 = vtanh.f32 %v3242_v35  ;;  %v3122_v39 = vpop.f32.mrb[15].mxu1  ;;  %v2832_v51 = vmul.f32 -1.442695, %v3242_v35 }
 0x932   :  { %3423 = vpow2.f32 %v2828_v50 }
 0x933   :  { %3425 = vpow2.f32 %v2832_v51 }
 0x937   :  { %v3420_v40 = vpop.eup %3419 }
 0x938   :  { %1271 = vrot.lane.b32.xlu1 %v3420_v40, %s3505_s14 }
 0x93b   :  { %v3422_v43 = vpop.eup %3421 }
 0x93c   :  { %1367 = vrot.lane.b32.xlu0 %v3422_v43, %s3505_s14  ;;  %v3424_v56 = vpop.eup %3423 }
 0x93d   :  { %v1265_v47 = vadd.f32 1.0, %v3424_v56  ;;  %v3426_v52 = vpop.eup %3425 }
 0x93e   :  { %v1361_v60 = vadd.f32 1.0, %v3426_v52 }
 0x93f   :  { %3427 = vrcp.f32 %v1265_v47 }
 0x940   :  { %3429 = vrcp.f32 %v1361_v60 }
 0x949   :  { %v3428_v61 = vpop.eup %3427 }
 0x94a   :  { %v3430_v54 = vpop.eup %3429  ;;  %v1269_v6 = vmul.f32 %v3428_v61, %v3983_v13 }
 0x94b   :  { %v1365_v27 = vmul.f32 %v3430_v54, %v3992_v36 }
 0x9aa   :  { %v1272_v48 = vpop.permute.xlu1 %1271 }
 0x9ab   :  { %v1274_v53 = vmul.f32 %v3428_v61, %v1272_v48 }
 0x9ad   :  { %1276 = vrot.lane.b32.xlu1 %v1274_v53, %s3503_s29 }
 0x9ae   :  { %v1368_v57 = vpop.permute.xlu0 %1367 }
 0x9af   :  { %v1370_v7 = vmul.f32 %v3430_v54, %v1368_v57 }
 0x9b1   :  { %1288 = vperm.xlu1 %3322, %v3970_v2   ;;  %1372 = vrot.lane.b32.xlu0 %v1370_v7, %s3503_s29 }
 0x9b5   :  { %1384 = vperm.xlu0 %3321, %v3976_v12  }
 0xa1f   :  { %v1277_v18 = vpop.permute.xlu1 %1276 }
 0xa20   :  { %v3986_v10 = vadd.f32 %v1277_v18, %v1269_v6 }
 0xa22   :  { %3431 = vtanh.f32 %v3986_v10 }
 0xa23   :  { %v1373_v23 = vpop.permute.xlu0 %1372 }
 0xa24   :  { %v3996_v24 = vadd.f32 %v1373_v23, %v1365_v27 }
 0xa26   :  { %3433 = vtanh.f32 %v3996_v24 }
 0xa2c   :  { %v3432_v29 = vpop.eup %3431 }
 0xa2d   :  { %1282 = vrot.lane.b32.xlu1 %v3432_v29, %s3505_s14 }
 0xa30   :  { %v3434_v16 = vpop.eup %3433  ;;  %v4037_v32 = vpop.permute.xlu1 %1288 }
 0xa31   :  { %1378 = vrot.lane.b32.xlu0 %v3434_v16, %s3505_s14  ;;  %vm1290_vm4 = vcmp.eq.s32.totalorder %v4037_v32, 1 }
 0xa32   :  { %v4083_v31 = vsel %vm1290_vm4, %v3986_v10, %v3983_v13  ;;  %v3353_v13 = vld [vmem:[%s4543_s3] sm:$0xff]  }
 0xa33   :  { %v3354_v10 = vld [vmem:[%s4544_s4] sm:$0xff]  }
 0xa34   :  { %v4039_v33 = vpop.permute.xlu0 %1384 }
 0xa35   :  { %vm1386_vm7 = vcmp.eq.s32.totalorder %v4039_v33, 1 }
 0xa9f   :  { %v1283_v34 = vpop.permute.xlu1 %1282 }
 0xaa0   :  { %v4041_v35 = vmul.f32 %v3428_v61, %v1283_v34 }
 0xaa2   :  { %v4048_v37 = vsel %vm1290_vm4, %v4041_v35, %v3940_v22 }
 0xaa3   :  { %v1379_v38 = vpop.permute.xlu0 %1378  ;;  %v1522_v39 = vpack.c.bf16 %v4048_v37, %v4048_v37 }
 0xaa4   :  { %v4052_v40 = vmul.f32 %v3430_v54, %v1379_v38 }
 0xaa5   :  { %1528 = vrot.lane.b32.xlu1 %v1522_v39, %s3503_s29 }
 0xaa6   :  { %v4060_v43 = vsel %vm1386_vm7, %v4052_v40, %v3952_v26  ;;  %v1387_v19 = vsel %vm1386_vm7, %v4052_v40, 0.0 }
 0xaa7   :  { %v1618_v22 = vpack.c.bf16 %v4060_v43, %v4060_v43  ;;  %v2922_v20 = vpack.c.bf16 %v1387_v19, %v1387_v19 }
 0xaa9   :  { %1624 = vrot.lane.b32.xlu0 %v1618_v22, %s3503_s29 }
 0xb17   :  { %v1529_v50 = vpop.permute.xlu1 %1528 }
 0xb18   :  { %3140 = vmatmul.mubr.msk.bf16.vlgmr.msra.gmra.mrb[16].mxu0 %vm75_vm0, %v1529_v50 }
 0xb19   :  { %3153 = vmatprep.mubr.msk.bf16.mxu0 %vm3502_vm1, %v3501_v0  ;;  %3152 = vmatpush3.bf16.msra.mxu0 %v3353_v13 }
 0xb1a   :  { %3163 = vmatprep.subr.bf16.mxu0 %v3501_v0 }
 0xb1b   :  { %v1625_v51 = vpop.permute.xlu0 %1624 }
 0xb1c   :  { %3148 = vmatmul.mubr.msk.bf16.vlgmr.msra.gmra.mrb[16].mxu1 %vm75_vm0, %v1625_v51  ;;  %v2860_v51 = vld [vmem:[%s4546_s2 + $0x8] sm:$0xf] }
 0xb1d   :  { %3159 = vmatprep.mubr.msk.bf16.mxu1 %vm3502_vm1, %v3501_v0  ;;  %3158 = vmatpush3.bf16.msra.mxu1 %v3354_v10 }
 0xb1e   :  { %3171 = vmatprep.subr.bf16.mxu1 %v3501_v0 }
 0xb24   :  { %3160 = vmatmul.mubr.msk.bf16.vlgmr.msra.gmra.mrb[20].mxu1 %vm99_vm2, %v2860_v51 }
 0xb25   :  { %3175 = vmatprep.mubr.msk.bf16.mxu1 %vm3502_vm1, %v3501_v0 }
 0xbeb   :  { %v1579_v56 = vpop.f32.mrb[16].mxu0 }
 0xbec   :  { %v3243_v26 = vadd.f32 %v3631_v15, %v1579_v56  ;;  %v3141_v47 = vpop.f32.mrb[17].mxu0  ;;  %v3356_v56 = vld [vmem:[%s4548_s6] sm:$0xff]  }
 0xbed   :  { %v1582_v52 = vpop.f32.mrb[18].mxu0  ;;  %3172 = vmatpush3.bf16.msra.mxu1 %v3356_v56  ;;  %v3357_v47 = vld [vmem:[%s4547_s5 + $0x8] sm:$0xff]  }
 0xbee   :  { %3435 = vtanh.f32 %v3243_v26  ;;  %v3142_v60 = vpop.f32.mrb[19].mxu0  ;;  %v2848_v18 = vmul.f32 -1.442695, %v3243_v26  ;;  %3173 = vmatprep.subr.bf16.mxu1 %v3501_v0 }
 0xbef   :  { %v1675_v61 = vpop.f32.mrb[16].mxu1  ;;  %v3358_v60 = vld [vmem:[%s4548_s6 + $0x8] sm:$0xff]  }
 0xbf0   :  { %v3244_v48 = vadd.f32 %v3636_v17, %v1675_v61  ;;  %v3149_v53 = vpop.f32.mrb[17].mxu1 }
 0xbf1   :  { %v1678_v54 = vpop.f32.mrb[18].mxu1  ;;  %3174 = vmatpush3.bf16.msra.mxu1 %v3358_v60 }
 0xbf2   :  { %3437 = vtanh.f32 %v3244_v48  ;;  %v3150_v57 = vpop.f32.mrb[19].mxu1  ;;  %v2852_v27 = vmul.f32 -1.442695, %v3244_v48  ;;  %3185 = vmatprep.subr.bf16.mxu1 %v3501_v0 }
 0xbf3   :  { %3439 = vpow2.f32 %v2848_v18 }
 0xbf4   :  { %3441 = vpow2.f32 %v2852_v27 }
 0xbf8   :  { %v3436_v7 = vpop.eup %3435 }
 0xbf9   :  { %1595 = vrot.lane.b32.xlu1 %v3436_v7, %s3505_s14 }
 0xbfc   :  { %v3438_v6 = vpop.eup %3437 }
 0xbfd   :  { %1691 = vrot.lane.b32.xlu0 %v3438_v6, %s3505_s14  ;;  %v3440_v23 = vpop.eup %3439 }
 0xbfe   :  { %v1589_v49 = vadd.f32 1.0, %v3440_v23  ;;  %v3442_v58 = vpop.eup %3441 }
 0xbff   :  { %v1685_v59 = vadd.f32 1.0, %v3442_v58 }
 0xc00   :  { %3443 = vrcp.f32 %v1589_v49 }
 0xc01   :  { %3445 = vrcp.f32 %v1685_v59 }
 0xc0a   :  { %v3444_v62 = vpop.eup %3443 }
 0xc0b   :  { %v3446_v29 = vpop.eup %3445  ;;  %v1593_v34 = vmul.f32 %v3444_v62, %v4083_v31 }
 0xc6b   :  { %v1596_v11 = vpop.permute.xlu1 %1595 }
 0xc6c   :  { %v1598_v28 = vmul.f32 %v3444_v62, %v1596_v11 }
 0xc6e   :  { %1600 = vrot.lane.b32.xlu1 %v1598_v28, %s3503_s29 }
 0xc6f   :  { %v1692_v30 = vpop.permute.xlu0 %1691 }
 0xc70   :  { %v1694_v16 = vmul.f32 %v3446_v29, %v1692_v30 }
 0xc72   :  { %1612 = vperm.xlu1 %3322, %v3976_v12   ;;  %1696 = vrot.lane.b32.xlu0 %v1694_v16, %s3503_s29  ;;  %v4092_v12 = vsel %vm1386_vm7, %v3996_v24, %v3992_v36  ;;  %v2857_v36 = vld [vmem:[%s4545_s1 + $0x14] sm:$0xf]  ;;  %v3355_v24 = vld [vmem:[%s4547_s5] sm:$0xff]  }
 0xc73   :  { %3154 = vmatmul.mubr.msk.bf16.vlgmr.msra.gmra.mrb[20].mxu0 %vm99_vm2, %v2857_v36 }
 0xc74   :  { %3164 = vmatpush3.bf16.msra.mxu0 %v3355_v24  ;;  %3167 = vmatprep.mubr.msk.bf16.mxu0 %vm3502_vm1, %v3501_v0 }
 0xc75   :  { %3165 = vmatprep.subr.bf16.mxu0 %v3501_v0 }
 0xc76   :  { %1708 = vperm.xlu0 %3321, %v3970_v2   ;;  %v1689_v2 = vmul.f32 %v3446_v29, %v4092_v12 }
 0xc78   :  { %3166 = vmatpush3.bf16.msra.mxu0 %v3357_v47 }
 0xc79   :  { %3179 = vmatprep.subr.bf16.mxu0 %v3501_v0 }
 0xce0   :  { %v1601_v38 = vpop.permute.xlu1 %1600 }
 0xce1   :  { %v4086_v39 = vadd.f32 %v1601_v38, %v1593_v34 }
 0xce3   :  { %3447 = vtanh.f32 %v4086_v39 }
 0xce4   :  { %v1697_v22 = vpop.permute.xlu0 %1696 }
 0xce5   :  { %v4096_v50 = vadd.f32 %v1697_v22, %v1689_v2 }
 0xce7   :  { %3449 = vtanh.f32 %v4096_v50 }
 0xced   :  { %v3448_v26 = vpop.eup %3447 }
 0xcee   :  { %1606 = vrot.lane.b32.xlu1 %v3448_v26, %s3505_s14 }
 0xcf1   :  { %v3450_v52 = vpop.eup %3449  ;;  %v4137_v61 = vpop.permute.xlu1 %1612 }
 0xcf2   :  { %1702 = vrot.lane.b32.xlu0 %v3450_v52, %s3505_s14  ;;  %vm1614_vm8 = vcmp.eq.s32.totalorder %v4137_v61, 1 }
 0xcf3   :  { %v4183_v60 = vsel %vm1614_vm8, %v4086_v39, %v4083_v31  ;;  %v3359_v31 = vld [vmem:[%s4543_s3] sm:$0xff]  }
 0xcf4   :  { %v3360_v39 = vld [vmem:[%s4544_s4] sm:$0xff]  }
 0xcf5   :  { %v4139_v48 = vpop.permute.xlu0 %1708 }
 0xcf6   :  { %vm1710_vm11 = vcmp.eq.s32.totalorder %v4139_v48, 1 }
 0xd60   :  { %v1607_v53 = vpop.permute.xlu1 %1606 }
 0xd61   :  { %v4141_v54 = vmul.f32 %v3444_v62, %v1607_v53 }
 0xd63   :  { %v4148_v57 = vsel %vm1614_vm8, %v4141_v54, %v4048_v37 }
 0xd64   :  { %v1703_v7 = vpop.permute.xlu0 %1702  ;;  %v1846_v6 = vpack.c.bf16 %v4148_v57, %v4148_v57 }
 0xd65   :  { %v4152_v18 = vmul.f32 %v3446_v29, %v1703_v7 }
 0xd66   :  { %1852 = vrot.lane.b32.xlu1 %v1846_v6, %s3503_s29 }
 0xd67   :  { %v4160_v27 = vsel %vm1710_vm11, %v4152_v18, %v4060_v43  ;;  %v1711_v32 = vsel %vm1710_vm11, %v4152_v18, 0.0 }
 0xd68   :  { %v1942_v37 = vpack.c.bf16 %v4160_v27, %v4160_v27  ;;  %v2924_v33 = vpack.c.bf16 %v1711_v32, %v1711_v32 }
 0xd6a   :  { %1948 = vrot.lane.b32.xlu0 %v1942_v37, %s3503_s29 }
 0xdd8   :  { %v1853_v23 = vpop.permute.xlu1 %1852 }
 0xdd9   :  { %3168 = vmatmul.mubr.msk.bf16.vlgmr.msra.gmra.mrb[20].mxu0 %vm75_vm0, %v1853_v23 }
 0xdda   :  { %3181 = vmatprep.mubr.msk.bf16.mxu0 %vm3502_vm1, %v3501_v0  ;;  %3180 = vmatpush3.bf16.msra.mxu0 %v3359_v31 }
 0xddb   :  { %3191 = vmatprep.subr.bf16.mxu0 %v3501_v0 }
 0xddc   :  { %v1949_v49 = vpop.permute.xlu0 %1948 }
 0xddd   :  { %3176 = vmatmul.mubr.msk.bf16.vlgmr.msra.gmra.mrb[20].mxu1 %vm75_vm0, %v1949_v49  ;;  %v2880_v49 = vld [vmem:[%s4546_s2 + $0x4] sm:$0xf] }
 0xdde   :  { %3187 = vmatprep.mubr.msk.bf16.mxu1 %vm3502_vm1, %v3501_v0  ;;  %3186 = vmatpush3.bf16.msra.mxu1 %v3360_v39 }
 0xddf   :  { %3199 = vmatprep.subr.bf16.mxu1 %v3501_v0 }
 0xde5   :  { %3188 = vmatmul.mubr.msk.bf16.vlgmr.msra.gmra.mrb[24].mxu1 %vm99_vm2, %v2880_v49 }
 0xde6   :  { %3203 = vmatprep.mubr.msk.bf16.mxu1 %vm3502_vm1, %v3501_v0 }
 0xeac   :  { %v1903_v58 = vpop.f32.mrb[20].mxu0 }
 0xead   :  { %v3245_v43 = vadd.f32 %v3631_v15, %v1903_v58  ;;  %v3169_v59 = vpop.f32.mrb[21].mxu0  ;;  %v3362_v58 = vld [vmem:[%s4548_s6] sm:$0xff]  }
 0xeae   :  { %v1906_v62 = vpop.f32.mrb[22].mxu0  ;;  %3200 = vmatpush3.bf16.msra.mxu1 %v3362_v58  ;;  %v3363_v59 = vld [vmem:[%s4547_s5 + $0x8] sm:$0xff]  }
 0xeaf   :  { %3451 = vtanh.f32 %v3245_v43  ;;  %v3170_v11 = vpop.f32.mrb[23].mxu0  ;;  %v2868_v22 = vmul.f32 -1.442695, %v3245_v43  ;;  %3201 = vmatprep.subr.bf16.mxu1 %v3501_v0 }
 0xeb0   :  { %v1999_v28 = vpop.f32.mrb[20].mxu1  ;;  %v3364_v11 = vld [vmem:[%s4548_s6 + $0x8] sm:$0xff]  }
 0xeb1   :  { %v3246_v29 = vadd.f32 %v3636_v17, %v1999_v28  ;;  %v3177_v30 = vpop.f32.mrb[21].mxu1 }
 0xeb2   :  { %v2002_v16 = vpop.f32.mrb[22].mxu1  ;;  %3202 = vmatpush3.bf16.msra.mxu1 %v3364_v11 }
 0xeb3   :  { %3453 = vtanh.f32 %v3246_v29  ;;  %v3178_v34 = vpop.f32.mrb[23].mxu1  ;;  %v2872_v15 = vmul.f32 -1.442695, %v3246_v29  ;;  %3213 = vmatprep.subr.bf16.mxu1 %v3501_v0 }
 0xeb4   :  { %3455 = vpow2.f32 %v2868_v22 }
 0xeb5   :  { %3457 = vpow2.f32 %v2872_v15 }
 0xeb9   :  { %v3452_v38 = vpop.eup %3451 }
 0xeba   :  { %1919 = vrot.lane.b32.xlu1 %v3452_v38, %s3505_s14 }
 0xebd   :  { %v3454_v2 = vpop.eup %3453 }
 0xebe   :  { %2015 = vrot.lane.b32.xlu0 %v3454_v2, %s3505_s14  ;;  %v3456_v13 = vpop.eup %3455 }
 0xebf   :  { %v1913_v10 = vadd.f32 1.0, %v3456_v13  ;;  %v3458_v36 = vpop.eup %3457 }
 0xec0   :  { %v2009_v24 = vadd.f32 1.0, %v3458_v36 }
 0xec1   :  { %3459 = vrcp.f32 %v1913_v10 }
 0xec2   :  { %3461 = vrcp.f32 %v2009_v24 }
 0xecb   :  { %v3460_v17 = vpop.eup %3459 }
 0xecc   :  { %v3462_v26 = vpop.eup %3461  ;;  %v1917_v53 = vmul.f32 %v3460_v17, %v4183_v60 }
 0xf2c   :  { %v1920_v51 = vpop.permute.xlu1 %1919 }
 0xf2d   :  { %v1922_v56 = vmul.f32 %v3460_v17, %v1920_v51 }
 0xf2f   :  { %1924 = vrot.lane.b32.xlu1 %v1922_v56, %s3503_s29 }
 0xf30   :  { %v2016_v47 = vpop.permute.xlu0 %2015 }
 0xf31   :  { %v2018_v52 = vmul.f32 %v3462_v26, %v2016_v47  ;;  %v4280_v47 = vld [vmem:[%s4550_s8] ss:$0 sm:$0xff] }
 0xf33   :  { %1936 = vperm.xlu1 %3322, %v3868_v45   ;;  %2020 = vrot.lane.b32.xlu0 %v2018_v52, %s3503_s29  ;;  %v4192_v45 = vsel %vm1710_vm11, %v4096_v50, %v4092_v12  ;;  %v2877_v12 = vld [vmem:[%s4545_s1 + $0x18] sm:$0xf]  ;;  %v3361_v50 = vld [vmem:[%s4547_s5] sm:$0xff]  }
 0xf34   :  { %3182 = vmatmul.mubr.msk.bf16.vlgmr.msra.gmra.mrb[24].mxu0 %vm99_vm2, %v2877_v12 }
 0xf35   :  { %3192 = vmatpush3.bf16.msra.mxu0 %v3361_v50  ;;  %3195 = vmatprep.mubr.msk.bf16.mxu0 %vm3502_vm1, %v3501_v0 }
 0xf36   :  { %3193 = vmatprep.subr.bf16.mxu0 %v3501_v0 }
 0xf37   :  { %2032 = vperm.xlu0 %3321, %v3862_v55   ;;  %v2013_v55 = vmul.f32 %v3462_v26, %v4192_v45 }
 0xf39   :  { %3194 = vmatpush3.bf16.msra.mxu0 %v3363_v59 }
 0xf3a   :  { %3207 = vmatprep.subr.bf16.mxu0 %v3501_v0 }
 0xfa1   :  { %v1925_v7 = vpop.permute.xlu1 %1924 }
 0xfa2   :  { %v4186_v6 = vadd.f32 %v1925_v7, %v1917_v53 }
 0xfa4   :  { %3463 = vtanh.f32 %v4186_v6 }
 0xfa5   :  { %v2021_v37 = vpop.permute.xlu0 %2020 }
 0xfa6   :  { %v4196_v23 = vadd.f32 %v2021_v37, %v2013_v55 }
 0xfa8   :  { %3465 = vtanh.f32 %v4196_v23 }
 0xfae   :  { %v3464_v43 = vpop.eup %3463 }
 0xfaf   :  { %1930 = vrot.lane.b32.xlu1 %v3464_v43, %s3505_s14 }
 0xfb2   :  { %v3466_v62 = vpop.eup %3465  ;;  %v4237_v28 = vpop.permute.xlu1 %1936 }
 0xfb3   :  { %2026 = vrot.lane.b32.xlu0 %v3466_v62, %s3505_s14  ;;  %vm1938_vm12 = vcmp.eq.s32.totalorder %v4237_v28, 1 }
 0xfb6   :  { %v4239_v29 = vpop.permute.xlu0 %2032 }
 0xfb7   :  { %vm2034_vm15 = vcmp.eq.s32.totalorder %v4239_v29, 1 }
0x1021   :  { %v1931_v30 = vpop.permute.xlu1 %1930 }
0x1022   :  { %v4241_v16 = vmul.f32 %v3460_v17, %v1931_v30 }
0x1024   :  { %v4248_v34 = vsel %vm1938_vm12, %v4241_v16, %v4148_v57 }
0x1025   :  { %v2027_v38 = vpop.permute.xlu0 %2026  ;;  %v2170_v2 = vpack.c.bf16 %v4248_v34, %v4248_v34 }
0x1026   :  { %v4252_v22 = vmul.f32 %v3462_v26, %v2027_v38 }
0x1027   :  { %2176 = vrot.lane.b32.xlu1 %v2170_v2, %s3503_s29 }
0x1028   :  { %v4260_v15 = vsel %vm2034_vm15, %v4252_v22, %v4160_v27  ;;  %v4274_v27 = vld [vmem:[%s4549_s7] ss:$0 sm:$0xff]  ;;  %v2035_v61 = vsel %vm2034_vm15, %v4252_v22, 0.0 }
0x1029   :  { %v2266_v57 = vpack.c.bf16 %v4260_v15, %v4260_v15  ;;  %v2926_v48 = vpack.c.bf16 %v2035_v61, %v2035_v61 }
0x102b   :  { %2272 = vrot.lane.b32.xlu0 %v2266_v57, %s3503_s29  ;;  %v4293_v57 = vsel %vm1938_vm12, %v4186_v6, %v4183_v60  ;;  %v3365_v60 = vld [vmem:[%s4543_s3] sm:$0xff]  }
0x102c   :  { %v3366_v6 = vld [vmem:[%s4544_s4] sm:$0xff]  }
0x1099   :  { %v2177_v13 = vpop.permute.xlu1 %2176 }
0x109a   :  { %3196 = vmatmul.mubr.msk.bf16.vlgmr.msra.gmra.mrb[24].mxu0 %vm75_vm0, %v2177_v13 }
0x109b   :  { %3209 = vmatprep.mubr.msk.bf16.mxu0 %vm3502_vm1, %v3501_v0  ;;  %3208 = vmatpush3.bf16.msra.mxu0 %v3365_v60 }
0x109c   :  { %3219 = vmatprep.subr.bf16.mxu0 %v3501_v0 }
0x109d   :  { %v2273_v10 = vpop.permute.xlu0 %2272 }
0x109e   :  { %3204 = vmatmul.mubr.msk.bf16.vlgmr.msra.gmra.mrb[24].mxu1 %vm75_vm0, %v2273_v10 }
0x109f   :  { %3215 = vmatprep.mubr.msk.bf16.mxu1 %vm3502_vm1, %v3501_v0  ;;  %3214 = vmatpush3.bf16.msra.mxu1 %v3366_v6 }
0x10a0   :  { %3227 = vmatprep.subr.bf16.mxu1 %v3501_v0 }
0x116d   :  { %v2227_v36 = vpop.f32.mrb[24].mxu0 }
0x116e   :  { %v3247_v24 = vadd.f32 %v4274_v27, %v2227_v36  ;;  %v3197_v17 = vpop.f32.mrb[25].mxu0 }
0x116f   :  { %v2230_v51 = vpop.f32.mrb[26].mxu0 }
0x1170   :  { %3467 = vtanh.f32 %v3247_v24  ;;  %v3198_v56 = vpop.f32.mrb[27].mxu0  ;;  %v2888_v39 = vmul.f32 -1.442695, %v3247_v24  ;;  %v2434_v51 = vld [vmem:[%s4546_s2] sm:$0xf] }
0x1171   :  { %v2323_v26 = vpop.f32.mrb[24].mxu1  ;;  %v3368_v56 = vld [vmem:[%s4548_s6] sm:$0xff]   ;;  %3216 = vmatmul.mubr.msk.bf16.vlgmr.msra.gmra.mrb[28].mxu1 %vm99_vm2, %v2434_v51 }
0x1172   :  { %v3248_v52 = vadd.f32 %v4280_v47, %v2323_v26  ;;  %v3205_v53 = vpop.f32.mrb[25].mxu1  ;;  %3228 = vmatpush3.bf16.msra.mxu1 %v3368_v56  ;;  %3231 = vmatprep.mubr.msk.bf16.mxu1 %vm3502_vm1, %v3501_v0 }
0x1173   :  { %v2326_v7 = vpop.f32.mrb[26].mxu1  ;;  %3229 = vmatprep.subr.bf16.mxu1 %v3501_v0 }
0x1174   :  { %3469 = vtanh.f32 %v3248_v52  ;;  %v3206_v55 = vpop.f32.mrb[27].mxu1  ;;  %v2892_v12 = vmul.f32 -1.442695, %v3248_v52  ;;  %v3369_v52 = vld [vmem:[%s4547_s5 + $0x8] sm:$0xff]  }
0x1175   :  { %3471 = vpow2.f32 %v2888_v39  ;;  %v3370_v7 = vld [vmem:[%s4548_s6 + $0x8] sm:$0xff]  }
0x1176   :  { %3473 = vpow2.f32 %v2892_v12  ;;  %3230 = vmatpush3.bf16.msra.mxu1 %v3370_v7 }
0x117a   :  { %v3468_v37 = vpop.eup %3467 }
0x117b   :  { %2243 = vrot.lane.b32.xlu1 %v3468_v37, %s3505_s14 }
0x117e   :  { %v3470_v31 = vpop.eup %3469 }
0x117f   :  { %2339 = vrot.lane.b32.xlu0 %v3470_v31, %s3505_s14  ;;  %v3472_v50 = vpop.eup %3471 }
0x1180   :  { %v2237_v49 = vadd.f32 1.0, %v3472_v50  ;;  %v3474_v58 = vpop.eup %3473 }
0x1181   :  { %v2333_v43 = vadd.f32 1.0, %v3474_v58 }
0x1182   :  { %3475 = vrcp.f32 %v2237_v49 }
0x1183   :  { %3477 = vrcp.f32 %v2333_v43 }
0x118c   :  { %v3476_v59 = vpop.eup %3475 }
0x118d   :  { %v3478_v30 = vpop.eup %3477  ;;  %v2241_v13 = vmul.f32 %v3476_v59, %v4293_v57 }
0x11ed   :  { %v2244_v62 = vpop.permute.xlu1 %2243 }
0x11ee   :  { %v2246_v11 = vmul.f32 %v3476_v59, %v2244_v62 }
0x11f0   :  { %2248 = vrot.lane.b32.xlu1 %v2246_v11, %s3503_s29 }
0x11f1   :  { %v2340_v38 = vpop.permute.xlu0 %2339 }
0x11f2   :  { %v2342_v2 = vmul.f32 %v3478_v30, %v2340_v38 }
0x11f4   :  { %2260 = vperm.xlu1 %3322, %v3760_v46   ;;  %2344 = vrot.lane.b32.xlu0 %v2342_v2, %s3503_s29  ;;  %v4302_v46 = vsel %vm2034_vm15, %v4196_v23, %v4192_v45  ;;  %v2897_v45 = vld [vmem:[%s4545_s1 + $0x1c] sm:$0xf]  ;;  %v3367_v23 = vld [vmem:[%s4547_s5] sm:$0xff]  }
0x11f5   :  { %3210 = vmatmul.mubr.msk.bf16.vlgmr.msra.gmra.mrb[28].mxu0 %vm99_vm2, %v2897_v45 }
0x11f6   :  { %3220 = vmatpush3.bf16.msra.mxu0 %v3367_v23  ;;  %3223 = vmatprep.mubr.msk.bf16.mxu0 %vm3502_vm1, %v3501_v0 }
0x11f7   :  { %3221 = vmatprep.subr.bf16.mxu0 %v3501_v0 }
0x11f8   :  { %2356 = vperm.xlu0 %3321, %v3754_v41   ;;  %v2337_v41 = vmul.f32 %v3478_v30, %v4302_v46 }
0x11fa   :  { %3222 = vmatpush3.bf16.msra.mxu0 %v3369_v52 }
0x1262   :  { %v2249_v10 = vpop.permute.xlu1 %2248 }
0x1263   :  { %v4296_v36 = vadd.f32 %v2249_v10, %v2241_v13 }
0x1265   :  { %3479 = vtanh.f32 %v4296_v36 }
0x1266   :  { %v2345_v24 = vpop.permute.xlu0 %2344 }
0x1267   :  { %v4306_v17 = vadd.f32 %v2345_v24, %v2337_v41 }
0x1269   :  { %3481 = vtanh.f32 %v4306_v17 }
0x126f   :  { %v3480_v26 = vpop.eup %3479 }
0x1270   :  { %2254 = vrot.lane.b32.xlu1 %v3480_v26, %s3505_s14 }
0x1273   :  { %v3482_v53 = vpop.eup %3481  ;;  %v4345_v55 = vpop.permute.xlu1 %2260 }
0x1274   :  { %2350 = vrot.lane.b32.xlu0 %v3482_v53, %s3505_s14  ;;  %vm2262_vm2 = vcmp.eq.s32.totalorder %v4345_v55, 1 }
0x1277   :  { %v4347_v37 = vpop.permute.xlu0 %2356 }
0x1278   :  { %vm2358_vm1 = vcmp.eq.s32.totalorder %v4347_v37, 1 }
0x12e2   :  { %v2255_v31 = vpop.permute.xlu1 %2254 }
0x12e3   :  { %v4349_v39 = vmul.f32 %v3476_v59, %v2255_v31 }
0x12e5   :  { %v4356_v0 = vsel %vm2262_vm2, %v4349_v39, %v4248_v34 }
0x12e6   :  { %v2351_v12 = vpop.permute.xlu0 %2350  ;;  %v2492_v50 = vpack.c.bf16 %v4356_v0, %v4356_v0 }
0x12e7   :  { %v4360_v49 = vmul.f32 %v3478_v30, %v2351_v12 }
0x12e8   :  { %2498 = vrot.lane.b32.xlu1 %v2492_v50, %s3503_s29  ;;  %v2265_v50 = vsel %vm2262_vm2, %v4296_v36, %v4293_v57  ;;  %v310_v36 = vsel %vm309_vm5, %v3719_v3, 0.0  ;;  %v967_v3 = vsel %vm966_vm13, %v3933_v21, 0.0  ;;  %v1615_v21 = vsel %vm1614_vm8, %v4141_v54, 0.0 }
0x12e9   :  { %v4368_v58 = vsel %vm2358_vm1, %v4360_v49, %v4260_v15  ;;  %v2923_v25 = vpack.c.bf16 %v1615_v21, %v1615_v21  ;;  %v2263_v54 = vsel %vm2262_vm2, %v4349_v39, 0.0  ;;  %v2359_v28 = vsel %vm2358_vm1, %v4360_v49, 0.0 }
0x12ea   :  { %v2588_v34 = vpack.c.bf16 %v4368_v58, %v4368_v58  ;;  %v2927_v18 = vpack.c.bf16 %v2263_v54, %v2263_v54 }
0x12ec   :  { %2594 = vrot.lane.b32.xlu0 %v2588_v34, %s3503_s29 }
0x135a   :  { %v2499_v43 = vpop.permute.xlu1 %2498 }
0x135b   :  { %3224 = vmatmul.mubr.msk.bf16.vlgmr.msra.gmra.mrb[28].mxu0 %vm75_vm0, %v2499_v43 }
0x135e   :  { %v2595_v59 = vpop.permute.xlu0 %2594 }
0x135f   :  { %3232 = vmatmul.mubr.msk.bf16.vlgmr.msra.gmra.mrb[28].mxu1 %vm75_vm0, %v2595_v59 }
0x142e   :  { %v2549_v62 = vpop.f32.mrb[28].mxu0 }
0x142f   :  { %v3249_v11 = vadd.f32 %v4274_v27, %v2549_v62  ;;  %v3225_v30 = vpop.f32.mrb[29].mxu0  ;;  %v4398_v62 = vsel %vm2358_vm1, %v4306_v17, %v4302_v46  ;;  %v411_v46 = vsel %vm410_vm6, %v3729_v8, 0.0  ;;  %v643_v17 = vsel %vm642_vm9, %v3825_v9, 0.0 }
0x1430   :  { %v2552_v38 = vpop.f32.mrb[30].mxu0  ;;  %v2915_v30 = vpack.c.bf16 %v310_v36, %v310_v36  ;;  %v2919_v8 = vpack.c.bf16 %v967_v3, %v967_v3  ;;  %v1291_v9 = vsel %vm1290_vm4, %v4041_v35, 0.0  ;;  %v1939_v35 = vsel %vm1938_vm12, %v4241_v16, 0.0 }
0x1431   :  { %3483 = vtanh.f32 %v3249_v11  ;;  %v3226_v2 = vpop.f32.mrb[31].mxu0  ;;  %v2907_v45 = vmul.f32 -1.442695, %v3249_v11  ;;  %v2921_v14 = vpack.c.bf16 %v1291_v9, %v1291_v9  ;;  %v2925_v40 = vpack.c.bf16 %v1939_v35, %v1939_v35 }
0x1432   :  { %v2645_v15 = vpop.f32.mrb[28].mxu1  ;;  %v2916_v2 = vpack.c.bf16 %v411_v46, %v411_v46  ;;  %v2928_v16 = vpack.c.bf16 %v2359_v28, %v2359_v28  ;;  %vm425_vm6 = vcmask 257024  }
0x1433   :  { %v3250_v13 = vadd.f32 %v4280_v47, %v2645_v15  ;;  %v3233_v10 = vpop.f32.mrb[29].mxu1  ;;  %v2917_v15 = vpack.c.bf16 %v643_v17, %v643_v17 }
0x1434   :  { %v2648_v41 = vpop.f32.mrb[30].mxu1 }
0x1435   :  { %3485 = vtanh.f32 %v3250_v13  ;;  %v3234_v24 = vpop.f32.mrb[31].mxu1  ;;  %v2911_v27 = vmul.f32 -1.442695, %v3250_v13 }
0x1436   :  { %3487 = vpow2.f32 %v2907_v45 }
0x1437   :  { %3489 = vpow2.f32 %v2911_v27 }
0x143b   :  { %v3484_v60 = vpop.eup %3483 }
0x143c   :  { %2565 = vrot.lane.b32.xlu1 %v3484_v60, %s3505_s14 }
0x143f   :  { %v3486_v6 = vpop.eup %3485 }
0x1440   :  { %2661 = vrot.lane.b32.xlu0 %v3486_v6, %s3505_s14  ;;  %v3488_v23 = vpop.eup %3487 }
0x1441   :  { %v2559_v51 = vadd.f32 1.0, %v3488_v23  ;;  %v3490_v56 = vpop.eup %3489 }
0x1442   :  { %v2655_v26 = vadd.f32 1.0, %v3490_v56 }
0x1443   :  { %3491 = vrcp.f32 %v2559_v51 }
0x1444   :  { %3493 = vrcp.f32 %v2655_v26 }
0x144d   :  { %v4379_v47 = vpop.eup %3491 }
0x144e   :  { %v4383_v7 = vpop.eup %3493  ;;  %v2563_v34 = vmul.f32 %v4379_v47, %v2265_v50 }
0x14ae   :  { %v2566_v52 = vpop.permute.xlu1 %2565 }
0x14af   :  { %v2568_v53 = vmul.f32 %v4379_v47, %v2566_v52 }
0x14b1   :  { %2570 = vrot.lane.b32.xlu1 %v2568_v53, %s3503_s29 }
0x14b2   :  { %v2662_v31 = vpop.permute.xlu0 %2661 }
0x14b3   :  { %v2664_v12 = vmul.f32 %v4383_v7, %v2662_v31 }
0x14b5   :  { %2582 = vperm.xlu1 %3322, %v3658_v44   ;;  %2666 = vrot.lane.b32.xlu0 %v2664_v12, %s3503_s29  ;;  %v2659_v44 = vmul.f32 %v4383_v7, %v4398_v62 }
0x14b9   :  { %2678 = vperm.xlu0 %3321, %v3652_v42  }
0x1523   :  { %v2571_v43 = vpop.permute.xlu1 %2570 }
0x1524   :  { %v2573_v59 = vadd.f32 %v2571_v43, %v2563_v34 }
0x1526   :  { %3495 = vtanh.f32 %v2573_v59 }
0x1527   :  { %v2667_v42 = vpop.permute.xlu0 %2666 }
0x1528   :  { %v4402_v11 = vadd.f32 %v2667_v42, %v2659_v44 }
0x152a   :  { %3497 = vtanh.f32 %v4402_v11 }
0x1530   :  { %v3496_v57 = vpop.eup %3495 }
0x1531   :  { %2576 = vrot.lane.b32.xlu1 %v3496_v57, %s3505_s14 }
0x1534   :  { %v3498_v38 = vpop.eup %3497  ;;  %v2583_v29 = vpop.permute.xlu1 %2582 }
0x1535   :  { %422 = vrot.lane.b32.xlu1 %v2915_v30, %s3503_s29  ;;  %2672 = vrot.lane.b32.xlu0 %v3498_v38, %s3505_s14  ;;  %vm2584_vm5 = vcmp.eq.s32.totalorder %v2583_v29, 1 }
0x1536   :  { %v2587_v22 = vsel %vm2584_vm5, %v2573_v59, %v2265_v50 }
0x1538   :  { %v2679_v55 = vpop.permute.xlu0 %2678 }
0x1539   :  { %746 = vrot.lane.b32.xlu1 %v2917_v15, %s3503_s29  ;;  %431 = vrot.lane.b32.xlu0 %v2916_v2, %s3503_s29  ;;  %vm2680_vm9 = vcmp.eq.s32.totalorder %v2679_v55, 1 }
0x153a   :  { %v2683_v26 = vsel %vm2680_vm9, %v4402_v11, %v4398_v62 }
0x153d   :  { %1070 = vrot.lane.b32.xlu1 %v2919_v8, %s3503_s29  ;;  %755 = vrot.lane.b32.xlu0 %v2918_v63, %s3503_s29 }
0x1541   :  { %1394 = vrot.lane.b32.xlu1 %v2921_v14, %s3503_s29  ;;  %1079 = vrot.lane.b32.xlu0 %v2920_v5, %s3503_s29 }
0x1545   :  { %1718 = vrot.lane.b32.xlu1 %v2923_v25, %s3503_s29  ;;  %1403 = vrot.lane.b32.xlu0 %v2922_v20, %s3503_s29 }
0x1549   :  { %2042 = vrot.lane.b32.xlu1 %v2925_v40, %s3503_s29  ;;  %1727 = vrot.lane.b32.xlu0 %v2924_v33, %s3503_s29 }
0x154d   :  { %2366 = vrot.lane.b32.xlu1 %v2927_v18, %s3503_s29  ;;  %2051 = vrot.lane.b32.xlu0 %v2926_v48, %s3503_s29 }
0x1551   :  { %2375 = vrot.lane.b32.xlu0 %v2928_v16, %s3503_s29 }
0x1555   :  { %2707 = vrot.lane.b32.xlu0 %v2587_v22, %s3506_s28 }
0x15a3   :  { %v2577_v39 = vpop.permute.xlu1 %2576 }
0x15a4   :  { %v2579_v13 = vmul.f32 %v4379_v47, %v2577_v39 }
0x15a6   :  { %v2585_v10 = vsel %vm2584_vm5, %v2579_v13, 0.0  ;;  %v2586_v37 = vsel %vm2584_vm5, %v2579_v13, %v4356_v0 }
0x15a7   :  { %2702 = vrot.lane.b32.xlu1 %v2586_v37, %s3503_s29  ;;  %v423_v49 = vpop.permute.xlu1 %422  ;;  %v2673_v41 = vpop.permute.xlu0 %2672  ;;  %v2929_v60 = vpack.c.bf16 %v2585_v10, %v2585_v10 }
0x15a8   :  { %426 = vst.msk [vmem:[%s4552_s9] sm:$0xf] %vm425_vm6, %v423_v49  ;;  %v2675_v24 = vmul.f32 %v4383_v7, %v2673_v41 }
0x15aa   :  { %v2681_v6 = vsel %vm2680_vm9, %v2675_v24, 0.0  ;;  %v2682_v0 = vsel %vm2680_vm9, %v2675_v24, %v4368_v58 }
0x15ab   :  { %v2930_v45 = vpack.c.bf16 %v2681_v6, %v2681_v6  ;;  %2688 = vrot.lane.b32.xlu1 %v2929_v60, %s3503_s29  ;;  %v747_v27 = vpop.permute.xlu1 %746  ;;  %v432_v23 = vpop.permute.xlu0 %431 }
0x15ac   :  { %2794 = vst.msk [vmem:[%s4552_s9 + $0x4] sm:$0xf] %vm425_vm6, %v747_v27  ;;  %2776 = vst.msk [vmem:[%s4553_s10 + $0x1c] sm:$0xf] %vm425_vm6, %v432_v23 }
0x15ad   :  { %2697 = vrot.lane.b32.xlu0 %v2930_v45, %s3503_s29 }
0x15af   :  { %v1071_v51 = vpop.permute.xlu1 %1070  ;;  %2712 = vrot.lane.b32.xlu1 %v2682_v0, %s3503_s29  ;;  %v756_v56 = vpop.permute.xlu0 %755 }
0x15b0   :  { %2814 = vst.msk [vmem:[%s4552_s9 + $0x8] sm:$0xf] %vm425_vm6, %v1071_v51  ;;  %2796 = vst.msk [vmem:[%s4553_s10 + $0x18] sm:$0xf] %vm425_vm6, %v756_v56 }
0x15b1   :  { %2717 = vrot.lane.b32.xlu0 %v2683_v26, %s3506_s28 }
0x15b3   :  { %v1395_v58 = vpop.permute.xlu1 %1394  ;;  %v1080_v47 = vpop.permute.xlu0 %1079 }
0x15b4   :  { %2834 = vst.msk [vmem:[%s4552_s9 + $0xc] sm:$0xf] %vm425_vm6, %v1395_v58  ;;  %2816 = vst.msk [vmem:[%s4553_s10 + $0x14] sm:$0xf] %vm425_vm6, %v1080_v47 }
0x15b7   :  { %v1719_v52 = vpop.permute.xlu1 %1718  ;;  %v1404_v53 = vpop.permute.xlu0 %1403 }
0x15b8   :  { %2854 = vst.msk [vmem:[%s4552_s9 + $0x10] sm:$0xf] %vm425_vm6, %v1719_v52  ;;  %2836 = vst.msk [vmem:[%s4553_s10 + $0x10] sm:$0xf] %vm425_vm6, %v1404_v53 }
0x15bb   :  { %v2043_v7 = vpop.permute.xlu1 %2042  ;;  %v1728_v31 = vpop.permute.xlu0 %1727 }
0x15bc   :  { %2874 = vst.msk [vmem:[%s4552_s9 + $0x14] sm:$0xf] %vm425_vm6, %v2043_v7  ;;  %2856 = vst.msk [vmem:[%s4553_s10 + $0xc] sm:$0xf] %vm425_vm6, %v1728_v31 }
0x15bf   :  { %v2367_v12 = vpop.permute.xlu1 %2366  ;;  %v2052_v50 = vpop.permute.xlu0 %2051 }
0x15c0   :  { %2894 = vst.msk [vmem:[%s4552_s9 + $0x18] sm:$0xf] %vm425_vm6, %v2367_v12  ;;  %2876 = vst.msk [vmem:[%s4553_s10 + $0x8] sm:$0xf] %vm425_vm6, %v2052_v50 }
0x15c3   :  { %v2376_v34 = vpop.permute.xlu0 %2375 }
0x15c4   :  { %2896 = vst.msk [vmem:[%s4553_s10 + $0x4] sm:$0xf] %vm425_vm6, %v2376_v34 }
0x15c7   :  { %v2708_v43 = vpop.permute.xlu0 %2707 }
0x15c8   :  { %2710 = vst.msk [vmem:[#allocation3] sm:$0xff] %vm75_vm0, %v2708_v43 }
0x1619   :  { %v2703_v59 = vpop.permute.xlu1 %2702 }
0x161a   :  { %2705 = vst.msk [vmem:[#allocation2] sm:$0xff] %vm75_vm0, %v2703_v59 }
0x161d   :  { %v2689_v62 = vpop.permute.xlu1 %2688 }
0x161e   :  { %2913 = vst.msk [vmem:[%s4552_s9 + $0x1c] sm:$0xf] %vm425_vm6, %v2689_v62 }
0x161f   :  { %v2698_v44 = vpop.permute.xlu0 %2697 }
0x1620   :  { %2700 = vst.msk [vmem:[%s4553_s10] sm:$0xf] %vm425_vm6, %v2698_v44 }
0x1621   :  { %v2713_v42 = vpop.permute.xlu1 %2712 }
0x1622   :  { %2715 = vst.msk [vmem:[#allocation4] sm:$0xff] %vm75_vm0, %v2713_v42 }
0x1623   :  { %v2718_v11 = vpop.permute.xlu0 %2717 }
0x1624   :  { %2720 = vst.msk [vmem:[#allocation5] sm:$0xff] %vm75_vm0, %v2718_v11 }

// kernel: bilstm_forward.4
= control target key start
LH: loop header
LB: loop body
LE: loop exit
PB: predicated region body
PF: predicated region fallthrough
CT: control target
= control target key end

     0   :  { %vm109_vm0 = vcmask 261120   ;;  %v5072_v0 = vmov 0.0   ;;  %vm5073_vm1 = vmmov 0   ;;  %s5074_s21 = smov 32   ;;  %v5075_v35 = vmov 0   ;;  %s5076_s18 = smov 64   ;;  %s6492_s5 = inlined_call_operand.vmem [shape: bf16[32,128], index: 5, kind: input, shape index: {}]   ;;  %s6493_s7 = inlined_call_operand.vmem [shape: bf16[32,128], index: 7, kind: input, shape index: {}]   ;;  %s6494_s1 = inlined_call_operand.vmem [shape: bf16[8,8,32], index: 1, kind: input, shape index: {}, may-alias: {1,3}]   ;;  %s6495_s3 = inlined_call_operand.vmem [shape: bf16[8,8,32], index: 3, kind: input, shape index: {}, may-alias: {1,3}]   ;;  %s6496_s6 = inlined_call_operand.vmem [shape: bf16[32,128], index: 6, kind: input, shape index: {}]   ;;  %s6497_s8 = inlined_call_operand.vmem [shape: bf16[32,128], index: 8, kind: input, shape index: {}]   ;;  %s6498_s9 = inlined_call_operand.vmem [shape: bf16[32,128], index: 9, kind: input, shape index: {}]   ;;  %s6499_s10 = inlined_call_operand.vmem [shape: bf16[32,128], index: 10, kind: input, shape index: {}]   ;;  %s6500_s2 = inlined_call_operand.vmem [shape: bf16[8,8,32], index: 2, kind: input, shape index: {}, may-alias: {2,4}]   ;;  %s6501_s4 = inlined_call_operand.vmem [shape: bf16[8,8,32], index: 4, kind: input, shape index: {}, may-alias: {2,4}]   ;;  %s6502_s11 = inlined_call_operand.vmem [shape: f32[1,128], index: 11, kind: input, shape index: {}]   ;;  %s6503_s12 = inlined_call_operand.vmem [shape: f32[1,128], index: 12, kind: input, shape index: {}]   ;;  %s6504_s0 = inlined_call_operand.vmem [shape: s32[8,1], index: 0, kind: input, shape index: {}]   ;;  %s6505_s13 = inlined_call_operand.vmem [shape: bf16[8,8,32], index: 13, kind: output, shape index: {0}]   ;;  %s6506_s14 = inlined_call_operand.vmem [shape: bf16[8,8,32], index: 14, kind: output, shape index: {1}]  }
   0x1   :  { %4310 = vmatprep.subr.bf16.mxu0 %v5072_v0  ;;  %4326 = vmatprep.subr.bf16.mxu1 %v5072_v0  ;;  %v4846_v1 = vld [vmem:[%s6492_s5] sm:$0xff]   ;;  %110 = vst.msk [vmem:[#allocation2] sm:$0xff] %vm109_vm0, %v5072_v0  ;;  %111 = vst.msk [vmem:[#allocation3] sm:$0xff] %vm109_vm0, %v5072_v0  ;;  %v4848_v3 = vld [vmem:[%s6492_s5 + $0x8] sm:$0xff]   ;;  %s5077_s29 = smov 96  }
   0x2   :  { %112 = vst.msk [vmem:[#allocation4] sm:$0xff] %vm109_vm0, %v5072_v0  ;;  %113 = vst.msk [vmem:[#allocation5] sm:$0xff] %vm109_vm0, %v5072_v0  ;;  %v4847_v2 = vld [vmem:[%s6493_s7] sm:$0xff]   ;;  %4314 = vmatprep.mubr.msk.bf16.mxu0 %vm5073_vm1, %v5072_v0  ;;  %4330 = vmatprep.mubr.msk.bf16.mxu1 %vm5073_vm1, %v5072_v0  ;;  %v4849_v4 = vld [vmem:[%s6493_s7 + $0x8] sm:$0xff]  }
   0x3   :  { %4311 = vmatpush3.bf16.msra.mxu0 %v4846_v1  ;;  %4327 = vmatpush3.bf16.msra.mxu1 %v4847_v2  ;;  %v124_v5 = vld [vmem:[%s6494_s1] sm:$0xf]  ;;  %v3921_v6 = vld [vmem:[%s6495_s3 + $0x1c] sm:$0xf]  ;;  %v4852_v9 = vld [vmem:[%s6496_s6 + $0x8] sm:$0xff]  }
   0x4   :  { %4312 = vmatprep.subr.bf16.mxu0 %v5072_v0  ;;  %4328 = vmatprep.subr.bf16.mxu1 %v5072_v0  ;;  %v4850_v7 = vld [vmem:[%s6496_s6] sm:$0xff]   ;;  %v4853_v10 = vld [vmem:[%s6497_s8 + $0x8] sm:$0xff]   ;;  %v3926_v15 = vld [vmem:[%s6501_s4 + $0x1c] sm:$0xf] }
   0x5   :  { %v4851_v8 = vld [vmem:[%s6497_s8] sm:$0xff]   ;;  %v4856_v17 = vld [vmem:[%s6498_s9 + $0x8] sm:$0xff]   ;;  %4844 = vset.pattern.permute.xlu0 %v5075_v35  ;;  %4845 = vset.pattern.permute.xlu1 %v5075_v35 }
   0x6   :  { %v192_v13 = vld [vmem:[%s6500_s2] sm:$0xf]  ;;  %v4857_v18 = vld [vmem:[%s6499_s10 + $0x8] sm:$0xff]  }
   0x7   :  { %4313 = vmatpush3.bf16.msra.mxu0 %v4848_v3  ;;  %4329 = vmatpush3.bf16.msra.mxu1 %v4849_v4  ;;  %v4854_v14 = vld [vmem:[%s6498_s9] sm:$0xff]   ;;  %v4859_v1 = vld [vmem:[%s6492_s5 + $0x8] sm:$0xff]  }
   0x8   :  { %4318 = vmatprep.subr.bf16.mxu0 %v5072_v0  ;;  %4334 = vmatprep.subr.bf16.mxu1 %v5072_v0  ;;  %v121_v11 = vld [vmem:[#allocation3] sm:$0xff]  ;;  %v4855_v16 = vld [vmem:[%s6499_s10] sm:$0xff]  }
   0x9   :  { %v123_v12 = vld [vmem:[#allocation5] sm:$0xff]  ;;  %457 = vrot.lane.b32.xlu1 %v121_v11, %s5074_s21  ;;  %v5237_v19 = vld [vmem:[#allocation2] sm:$0xff]  ;;  %v5241_v20 = vld [vmem:[#allocation4] sm:$0xff] }
   0xa   :  { %4315 = vmatmul.mubr.msk.bf16.vlgmr.msra.gmra.mrb[0].mxu0 %vm109_vm0, %v124_v5  ;;  %4331 = vmatmul.mubr.msk.bf16.vlgmr.msra.gmra.mrb[0].mxu1 %vm109_vm0, %v3921_v6  ;;  %v388_v21 = vpack.c.bf16 %v5237_v19, %v5237_v19  ;;  %v489_v22 = vpack.c.bf16 %v5241_v20, %v5241_v20  ;;  %v5258_v23 = vld [vmem:[%s6502_s11] ss:$0 sm:$0xff]  ;;  %v4861_v2 = vld [vmem:[%s6493_s7 + $0x8] sm:$0xff]   ;;  %v3943_v4 = vld [vmem:[%s6494_s1 + $0x4] sm:$0xf] }
   0xb   :  { %4319 = vmatpush3.bf16.msra.mxu0 %v4850_v7  ;;  %4335 = vmatpush3.bf16.msra.mxu1 %v4851_v8  ;;  %v5263_v25 = vld [vmem:[%s6503_s12] ss:$0 sm:$0xff]  ;;  %v3951_v6 = vld [vmem:[%s6495_s3 + $0x18] sm:$0xf]  ;;  %v4864_v8 = vld [vmem:[%s6496_s6 + $0x8] sm:$0xff]  }
   0xc   :  { %4320 = vmatprep.subr.bf16.mxu0 %v5072_v0  ;;  %4336 = vmatprep.subr.bf16.mxu1 %v5072_v0  ;;  %v5274_v44 = vld [vmem:[%s6504_s0] sm:$0xff] }
   0xd   :  { %4322 = vmatprep.mubr.msk.bf16.mxu0 %vm5073_vm1, %v5072_v0  ;;  %4338 = vmatprep.mubr.msk.bf16.mxu1 %vm5073_vm1, %v5072_v0  ;;  %vm3930_vm2 = vcmp.gt.s32.totalorder %v5274_v44, 0  ;;  %vm3931_vm3 = vcmp.gt.s32.totalorder %v5274_v44, 7  ;;  %v4858_v61 = vld [vmem:[%s6492_s5] sm:$0xff]   ;;  %vm3959_vm6 = vcmp.gt.s32.totalorder %v5274_v44, 1  ;;  %vm3960_vm7 = vcmp.gt.s32.totalorder %v5274_v44, 6 }
   0xe   :  { %558 = vrot.lane.b32.xlu1 %v123_v12, %s5074_s21  ;;  %v5284_v50 = vsel %vm3930_vm2, 1, %v5075_v35  ;;  %v5291_v52 = vsel %vm3931_vm3, 1, %v5075_v35  ;;  %v4860_v62 = vld [vmem:[%s6493_s7] sm:$0xff]   ;;  %v3955_v12 = vld [vmem:[%s6501_s4 + $0x18] sm:$0xf]  ;;  %vm3989_vm10 = vcmp.gt.s32.totalorder %v5274_v44, 2 }
   0xf   :  { %4321 = vmatpush3.bf16.msra.mxu0 %v4852_v9  ;;  %4337 = vmatpush3.bf16.msra.mxu1 %v4853_v10  ;;  %v4862_v5 = vld [vmem:[%s6496_s6] sm:$0xff]   ;;  %v4865_v9 = vld [vmem:[%s6497_s8 + $0x8] sm:$0xff]   ;;  %vm3990_vm11 = vcmp.gt.s32.totalorder %v5274_v44, 5  ;;  %vm4019_vm14 = vcmp.gt.s32.totalorder %v5274_v44, 3  ;;  %vm4020_vm15 = vcmp.gt.s32.totalorder %v5274_v44, 4 }
  0x10   :  { %4342 = vmatprep.subr.bf16.mxu0 %v5072_v0  ;;  %4350 = vmatprep.subr.bf16.mxu1 %v5072_v0  ;;  %v4863_v7 = vld [vmem:[%s6497_s8] sm:$0xff]  }
  0x11   :  { %v3947_v10 = vld [vmem:[%s6500_s2 + $0x4] sm:$0xf] }
  0x12   :  { %v4866_v11 = vld [vmem:[%s6498_s9] sm:$0xff]  }
  0x16   :  { %4323 = vmatmul.mubr.msk.bf16.vlgmr.msra.gmra.mrb[0].mxu0 %vm109_vm0, %v192_v13  ;;  %4339 = vmatmul.mubr.msk.bf16.vlgmr.msra.gmra.mrb[0].mxu1 %vm109_vm0, %v3926_v15  ;;  %v4867_v13 = vld [vmem:[%s6499_s10] sm:$0xff]   ;;  %v4869_v15 = vld [vmem:[%s6499_s10 + $0x8] sm:$0xff]  }
  0x17   :  { %4343 = vmatpush3.bf16.msra.mxu0 %v4854_v14  ;;  %4351 = vmatpush3.bf16.msra.mxu1 %v4855_v16  ;;  %v4868_v14 = vld [vmem:[%s6498_s9 + $0x8] sm:$0xff]  }
  0x18   :  { %4344 = vmatprep.subr.bf16.mxu0 %v5072_v0  ;;  %4352 = vmatprep.subr.bf16.mxu1 %v5072_v0 }
  0x19   :  { %4346 = vmatprep.mubr.msk.bf16.mxu0 %vm5073_vm1, %v5072_v0  ;;  %4354 = vmatprep.mubr.msk.bf16.mxu1 %vm5073_vm1, %v5072_v0 }
  0x1b   :  { %4345 = vmatpush3.bf16.msra.mxu0 %v4856_v17  ;;  %4353 = vmatpush3.bf16.msra.mxu1 %v4857_v18 }
  0x1c   :  { %4358 = vmatprep.subr.bf16.mxu0 %v5072_v0  ;;  %4374 = vmatprep.subr.bf16.mxu1 %v5072_v0 }
  0x22   :  { %4347 = vmatmul.mubr.msk.bf16.vlgmr.msra.gmra.mrb[0].mxu0 %vm109_vm0, %v388_v21  ;;  %4355 = vmatmul.mubr.msk.bf16.vlgmr.msra.gmra.mrb[0].mxu1 %vm109_vm0, %v489_v22 }
  0x23   :  { %4362 = vmatprep.mubr.msk.bf16.mxu0 %vm5073_vm1, %v5072_v0  ;;  %4378 = vmatprep.mubr.msk.bf16.mxu1 %vm5073_vm1, %v5072_v0 }
  0x24   :  { %4359 = vmatpush3.bf16.msra.mxu0 %v4858_v61  ;;  %4375 = vmatpush3.bf16.msra.mxu1 %v4860_v62 }
  0x25   :  { %4360 = vmatprep.subr.bf16.mxu0 %v5072_v0  ;;  %4376 = vmatprep.subr.bf16.mxu1 %v5072_v0 }
  0x28   :  { %4361 = vmatpush3.bf16.msra.mxu0 %v4859_v1  ;;  %4377 = vmatpush3.bf16.msra.mxu1 %v4861_v2  ;;  %v5439_v2 = vsel %vm3960_vm7, 1, %v5075_v35 }
  0x29   :  { %4366 = vmatprep.subr.bf16.mxu0 %v5072_v0  ;;  %4382 = vmatprep.subr.bf16.mxu1 %v5072_v0 }
  0x2b   :  { %4363 = vmatmul.mubr.msk.bf16.vlgmr.msra.gmra.mrb[4].mxu0 %vm109_vm0, %v3943_v4  ;;  %4379 = vmatmul.mubr.msk.bf16.vlgmr.msra.gmra.mrb[4].mxu1 %vm109_vm0, %v3951_v6 }
  0x2c   :  { %4367 = vmatpush3.bf16.msra.mxu0 %v4862_v5  ;;  %4383 = vmatpush3.bf16.msra.mxu1 %v4863_v7 }
  0x2d   :  { %4368 = vmatprep.subr.bf16.mxu0 %v5072_v0  ;;  %4384 = vmatprep.subr.bf16.mxu1 %v5072_v0 }
  0x2e   :  { %4370 = vmatprep.mubr.msk.bf16.mxu0 %vm5073_vm1, %v5072_v0  ;;  %4386 = vmatprep.mubr.msk.bf16.mxu1 %vm5073_vm1, %v5072_v0 }
  0x30   :  { %4369 = vmatpush3.bf16.msra.mxu0 %v4864_v8  ;;  %4385 = vmatpush3.bf16.msra.mxu1 %v4865_v9 }
  0x31   :  { %4390 = vmatprep.subr.bf16.mxu0 %v5072_v0  ;;  %4398 = vmatprep.subr.bf16.mxu1 %v5072_v0 }
  0x37   :  { %4371 = vmatmul.mubr.msk.bf16.vlgmr.msra.gmra.mrb[4].mxu0 %vm109_vm0, %v3947_v10  ;;  %4387 = vmatmul.mubr.msk.bf16.vlgmr.msra.gmra.mrb[4].mxu1 %vm109_vm0, %v3955_v12  ;;  %v4872_v10 = vld [vmem:[%s6493_s7] sm:$0xff]   ;;  %v3973_v12 = vld [vmem:[%s6494_s1 + $0x8] sm:$0xf] }
  0x38   :  { %4391 = vmatpush3.bf16.msra.mxu0 %v4866_v11  ;;  %4399 = vmatpush3.bf16.msra.mxu1 %v4867_v13  ;;  %v4874_v13 = vld [vmem:[%s6496_s6] sm:$0xff]  }
  0x39   :  { %4392 = vmatprep.subr.bf16.mxu0 %v5072_v0  ;;  %4400 = vmatprep.subr.bf16.mxu1 %v5072_v0 }
  0x3a   :  { %4394 = vmatprep.mubr.msk.bf16.mxu0 %vm5073_vm1, %v5072_v0  ;;  %4402 = vmatprep.mubr.msk.bf16.mxu1 %vm5073_vm1, %v5072_v0 }
  0x3c   :  { %4393 = vmatpush3.bf16.msra.mxu0 %v4868_v14  ;;  %4401 = vmatpush3.bf16.msra.mxu1 %v4869_v15  ;;  %v3981_v14 = vld [vmem:[%s6495_s3 + $0x14] sm:$0xf]  ;;  %v4875_v15 = vld [vmem:[%s6497_s8] sm:$0xff]  }
  0x3d   :  { %4406 = vmatprep.subr.bf16.mxu0 %v5072_v0  ;;  %4422 = vmatprep.subr.bf16.mxu1 %v5072_v0 }
  0x7b   :  { %v5294_v53 = vpop.permute.xlu1 %457 }
  0x80   :  { %v5298_v55 = vpop.permute.xlu1 %558 }
  0xf5   :  { %v442_v24 = vpop.f32.mrb[0].mxu0  ;;  %v543_v27 = vpop.f32.mrb[0].mxu1 }
  0xf6   :  { %v4694_v26 = vadd.f32 %v5258_v23, %v442_v24  ;;  %v4348_v28 = vpop.f32.mrb[1].mxu0  ;;  %v4356_v29 = vpop.f32.mrb[1].mxu1  ;;  %v4695_v31 = vadd.f32 %v5263_v25, %v543_v27 }
  0xf7   :  { %v445_v30 = vpop.f32.mrb[2].mxu0  ;;  %v546_v32 = vpop.f32.mrb[2].mxu1 }
  0xf8   :  { %4942 = vtanh.f32 %v4694_v26  ;;  %v4349_v33 = vpop.f32.mrb[3].mxu0  ;;  %v4357_v34 = vpop.f32.mrb[3].mxu1  ;;  %v3935_v38 = vmul.f32 -1.442695, %v4694_v26  ;;  %v3939_v39 = vmul.f32 -1.442695, %v4695_v31 }
  0xf9   :  { %4944 = vtanh.f32 %v4695_v31 }
  0xfa   :  { %4946 = vpow2.f32 %v3935_v38 }
  0xfb   :  { %4948 = vpow2.f32 %v3939_v39 }
 0x102   :  { %v4943_v36 = vpop.eup %4942 }
 0x103   :  { %462 = vrot.lane.b32.xlu0 %v4943_v36, %s5076_s18  ;;  %v4945_v37 = vpop.eup %4944 }
 0x104   :  { %v4947_v40 = vpop.eup %4946 }
 0x105   :  { %v452_v41 = vadd.f32 1.0, %v4947_v40  ;;  %v4949_v42 = vpop.eup %4948 }
 0x106   :  { %v553_v43 = vadd.f32 1.0, %v4949_v42 }
 0x107   :  { %563 = vrot.lane.b32.xlu0 %v4945_v37, %s5076_s18  ;;  %4950 = vrcp.f32 %v452_v41 }
 0x108   :  { %4952 = vrcp.f32 %v553_v43 }
 0x111   :  { %v5276_v45 = vpop.eup %4950 }
 0x112   :  { %v5281_v48 = vpop.eup %4952  ;;  %v460_v54 = vmul.f32 %v5276_v45, %v5294_v53 }
 0x113   :  { %v561_v58 = vmul.f32 %v5281_v48, %v5298_v55 }
 0x175   :  { %v463_v46 = vpop.permute.xlu0 %462 }
 0x176   :  { %v465_v47 = vmul.f32 %v5276_v45, %v463_v46 }
 0x178   :  { %467 = vrot.lane.b32.xlu0 %v465_v47, %s5074_s21 }
 0x179   :  { %v564_v49 = vpop.permute.xlu0 %563 }
 0x17a   :  { %v566_v51 = vmul.f32 %v5281_v48, %v564_v49 }
 0x17c   :  { %568 = vrot.lane.b32.xlu1 %v566_v51, %s5074_s21  ;;  %479 = vperm.xlu0 %4844, %v5284_v50  }
 0x180   :  { %580 = vperm.xlu1 %4845, %v5291_v52  }
 0x1ea   :  { %v468_v56 = vpop.permute.xlu0 %467 }
 0x1eb   :  { %v5300_v57 = vadd.f32 %v468_v56, %v460_v54 }
 0x1ed   :  { %4954 = vtanh.f32 %v5300_v57 }
 0x1ee   :  { %v569_v59 = vpop.permute.xlu1 %568 }
 0x1ef   :  { %v5305_v60 = vadd.f32 %v569_v59, %v561_v58 }
 0x1f1   :  { %4956 = vtanh.f32 %v5305_v60 }
 0x1f7   :  { %v4955_v63 = vpop.eup %4954 }
 0x1f8   :  { %473 = vrot.lane.b32.xlu1 %v4955_v63, %s5076_s18  ;;  %v5432_v63 = vsel %vm3959_vm6, 1, %v5075_v35 }
 0x1fb   :  { %v4957_v3 = vpop.eup %4956  ;;  %v5388_v17 = vpop.permute.xlu0 %479 }
 0x1fc   :  { %484 = vrot.lane.b32.xlu1 %v5237_v19, %s5077_s29  ;;  %574 = vrot.lane.b32.xlu0 %v4957_v3, %s5076_s18  ;;  %vm481_vm4 = vcmp.eq.s32.totalorder %v5388_v17, 1 }
 0x1fd   :  { %v5446_v3 = vsel %vm481_vm4, %v5300_v57, %v5294_v53  ;;  %v4870_v57 = vld [vmem:[%s6492_s5] sm:$0xff]  }
 0x1ff   :  { %v5386_v16 = vpop.permute.xlu1 %580 }
 0x200   :  { %585 = vrot.lane.b32.xlu0 %v5241_v20, %s5077_s29  ;;  %vm582_vm5 = vcmp.eq.s32.totalorder %v5386_v16, 1 }
 0x201   :  { %v5456_v7 = vsel %vm582_vm5, %v5305_v60, %v5298_v55  ;;  %v4871_v55 = vld [vmem:[%s6492_s5 + $0x8] sm:$0xff]  }
 0x202   :  { %v4873_v60 = vld [vmem:[%s6493_s7 + $0x8] sm:$0xff]  }
 0x26a   :  { %v474_v18 = vpop.permute.xlu1 %473 }
 0x26b   :  { %v5391_v19 = vmul.f32 %v5276_v45, %v474_v18 }
 0x26e   :  { %v485_v20 = vpop.permute.xlu1 %484  ;;  %v575_v21 = vpop.permute.xlu0 %574 }
 0x26f   :  { %v5397_v22 = vsel %vm481_vm4, %v5391_v19, %v485_v20  ;;  %v5402_v26 = vmul.f32 %v5281_v48, %v575_v21  ;;  %v4876_v20 = vld [vmem:[%s6496_s6 + $0x8] sm:$0xff]  }
 0x270   :  { %v862_v24 = vpack.c.bf16 %v5397_v22, %v5397_v22  ;;  %v4877_v21 = vld [vmem:[%s6497_s8 + $0x8] sm:$0xff]  }
 0x272   :  { %868 = vrot.lane.b32.xlu1 %v862_v24, %s5074_s21  ;;  %v586_v27 = vpop.permute.xlu0 %585  ;;  %v3977_v24 = vld [vmem:[%s6500_s2 + $0x8] sm:$0xf] }
 0x273   :  { %v5409_v28 = vsel %vm582_vm5, %v5402_v26, %v586_v27  ;;  %v4878_v27 = vld [vmem:[%s6498_s9] sm:$0xff]  }
 0x274   :  { %v958_v29 = vpack.c.bf16 %v5409_v28, %v5409_v28 }
 0x276   :  { %964 = vrot.lane.b32.xlu0 %v958_v29, %s5074_s21  ;;  %v3985_v29 = vld [vmem:[%s6501_s4 + $0x14] sm:$0xf] }
 0x2e4   :  { %v869_v30 = vpop.permute.xlu1 %868 }
 0x2e5   :  { %4395 = vmatmul.mubr.msk.bf16.vlgmr.msra.gmra.mrb[4].mxu0 %vm109_vm0, %v869_v30  ;;  %v4879_v30 = vld [vmem:[%s6499_s10] sm:$0xff]  }
 0x2e6   :  { %4410 = vmatprep.mubr.msk.bf16.mxu0 %vm5073_vm1, %v5072_v0  ;;  %4407 = vmatpush3.bf16.msra.mxu0 %v4870_v57 }
 0x2e7   :  { %4408 = vmatprep.subr.bf16.mxu0 %v5072_v0 }
 0x2e8   :  { %v965_v31 = vpop.permute.xlu0 %964 }
 0x2e9   :  { %4403 = vmatmul.mubr.msk.bf16.vlgmr.msra.gmra.mrb[4].mxu1 %vm109_vm0, %v965_v31  ;;  %v4880_v31 = vld [vmem:[%s6498_s9 + $0x8] sm:$0xff]  }
 0x2ea   :  { %4426 = vmatprep.mubr.msk.bf16.mxu1 %vm5073_vm1, %v5072_v0  ;;  %4423 = vmatpush3.bf16.msra.mxu1 %v4872_v10 }
 0x2eb   :  { %4424 = vmatprep.subr.bf16.mxu1 %v5072_v0  ;;  %4409 = vmatpush3.bf16.msra.mxu0 %v4871_v55 }
 0x2ec   :  { %4414 = vmatprep.subr.bf16.mxu0 %v5072_v0 }
 0x2ee   :  { %4425 = vmatpush3.bf16.msra.mxu1 %v4873_v60  ;;  %4411 = vmatmul.mubr.msk.bf16.vlgmr.msra.gmra.mrb[8].mxu0 %vm109_vm0, %v3973_v12 }
 0x2ef   :  { %4430 = vmatprep.subr.bf16.mxu1 %v5072_v0  ;;  %4415 = vmatpush3.bf16.msra.mxu0 %v4874_v13  ;;  %v5586_v13 = vsel %vm3989_vm10, 1, %v5075_v35 }
 0x2f0   :  { %4416 = vmatprep.subr.bf16.mxu0 %v5072_v0  ;;  %4418 = vmatprep.mubr.msk.bf16.mxu0 %vm5073_vm1, %v5072_v0 }
 0x2f1   :  { %4427 = vmatmul.mubr.msk.bf16.vlgmr.msra.gmra.mrb[8].mxu1 %vm109_vm0, %v3981_v14 }
 0x2f2   :  { %4431 = vmatpush3.bf16.msra.mxu1 %v4875_v15  ;;  %4434 = vmatprep.mubr.msk.bf16.mxu1 %vm5073_vm1, %v5072_v0  ;;  %v5593_v15 = vsel %vm3990_vm11, 1, %v5075_v35 }
 0x2f3   :  { %4432 = vmatprep.subr.bf16.mxu1 %v5072_v0  ;;  %4417 = vmatpush3.bf16.msra.mxu0 %v4876_v20 }
 0x2f4   :  { %4438 = vmatprep.subr.bf16.mxu0 %v5072_v0 }
 0x2f6   :  { %4433 = vmatpush3.bf16.msra.mxu1 %v4877_v21 }
 0x2f7   :  { %4446 = vmatprep.subr.bf16.mxu1 %v5072_v0 }
 0x2fa   :  { %4419 = vmatmul.mubr.msk.bf16.vlgmr.msra.gmra.mrb[8].mxu0 %vm109_vm0, %v3977_v24 }
 0x2fb   :  { %4439 = vmatpush3.bf16.msra.mxu0 %v4878_v27  ;;  %4442 = vmatprep.mubr.msk.bf16.mxu0 %vm5073_vm1, %v5072_v0 }
 0x2fc   :  { %4440 = vmatprep.subr.bf16.mxu0 %v5072_v0 }
 0x2fd   :  { %4435 = vmatmul.mubr.msk.bf16.vlgmr.msra.gmra.mrb[8].mxu1 %vm109_vm0, %v3985_v29 }
 0x2fe   :  { %4447 = vmatpush3.bf16.msra.mxu1 %v4879_v30  ;;  %4450 = vmatprep.mubr.msk.bf16.mxu1 %vm5073_vm1, %v5072_v0 }
 0x2ff   :  { %4448 = vmatprep.subr.bf16.mxu1 %v5072_v0  ;;  %4441 = vmatpush3.bf16.msra.mxu0 %v4880_v31  ;;  %v4884_v31 = vld [vmem:[%s6493_s7] sm:$0xff]  }
 0x300   :  { %4454 = vmatprep.subr.bf16.mxu0 %v5072_v0 }
 0x3b8   :  { %v919_v32 = vpop.f32.mrb[4].mxu0 }
 0x3b9   :  { %v4696_v33 = vadd.f32 %v5258_v23, %v919_v32  ;;  %v4396_v34 = vpop.f32.mrb[5].mxu0  ;;  %v4881_v32 = vld [vmem:[%s6499_s10 + $0x8] sm:$0xff]  }
 0x3ba   :  { %v922_v36 = vpop.f32.mrb[6].mxu0  ;;  %4449 = vmatpush3.bf16.msra.mxu1 %v4881_v32 }
 0x3bb   :  { %4958 = vtanh.f32 %v4696_v33  ;;  %v4397_v37 = vpop.f32.mrb[7].mxu0  ;;  %v3964_v46 = vmul.f32 -1.442695, %v4696_v33  ;;  %4470 = vmatprep.subr.bf16.mxu1 %v5072_v0 }
 0x3bc   :  { %v1015_v38 = vpop.f32.mrb[4].mxu1 }
 0x3bd   :  { %v4697_v39 = vadd.f32 %v5263_v25, %v1015_v38  ;;  %v4404_v40 = vpop.f32.mrb[5].mxu1 }
 0x3be   :  { %v1018_v41 = vpop.f32.mrb[6].mxu1 }
 0x3bf   :  { %4960 = vtanh.f32 %v4697_v39  ;;  %v4405_v42 = vpop.f32.mrb[7].mxu1  ;;  %v3968_v47 = vmul.f32 -1.442695, %v4697_v39 }
 0x3c0   :  { %4962 = vpow2.f32 %v3964_v46 }
 0x3c1   :  { %4964 = vpow2.f32 %v3968_v47 }
 0x3c5   :  { %v4959_v43 = vpop.eup %4958 }
 0x3c6   :  { %935 = vrot.lane.b32.xlu1 %v4959_v43, %s5076_s18 }
 0x3c9   :  { %v4961_v45 = vpop.eup %4960 }
 0x3ca   :  { %1031 = vrot.lane.b32.xlu0 %v4961_v45, %s5076_s18  ;;  %v4963_v48 = vpop.eup %4962 }
 0x3cb   :  { %v929_v49 = vadd.f32 1.0, %v4963_v48  ;;  %v4965_v51 = vpop.eup %4964 }
 0x3cc   :  { %v1025_v54 = vadd.f32 1.0, %v4965_v51 }
 0x3cd   :  { %4966 = vrcp.f32 %v929_v49 }
 0x3ce   :  { %4968 = vrcp.f32 %v1025_v54 }
 0x3d7   :  { %v5424_v56 = vpop.eup %4966 }
 0x3d8   :  { %v5429_v61 = vpop.eup %4968  ;;  %v933_v4 = vmul.f32 %v5424_v56, %v5446_v3 }
 0x3d9   :  { %v1029_v8 = vmul.f32 %v5429_v61, %v5456_v7 }
 0x438   :  { %v936_v58 = vpop.permute.xlu1 %935 }
 0x439   :  { %v938_v59 = vmul.f32 %v5424_v56, %v936_v58 }
 0x43b   :  { %940 = vrot.lane.b32.xlu1 %v938_v59, %s5074_s21 }
 0x43c   :  { %v1032_v62 = vpop.permute.xlu0 %1031 }
 0x43d   :  { %v1034_v1 = vmul.f32 %v5429_v61, %v1032_v62 }
 0x43f   :  { %952 = vperm.xlu1 %4845, %v5432_v63   ;;  %1036 = vrot.lane.b32.xlu0 %v1034_v1, %s5074_s21 }
 0x443   :  { %1048 = vperm.xlu0 %4844, %v5439_v2  }
 0x4ad   :  { %v941_v5 = vpop.permute.xlu1 %940 }
 0x4ae   :  { %v5450_v6 = vadd.f32 %v941_v5, %v933_v4 }
 0x4b0   :  { %4970 = vtanh.f32 %v5450_v6 }
 0x4b1   :  { %v1037_v9 = vpop.permute.xlu0 %1036 }
 0x4b2   :  { %v5461_v53 = vadd.f32 %v1037_v9, %v1029_v8 }
 0x4b4   :  { %4972 = vtanh.f32 %v5461_v53 }
 0x4ba   :  { %v4971_v11 = vpop.eup %4970 }
 0x4bb   :  { %946 = vrot.lane.b32.xlu1 %v4971_v11, %s5076_s18 }
 0x4be   :  { %v4973_v18 = vpop.eup %4972  ;;  %v5538_v33 = vpop.permute.xlu1 %952 }
 0x4bf   :  { %1042 = vrot.lane.b32.xlu0 %v4973_v18, %s5076_s18  ;;  %vm954_vm8 = vcmp.eq.s32.totalorder %v5538_v33, 1 }
 0x4c0   :  { %v5600_v18 = vsel %vm954_vm8, %v5450_v6, %v5446_v3  ;;  %v4882_v6 = vld [vmem:[%s6492_s5] sm:$0xff]  }
 0x4c2   :  { %v5540_v34 = vpop.permute.xlu0 %1048 }
 0x4c3   :  { %vm1050_vm9 = vcmp.eq.s32.totalorder %v5540_v34, 1 }
 0x4c4   :  { %v5610_v27 = vsel %vm1050_vm9, %v5461_v53, %v5456_v7  ;;  %v4883_v7 = vld [vmem:[%s6492_s5 + $0x8] sm:$0xff]  }
 0x4c5   :  { %v4885_v53 = vld [vmem:[%s6493_s7 + $0x8] sm:$0xff]  }
 0x52d   :  { %v947_v36 = vpop.permute.xlu1 %946 }
 0x52e   :  { %v5543_v37 = vmul.f32 %v5424_v56, %v947_v36  ;;  %v4003_v36 = vld [vmem:[%s6494_s1 + $0xc] sm:$0xf] }
 0x530   :  { %v5550_v38 = vsel %vm954_vm8, %v5543_v37, %v5397_v22 }
 0x531   :  { %v1043_v39 = vpop.permute.xlu0 %1042  ;;  %v1326_v40 = vpack.c.bf16 %v5550_v38, %v5550_v38 }
 0x532   :  { %v5555_v41 = vmul.f32 %v5429_v61, %v1043_v39  ;;  %v4886_v39 = vld [vmem:[%s6496_s6] sm:$0xff]  }
 0x533   :  { %1332 = vrot.lane.b32.xlu1 %v1326_v40, %s5074_s21  ;;  %v4011_v40 = vld [vmem:[%s6495_s3 + $0x10] sm:$0xf] }
 0x534   :  { %v5563_v42 = vsel %vm1050_vm9, %v5555_v41, %v5409_v28  ;;  %v1051_v17 = vsel %vm1050_vm9, %v5555_v41, 0.0 }
 0x535   :  { %v1422_v22 = vpack.c.bf16 %v5563_v42, %v5563_v42  ;;  %v4153_v16 = vpack.c.bf16 %v1051_v17, %v1051_v17 }
 0x537   :  { %1428 = vrot.lane.b32.xlu0 %v1422_v22, %s5074_s21  ;;  %v4887_v22 = vld [vmem:[%s6497_s8] sm:$0xff]  }
 0x5a5   :  { %v1333_v43 = vpop.permute.xlu1 %1332 }
 0x5a6   :  { %4443 = vmatmul.mubr.msk.bf16.vlgmr.msra.gmra.mrb[8].mxu0 %vm109_vm0, %v1333_v43 }
 0x5a7   :  { %4458 = vmatprep.mubr.msk.bf16.mxu0 %vm5073_vm1, %v5072_v0  ;;  %4455 = vmatpush3.bf16.msra.mxu0 %v4882_v6 }
 0x5a8   :  { %4456 = vmatprep.subr.bf16.mxu0 %v5072_v0 }
 0x5a9   :  { %v1429_v45 = vpop.permute.xlu0 %1428 }
 0x5aa   :  { %4451 = vmatmul.mubr.msk.bf16.vlgmr.msra.gmra.mrb[8].mxu1 %vm109_vm0, %v1429_v45  ;;  %v4888_v45 = vld [vmem:[%s6496_s6 + $0x8] sm:$0xff]  }
 0x5ab   :  { %4474 = vmatprep.mubr.msk.bf16.mxu1 %vm5073_vm1, %v5072_v0  ;;  %4471 = vmatpush3.bf16.msra.mxu1 %v4884_v31 }
 0x5ac   :  { %4472 = vmatprep.subr.bf16.mxu1 %v5072_v0  ;;  %4457 = vmatpush3.bf16.msra.mxu0 %v4883_v7 }
 0x5ad   :  { %4462 = vmatprep.subr.bf16.mxu0 %v5072_v0 }
 0x5af   :  { %4473 = vmatpush3.bf16.msra.mxu1 %v4885_v53  ;;  %4459 = vmatmul.mubr.msk.bf16.vlgmr.msra.gmra.mrb[12].mxu0 %vm109_vm0, %v4003_v36 }
 0x5b0   :  { %4478 = vmatprep.subr.bf16.mxu1 %v5072_v0  ;;  %4463 = vmatpush3.bf16.msra.mxu0 %v4886_v39 }
 0x5b1   :  { %4464 = vmatprep.subr.bf16.mxu0 %v5072_v0  ;;  %4466 = vmatprep.mubr.msk.bf16.mxu0 %vm5073_vm1, %v5072_v0 }
 0x5b2   :  { %4475 = vmatmul.mubr.msk.bf16.vlgmr.msra.gmra.mrb[12].mxu1 %vm109_vm0, %v4011_v40 }
 0x5b3   :  { %4479 = vmatpush3.bf16.msra.mxu1 %v4887_v22  ;;  %4482 = vmatprep.mubr.msk.bf16.mxu1 %vm5073_vm1, %v5072_v0 }
 0x5b4   :  { %4480 = vmatprep.subr.bf16.mxu1 %v5072_v0  ;;  %4465 = vmatpush3.bf16.msra.mxu0 %v4888_v45 }
 0x5b5   :  { %4486 = vmatprep.subr.bf16.mxu0 %v5072_v0 }
 0x679   :  { %v1383_v46 = vpop.f32.mrb[8].mxu0 }
 0x67a   :  { %v4698_v28 = vadd.f32 %v5258_v23, %v1383_v46  ;;  %v4444_v47 = vpop.f32.mrb[9].mxu0  ;;  %v4889_v46 = vld [vmem:[%s6497_s8 + $0x8] sm:$0xff]  }
 0x67b   :  { %v1386_v48 = vpop.f32.mrb[10].mxu0  ;;  %4481 = vmatpush3.bf16.msra.mxu1 %v4889_v46  ;;  %v4890_v47 = vld [vmem:[%s6498_s9] sm:$0xff]  }
 0x67c   :  { %4974 = vtanh.f32 %v4698_v28  ;;  %v4445_v49 = vpop.f32.mrb[11].mxu0  ;;  %v3994_v1 = vmul.f32 -1.442695, %v4698_v28  ;;  %4494 = vmatprep.subr.bf16.mxu1 %v5072_v0  ;;  %v4007_v28 = vld [vmem:[%s6500_s2 + $0xc] sm:$0xf] }
 0x67d   :  { %v1479_v51 = vpop.f32.mrb[8].mxu1  ;;  %v4015_v48 = vld [vmem:[%s6501_s4 + $0x10] sm:$0xf]  ;;  %v4891_v49 = vld [vmem:[%s6499_s10] sm:$0xff]   ;;  %4467 = vmatmul.mubr.msk.bf16.vlgmr.msra.gmra.mrb[12].mxu0 %vm109_vm0, %v4007_v28  ;;  %v5740_v28 = vsel %vm4019_vm14, 1, %v5075_v35 }
 0x67e   :  { %v4699_v54 = vadd.f32 %v5263_v25, %v1479_v51  ;;  %v4452_v56 = vpop.f32.mrb[9].mxu1  ;;  %4483 = vmatmul.mubr.msk.bf16.vlgmr.msra.gmra.mrb[12].mxu1 %vm109_vm0, %v4015_v48  ;;  %4487 = vmatpush3.bf16.msra.mxu0 %v4890_v47  ;;  %v4892_v51 = vld [vmem:[%s6498_s9 + $0x8] sm:$0xff]   ;;  %v5747_v48 = vsel %vm4020_vm15, 1, %v5075_v35 }
 0x67f   :  { %v1482_v58 = vpop.f32.mrb[10].mxu1  ;;  %4495 = vmatpush3.bf16.msra.mxu1 %v4891_v49  ;;  %4488 = vmatprep.subr.bf16.mxu0 %v5072_v0 }
 0x680   :  { %4976 = vtanh.f32 %v4699_v54  ;;  %v4453_v59 = vpop.f32.mrb[11].mxu1  ;;  %v3998_v4 = vmul.f32 -1.442695, %v4699_v54  ;;  %4496 = vmatprep.subr.bf16.mxu1 %v5072_v0  ;;  %4490 = vmatprep.mubr.msk.bf16.mxu0 %vm5073_vm1, %v5072_v0  ;;  %v4893_v54 = vld [vmem:[%s6499_s10 + $0x8] sm:$0xff]  }
 0x681   :  { %4978 = vpow2.f32 %v3994_v1  ;;  %4498 = vmatprep.mubr.msk.bf16.mxu1 %vm5073_vm1, %v5072_v0 }
 0x682   :  { %4980 = vpow2.f32 %v3998_v4  ;;  %4489 = vmatpush3.bf16.msra.mxu0 %v4892_v51 }
 0x683   :  { %4502 = vmatprep.subr.bf16.mxu0 %v5072_v0  ;;  %4497 = vmatpush3.bf16.msra.mxu1 %v4893_v54 }
 0x684   :  { %4518 = vmatprep.subr.bf16.mxu1 %v5072_v0 }
 0x686   :  { %v4975_v61 = vpop.eup %4974 }
 0x687   :  { %1399 = vrot.lane.b32.xlu1 %v4975_v61, %s5076_s18 }
 0x68a   :  { %v4977_v62 = vpop.eup %4976 }
 0x68b   :  { %1495 = vrot.lane.b32.xlu0 %v4977_v62, %s5076_s18  ;;  %v4979_v5 = vpop.eup %4978 }
 0x68c   :  { %v1393_v8 = vadd.f32 1.0, %v4979_v5  ;;  %v4981_v9 = vpop.eup %4980 }
 0x68d   :  { %v1489_v57 = vadd.f32 1.0, %v4981_v9 }
 0x68e   :  { %4982 = vrcp.f32 %v1393_v8 }
 0x68f   :  { %4984 = vrcp.f32 %v1489_v57 }
 0x698   :  { %v5578_v10 = vpop.eup %4982 }
 0x699   :  { %v5583_v11 = vpop.eup %4984  ;;  %v1397_v20 = vmul.f32 %v5578_v10, %v5600_v18 }
 0x69a   :  { %v1493_v29 = vmul.f32 %v5583_v11, %v5610_v27 }
 0x6f9   :  { %v1400_v55 = vpop.permute.xlu1 %1399 }
 0x6fa   :  { %v1402_v60 = vmul.f32 %v5578_v10, %v1400_v55 }
 0x6fc   :  { %1404 = vrot.lane.b32.xlu1 %v1402_v60, %s5074_s21 }
 0x6fd   :  { %v1496_v12 = vpop.permute.xlu0 %1495 }
 0x6fe   :  { %v1498_v14 = vmul.f32 %v5583_v11, %v1496_v12 }
 0x700   :  { %1416 = vperm.xlu1 %4845, %v5586_v13   ;;  %1500 = vrot.lane.b32.xlu0 %v1498_v14, %s5074_s21 }
 0x704   :  { %1512 = vperm.xlu0 %4844, %v5593_v15  }
 0x76e   :  { %v1405_v21 = vpop.permute.xlu1 %1404 }
 0x76f   :  { %v5604_v24 = vadd.f32 %v1405_v21, %v1397_v20 }
 0x771   :  { %4986 = vtanh.f32 %v5604_v24 }
 0x772   :  { %v1501_v30 = vpop.permute.xlu0 %1500 }
 0x773   :  { %v5615_v3 = vadd.f32 %v1501_v30, %v1493_v29 }
 0x775   :  { %4988 = vtanh.f32 %v5615_v3 }
 0x77b   :  { %v4987_v32 = vpop.eup %4986 }
 0x77c   :  { %1410 = vrot.lane.b32.xlu1 %v4987_v32, %s5076_s18 }
 0x77f   :  { %v4989_v43 = vpop.eup %4988  ;;  %v5692_v56 = vpop.permute.xlu1 %1416 }
 0x780   :  { %1506 = vrot.lane.b32.xlu0 %v4989_v43, %s5076_s18  ;;  %vm1418_vm12 = vcmp.eq.s32.totalorder %v5692_v56, 1 }
 0x781   :  { %v5754_v49 = vsel %vm1418_vm12, %v5604_v24, %v5600_v18  ;;  %v4894_v24 = vld [vmem:[%s6492_s5] sm:$0xff]  }
 0x783   :  { %v5694_v58 = vpop.permute.xlu0 %1512 }
 0x784   :  { %vm1514_vm13 = vcmp.eq.s32.totalorder %v5694_v58, 1 }
 0x785   :  { %v5764_v35 = vsel %vm1514_vm13, %v5615_v3, %v5610_v27  ;;  %v4895_v27 = vld [vmem:[%s6492_s5 + $0x8] sm:$0xff]  }
 0x786   :  { %v4897_v3 = vld [vmem:[%s6493_s7 + $0x8] sm:$0xff]  }
 0x7ee   :  { %v1411_v59 = vpop.permute.xlu1 %1410 }
 0x7ef   :  { %v5697_v61 = vmul.f32 %v5578_v10, %v1411_v59 }
 0x7f1   :  { %v5704_v62 = vsel %vm1418_vm12, %v5697_v61, %v5550_v38 }
 0x7f2   :  { %v1507_v1 = vpop.permute.xlu0 %1506  ;;  %v1790_v4 = vpack.c.bf16 %v5704_v62, %v5704_v62 }
 0x7f3   :  { %v5709_v5 = vmul.f32 %v5583_v11, %v1507_v1 }
 0x7f4   :  { %1796 = vrot.lane.b32.xlu1 %v1790_v4, %s5074_s21  ;;  %v4896_v4 = vld [vmem:[%s6493_s7] sm:$0xff]  }
 0x7f5   :  { %v5717_v8 = vsel %vm1514_vm13, %v5709_v5, %v5563_v42  ;;  %v1515_v33 = vsel %vm1514_vm13, %v5709_v5, 0.0 }
 0x7f6   :  { %v1886_v38 = vpack.c.bf16 %v5717_v8, %v5717_v8  ;;  %v4155_v34 = vpack.c.bf16 %v1515_v33, %v1515_v33 }
 0x7f8   :  { %1892 = vrot.lane.b32.xlu0 %v1886_v38, %s5074_s21 }
 0x866   :  { %v1797_v9 = vpop.permute.xlu1 %1796 }
 0x867   :  { %4491 = vmatmul.mubr.msk.bf16.vlgmr.msra.gmra.mrb[12].mxu0 %vm109_vm0, %v1797_v9  ;;  %v4033_v9 = vld [vmem:[%s6494_s1 + $0x10] sm:$0xf] }
 0x868   :  { %4506 = vmatprep.mubr.msk.bf16.mxu0 %vm5073_vm1, %v5072_v0  ;;  %4503 = vmatpush3.bf16.msra.mxu0 %v4894_v24 }
 0x869   :  { %4504 = vmatprep.subr.bf16.mxu0 %v5072_v0 }
 0x86a   :  { %v1893_v57 = vpop.permute.xlu0 %1892 }
 0x86b   :  { %4499 = vmatmul.mubr.msk.bf16.vlgmr.msra.gmra.mrb[12].mxu1 %vm109_vm0, %v1893_v57  ;;  %v4898_v57 = vld [vmem:[%s6496_s6] sm:$0xff]  }
 0x86c   :  { %4522 = vmatprep.mubr.msk.bf16.mxu1 %vm5073_vm1, %v5072_v0  ;;  %4519 = vmatpush3.bf16.msra.mxu1 %v4896_v4 }
 0x86d   :  { %4520 = vmatprep.subr.bf16.mxu1 %v5072_v0  ;;  %4505 = vmatpush3.bf16.msra.mxu0 %v4895_v27 }
 0x86e   :  { %4510 = vmatprep.subr.bf16.mxu0 %v5072_v0 }
 0x870   :  { %4521 = vmatpush3.bf16.msra.mxu1 %v4897_v3  ;;  %4507 = vmatmul.mubr.msk.bf16.vlgmr.msra.gmra.mrb[16].mxu0 %vm109_vm0, %v4033_v9 }
 0x871   :  { %4526 = vmatprep.subr.bf16.mxu1 %v5072_v0  ;;  %4511 = vmatpush3.bf16.msra.mxu0 %v4898_v57 }
 0x872   :  { %4512 = vmatprep.subr.bf16.mxu0 %v5072_v0  ;;  %4514 = vmatprep.mubr.msk.bf16.mxu0 %vm5073_vm1, %v5072_v0 }
 0x93a   :  { %v1847_v10 = vpop.f32.mrb[12].mxu0 }
 0x93b   :  { %v4700_v42 = vadd.f32 %v5258_v23, %v1847_v10  ;;  %v4492_v55 = vpop.f32.mrb[13].mxu0  ;;  %v4041_v10 = vld [vmem:[%s6495_s3 + $0xc] sm:$0xf] }
 0x93c   :  { %v1850_v60 = vpop.f32.mrb[14].mxu0  ;;  %4523 = vmatmul.mubr.msk.bf16.vlgmr.msra.gmra.mrb[16].mxu1 %vm109_vm0, %v4041_v10 }
 0x93d   :  { %4990 = vtanh.f32 %v4700_v42  ;;  %v4493_v11 = vpop.f32.mrb[15].mxu0  ;;  %v4024_v31 = vmul.f32 -1.442695, %v4700_v42  ;;  %v4899_v42 = vld [vmem:[%s6497_s8] sm:$0xff]   ;;  %v4900_v60 = vld [vmem:[%s6496_s6 + $0x8] sm:$0xff]   ;;  %4530 = vmatprep.mubr.msk.bf16.mxu1 %vm5073_vm1, %v5072_v0 }
 0x93e   :  { %v1943_v12 = vpop.f32.mrb[12].mxu1  ;;  %4527 = vmatpush3.bf16.msra.mxu1 %v4899_v42  ;;  %v4901_v11 = vld [vmem:[%s6497_s8 + $0x8] sm:$0xff]   ;;  %4513 = vmatpush3.bf16.msra.mxu0 %v4900_v60 }
 0x93f   :  { %v4701_v14 = vadd.f32 %v5263_v25, %v1943_v12  ;;  %v4500_v20 = vpop.f32.mrb[13].mxu1  ;;  %4528 = vmatprep.subr.bf16.mxu1 %v5072_v0  ;;  %4534 = vmatprep.subr.bf16.mxu0 %v5072_v0  ;;  %v4037_v12 = vld [vmem:[%s6500_s2 + $0x10] sm:$0xf] }
 0x940   :  { %v1946_v21 = vpop.f32.mrb[14].mxu1  ;;  %v4045_v20 = vld [vmem:[%s6501_s4 + $0xc] sm:$0xf] }
 0x941   :  { %4992 = vtanh.f32 %v4701_v14  ;;  %v4501_v29 = vpop.f32.mrb[15].mxu1  ;;  %v4028_v7 = vmul.f32 -1.442695, %v4701_v14  ;;  %v4902_v14 = vld [vmem:[%s6498_s9] sm:$0xff]   ;;  %4515 = vmatmul.mubr.msk.bf16.vlgmr.msra.gmra.mrb[16].mxu0 %vm109_vm0, %v4037_v12 }
 0x942   :  { %4994 = vpow2.f32 %v4024_v31  ;;  %4529 = vmatpush3.bf16.msra.mxu1 %v4901_v11  ;;  %v4903_v21 = vld [vmem:[%s6499_s10] sm:$0xff]   ;;  %4535 = vmatpush3.bf16.msra.mxu0 %v4902_v14  ;;  %v4904_v29 = vld [vmem:[%s6498_s9 + $0x8] sm:$0xff]  }
 0x943   :  { %4996 = vpow2.f32 %v4028_v7  ;;  %4542 = vmatprep.subr.bf16.mxu1 %v5072_v0  ;;  %4536 = vmatprep.subr.bf16.mxu0 %v5072_v0 }
 0x944   :  { %4538 = vmatprep.mubr.msk.bf16.mxu0 %vm5073_vm1, %v5072_v0 }
 0x946   :  { %4537 = vmatpush3.bf16.msra.mxu0 %v4904_v29 }
 0x947   :  { %v4991_v30 = vpop.eup %4990  ;;  %4550 = vmatprep.subr.bf16.mxu0 %v5072_v0 }
 0x948   :  { %1863 = vrot.lane.b32.xlu1 %v4991_v30, %s5076_s18  ;;  %4531 = vmatmul.mubr.msk.bf16.vlgmr.msra.gmra.mrb[16].mxu1 %vm109_vm0, %v4045_v20  ;;  %v4905_v30 = vld [vmem:[%s6499_s10 + $0x8] sm:$0xff]  }
 0x949   :  { %4543 = vmatpush3.bf16.msra.mxu1 %v4903_v21  ;;  %4546 = vmatprep.mubr.msk.bf16.mxu1 %vm5073_vm1, %v5072_v0 }
 0x94a   :  { %4544 = vmatprep.subr.bf16.mxu1 %v5072_v0 }
 0x94b   :  { %v4993_v6 = vpop.eup %4992 }
 0x94c   :  { %1959 = vrot.lane.b32.xlu0 %v4993_v6, %s5076_s18  ;;  %v4995_v53 = vpop.eup %4994 }
 0x94d   :  { %v1857_v32 = vadd.f32 1.0, %v4995_v53  ;;  %v4997_v36 = vpop.eup %4996  ;;  %4545 = vmatpush3.bf16.msra.mxu1 %v4905_v30 }
 0x94e   :  { %v1953_v39 = vadd.f32 1.0, %v4997_v36  ;;  %4566 = vmatprep.subr.bf16.mxu1 %v5072_v0 }
 0x94f   :  { %4998 = vrcp.f32 %v1857_v32 }
 0x950   :  { %5000 = vrcp.f32 %v1953_v39 }
 0x959   :  { %v5732_v40 = vpop.eup %4998 }
 0x95a   :  { %v5737_v45 = vpop.eup %5000  ;;  %v1861_v51 = vmul.f32 %v5732_v40, %v5754_v49 }
 0x95b   :  { %v1957_v59 = vmul.f32 %v5737_v45, %v5764_v35 }
 0x9ba   :  { %v1864_v22 = vpop.permute.xlu1 %1863 }
 0x9bb   :  { %v1866_v43 = vmul.f32 %v5732_v40, %v1864_v22 }
 0x9bd   :  { %1868 = vrot.lane.b32.xlu1 %v1866_v43, %s5074_s21 }
 0x9be   :  { %v1960_v46 = vpop.permute.xlu0 %1959 }
 0x9bf   :  { %v1962_v47 = vmul.f32 %v5737_v45, %v1960_v46 }
 0x9c1   :  { %1880 = vperm.xlu1 %4845, %v5740_v28   ;;  %1964 = vrot.lane.b32.xlu0 %v1962_v47, %s5074_s21 }
 0x9c5   :  { %1976 = vperm.xlu0 %4844, %v5747_v48  }
 0xa2f   :  { %v1869_v54 = vpop.permute.xlu1 %1868 }
 0xa30   :  { %v5758_v44 = vadd.f32 %v1869_v54, %v1861_v51 }
 0xa32   :  { %5002 = vtanh.f32 %v5758_v44 }
 0xa33   :  { %v1965_v1 = vpop.permute.xlu0 %1964 }
 0xa34   :  { %v5769_v18 = vadd.f32 %v1965_v1, %v1957_v59 }
 0xa36   :  { %5004 = vtanh.f32 %v5769_v18 }
 0xa3c   :  { %v5003_v38 = vpop.eup %5002 }
 0xa3d   :  { %1874 = vrot.lane.b32.xlu1 %v5003_v38, %s5076_s18 }
 0xa40   :  { %v5005_v55 = vpop.eup %5004  ;;  %v5846_v6 = vpop.permute.xlu1 %1880 }
 0xa41   :  { %1970 = vrot.lane.b32.xlu0 %v5005_v55, %s5076_s18  ;;  %vm1882_vm2 = vcmp.eq.s32.totalorder %v5846_v6, 1 }
 0xa42   :  { %v5900_v21 = vsel %vm1882_vm2, %v5758_v44, %v5754_v49  ;;  %v4906_v44 = vld [vmem:[%s6492_s5] sm:$0xff]  }
 0xa44   :  { %v5848_v31 = vpop.permute.xlu0 %1976 }
 0xa45   :  { %vm1978_vm3 = vcmp.eq.s32.totalorder %v5848_v31, 1 }
 0xaaf   :  { %v1875_v7 = vpop.permute.xlu1 %1874 }
 0xab0   :  { %v5851_v53 = vmul.f32 %v5732_v40, %v1875_v7 }
 0xab2   :  { %v5858_v32 = vsel %vm1882_vm2, %v5851_v53, %v5704_v62 }
 0xab3   :  { %v1971_v36 = vpop.permute.xlu0 %1970  ;;  %v2254_v39 = vpack.c.bf16 %v5858_v32, %v5858_v32 }
 0xab4   :  { %v5863_v22 = vmul.f32 %v5737_v45, %v1971_v36 }
 0xab5   :  { %2260 = vrot.lane.b32.xlu1 %v2254_v39, %s5074_s21  ;;  %v4908_v39 = vld [vmem:[%s6493_s7] sm:$0xff]  }
 0xab6   :  { %v5871_v40 = vsel %vm1978_vm3, %v5863_v22, %v5717_v8  ;;  %v1979_v56 = vsel %vm1978_vm3, %v5863_v22, 0.0 }
 0xab7   :  { %v2350_v62 = vpack.c.bf16 %v5871_v40, %v5871_v40  ;;  %v4157_v58 = vpack.c.bf16 %v1979_v56, %v1979_v56 }
 0xab9   :  { %2356 = vrot.lane.b32.xlu0 %v2350_v62, %s5074_s21 }
 0xb27   :  { %v2261_v43 = vpop.permute.xlu1 %2260 }
 0xb28   :  { %4539 = vmatmul.mubr.msk.bf16.vlgmr.msra.gmra.mrb[16].mxu0 %vm109_vm0, %v2261_v43  ;;  %v4063_v43 = vld [vmem:[%s6494_s1 + $0x14] sm:$0xf] }
 0xb29   :  { %4554 = vmatprep.mubr.msk.bf16.mxu0 %vm5073_vm1, %v5072_v0  ;;  %4551 = vmatpush3.bf16.msra.mxu0 %v4906_v44  ;;  %v6037_v44 = vld [vmem:[%s6503_s12] ss:$0 sm:$0xff] }
 0xb2a   :  { %4552 = vmatprep.subr.bf16.mxu0 %v5072_v0 }
 0xb2b   :  { %v2357_v45 = vpop.permute.xlu0 %2356 }
 0xb2c   :  { %4547 = vmatmul.mubr.msk.bf16.vlgmr.msra.gmra.mrb[16].mxu1 %vm109_vm0, %v2357_v45  ;;  %v4910_v45 = vld [vmem:[%s6496_s6] sm:$0xff]  }
 0xb2d   :  { %4570 = vmatprep.mubr.msk.bf16.mxu1 %vm5073_vm1, %v5072_v0  ;;  %4567 = vmatpush3.bf16.msra.mxu1 %v4908_v39 }
 0xb2e   :  { %4568 = vmatprep.subr.bf16.mxu1 %v5072_v0 }
 0xbfb   :  { %v2311_v46 = vpop.f32.mrb[16].mxu0 }
 0xbfc   :  { %v4702_v8 = vadd.f32 %v5258_v23, %v2311_v46  ;;  %v4540_v47 = vpop.f32.mrb[17].mxu0  ;;  %v4071_v46 = vld [vmem:[%s6495_s3 + $0x8] sm:$0xf] }
 0xbfd   :  { %v2314_v51 = vpop.f32.mrb[18].mxu0 }
 0xbfe   :  { %5006 = vtanh.f32 %v4702_v8  ;;  %v4541_v54 = vpop.f32.mrb[19].mxu0  ;;  %v4054_v9 = vmul.f32 -1.442695, %v4702_v8  ;;  %v4911_v8 = vld [vmem:[%s6497_s8] sm:$0xff]   ;;  %v4912_v51 = vld [vmem:[%s6496_s6 + $0x8] sm:$0xff]  }
 0xbff   :  { %v2407_v59 = vpop.f32.mrb[16].mxu1  ;;  %v4913_v54 = vld [vmem:[%s6497_s8 + $0x8] sm:$0xff]  }
 0xc00   :  { %v4703_v1 = vadd.f32 %v5263_v25, %v2407_v59  ;;  %v4548_v24 = vpop.f32.mrb[17].mxu1  ;;  %v4067_v59 = vld [vmem:[%s6500_s2 + $0x14] sm:$0xf] }
 0xc01   :  { %v2410_v4 = vpop.f32.mrb[18].mxu1  ;;  %v4075_v24 = vld [vmem:[%s6501_s4 + $0x8] sm:$0xf] }
 0xc02   :  { %5008 = vtanh.f32 %v4703_v1  ;;  %v4549_v27 = vpop.f32.mrb[19].mxu1  ;;  %v4058_v23 = vmul.f32 -1.442695, %v4703_v1  ;;  %v4914_v1 = vld [vmem:[%s6498_s9] sm:$0xff]  }
 0xc03   :  { %5010 = vpow2.f32 %v4054_v9  ;;  %v4915_v4 = vld [vmem:[%s6499_s10] sm:$0xff]   ;;  %v4916_v27 = vld [vmem:[%s6498_s9 + $0x8] sm:$0xff]  }
 0xc04   :  { %5012 = vpow2.f32 %v4058_v23 }
 0xc08   :  { %v5007_v3 = vpop.eup %5006 }
 0xc09   :  { %2327 = vrot.lane.b32.xlu1 %v5007_v3, %s5076_s18  ;;  %v4917_v3 = vld [vmem:[%s6499_s10 + $0x8] sm:$0xff]  }
 0xc0c   :  { %v5009_v38 = vpop.eup %5008 }
 0xc0d   :  { %2423 = vrot.lane.b32.xlu0 %v5009_v38, %s5076_s18  ;;  %v5011_v57 = vpop.eup %5010 }
 0xc0e   :  { %v2321_v10 = vadd.f32 1.0, %v5011_v57  ;;  %v5013_v42 = vpop.eup %5012 }
 0xc0f   :  { %v2417_v55 = vadd.f32 1.0, %v5013_v42 }
 0xc10   :  { %5014 = vrcp.f32 %v2321_v10 }
 0xc11   :  { %5016 = vrcp.f32 %v2417_v55 }
 0xc1a   :  { %v5886_v25 = vpop.eup %5014 }
 0xc1b   :  { %v5890_v12 = vpop.eup %5016  ;;  %v2325_v29 = vmul.f32 %v5886_v25, %v5900_v21 }
 0xc7b   :  { %v2328_v60 = vpop.permute.xlu1 %2327 }
 0xc7c   :  { %v2330_v11 = vmul.f32 %v5886_v25, %v2328_v60 }
 0xc7e   :  { %2332 = vrot.lane.b32.xlu1 %v2330_v11, %s5074_s21 }
 0xc7f   :  { %v2424_v14 = vpop.permute.xlu0 %2423 }
 0xc80   :  { %v2426_v20 = vmul.f32 %v5890_v12, %v2424_v14 }
 0xc82   :  { %2344 = vperm.xlu1 %4845, %v5747_v48   ;;  %2428 = vrot.lane.b32.xlu0 %v2426_v20, %s5074_s21  ;;  %v5910_v48 = vsel %vm1978_vm3, %v5769_v18, %v5764_v35  ;;  %v4907_v35 = vld [vmem:[%s6492_s5 + $0x8] sm:$0xff]  }
 0xc83   :  { %v4909_v18 = vld [vmem:[%s6493_s7 + $0x8] sm:$0xff]   ;;  %4553 = vmatpush3.bf16.msra.mxu0 %v4907_v35 }
 0xc84   :  { %4569 = vmatpush3.bf16.msra.mxu1 %v4909_v18  ;;  %4558 = vmatprep.subr.bf16.mxu0 %v5072_v0 }
 0xc85   :  { %4574 = vmatprep.subr.bf16.mxu1 %v5072_v0 }
 0xc86   :  { %2440 = vperm.xlu0 %4844, %v5740_v28   ;;  %v2421_v28 = vmul.f32 %v5890_v12, %v5910_v48  ;;  %4555 = vmatmul.mubr.msk.bf16.vlgmr.msra.gmra.mrb[20].mxu0 %vm109_vm0, %v4063_v43 }
 0xc87   :  { %4571 = vmatmul.mubr.msk.bf16.vlgmr.msra.gmra.mrb[20].mxu1 %vm109_vm0, %v4071_v46  ;;  %4559 = vmatpush3.bf16.msra.mxu0 %v4910_v45 }
 0xc88   :  { %4575 = vmatpush3.bf16.msra.mxu1 %v4911_v8  ;;  %4560 = vmatprep.subr.bf16.mxu0 %v5072_v0 }
 0xc89   :  { %4576 = vmatprep.subr.bf16.mxu1 %v5072_v0  ;;  %4562 = vmatprep.mubr.msk.bf16.mxu0 %vm5073_vm1, %v5072_v0 }
 0xc8a   :  { %4578 = vmatprep.mubr.msk.bf16.mxu1 %vm5073_vm1, %v5072_v0 }
 0xc8b   :  { %4561 = vmatpush3.bf16.msra.mxu0 %v4912_v51 }
 0xc8c   :  { %4577 = vmatpush3.bf16.msra.mxu1 %v4913_v54  ;;  %4582 = vmatprep.subr.bf16.mxu0 %v5072_v0 }
 0xc8d   :  { %4590 = vmatprep.subr.bf16.mxu1 %v5072_v0 }
 0xc92   :  { %4563 = vmatmul.mubr.msk.bf16.vlgmr.msra.gmra.mrb[20].mxu0 %vm109_vm0, %v4067_v59 }
 0xc93   :  { %4579 = vmatmul.mubr.msk.bf16.vlgmr.msra.gmra.mrb[20].mxu1 %vm109_vm0, %v4075_v24  ;;  %4583 = vmatpush3.bf16.msra.mxu0 %v4914_v1 }
 0xc94   :  { %4591 = vmatpush3.bf16.msra.mxu1 %v4915_v4  ;;  %4584 = vmatprep.subr.bf16.mxu0 %v5072_v0 }
 0xc95   :  { %4592 = vmatprep.subr.bf16.mxu1 %v5072_v0  ;;  %4586 = vmatprep.mubr.msk.bf16.mxu0 %vm5073_vm1, %v5072_v0 }
 0xc96   :  { %4594 = vmatprep.mubr.msk.bf16.mxu1 %vm5073_vm1, %v5072_v0 }
 0xc97   :  { %4585 = vmatpush3.bf16.msra.mxu0 %v4916_v27 }
 0xc98   :  { %4598 = vmatprep.subr.bf16.mxu0 %v5072_v0  ;;  %4593 = vmatpush3.bf16.msra.mxu1 %v4917_v3 }
 0xc99   :  { %4614 = vmatprep.subr.bf16.mxu1 %v5072_v0 }
 0xcf0   :  { %v2333_v30 = vpop.permute.xlu1 %2332 }
 0xcf1   :  { %v5904_v7 = vadd.f32 %v2333_v30, %v2325_v29 }
 0xcf3   :  { %5018 = vtanh.f32 %v5904_v7 }
 0xcf4   :  { %v2429_v36 = vpop.permute.xlu0 %2428 }
 0xcf5   :  { %v5915_v49 = vadd.f32 %v2429_v36, %v2421_v28 }
 0xcf7   :  { %5020 = vtanh.f32 %v5915_v49 }
 0xcfd   :  { %v5019_v62 = vpop.eup %5018 }
 0xcfe   :  { %2338 = vrot.lane.b32.xlu1 %v5019_v62, %s5076_s18 }
 0xd01   :  { %v5021_v47 = vpop.eup %5020  ;;  %v5992_v38 = vpop.permute.xlu1 %2344 }
 0xd02   :  { %2434 = vrot.lane.b32.xlu0 %v5021_v47, %s5076_s18  ;;  %vm2346_vm6 = vcmp.eq.s32.totalorder %v5992_v38, 1 }
 0xd05   :  { %v5994_v9 = vpop.permute.xlu0 %2440 }
 0xd06   :  { %vm2442_vm7 = vcmp.eq.s32.totalorder %v5994_v9, 1 }
 0xd70   :  { %v2339_v23 = vpop.permute.xlu1 %2338 }
 0xd71   :  { %v5997_v57 = vmul.f32 %v5886_v25, %v2339_v23 }
 0xd73   :  { %v6004_v10 = vsel %vm2346_vm6, %v5997_v57, %v5858_v32 }
 0xd74   :  { %v2435_v42 = vpop.permute.xlu0 %2434  ;;  %v2718_v55 = vpack.c.bf16 %v6004_v10, %v6004_v10 }
 0xd75   :  { %v6009_v60 = vmul.f32 %v5890_v12, %v2435_v42  ;;  %v6056_v42 = vsel %vm2346_vm6, %v5904_v7, %v5900_v21  ;;  %v4918_v7 = vld [vmem:[%s6492_s5] sm:$0xff]  }
 0xd76   :  { %2724 = vrot.lane.b32.xlu1 %v2718_v55, %s5074_s21 }
 0xd77   :  { %v6017_v25 = vsel %vm2442_vm7, %v6009_v60, %v5871_v40  ;;  %v6031_v40 = vld [vmem:[%s6502_s11] ss:$0 sm:$0xff]  ;;  %v2443_v6 = vsel %vm2442_vm7, %v6009_v60, 0.0 }
 0xd78   :  { %v2814_v32 = vpack.c.bf16 %v6017_v25, %v6017_v25  ;;  %v4159_v31 = vpack.c.bf16 %v2443_v6, %v2443_v6 }
 0xd7a   :  { %2820 = vrot.lane.b32.xlu0 %v2814_v32, %s5074_s21 }
 0xde8   :  { %v2725_v11 = vpop.permute.xlu1 %2724 }
 0xde9   :  { %4587 = vmatmul.mubr.msk.bf16.vlgmr.msra.gmra.mrb[20].mxu0 %vm109_vm0, %v2725_v11 }
 0xdea   :  { %4602 = vmatprep.mubr.msk.bf16.mxu0 %vm5073_vm1, %v5072_v0  ;;  %4599 = vmatpush3.bf16.msra.mxu0 %v4918_v7 }
 0xdeb   :  { %4600 = vmatprep.subr.bf16.mxu0 %v5072_v0 }
 0xdec   :  { %v2821_v12 = vpop.permute.xlu0 %2820 }
 0xded   :  { %4595 = vmatmul.mubr.msk.bf16.vlgmr.msra.gmra.mrb[20].mxu1 %vm109_vm0, %v2821_v12 }
 0xdee   :  { %4618 = vmatprep.mubr.msk.bf16.mxu1 %vm5073_vm1, %v5072_v0 }
 0xebc   :  { %v2775_v14 = vpop.f32.mrb[20].mxu0 }
 0xebd   :  { %v4704_v20 = vadd.f32 %v6031_v40, %v2775_v14  ;;  %v4588_v29 = vpop.f32.mrb[21].mxu0  ;;  %v4920_v14 = vld [vmem:[%s6493_s7] sm:$0xff]  }
 0xebe   :  { %v2778_v30 = vpop.f32.mrb[22].mxu0  ;;  %4615 = vmatpush3.bf16.msra.mxu1 %v4920_v14  ;;  %v4093_v29 = vld [vmem:[%s6494_s1 + $0x18] sm:$0xf] }
 0xebf   :  { %5022 = vtanh.f32 %v4704_v20  ;;  %v4589_v28 = vpop.f32.mrb[23].mxu0  ;;  %v4084_v46 = vmul.f32 -1.442695, %v4704_v20  ;;  %4616 = vmatprep.subr.bf16.mxu1 %v5072_v0  ;;  %v4922_v30 = vld [vmem:[%s6496_s6] sm:$0xff]  }
 0xec0   :  { %v2871_v36 = vpop.f32.mrb[20].mxu1  ;;  %v4101_v28 = vld [vmem:[%s6495_s3 + $0x4] sm:$0xf] }
 0xec1   :  { %v4705_v39 = vadd.f32 %v6037_v44, %v2871_v36  ;;  %v4596_v35 = vpop.f32.mrb[21].mxu1  ;;  %v4923_v36 = vld [vmem:[%s6497_s8] sm:$0xff]  }
 0xec2   :  { %v2874_v18 = vpop.f32.mrb[22].mxu1  ;;  %v4924_v35 = vld [vmem:[%s6496_s6 + $0x8] sm:$0xff]  }
 0xec3   :  { %5024 = vtanh.f32 %v4705_v39  ;;  %v4597_v62 = vpop.f32.mrb[23].mxu1  ;;  %v4088_v8 = vmul.f32 -1.442695, %v4705_v39  ;;  %v4925_v18 = vld [vmem:[%s6497_s8 + $0x8] sm:$0xff]  }
 0xec4   :  { %5026 = vpow2.f32 %v4084_v46  ;;  %v4097_v62 = vld [vmem:[%s6500_s2 + $0x18] sm:$0xf]  ;;  %v4927_v46 = vld [vmem:[%s6499_s10] sm:$0xff]  }
 0xec5   :  { %5028 = vpow2.f32 %v4088_v8  ;;  %v4928_v8 = vld [vmem:[%s6498_s9 + $0x8] sm:$0xff]  }
 0xec9   :  { %v5023_v43 = vpop.eup %5022 }
 0xeca   :  { %2791 = vrot.lane.b32.xlu1 %v5023_v43, %s5076_s18  ;;  %v4926_v43 = vld [vmem:[%s6498_s9] sm:$0xff]  }
 0xecd   :  { %v5025_v45 = vpop.eup %5024 }
 0xece   :  { %2887 = vrot.lane.b32.xlu0 %v5025_v45, %s5076_s18  ;;  %v5027_v47 = vpop.eup %5026  ;;  %v4105_v45 = vld [vmem:[%s6501_s4 + $0x4] sm:$0xf] }
 0xecf   :  { %v2785_v51 = vadd.f32 1.0, %v5027_v47  ;;  %v5029_v54 = vpop.eup %5028  ;;  %v4929_v47 = vld [vmem:[%s6499_s10 + $0x8] sm:$0xff]  }
 0xed0   :  { %v2881_v59 = vadd.f32 1.0, %v5029_v54 }
 0xed1   :  { %5030 = vrcp.f32 %v2785_v51 }
 0xed2   :  { %5032 = vrcp.f32 %v2881_v59 }
 0xedb   :  { %v6042_v1 = vpop.eup %5030 }
 0xedc   :  { %v6046_v27 = vpop.eup %5032  ;;  %v2789_v55 = vmul.f32 %v6042_v1, %v6056_v42 }
 0xf3c   :  { %v2792_v24 = vpop.permute.xlu1 %2791 }
 0xf3d   :  { %v2794_v4 = vmul.f32 %v6042_v1, %v2792_v24 }
 0xf3f   :  { %2796 = vrot.lane.b32.xlu1 %v2794_v4, %s5074_s21 }
 0xf40   :  { %v2888_v3 = vpop.permute.xlu0 %2887 }
 0xf41   :  { %v2890_v23 = vmul.f32 %v6046_v27, %v2888_v3 }
 0xf43   :  { %2808 = vperm.xlu1 %4845, %v5593_v15   ;;  %2892 = vrot.lane.b32.xlu0 %v2890_v23, %s5074_s21  ;;  %v6066_v15 = vsel %vm2442_vm7, %v5915_v49, %v5910_v48  ;;  %v4919_v48 = vld [vmem:[%s6492_s5 + $0x8] sm:$0xff]  }
 0xf44   :  { %v4921_v49 = vld [vmem:[%s6493_s7 + $0x8] sm:$0xff]   ;;  %4601 = vmatpush3.bf16.msra.mxu0 %v4919_v48 }
 0xf45   :  { %4617 = vmatpush3.bf16.msra.mxu1 %v4921_v49  ;;  %4606 = vmatprep.subr.bf16.mxu0 %v5072_v0 }
 0xf46   :  { %4622 = vmatprep.subr.bf16.mxu1 %v5072_v0 }
 0xf47   :  { %2904 = vperm.xlu0 %4844, %v5586_v13   ;;  %v2885_v13 = vmul.f32 %v6046_v27, %v6066_v15  ;;  %4603 = vmatmul.mubr.msk.bf16.vlgmr.msra.gmra.mrb[24].mxu0 %vm109_vm0, %v4093_v29 }
 0xf48   :  { %4619 = vmatmul.mubr.msk.bf16.vlgmr.msra.gmra.mrb[24].mxu1 %vm109_vm0, %v4101_v28  ;;  %4607 = vmatpush3.bf16.msra.mxu0 %v4922_v30 }
 0xf49   :  { %4623 = vmatpush3.bf16.msra.mxu1 %v4923_v36  ;;  %4608 = vmatprep.subr.bf16.mxu0 %v5072_v0 }
 0xf4a   :  { %4624 = vmatprep.subr.bf16.mxu1 %v5072_v0  ;;  %4610 = vmatprep.mubr.msk.bf16.mxu0 %vm5073_vm1, %v5072_v0 }
 0xf4b   :  { %4626 = vmatprep.mubr.msk.bf16.mxu1 %vm5073_vm1, %v5072_v0 }
 0xf4c   :  { %4609 = vmatpush3.bf16.msra.mxu0 %v4924_v35 }
 0xf4d   :  { %4625 = vmatpush3.bf16.msra.mxu1 %v4925_v18  ;;  %4630 = vmatprep.subr.bf16.mxu0 %v5072_v0 }
 0xf4e   :  { %4638 = vmatprep.subr.bf16.mxu1 %v5072_v0 }
 0xf53   :  { %4611 = vmatmul.mubr.msk.bf16.vlgmr.msra.gmra.mrb[24].mxu0 %vm109_vm0, %v4097_v62 }
 0xf54   :  { %4627 = vmatmul.mubr.msk.bf16.vlgmr.msra.gmra.mrb[24].mxu1 %vm109_vm0, %v4105_v45  ;;  %4631 = vmatpush3.bf16.msra.mxu0 %v4926_v43 }
 0xf55   :  { %4639 = vmatpush3.bf16.msra.mxu1 %v4927_v46  ;;  %4632 = vmatprep.subr.bf16.mxu0 %v5072_v0 }
 0xf56   :  { %4640 = vmatprep.subr.bf16.mxu1 %v5072_v0  ;;  %4634 = vmatprep.mubr.msk.bf16.mxu0 %vm5073_vm1, %v5072_v0 }
 0xf57   :  { %4642 = vmatprep.mubr.msk.bf16.mxu1 %vm5073_vm1, %v5072_v0 }
 0xf58   :  { %4633 = vmatpush3.bf16.msra.mxu0 %v4928_v8 }
 0xf59   :  { %4646 = vmatprep.subr.bf16.mxu0 %v5072_v0  ;;  %4641 = vmatpush3.bf16.msra.mxu1 %v4929_v47 }
 0xf5a   :  { %4662 = vmatprep.subr.bf16.mxu1 %v5072_v0 }
 0xfb1   :  { %v2797_v32 = vpop.permute.xlu1 %2796 }
 0xfb2   :  { %v6060_v11 = vadd.f32 %v2797_v32, %v2789_v55 }
 0xfb4   :  { %5034 = vtanh.f32 %v6060_v11 }
 0xfb5   :  { %v2893_v12 = vpop.permute.xlu0 %2892 }
 0xfb6   :  { %v6071_v21 = vadd.f32 %v2893_v12, %v2885_v13 }
 0xfb8   :  { %5036 = vtanh.f32 %v6071_v21 }
 0xfbe   :  { %v5035_v20 = vpop.eup %5034 }
 0xfbf   :  { %2802 = vrot.lane.b32.xlu1 %v5035_v20, %s5076_s18 }
 0xfc2   :  { %v5037_v39 = vpop.eup %5036  ;;  %v6148_v51 = vpop.permute.xlu1 %2808 }
 0xfc3   :  { %2898 = vrot.lane.b32.xlu0 %v5037_v39, %s5076_s18  ;;  %vm2810_vm10 = vcmp.eq.s32.totalorder %v6148_v51, 1 }
 0xfc6   :  { %v6150_v54 = vpop.permute.xlu0 %2904 }
 0xfc7   :  { %vm2906_vm11 = vcmp.eq.s32.totalorder %v6150_v54, 1 }
0x1031   :  { %v2803_v59 = vpop.permute.xlu1 %2802 }
0x1032   :  { %v6153_v24 = vmul.f32 %v6042_v1, %v2803_v59 }
0x1034   :  { %v6160_v4 = vsel %vm2810_vm10, %v6153_v24, %v6004_v10 }
0x1035   :  { %v2899_v3 = vpop.permute.xlu0 %2898  ;;  %v3182_v23 = vpack.c.bf16 %v6160_v4, %v6160_v4 }
0x1036   :  { %v6165_v55 = vmul.f32 %v6046_v27, %v2899_v3 }
0x1037   :  { %3188 = vrot.lane.b32.xlu1 %v3182_v23, %s5074_s21 }
0x1038   :  { %v6173_v1 = vsel %vm2906_vm11, %v6165_v55, %v6017_v25  ;;  %v2907_v38 = vsel %vm2906_vm11, %v6165_v55, 0.0 }
0x1039   :  { %v3278_v10 = vpack.c.bf16 %v6173_v1, %v6173_v1  ;;  %v4161_v9 = vpack.c.bf16 %v2907_v38, %v2907_v38 }
0x103b   :  { %3284 = vrot.lane.b32.xlu0 %v3278_v10, %s5074_s21  ;;  %v6202_v10 = vsel %vm2810_vm10, %v6060_v11, %v6056_v42  ;;  %v4930_v11 = vld [vmem:[%s6492_s5] sm:$0xff]  }
0x10a9   :  { %v3189_v32 = vpop.permute.xlu1 %3188 }
0x10aa   :  { %4635 = vmatmul.mubr.msk.bf16.vlgmr.msra.gmra.mrb[24].mxu0 %vm109_vm0, %v3189_v32 }
0x10ab   :  { %4650 = vmatprep.mubr.msk.bf16.mxu0 %vm5073_vm1, %v5072_v0  ;;  %4647 = vmatpush3.bf16.msra.mxu0 %v4930_v11 }
0x10ac   :  { %4648 = vmatprep.subr.bf16.mxu0 %v5072_v0 }
0x10ad   :  { %v3285_v27 = vpop.permute.xlu0 %3284 }
0x10ae   :  { %4643 = vmatmul.mubr.msk.bf16.vlgmr.msra.gmra.mrb[24].mxu1 %vm109_vm0, %v3285_v27 }
0x10af   :  { %4666 = vmatprep.mubr.msk.bf16.mxu1 %vm5073_vm1, %v5072_v0 }
0x117d   :  { %v3239_v13 = vpop.f32.mrb[24].mxu0 }
0x117e   :  { %v4706_v25 = vadd.f32 %v6031_v40, %v3239_v13  ;;  %v4636_v12 = vpop.f32.mrb[25].mxu0 }
0x117f   :  { %v3242_v7 = vpop.f32.mrb[26].mxu0  ;;  %v4932_v12 = vld [vmem:[%s6493_s7] sm:$0xff]  }
0x1180   :  { %5038 = vtanh.f32 %v4706_v25  ;;  %v4637_v14 = vpop.f32.mrb[27].mxu0  ;;  %v4114_v39 = vmul.f32 -1.442695, %v4706_v25  ;;  %4663 = vmatpush3.bf16.msra.mxu1 %v4932_v12 }
0x1181   :  { %v3335_v48 = vpop.f32.mrb[24].mxu1  ;;  %4664 = vmatprep.subr.bf16.mxu1 %v5072_v0  ;;  %v4123_v14 = vld [vmem:[%s6494_s1 + $0x1c] sm:$0xf] }
0x1182   :  { %v4707_v49 = vadd.f32 %v6037_v44, %v3335_v48  ;;  %v4644_v20 = vpop.f32.mrb[25].mxu1  ;;  %v4934_v48 = vld [vmem:[%s6496_s6] sm:$0xff]  }
0x1183   :  { %v3338_v29 = vpop.f32.mrb[26].mxu1  ;;  %v4935_v20 = vld [vmem:[%s6497_s8] sm:$0xff]  }
0x1184   :  { %5040 = vtanh.f32 %v4707_v49  ;;  %v4645_v30 = vpop.f32.mrb[27].mxu1  ;;  %v4118_v35 = vmul.f32 -1.442695, %v4707_v49  ;;  %v3516_v49 = vld [vmem:[%s6495_s3] sm:$0xf] }
0x1185   :  { %5042 = vpow2.f32 %v4114_v39  ;;  %v4936_v30 = vld [vmem:[%s6496_s6 + $0x8] sm:$0xff]   ;;  %v4938_v39 = vld [vmem:[%s6498_s9] sm:$0xff]  }
0x1186   :  { %5044 = vpow2.f32 %v4118_v35  ;;  %v3577_v35 = vld [vmem:[%s6501_s4] sm:$0xf] }
0x118a   :  { %v5039_v28 = vpop.eup %5038 }
0x118b   :  { %3255 = vrot.lane.b32.xlu1 %v5039_v28, %s5076_s18  ;;  %v4937_v28 = vld [vmem:[%s6497_s8 + $0x8] sm:$0xff]  }
0x118e   :  { %v5041_v36 = vpop.eup %5040 }
0x118f   :  { %3351 = vrot.lane.b32.xlu0 %v5041_v36, %s5076_s18  ;;  %v5043_v18 = vpop.eup %5042  ;;  %v4127_v36 = vld [vmem:[%s6500_s2 + $0x1c] sm:$0xf] }
0x1190   :  { %v3249_v62 = vadd.f32 1.0, %v5043_v18  ;;  %v5045_v43 = vpop.eup %5044  ;;  %v4939_v18 = vld [vmem:[%s6499_s10] sm:$0xff]  }
0x1191   :  { %v3345_v45 = vadd.f32 1.0, %v5045_v43  ;;  %v4941_v43 = vld [vmem:[%s6499_s10 + $0x8] sm:$0xff]  }
0x1192   :  { %5046 = vrcp.f32 %v3249_v62  ;;  %v4940_v62 = vld [vmem:[%s6498_s9 + $0x8] sm:$0xff]  }
0x1193   :  { %5048 = vrcp.f32 %v3345_v45 }
0x119c   :  { %v6188_v46 = vpop.eup %5046 }
0x119d   :  { %v6192_v59 = vpop.eup %5048  ;;  %v3253_v32 = vmul.f32 %v6188_v46, %v6202_v10 }
0x11fd   :  { %v3256_v8 = vpop.permute.xlu1 %3255 }
0x11fe   :  { %v3258_v47 = vmul.f32 %v6188_v46, %v3256_v8 }
0x1200   :  { %3260 = vrot.lane.b32.xlu1 %v3258_v47, %s5074_s21 }
0x1201   :  { %v3352_v3 = vpop.permute.xlu0 %3351 }
0x1202   :  { %v3354_v23 = vmul.f32 %v6192_v59, %v3352_v3 }
0x1204   :  { %3272 = vperm.xlu1 %4845, %v5439_v2   ;;  %3356 = vrot.lane.b32.xlu0 %v3354_v23, %s5074_s21  ;;  %v6212_v2 = vsel %vm2906_vm11, %v6071_v21, %v6066_v15  ;;  %v4931_v15 = vld [vmem:[%s6492_s5 + $0x8] sm:$0xff]  }
0x1205   :  { %v4933_v21 = vld [vmem:[%s6493_s7 + $0x8] sm:$0xff]   ;;  %4649 = vmatpush3.bf16.msra.mxu0 %v4931_v15 }
0x1206   :  { %4665 = vmatpush3.bf16.msra.mxu1 %v4933_v21  ;;  %4654 = vmatprep.subr.bf16.mxu0 %v5072_v0 }
0x1207   :  { %4670 = vmatprep.subr.bf16.mxu1 %v5072_v0 }
0x1208   :  { %3368 = vperm.xlu0 %4844, %v5432_v63   ;;  %v3349_v63 = vmul.f32 %v6192_v59, %v6212_v2  ;;  %4651 = vmatmul.mubr.msk.bf16.vlgmr.msra.gmra.mrb[28].mxu0 %vm109_vm0, %v4123_v14 }
0x1209   :  { %4667 = vmatmul.mubr.msk.bf16.vlgmr.msra.gmra.mrb[28].mxu1 %vm109_vm0, %v3516_v49  ;;  %4655 = vmatpush3.bf16.msra.mxu0 %v4934_v48 }
0x120a   :  { %4671 = vmatpush3.bf16.msra.mxu1 %v4935_v20  ;;  %4656 = vmatprep.subr.bf16.mxu0 %v5072_v0 }
0x120b   :  { %4672 = vmatprep.subr.bf16.mxu1 %v5072_v0  ;;  %4658 = vmatprep.mubr.msk.bf16.mxu0 %vm5073_vm1, %v5072_v0 }
0x120c   :  { %4674 = vmatprep.mubr.msk.bf16.mxu1 %vm5073_vm1, %v5072_v0 }
0x120d   :  { %4657 = vmatpush3.bf16.msra.mxu0 %v4936_v30 }
0x120e   :  { %4673 = vmatpush3.bf16.msra.mxu1 %v4937_v28  ;;  %4678 = vmatprep.subr.bf16.mxu0 %v5072_v0 }
0x120f   :  { %4686 = vmatprep.subr.bf16.mxu1 %v5072_v0 }
0x1214   :  { %4659 = vmatmul.mubr.msk.bf16.vlgmr.msra.gmra.mrb[28].mxu0 %vm109_vm0, %v4127_v36 }
0x1215   :  { %4675 = vmatmul.mubr.msk.bf16.vlgmr.msra.gmra.mrb[28].mxu1 %vm109_vm0, %v3577_v35  ;;  %4679 = vmatpush3.bf16.msra.mxu0 %v4938_v39 }
0x1216   :  { %4687 = vmatpush3.bf16.msra.mxu1 %v4939_v18  ;;  %4680 = vmatprep.subr.bf16.mxu0 %v5072_v0 }
0x1217   :  { %4688 = vmatprep.subr.bf16.mxu1 %v5072_v0  ;;  %4682 = vmatprep.mubr.msk.bf16.mxu0 %vm5073_vm1, %v5072_v0 }
0x1218   :  { %4690 = vmatprep.mubr.msk.bf16.mxu1 %vm5073_vm1, %v5072_v0 }
0x1219   :  { %4681 = vmatpush3.bf16.msra.mxu0 %v4940_v62 }
0x121a   :  { %4689 = vmatpush3.bf16.msra.mxu1 %v4941_v43 }
0x1272   :  { %v3261_v27 = vpop.permute.xlu1 %3260 }
0x1273   :  { %v6206_v13 = vadd.f32 %v3261_v27, %v3253_v32 }
0x1275   :  { %5050 = vtanh.f32 %v6206_v13 }
0x1276   :  { %v3357_v25 = vpop.permute.xlu0 %3356 }
0x1277   :  { %v6217_v42 = vadd.f32 %v3357_v25, %v3349_v63 }
0x1279   :  { %5052 = vtanh.f32 %v6217_v42 }
0x127f   :  { %v5051_v7 = vpop.eup %5050 }
0x1280   :  { %3266 = vrot.lane.b32.xlu1 %v5051_v7, %s5076_s18 }
0x1283   :  { %v5053_v29 = vpop.eup %5052  ;;  %v6292_v45 = vpop.permute.xlu1 %3272 }
0x1284   :  { %3362 = vrot.lane.b32.xlu0 %v5053_v29, %s5076_s18  ;;  %vm3274_vm14 = vcmp.eq.s32.totalorder %v6292_v45, 1 }
0x1287   :  { %v6294_v8 = vpop.permute.xlu0 %3368 }
0x1288   :  { %vm3370_vm1 = vcmp.eq.s32.totalorder %v6294_v8, 1 }
0x12f2   :  { %v3267_v47 = vpop.permute.xlu1 %3266 }
0x12f3   :  { %v6297_v3 = vmul.f32 %v6188_v46, %v3267_v47 }
0x12f5   :  { %v6304_v0 = vsel %vm3274_vm14, %v6297_v3, %v6160_v4 }
0x12f6   :  { %v3363_v23 = vpop.permute.xlu0 %3362  ;;  %v3643_v32 = vpack.c.bf16 %v6304_v0, %v6304_v0 }
0x12f7   :  { %v6309_v27 = vmul.f32 %v6192_v59, %v3363_v23 }
0x12f8   :  { %3649 = vrot.lane.b32.xlu1 %v3643_v32, %s5074_s21  ;;  %v3277_v32 = vsel %vm3274_vm14, %v6206_v13, %v6202_v10  ;;  %v482_v13 = vsel %vm481_vm4, %v5391_v19, 0.0  ;;  %v1419_v19 = vsel %vm1418_vm12, %v5697_v61, 0.0  ;;  %v2347_v61 = vsel %vm2346_vm6, %v5997_v57, 0.0 }
0x12f9   :  { %v6317_v46 = vsel %vm3370_vm1, %v6309_v27, %v6173_v1  ;;  %v4158_v5 = vpack.c.bf16 %v2347_v61, %v2347_v61  ;;  %v3275_v57 = vsel %vm3274_vm14, %v6297_v3, 0.0  ;;  %v3371_v51 = vsel %vm3370_vm1, %v6309_v27, 0.0 }
0x12fa   :  { %v3739_v4 = vpack.c.bf16 %v6317_v46, %v6317_v46  ;;  %v4162_v60 = vpack.c.bf16 %v3275_v57, %v3275_v57 }
0x12fc   :  { %3745 = vrot.lane.b32.xlu0 %v3739_v4, %s5074_s21 }
0x136a   :  { %v3650_v63 = vpop.permute.xlu1 %3649 }
0x136b   :  { %4683 = vmatmul.mubr.msk.bf16.vlgmr.msra.gmra.mrb[28].mxu0 %vm109_vm0, %v3650_v63 }
0x136e   :  { %v3746_v59 = vpop.permute.xlu0 %3745 }
0x136f   :  { %4691 = vmatmul.mubr.msk.bf16.vlgmr.msra.gmra.mrb[28].mxu1 %vm109_vm0, %v3746_v59 }
0x143e   :  { %v3700_v25 = vpop.f32.mrb[28].mxu0 }
0x143f   :  { %v4708_v11 = vadd.f32 %v6031_v40, %v3700_v25  ;;  %v4684_v12 = vpop.f32.mrb[29].mxu0  ;;  %v6347_v25 = vsel %vm3370_vm1, %v6217_v42, %v6212_v2  ;;  %v583_v2 = vsel %vm582_vm5, %v5402_v26, 0.0  ;;  %v955_v42 = vsel %vm954_vm8, %v5543_v37, 0.0 }
0x1440   :  { %v3703_v15 = vpop.f32.mrb[30].mxu0  ;;  %v4150_v12 = vpack.c.bf16 %v482_v13, %v482_v13  ;;  %v4154_v26 = vpack.c.bf16 %v1419_v19, %v1419_v19  ;;  %v1883_v37 = vsel %vm1882_vm2, %v5851_v53, 0.0  ;;  %v2811_v53 = vsel %vm2810_vm10, %v6153_v24, 0.0 }
0x1441   :  { %5054 = vtanh.f32 %v4708_v11  ;;  %v4685_v21 = vpop.f32.mrb[31].mxu0  ;;  %v4142_v30 = vmul.f32 -1.442695, %v4708_v11  ;;  %v4156_v41 = vpack.c.bf16 %v1883_v37, %v1883_v37  ;;  %v4160_v22 = vpack.c.bf16 %v2811_v53, %v2811_v53 }
0x1442   :  { %v3796_v1 = vpop.f32.mrb[28].mxu1  ;;  %v4151_v21 = vpack.c.bf16 %v583_v2, %v583_v2  ;;  %v4163_v24 = vpack.c.bf16 %v3371_v51, %v3371_v51  ;;  %vm597_vm5 = vcmask 257024  }
0x1443   :  { %v4709_v7 = vadd.f32 %v6037_v44, %v3796_v1  ;;  %v4692_v14 = vpop.f32.mrb[29].mxu1  ;;  %v4152_v1 = vpack.c.bf16 %v955_v42, %v955_v42 }
0x1444   :  { %v3799_v48 = vpop.f32.mrb[30].mxu1 }
0x1445   :  { %5056 = vtanh.f32 %v4709_v7  ;;  %v4693_v49 = vpop.f32.mrb[31].mxu1  ;;  %v4146_v40 = vmul.f32 -1.442695, %v4709_v7 }
0x1446   :  { %5058 = vpow2.f32 %v4142_v30 }
0x1447   :  { %5060 = vpow2.f32 %v4146_v40 }
0x144b   :  { %v5055_v20 = vpop.eup %5054 }
0x144c   :  { %3716 = vrot.lane.b32.xlu1 %v5055_v20, %s5076_s18 }
0x144f   :  { %v5057_v29 = vpop.eup %5056 }
0x1450   :  { %3812 = vrot.lane.b32.xlu0 %v5057_v29, %s5076_s18  ;;  %v5059_v28 = vpop.eup %5058 }
0x1451   :  { %v3710_v36 = vadd.f32 1.0, %v5059_v28  ;;  %v5061_v39 = vpop.eup %5060 }
0x1452   :  { %v3806_v35 = vadd.f32 1.0, %v5061_v39 }
0x1453   :  { %5062 = vrcp.f32 %v3710_v36 }
0x1454   :  { %5064 = vrcp.f32 %v3806_v35 }
0x145d   :  { %v6328_v44 = vpop.eup %5062 }
0x145e   :  { %v6332_v43 = vpop.eup %5064  ;;  %v3714_v4 = vmul.f32 %v6328_v44, %v3277_v32 }
0x14be   :  { %v3717_v18 = vpop.permute.xlu1 %3716 }
0x14bf   :  { %v3719_v62 = vmul.f32 %v6328_v44, %v3717_v18 }
0x14c1   :  { %3721 = vrot.lane.b32.xlu1 %v3719_v62, %s5074_s21 }
0x14c2   :  { %v3813_v47 = vpop.permute.xlu0 %3812 }
0x14c3   :  { %v3815_v23 = vmul.f32 %v6332_v43, %v3813_v47 }
0x14c5   :  { %3733 = vperm.xlu1 %4845, %v5291_v52   ;;  %3817 = vrot.lane.b32.xlu0 %v3815_v23, %s5074_s21  ;;  %v3810_v52 = vmul.f32 %v6332_v43, %v6347_v25 }
0x14c9   :  { %3829 = vperm.xlu0 %4844, %v5284_v50  }
0x1533   :  { %v3722_v63 = vpop.permute.xlu1 %3721 }
0x1534   :  { %v3724_v59 = vadd.f32 %v3722_v63, %v3714_v4 }
0x1536   :  { %5066 = vtanh.f32 %v3724_v59 }
0x1537   :  { %v3818_v50 = vpop.permute.xlu0 %3817 }
0x1538   :  { %v6351_v11 = vadd.f32 %v3818_v50, %v3810_v52 }
0x153a   :  { %5068 = vtanh.f32 %v6351_v11 }
0x1540   :  { %v5067_v10 = vpop.eup %5066 }
0x1541   :  { %3727 = vrot.lane.b32.xlu1 %v5067_v10, %s5076_s18 }
0x1544   :  { %v5069_v15 = vpop.eup %5068  ;;  %v3734_v54 = vpop.permute.xlu1 %3733 }
0x1545   :  { %594 = vrot.lane.b32.xlu1 %v4150_v12, %s5074_s21  ;;  %3823 = vrot.lane.b32.xlu0 %v5069_v15, %s5076_s18  ;;  %vm3735_vm4 = vcmp.eq.s32.totalorder %v3734_v54, 1 }
0x1546   :  { %v3738_v55 = vsel %vm3735_vm4, %v3724_v59, %v3277_v32 }
0x1548   :  { %v3830_v45 = vpop.permute.xlu0 %3829 }
0x1549   :  { %1058 = vrot.lane.b32.xlu1 %v4152_v1, %s5074_s21  ;;  %603 = vrot.lane.b32.xlu0 %v4151_v21, %s5074_s21  ;;  %vm3831_vm8 = vcmp.eq.s32.totalorder %v3830_v45, 1 }
0x154a   :  { %v3834_v35 = vsel %vm3831_vm8, %v6351_v11, %v6347_v25 }
0x154d   :  { %1522 = vrot.lane.b32.xlu1 %v4154_v26, %s5074_s21  ;;  %1067 = vrot.lane.b32.xlu0 %v4153_v16, %s5074_s21 }
0x1551   :  { %1986 = vrot.lane.b32.xlu1 %v4156_v41, %s5074_s21  ;;  %1531 = vrot.lane.b32.xlu0 %v4155_v34, %s5074_s21 }
0x1555   :  { %2450 = vrot.lane.b32.xlu1 %v4158_v5, %s5074_s21  ;;  %1995 = vrot.lane.b32.xlu0 %v4157_v58, %s5074_s21 }
0x1559   :  { %2914 = vrot.lane.b32.xlu1 %v4160_v22, %s5074_s21  ;;  %2459 = vrot.lane.b32.xlu0 %v4159_v31, %s5074_s21 }
0x155d   :  { %3378 = vrot.lane.b32.xlu1 %v4162_v60, %s5074_s21  ;;  %2923 = vrot.lane.b32.xlu0 %v4161_v9, %s5074_s21 }
0x1561   :  { %3387 = vrot.lane.b32.xlu0 %v4163_v24, %s5074_s21 }
0x1565   :  { %3858 = vrot.lane.b32.xlu0 %v3738_v55, %s5077_s29 }
0x15b3   :  { %v3728_v3 = vpop.permute.xlu1 %3727 }
0x15b4   :  { %v3730_v7 = vmul.f32 %v6328_v44, %v3728_v3 }
0x15b6   :  { %v3736_v14 = vsel %vm3735_vm4, %v3730_v7, 0.0  ;;  %v3737_v8 = vsel %vm3735_vm4, %v3730_v7, %v6304_v0 }
0x15b7   :  { %3853 = vrot.lane.b32.xlu1 %v3737_v8, %s5074_s21  ;;  %v595_v27 = vpop.permute.xlu1 %594  ;;  %v3824_v48 = vpop.permute.xlu0 %3823  ;;  %v4164_v20 = vpack.c.bf16 %v3736_v14, %v3736_v14 }
0x15b8   :  { %598 = vst.msk [vmem:[%s6505_s13] sm:$0xf] %vm597_vm5, %v595_v27  ;;  %v3826_v49 = vmul.f32 %v6332_v43, %v3824_v48 }
0x15ba   :  { %v3832_v29 = vsel %vm3831_vm8, %v3826_v49, 0.0  ;;  %v3833_v0 = vsel %vm3831_vm8, %v3826_v49, %v6317_v46 }
0x15bb   :  { %v4165_v30 = vpack.c.bf16 %v3832_v29, %v3832_v29  ;;  %3839 = vrot.lane.b32.xlu1 %v4164_v20, %s5074_s21  ;;  %v1059_v40 = vpop.permute.xlu1 %1058  ;;  %v604_v28 = vpop.permute.xlu0 %603 }
0x15bc   :  { %3970 = vst.msk [vmem:[%s6505_s13 + $0x4] sm:$0xf] %vm597_vm5, %v1059_v40  ;;  %3942 = vst.msk [vmem:[%s6506_s14 + $0x1c] sm:$0xf] %vm597_vm5, %v604_v28 }
0x15bd   :  { %3848 = vrot.lane.b32.xlu0 %v4165_v30, %s5074_s21 }
0x15bf   :  { %v1523_v36 = vpop.permute.xlu1 %1522  ;;  %3863 = vrot.lane.b32.xlu1 %v3833_v0, %s5074_s21  ;;  %v1068_v39 = vpop.permute.xlu0 %1067 }
0x15c0   :  { %4000 = vst.msk [vmem:[%s6505_s13 + $0x8] sm:$0xf] %vm597_vm5, %v1523_v36  ;;  %3972 = vst.msk [vmem:[%s6506_s14 + $0x18] sm:$0xf] %vm597_vm5, %v1068_v39 }
0x15c1   :  { %3868 = vrot.lane.b32.xlu0 %v3834_v35, %s5077_s29 }
0x15c3   :  { %v1987_v46 = vpop.permute.xlu1 %1986  ;;  %v1532_v44 = vpop.permute.xlu0 %1531 }
0x15c4   :  { %4030 = vst.msk [vmem:[%s6505_s13 + $0xc] sm:$0xf] %vm597_vm5, %v1987_v46  ;;  %4002 = vst.msk [vmem:[%s6506_s14 + $0x14] sm:$0xf] %vm597_vm5, %v1532_v44 }
0x15c7   :  { %v2451_v18 = vpop.permute.xlu1 %2450  ;;  %v1996_v62 = vpop.permute.xlu0 %1995 }
0x15c8   :  { %4060 = vst.msk [vmem:[%s6505_s13 + $0x10] sm:$0xf] %vm597_vm5, %v2451_v18  ;;  %4032 = vst.msk [vmem:[%s6506_s14 + $0x10] sm:$0xf] %vm597_vm5, %v1996_v62 }
0x15cb   :  { %v2915_v43 = vpop.permute.xlu1 %2914  ;;  %v2460_v47 = vpop.permute.xlu0 %2459 }
0x15cc   :  { %4090 = vst.msk [vmem:[%s6505_s13 + $0x14] sm:$0xf] %vm597_vm5, %v2915_v43  ;;  %4062 = vst.msk [vmem:[%s6506_s14 + $0xc] sm:$0xf] %vm597_vm5, %v2460_v47 }
0x15cf   :  { %v3379_v23 = vpop.permute.xlu1 %3378  ;;  %v2924_v32 = vpop.permute.xlu0 %2923 }
0x15d0   :  { %4120 = vst.msk [vmem:[%s6505_s13 + $0x18] sm:$0xf] %vm597_vm5, %v3379_v23  ;;  %4092 = vst.msk [vmem:[%s6506_s14 + $0x8] sm:$0xf] %vm597_vm5, %v2924_v32 }
0x15d3   :  { %v3388_v4 = vpop.permute.xlu0 %3387 }
0x15d4   :  { %4122 = vst.msk [vmem:[%s6506_s14 + $0x4] sm:$0xf] %vm597_vm5, %v3388_v4 }
0x15d7   :  { %v3859_v63 = vpop.permute.xlu0 %3858 }
0x15d8   :  { %3861 = vst.msk [vmem:[#allocation3] sm:$0xff] %vm109_vm0, %v3859_v63 }
0x1629   :  { %v3854_v59 = vpop.permute.xlu1 %3853 }
0x162a   :  { %3856 = vst.msk [vmem:[#allocation2] sm:$0xff] %vm109_vm0, %v3854_v59 }
0x162d   :  { %v3840_v25 = vpop.permute.xlu1 %3839 }
0x162e   :  { %4148 = vst.msk [vmem:[%s6505_s13 + $0x1c] sm:$0xf] %vm597_vm5, %v3840_v25 }
0x162f   :  { %v3849_v52 = vpop.permute.xlu0 %3848 }
0x1630   :  { %3851 = vst.msk [vmem:[%s6506_s14] sm:$0xf] %vm597_vm5, %v3849_v52 }
0x1631   :  { %v3864_v50 = vpop.permute.xlu1 %3863 }
0x1632   :  { %3866 = vst.msk [vmem:[#allocation4] sm:$0xff] %vm109_vm0, %v3864_v50 }
0x1633   :  { %v3869_v11 = vpop.permute.xlu0 %3868 }
0x1634   :  { %3871 = vst.msk [vmem:[#allocation5] sm:$0xff] %vm109_vm0, %v3869_v11 }

</bundles_post_ra>
